<compile_context>
chip_gen: v7x
topology: tpu7x:2x2x1
jax: 0.10.0
libtpu: 0.0.40
codegen_flags: <defaults>
</compile_context>

<pallas_src>
import functools

import jax
import jax.numpy as jnp
from jax.experimental import pallas as pl
from jax.experimental.pallas import tpu as pltpu


def _round_up(x, m):
    return (x + m - 1) // m * m


# --------------------------------------------------------------------------
# Pallas GEMM kernel: bf16 operands, f32 accumulation, K-tiled reduction.
# --------------------------------------------------------------------------
def _matmul_kernel(a_ref, b_ref, o_ref, acc_ref):
    @pl.when(pl.program_id(1) == 0)
    def _():
        acc_ref[...] = jnp.zeros_like(acc_ref)

    acc_ref[...] += jnp.dot(a_ref[...], b_ref[...],
                            preferred_element_type=jnp.float32)

    @pl.when(pl.program_id(1) == pl.num_programs(1) - 1)
    def _():
        o_ref[...] = acc_ref[...]


def _pick_tk(kp):
    """Largest K tile (multiple of 128) that divides kp, capped at 1024."""
    kb = kp // 128
    tkb = max(d for d in range(1, min(kb, 8) + 1) if kb % d == 0)
    return tkb * 128


def pallas_matmul(a_bf16, b_bf16):
    """(M, K) bf16 @ (Kp, N) bf16 -> (M, N) f32.

    b is pre-padded so Kp is a multiple of 128 and Kp >= K; the extra rows of
    b are zero so padding a's K with zeros is exact.  N (= OC) is kept as a
    single resident tile.
    """
    M, K = a_bf16.shape
    Kp, N = b_bf16.shape
    assert Kp % 128 == 0 and Kp >= K

    tm = min(256, _round_up(M, 8))
    Mp = _round_up(M, tm)
    tk = _pick_tk(Kp)
    tn = N                                   # full OC resident

    a_p = a_bf16
    if Mp != M or Kp != K:
        a_p = jnp.pad(a_bf16, ((0, Mp - M), (0, Kp - K)))

    out = pl.pallas_call(
        _matmul_kernel,
        out_shape=jax.ShapeDtypeStruct((Mp, N), jnp.float32),
        grid=(Mp // tm, Kp // tk),
        in_specs=[pl.BlockSpec((tm, tk), lambda i, k: (i, k)),
                  pl.BlockSpec((tk, tn), lambda i, k: (k, 0))],
        out_specs=pl.BlockSpec((tm, tn), lambda i, k: (i, 0)),
        scratch_shapes=[pltpu.VMEM((tm, tn), jnp.float32)],
        compiler_params=pltpu.CompilerParams(
            dimension_semantics=("parallel", "arbitrary"),
            vmem_limit_bytes=32 * 1024 * 1024),
    )(a_p, b_bf16)
    return out[:M] if Mp != M else out


# --------------------------------------------------------------------------
# Tiled two-pass BatchNorm (training-mode batch stats, identity affine) with
# fused residual add + ReLU epilogue.
# --------------------------------------------------------------------------
def _bn_stats_kernel(x_ref, o_ref, acc_ref):
    @pl.when(pl.program_id(0) == 0)
    def _():
        acc_ref[...] = jnp.zeros_like(acc_ref)

    x = x_ref[...]
    s = jnp.sum(x, axis=0, keepdims=True)
    ss = jnp.sum(x * x, axis=0, keepdims=True)
    acc_ref[...] += jnp.concatenate([s, ss], axis=0)

    @pl.when(pl.program_id(0) == pl.num_programs(0) - 1)
    def _():
        o_ref[...] = acc_ref[...]


def _bn_norm_kernel(x_ref, s_ref, o_ref, *, relu):
    y = (x_ref[...] - s_ref[0:1, :]) * s_ref[1:2, :]
    if relu:
        y = jnp.maximum(y, 0.0)
    o_ref[...] = y


def _bn_norm_res_kernel(x_ref, s_ref, r_ref, o_ref, *, relu):
    y = (x_ref[...] - s_ref[0:1, :]) * s_ref[1:2, :] + r_ref[...]
    if relu:
        y = jnp.maximum(y, 0.0)
    o_ref[...] = y


def batchnorm2d(x2d, residual=None, relu=False, eps=1e-5):
    """x2d: (N*H*W, C) float32.  Batch stats over axis 0 (= N,H,W)."""
    M, C = x2d.shape
    # ~512 KiB f32 row tiles, multiple of 8 sublanes.
    tr = min(_round_up(M, 8), max(8, (131072 // C) // 8 * 8))
    Mp = _round_up(M, tr)
    x_p = jnp.pad(x2d, ((0, Mp - M), (0, 0))) if Mp != M else x2d
    grid = (Mp // tr,)

    # Pass 1: per-channel sum / sum-of-squares (padded rows are zero).
    stats = pl.pallas_call(
        _bn_stats_kernel,
        out_shape=jax.ShapeDtypeStruct((2, C), jnp.float32),
        grid=grid,
        in_specs=[pl.BlockSpec((tr, C), lambda i: (i, 0))],
        out_specs=pl.BlockSpec((2, C), lambda i: (0, 0)),
        scratch_shapes=[pltpu.VMEM((2, C), jnp.float32)],
        compiler_params=pltpu.CompilerParams(
            dimension_semantics=("arbitrary",)),
    )(x_p)

    mean = stats[0:1] / M
    var = stats[1:2] / M - mean * mean          # biased variance (PyTorch BN)
    mrs = jnp.concatenate([mean, jax.lax.rsqrt(var + eps)], axis=0)  # (2, C)

    # Pass 2: normalize (+ residual) (+ ReLU), tiled and pipelined.
    if residual is None:
        kern = functools.partial(_bn_norm_kernel, relu=relu)
        args = (x_p, mrs)
        in_specs = [pl.BlockSpec((tr, C), lambda i: (i, 0)),
                    pl.BlockSpec((2, C), lambda i: (0, 0))]
    else:
        r_p = jnp.pad(residual, ((0, Mp - M), (0, 0))) if Mp != M else residual
        kern = functools.partial(_bn_norm_res_kernel, relu=relu)
        args = (x_p, mrs, r_p)
        in_specs = [pl.BlockSpec((tr, C), lambda i: (i, 0)),
                    pl.BlockSpec((2, C), lambda i: (0, 0)),
                    pl.BlockSpec((tr, C), lambda i: (i, 0))]

    out = pl.pallas_call(
        kern,
        out_shape=jax.ShapeDtypeStruct((Mp, C), jnp.float32),
        grid=grid,
        in_specs=in_specs,
        out_specs=pl.BlockSpec((tr, C), lambda i: (i, 0)),
        compiler_params=pltpu.CompilerParams(
            dimension_semantics=("parallel",)),
    )(*args)
    return out[:M] if Mp != M else out


# --------------------------------------------------------------------------
# Conv2d via bf16 im2col + Pallas GEMM (bias=False everywhere in the ref).
# --------------------------------------------------------------------------
def _im2col(x_nhwc, kh, kw, stride, pad):
    N, H, W, C = x_nhwc.shape
    xp = jnp.pad(x_nhwc, ((0, 0), (pad, pad), (pad, pad), (0, 0)))
    OH = (H + 2 * pad - kh) // stride + 1
    OW = (W + 2 * pad - kw) // stride + 1
    patches = []
    for i in range(kh):
        for j in range(kw):
            patches.append(
                xp[:, i:i + stride * OH:stride, j:j + stride * OW:stride, :])
    cols = jnp.concatenate(patches, axis=-1)          # (N,OH,OW, kh*kw*C)
    return cols.reshape(N * OH * OW, kh * kw * C), OH, OW


def conv2d(x_nhwc, w2d_bf16, kh, kw, stride, pad):
    N = x_nhwc.shape[0]
    OC = w2d_bf16.shape[1]
    cols, OH, OW = _im2col(x_nhwc.astype(jnp.bfloat16), kh, kw, stride, pad)
    out2d = pallas_matmul(cols, w2d_bf16)              # (N*OH*OW, OC) f32
    return out2d, (N, OH, OW, OC)


def maxpool2d(x_nhwc, k, stride, pad):
    # TODO(synk): small window-reduce; kept as lax.reduce_window (padded
    # positions use -inf so they never win the max, matching PyTorch).
    return jax.lax.reduce_window(
        x_nhwc, -jnp.inf, jax.lax.max,
        window_dimensions=(1, k, k, 1),
        window_strides=(1, stride, stride, 1),
        padding=((0, 0), (pad, pad), (pad, pad), (0, 0)))


# --------------------------------------------------------------------------
# ResNet model (resnet18: blocks = (2, 2, 2, 2))
# --------------------------------------------------------------------------
def residual_block(x_nhwc, bp, stride):
    N, H, W, C = x_nhwc.shape
    if 'down' in bp:
        d2d, _ = conv2d(x_nhwc, bp['down'], 1, 1, stride, 0)
        identity = batchnorm2d(d2d, relu=False)
    else:
        identity = x_nhwc.reshape(N * H * W, C)
    y2d, shp = conv2d(x_nhwc, bp['w1'], 3, 3, stride, 1)
    y = batchnorm2d(y2d, relu=True).reshape(shp)
    y2d2, shp2 = conv2d(y, bp['w2'], 3, 3, 1, 1)
    out = batchnorm2d(y2d2, residual=identity, relu=True)
    return out.reshape(shp2)


@jax.jit
def resnet_forward(params, x_nchw):
    x = jnp.transpose(x_nchw, (0, 2, 3, 1)).astype(jnp.float32)   # NCHW->NHWC
    # stem: conv7x7 s2 p3 -> BN -> ReLU -> maxpool3x3 s2 p1
    y2d, shp = conv2d(x, params['stem_w2d'], 7, 7, 2, 3)
    y = batchnorm2d(y2d, relu=True).reshape(shp)
    y = maxpool2d(y, 3, 2, 1)
    # stages
    stage_strides = (1, 2, 2, 2)
    for stage, s0 in zip(params['stages'], stage_strides):
        for b, bp in enumerate(stage):
            y = residual_block(y, bp, s0 if b == 0 else 1)
    # classifier: AdaptiveAvgPool2d((1,1)) -> Flatten -> Linear (tiny: plain jnp)
    pooled = jnp.mean(y, axis=(1, 2))                              # (N, 512)
    return pooled @ params['fc_w'].T + params['fc_b'][None, :]


def init_params(key, blocks=(2, 2, 2, 2), num_classes=10):
    keys = iter(jax.random.split(key, 64))

    def conv_w2d(oc, ic, k):
        # kaiming_normal_(nonlinearity='relu'): std = sqrt(2 / fan_in)
        fan_in = ic * k * k
        std = jnp.sqrt(2.0 / fan_in)
        w = jax.random.normal(next(keys), (oc, ic, k, k), jnp.float32) * std
        # (OC,IC,KH,KW) -> (KH,KW,IC,OC) -> (KH*KW*IC, OC): matches im2col order
        w2d = jnp.transpose(w, (2, 3, 1, 0)).reshape(k * k * ic, oc)
        kp = _round_up(k * k * ic, 128)                 # 128-aligned K panel
        w2d = jnp.pad(w2d, ((0, kp - k * k * ic), (0, 0)))
        return w2d.astype(jnp.bfloat16)                 # bf16 once at init

    params = {'stem_w2d': conv_w2d(64, 3, 7)}
    stages, in_c = [], 64
    for out_c, stride, n in zip((64, 128, 256, 512), (1, 2, 2, 2), blocks):
        blist = []
        for b in range(n):
            s = stride if b == 0 else 1
            ic = in_c if b == 0 else out_c
            bp = {'w1': conv_w2d(out_c, ic, 3), 'w2': conv_w2d(out_c, out_c, 3)}
            if s != 1 or ic != out_c:
                bp['down'] = conv_w2d(out_c, ic, 1)
            blist.append(bp)
        stages.append(blist)
        in_c = out_c
    params['stages'] = stages
    params['fc_w'] = (jax.random.normal(next(keys), (num_classes, 512),
                                        jnp.float32) * jnp.sqrt(2.0 / 512))
    params['fc_b'] = jnp.zeros((num_classes,), jnp.float32)
    return params


if __name__ == "__main__":
    key = jax.random.PRNGKey(0)
    pkey, xkey = jax.random.split(key)
    params = init_params(pkey, blocks=(2, 2, 2, 2), num_classes=10)  # resnet18
    # Small input consistent with the module: NCHW, 3 input channels.
    x = jax.random.normal(xkey, (2, 3, 32, 32), jnp.float32)
    logits = resnet_forward(params, x)
    logits = jax.block_until_ready(logits)
    assert logits.shape == (2, 10)
    assert bool(jnp.all(jnp.isfinite(logits)))
    print("KERNEL_OK")
</pallas_src>

<mosaic_0001>
module attributes {stable_mosaic.version = 11 : i64} {
  func.func @_matmul_kernel(%arg0: i32, %arg1: i32, %arg2: memref<256x256xbf16, #tpu.memory_space<vmem>>, %arg3: memref<256x64xbf16, #tpu.memory_space<vmem>>, %arg4: memref<256x64xf32, #tpu.memory_space<vmem>>, %arg5: memref<256x64xf32, #tpu.memory_space<vmem>>) attributes {dimension_semantics = [#tpu.dimension_semantics<parallel>, #tpu.dimension_semantics<arbitrary>], iteration_bounds = array<i64: 2, 1>, scalar_prefetch = 0 : i64, scratch_operands = 1 : i64, tpu.core_type = #tpu.core_type<tc>, window_params = [{transform_indices = @transform_0, window_bounds = array<i64: 256, 256>}, {transform_indices = @transform_1, window_bounds = array<i64: 256, 64>}, {transform_indices = @transform_2, window_bounds = array<i64: 256, 64>}]} {
    %c0_i32 = arith.constant 0 : i32
    %0 = arith.cmpi eq, %arg1, %c0_i32 : i32
    %1 = arith.extui %0 : i1 to i32
    %c0_i32_0 = arith.constant 0 : i32
    %2 = arith.cmpi ne, %1, %c0_i32_0 : i32
    scf.if %2 {
      %cst_10 = arith.constant 0.000000e+00 : f32
      %12 = vector.broadcast %cst_10 : f32 to vector<256x64xf32>
      %c0_11 = arith.constant 0 : index
      %c0_12 = arith.constant 0 : index
      %13 = vector.load %arg5[%c0_11, %c0_12] : memref<256x64xf32, #tpu.memory_space<vmem>>, vector<256x64xf32>
      tpu.vector_store %arg5[%c0_11, %c0_12], %12 {strides = array<i32>} : memref<256x64xf32, #tpu.memory_space<vmem>>, vector<256x64xf32>,
    } else {
    }
    %c0 = arith.constant 0 : index
    %c0_1 = arith.constant 0 : index
    %3 = vector.load %arg5[%c0, %c0_1] : memref<256x64xf32, #tpu.memory_space<vmem>>, vector<256x64xf32>
    %c0_2 = arith.constant 0 : index
    %c0_3 = arith.constant 0 : index
    %4 = vector.load %arg2[%c0_2, %c0_3] : memref<256x256xbf16, #tpu.memory_space<vmem>>, vector<256x256xbf16>
    %c0_4 = arith.constant 0 : index
    %c0_5 = arith.constant 0 : index
    %5 = vector.load %arg3[%c0_4, %c0_5] : memref<256x64xbf16, #tpu.memory_space<vmem>>, vector<256x64xbf16>
    %cst = arith.constant dense<0.000000e+00> : vector<256x64xf32>
    %6 = tpu.matmul %4, %5, %cst {dimension_numbers = #tpu.dot_dimension_numbers<[1], [0], [0], [1], [0, 0, 1, 1], [], []>} : vector<256x256xbf16>, vector<256x64xbf16>, vector<256x64xf32> -> vector<256x64xf32>
    %7 = arith.addf %3, %6 : vector<256x64xf32>
    %c0_6 = arith.constant 0 : index
    %c0_7 = arith.constant 0 : index
    %8 = vector.load %arg5[%c0_6, %c0_7] : memref<256x64xf32, #tpu.memory_space<vmem>>, vector<256x64xf32>
    tpu.vector_store %arg5[%c0_6, %c0_7], %7 {strides = array<i32>} : memref<256x64xf32, #tpu.memory_space<vmem>>, vector<256x64xf32>,
    %c0_i32_8 = arith.constant 0 : i32
    %9 = arith.cmpi eq, %arg1, %c0_i32_8 : i32
    %10 = arith.extui %9 : i1 to i32
    %c0_i32_9 = arith.constant 0 : i32
    %11 = arith.cmpi ne, %10, %c0_i32_9 : i32
    scf.if %11 {
      %c0_10 = arith.constant 0 : index
      %c0_11 = arith.constant 0 : index
      %12 = vector.load %arg5[%c0_10, %c0_11] : memref<256x64xf32, #tpu.memory_space<vmem>>, vector<256x64xf32>
      %c0_12 = arith.constant 0 : index
      %c0_13 = arith.constant 0 : index
      %13 = vector.load %arg4[%c0_12, %c0_13] : memref<256x64xf32, #tpu.memory_space<vmem>>, vector<256x64xf32>
      tpu.vector_store %arg4[%c0_12, %c0_13], %12 {strides = array<i32>} : memref<256x64xf32, #tpu.memory_space<vmem>>, vector<256x64xf32>,
    } else {
    }
    return
  }
  func.func @transform_0(%arg0: i32, %arg1: i32) -> (i32, i32) {
    %c0_i32 = arith.constant 0 : i32
    return %arg0, %arg1 : i32, i32
  }
  func.func @transform_1(%arg0: i32, %arg1: i32) -> (i32, i32) {
    %c0_i32 = arith.constant 0 : i32
    %c0_i32_0 = arith.constant 0 : i32
    return %arg1, %c0_i32 : i32, i32
  }
  func.func @transform_2(%arg0: i32, %arg1: i32) -> (i32, i32) {
    %c0_i32 = arith.constant 0 : i32
    %c0_i32_0 = arith.constant 0 : i32
    return %arg0, %c0_i32 : i32, i32
  }
}

module attributes {stable_mosaic.version = 11 : i64} {
  func.func @_bn_norm_kernel(%arg0: i32, %arg1: memref<512x64xf32, #tpu.memory_space<vmem>>, %arg2: memref<2x64xf32, #tpu.memory_space<vmem>>, %arg3: memref<512x64xf32, #tpu.memory_space<vmem>>) attributes {dimension_semantics = [#tpu.dimension_semantics<parallel>], iteration_bounds = array<i64: 1>, scalar_prefetch = 0 : i64, scratch_operands = 0 : i64, tpu.core_type = #tpu.core_type<tc>, window_params = [{transform_indices = @transform_0, window_bounds = array<i64: 512, 64>}, {pipeline_mode = #tpu.pipeline_mode<synchronous>, transform_indices = @transform_1, window_bounds = array<i64: 2, 64>}, {transform_indices = @transform_2, window_bounds = array<i64: 512, 64>}]} {
    %c0 = arith.constant 0 : index
    %c0_0 = arith.constant 0 : index
    %0 = vector.load %arg1[%c0, %c0_0] : memref<512x64xf32, #tpu.memory_space<vmem>>, vector<512x64xf32>
    %c0_1 = arith.constant 0 : index
    %c0_2 = arith.constant 0 : index
    %1 = vector.load %arg2[%c0_1, %c0_2] : memref<2x64xf32, #tpu.memory_space<vmem>>, vector<1x64xf32>
    %2 = vector.broadcast %1 : vector<1x64xf32> to vector<512x64xf32>
    %3 = arith.subf %0, %2 : vector<512x64xf32>
    %c1 = arith.constant 1 : index
    %c0_3 = arith.constant 0 : index
    %4 = vector.load %arg2[%c1, %c0_3] : memref<2x64xf32, #tpu.memory_space<vmem>>, vector<1x64xf32>
    %5 = vector.broadcast %4 : vector<1x64xf32> to vector<512x64xf32>
    %6 = arith.mulf %3, %5 : vector<512x64xf32>
    %cst = arith.constant 0.000000e+00 : f32
    %7 = vector.broadcast %cst : f32 to vector<512x64xf32>
    %8 = arith.maximumf %6, %7 : vector<512x64xf32>
    %c0_4 = arith.constant 0 : index
    %c0_5 = arith.constant 0 : index
    %9 = vector.load %arg3[%c0_4, %c0_5] : memref<512x64xf32, #tpu.memory_space<vmem>>, vector<512x64xf32>
    tpu.vector_store %arg3[%c0_4, %c0_5], %8 {strides = array<i32>} : memref<512x64xf32, #tpu.memory_space<vmem>>, vector<512x64xf32>,
    return
  }
  func.func @transform_0(%arg0: i32) -> (i32, i32) {
    %c0_i32 = arith.constant 0 : i32
    %c0_i32_0 = arith.constant 0 : i32
    return %arg0, %c0_i32 : i32, i32
  }
  func.func @transform_1(%arg0: i32) -> (i32, i32) {
    %c0_i32 = arith.constant 0 : i32
    %c0_i32_0 = arith.constant 0 : i32
    %c0_i32_1 = arith.constant 0 : i32
    return %c0_i32, %c0_i32_0 : i32, i32
  }
  func.func @transform_2(%arg0: i32) -> (i32, i32) {
    %c0_i32 = arith.constant 0 : i32
    %c0_i32_0 = arith.constant 0 : i32
    return %arg0, %c0_i32 : i32, i32
  }
}

module attributes {stable_mosaic.version = 11 : i64} {
  func.func @_bn_stats_kernel(%arg0: i32, %arg1: memref<512x64xf32, #tpu.memory_space<vmem>>, %arg2: memref<2x64xf32, #tpu.memory_space<vmem>>, %arg3: memref<2x64xf32, #tpu.memory_space<vmem>>) attributes {dimension_semantics = [#tpu.dimension_semantics<arbitrary>], iteration_bounds = array<i64: 1>, scalar_prefetch = 0 : i64, scratch_operands = 1 : i64, tpu.core_type = #tpu.core_type<tc>, window_params = [{transform_indices = @transform_0, window_bounds = array<i64: 512, 64>}, {pipeline_mode = #tpu.pipeline_mode<synchronous>, transform_indices = @transform_1, window_bounds = array<i64: 2, 64>}]} {
    %c0_i32 = arith.constant 0 : i32
    %0 = arith.cmpi eq, %arg0, %c0_i32 : i32
    %1 = arith.extui %0 : i1 to i32
    %c0_i32_0 = arith.constant 0 : i32
    %2 = arith.cmpi ne, %1, %c0_i32_0 : i32
    scf.if %2 {
      %cst_9 = arith.constant 0.000000e+00 : f32
      %16 = vector.broadcast %cst_9 : f32 to vector<2x64xf32>
      %c0_10 = arith.constant 0 : index
      %c0_11 = arith.constant 0 : index
      %17 = vector.load %arg3[%c0_10, %c0_11] : memref<2x64xf32, #tpu.memory_space<vmem>>, vector<2x64xf32>
      tpu.vector_store %arg3[%c0_10, %c0_11], %16 {strides = array<i32>} : memref<2x64xf32, #tpu.memory_space<vmem>>, vector<2x64xf32>,
    } else {
    }
    %c0 = arith.constant 0 : index
    %c0_1 = arith.constant 0 : index
    %3 = vector.load %arg1[%c0, %c0_1] : memref<512x64xf32, #tpu.memory_space<vmem>>, vector<512x64xf32>
    %cst = arith.constant dense<0.000000e+00> : vector<64xf32>
    %4 = vector.multi_reduction <add>, %3, %cst [0] : vector<512x64xf32> to vector<64xf32>
    %5 = vector.shape_cast %4 : vector<64xf32> to vector<1x64xf32>
    %6 = arith.mulf %3, %3 : vector<512x64xf32>
    %cst_2 = arith.constant dense<0.000000e+00> : vector<64xf32>
    %7 = vector.multi_reduction <add>, %6, %cst_2 [0] : vector<512x64xf32> to vector<64xf32>
    %8 = vector.shape_cast %7 : vector<64xf32> to vector<1x64xf32>
    %c0_3 = arith.constant 0 : index
    %c0_4 = arith.constant 0 : index
    %9 = vector.load %arg3[%c0_3, %c0_4] : memref<2x64xf32, #tpu.memory_space<vmem>>, vector<2x64xf32>
    %10 = tpu.concatenate %5, %8 in 0 : vector<1x64xf32>, vector<1x64xf32> -> vector<2x64xf32>
    %11 = arith.addf %9, %10 : vector<2x64xf32>
    %c0_5 = arith.constant 0 : index
    %c0_6 = arith.constant 0 : index
    %12 = vector.load %arg3[%c0_5, %c0_6] : memref<2x64xf32, #tpu.memory_space<vmem>>, vector<2x64xf32>
    tpu.vector_store %arg3[%c0_5, %c0_6], %11 {strides = array<i32>} : memref<2x64xf32, #tpu.memory_space<vmem>>, vector<2x64xf32>,
    %c0_i32_7 = arith.constant 0 : i32
    %13 = arith.cmpi eq, %arg0, %c0_i32_7 : i32
    %14 = arith.extui %13 : i1 to i32
    %c0_i32_8 = arith.constant 0 : i32
    %15 = arith.cmpi ne, %14, %c0_i32_8 : i32
    scf.if %15 {
      %c0_9 = arith.constant 0 : index
      %c0_10 = arith.constant 0 : index
      %16 = vector.load %arg3[%c0_9, %c0_10] : memref<2x64xf32, #tpu.memory_space<vmem>>, vector<2x64xf32>
      %c0_11 = arith.constant 0 : index
      %c0_12 = arith.constant 0 : index
      %17 = vector.load %arg2[%c0_11, %c0_12] : memref<2x64xf32, #tpu.memory_space<vmem>>, vector<2x64xf32>
      tpu.vector_store %arg2[%c0_11, %c0_12], %16 {strides = array<i32>} : memref<2x64xf32, #tpu.memory_space<vmem>>, vector<2x64xf32>,
    } else {
    }
    return
  }
  func.func @transform_0(%arg0: i32) -> (i32, i32) {
    %c0_i32 = arith.constant 0 : i32
    %c0_i32_0 = arith.constant 0 : i32
    return %arg0, %c0_i32 : i32, i32
  }
  func.func @transform_1(%arg0: i32) -> (i32, i32) {
    %c0_i32 = arith.constant 0 : i32
    %c0_i32_0 = arith.constant 0 : i32
    %c0_i32_1 = arith.constant 0 : i32
    return %c0_i32, %c0_i32_0 : i32, i32
  }
}

module attributes {stable_mosaic.version = 11 : i64} {
  func.func @_matmul_kernel(%arg0: i32, %arg1: i32, %arg2: memref<128x640xbf16, #tpu.memory_space<vmem>>, %arg3: memref<640x64xbf16, #tpu.memory_space<vmem>>, %arg4: memref<128x64xf32, #tpu.memory_space<vmem>>, %arg5: memref<128x64xf32, #tpu.memory_space<vmem>>) attributes {dimension_semantics = [#tpu.dimension_semantics<parallel>, #tpu.dimension_semantics<arbitrary>], iteration_bounds = array<i64: 1, 1>, scalar_prefetch = 0 : i64, scratch_operands = 1 : i64, tpu.core_type = #tpu.core_type<tc>, window_params = [{transform_indices = @transform_0, window_bounds = array<i64: 128, 640>}, {transform_indices = @transform_1, window_bounds = array<i64: 640, 64>}, {transform_indices = @transform_2, window_bounds = array<i64: 128, 64>}]} {
    %c0_i32 = arith.constant 0 : i32
    %0 = arith.cmpi eq, %arg1, %c0_i32 : i32
    %1 = arith.extui %0 : i1 to i32
    %c0_i32_0 = arith.constant 0 : i32
    %2 = arith.cmpi ne, %1, %c0_i32_0 : i32
    scf.if %2 {
      %cst_10 = arith.constant 0.000000e+00 : f32
      %12 = vector.broadcast %cst_10 : f32 to vector<128x64xf32>
      %c0_11 = arith.constant 0 : index
      %c0_12 = arith.constant 0 : index
      %13 = vector.load %arg5[%c0_11, %c0_12] : memref<128x64xf32, #tpu.memory_space<vmem>>, vector<128x64xf32>
      tpu.vector_store %arg5[%c0_11, %c0_12], %12 {strides = array<i32>} : memref<128x64xf32, #tpu.memory_space<vmem>>, vector<128x64xf32>,
    } else {
    }
    %c0 = arith.constant 0 : index
    %c0_1 = arith.constant 0 : index
    %3 = vector.load %arg5[%c0, %c0_1] : memref<128x64xf32, #tpu.memory_space<vmem>>, vector<128x64xf32>
    %c0_2 = arith.constant 0 : index
    %c0_3 = arith.constant 0 : index
    %4 = vector.load %arg2[%c0_2, %c0_3] : memref<128x640xbf16, #tpu.memory_space<vmem>>, vector<128x640xbf16>
    %c0_4 = arith.constant 0 : index
    %c0_5 = arith.constant 0 : index
    %5 = vector.load %arg3[%c0_4, %c0_5] : memref<640x64xbf16, #tpu.memory_space<vmem>>, vector<640x64xbf16>
    %cst = arith.constant dense<0.000000e+00> : vector<128x64xf32>
    %6 = tpu.matmul %4, %5, %cst {dimension_numbers = #tpu.dot_dimension_numbers<[1], [0], [0], [1], [0, 0, 1, 1], [], []>} : vector<128x640xbf16>, vector<640x64xbf16>, vector<128x64xf32> -> vector<128x64xf32>
    %7 = arith.addf %3, %6 : vector<128x64xf32>
    %c0_6 = arith.constant 0 : index
    %c0_7 = arith.constant 0 : index
    %8 = vector.load %arg5[%c0_6, %c0_7] : memref<128x64xf32, #tpu.memory_space<vmem>>, vector<128x64xf32>
    tpu.vector_store %arg5[%c0_6, %c0_7], %7 {strides = array<i32>} : memref<128x64xf32, #tpu.memory_space<vmem>>, vector<128x64xf32>,
    %c0_i32_8 = arith.constant 0 : i32
    %9 = arith.cmpi eq, %arg1, %c0_i32_8 : i32
    %10 = arith.extui %9 : i1 to i32
    %c0_i32_9 = arith.constant 0 : i32
    %11 = arith.cmpi ne, %10, %c0_i32_9 : i32
    scf.if %11 {
      %c0_10 = arith.constant 0 : index
      %c0_11 = arith.constant 0 : index
      %12 = vector.load %arg5[%c0_10, %c0_11] : memref<128x64xf32, #tpu.memory_space<vmem>>, vector<128x64xf32>
      %c0_12 = arith.constant 0 : index
      %c0_13 = arith.constant 0 : index
      %13 = vector.load %arg4[%c0_12, %c0_13] : memref<128x64xf32, #tpu.memory_space<vmem>>, vector<128x64xf32>
      tpu.vector_store %arg4[%c0_12, %c0_13], %12 {strides = array<i32>} : memref<128x64xf32, #tpu.memory_space<vmem>>, vector<128x64xf32>,
    } else {
    }
    return
  }
  func.func @transform_0(%arg0: i32, %arg1: i32) -> (i32, i32) {
    %c0_i32 = arith.constant 0 : i32
    return %arg0, %arg1 : i32, i32
  }
  func.func @transform_1(%arg0: i32, %arg1: i32) -> (i32, i32) {
    %c0_i32 = arith.constant 0 : i32
    %c0_i32_0 = arith.constant 0 : i32
    return %arg1, %c0_i32 : i32, i32
  }
  func.func @transform_2(%arg0: i32, %arg1: i32) -> (i32, i32) {
    %c0_i32 = arith.constant 0 : i32
    %c0_i32_0 = arith.constant 0 : i32
    return %arg0, %c0_i32 : i32, i32
  }
}

module attributes {stable_mosaic.version = 11 : i64} {
  func.func @_bn_stats_kernel(%arg0: i32, %arg1: memref<128x64xf32, #tpu.memory_space<vmem>>, %arg2: memref<2x64xf32, #tpu.memory_space<vmem>>, %arg3: memref<2x64xf32, #tpu.memory_space<vmem>>) attributes {dimension_semantics = [#tpu.dimension_semantics<arbitrary>], iteration_bounds = array<i64: 1>, scalar_prefetch = 0 : i64, scratch_operands = 1 : i64, tpu.core_type = #tpu.core_type<tc>, window_params = [{transform_indices = @transform_0, window_bounds = array<i64: 128, 64>}, {pipeline_mode = #tpu.pipeline_mode<synchronous>, transform_indices = @transform_1, window_bounds = array<i64: 2, 64>}]} {
    %c0_i32 = arith.constant 0 : i32
    %0 = arith.cmpi eq, %arg0, %c0_i32 : i32
    %1 = arith.extui %0 : i1 to i32
    %c0_i32_0 = arith.constant 0 : i32
    %2 = arith.cmpi ne, %1, %c0_i32_0 : i32
    scf.if %2 {
      %cst_9 = arith.constant 0.000000e+00 : f32
      %16 = vector.broadcast %cst_9 : f32 to vector<2x64xf32>
      %c0_10 = arith.constant 0 : index
      %c0_11 = arith.constant 0 : index
      %17 = vector.load %arg3[%c0_10, %c0_11] : memref<2x64xf32, #tpu.memory_space<vmem>>, vector<2x64xf32>
      tpu.vector_store %arg3[%c0_10, %c0_11], %16 {strides = array<i32>} : memref<2x64xf32, #tpu.memory_space<vmem>>, vector<2x64xf32>,
    } else {
    }
    %c0 = arith.constant 0 : index
    %c0_1 = arith.constant 0 : index
    %3 = vector.load %arg1[%c0, %c0_1] : memref<128x64xf32, #tpu.memory_space<vmem>>, vector<128x64xf32>
    %cst = arith.constant dense<0.000000e+00> : vector<64xf32>
    %4 = vector.multi_reduction <add>, %3, %cst [0] : vector<128x64xf32> to vector<64xf32>
    %5 = vector.shape_cast %4 : vector<64xf32> to vector<1x64xf32>
    %6 = arith.mulf %3, %3 : vector<128x64xf32>
    %cst_2 = arith.constant dense<0.000000e+00> : vector<64xf32>
    %7 = vector.multi_reduction <add>, %6, %cst_2 [0] : vector<128x64xf32> to vector<64xf32>
    %8 = vector.shape_cast %7 : vector<64xf32> to vector<1x64xf32>
    %c0_3 = arith.constant 0 : index
    %c0_4 = arith.constant 0 : index
    %9 = vector.load %arg3[%c0_3, %c0_4] : memref<2x64xf32, #tpu.memory_space<vmem>>, vector<2x64xf32>
    %10 = tpu.concatenate %5, %8 in 0 : vector<1x64xf32>, vector<1x64xf32> -> vector<2x64xf32>
    %11 = arith.addf %9, %10 : vector<2x64xf32>
    %c0_5 = arith.constant 0 : index
    %c0_6 = arith.constant 0 : index
    %12 = vector.load %arg3[%c0_5, %c0_6] : memref<2x64xf32, #tpu.memory_space<vmem>>, vector<2x64xf32>
    tpu.vector_store %arg3[%c0_5, %c0_6], %11 {strides = array<i32>} : memref<2x64xf32, #tpu.memory_space<vmem>>, vector<2x64xf32>,
    %c0_i32_7 = arith.constant 0 : i32
    %13 = arith.cmpi eq, %arg0, %c0_i32_7 : i32
    %14 = arith.extui %13 : i1 to i32
    %c0_i32_8 = arith.constant 0 : i32
    %15 = arith.cmpi ne, %14, %c0_i32_8 : i32
    scf.if %15 {
      %c0_9 = arith.constant 0 : index
      %c0_10 = arith.constant 0 : index
      %16 = vector.load %arg3[%c0_9, %c0_10] : memref<2x64xf32, #tpu.memory_space<vmem>>, vector<2x64xf32>
      %c0_11 = arith.constant 0 : index
      %c0_12 = arith.constant 0 : index
      %17 = vector.load %arg2[%c0_11, %c0_12] : memref<2x64xf32, #tpu.memory_space<vmem>>, vector<2x64xf32>
      tpu.vector_store %arg2[%c0_11, %c0_12], %16 {strides = array<i32>} : memref<2x64xf32, #tpu.memory_space<vmem>>, vector<2x64xf32>,
    } else {
    }
    return
  }
  func.func @transform_0(%arg0: i32) -> (i32, i32) {
    %c0_i32 = arith.constant 0 : i32
    %c0_i32_0 = arith.constant 0 : i32
    return %arg0, %c0_i32 : i32, i32
  }
  func.func @transform_1(%arg0: i32) -> (i32, i32) {
    %c0_i32 = arith.constant 0 : i32
    %c0_i32_0 = arith.constant 0 : i32
    %c0_i32_1 = arith.constant 0 : i32
    return %c0_i32, %c0_i32_0 : i32, i32
  }
}

module attributes {stable_mosaic.version = 11 : i64} {
  func.func @_bn_norm_kernel(%arg0: i32, %arg1: memref<128x64xf32, #tpu.memory_space<vmem>>, %arg2: memref<2x64xf32, #tpu.memory_space<vmem>>, %arg3: memref<128x64xf32, #tpu.memory_space<vmem>>) attributes {dimension_semantics = [#tpu.dimension_semantics<parallel>], iteration_bounds = array<i64: 1>, scalar_prefetch = 0 : i64, scratch_operands = 0 : i64, tpu.core_type = #tpu.core_type<tc>, window_params = [{transform_indices = @transform_0, window_bounds = array<i64: 128, 64>}, {pipeline_mode = #tpu.pipeline_mode<synchronous>, transform_indices = @transform_1, window_bounds = array<i64: 2, 64>}, {transform_indices = @transform_2, window_bounds = array<i64: 128, 64>}]} {
    %c0 = arith.constant 0 : index
    %c0_0 = arith.constant 0 : index
    %0 = vector.load %arg1[%c0, %c0_0] : memref<128x64xf32, #tpu.memory_space<vmem>>, vector<128x64xf32>
    %c0_1 = arith.constant 0 : index
    %c0_2 = arith.constant 0 : index
    %1 = vector.load %arg2[%c0_1, %c0_2] : memref<2x64xf32, #tpu.memory_space<vmem>>, vector<1x64xf32>
    %2 = vector.broadcast %1 : vector<1x64xf32> to vector<128x64xf32>
    %3 = arith.subf %0, %2 : vector<128x64xf32>
    %c1 = arith.constant 1 : index
    %c0_3 = arith.constant 0 : index
    %4 = vector.load %arg2[%c1, %c0_3] : memref<2x64xf32, #tpu.memory_space<vmem>>, vector<1x64xf32>
    %5 = vector.broadcast %4 : vector<1x64xf32> to vector<128x64xf32>
    %6 = arith.mulf %3, %5 : vector<128x64xf32>
    %cst = arith.constant 0.000000e+00 : f32
    %7 = vector.broadcast %cst : f32 to vector<128x64xf32>
    %8 = arith.maximumf %6, %7 : vector<128x64xf32>
    %c0_4 = arith.constant 0 : index
    %c0_5 = arith.constant 0 : index
    %9 = vector.load %arg3[%c0_4, %c0_5] : memref<128x64xf32, #tpu.memory_space<vmem>>, vector<128x64xf32>
    tpu.vector_store %arg3[%c0_4, %c0_5], %8 {strides = array<i32>} : memref<128x64xf32, #tpu.memory_space<vmem>>, vector<128x64xf32>,
    return
  }
  func.func @transform_0(%arg0: i32) -> (i32, i32) {
    %c0_i32 = arith.constant 0 : i32
    %c0_i32_0 = arith.constant 0 : i32
    return %arg0, %c0_i32 : i32, i32
  }
  func.func @transform_1(%arg0: i32) -> (i32, i32) {
    %c0_i32 = arith.constant 0 : i32
    %c0_i32_0 = arith.constant 0 : i32
    %c0_i32_1 = arith.constant 0 : i32
    return %c0_i32, %c0_i32_0 : i32, i32
  }
  func.func @transform_2(%arg0: i32) -> (i32, i32) {
    %c0_i32 = arith.constant 0 : i32
    %c0_i32_0 = arith.constant 0 : i32
    return %arg0, %c0_i32 : i32, i32
  }
}

module attributes {stable_mosaic.version = 11 : i64} {
  func.func @_bn_norm_res_kernel(%arg0: i32, %arg1: memref<128x64xf32, #tpu.memory_space<vmem>>, %arg2: memref<2x64xf32, #tpu.memory_space<vmem>>, %arg3: memref<128x64xf32, #tpu.memory_space<vmem>>, %arg4: memref<128x64xf32, #tpu.memory_space<vmem>>) attributes {dimension_semantics = [#tpu.dimension_semantics<parallel>], iteration_bounds = array<i64: 1>, scalar_prefetch = 0 : i64, scratch_operands = 0 : i64, tpu.core_type = #tpu.core_type<tc>, window_params = [{transform_indices = @transform_0, window_bounds = array<i64: 128, 64>}, {pipeline_mode = #tpu.pipeline_mode<synchronous>, transform_indices = @transform_1, window_bounds = array<i64: 2, 64>}, {transform_indices = @transform_2, window_bounds = array<i64: 128, 64>}, {transform_indices = @transform_3, window_bounds = array<i64: 128, 64>}]} {
    %c0 = arith.constant 0 : index
    %c0_0 = arith.constant 0 : index
    %0 = vector.load %arg1[%c0, %c0_0] : memref<128x64xf32, #tpu.memory_space<vmem>>, vector<128x64xf32>
    %c0_1 = arith.constant 0 : index
    %c0_2 = arith.constant 0 : index
    %1 = vector.load %arg2[%c0_1, %c0_2] : memref<2x64xf32, #tpu.memory_space<vmem>>, vector<1x64xf32>
    %2 = vector.broadcast %1 : vector<1x64xf32> to vector<128x64xf32>
    %3 = arith.subf %0, %2 : vector<128x64xf32>
    %c1 = arith.constant 1 : index
    %c0_3 = arith.constant 0 : index
    %4 = vector.load %arg2[%c1, %c0_3] : memref<2x64xf32, #tpu.memory_space<vmem>>, vector<1x64xf32>
    %5 = vector.broadcast %4 : vector<1x64xf32> to vector<128x64xf32>
    %6 = arith.mulf %3, %5 : vector<128x64xf32>
    %c0_4 = arith.constant 0 : index
    %c0_5 = arith.constant 0 : index
    %7 = vector.load %arg3[%c0_4, %c0_5] : memref<128x64xf32, #tpu.memory_space<vmem>>, vector<128x64xf32>
    %8 = arith.addf %6, %7 : vector<128x64xf32>
    %cst = arith.constant 0.000000e+00 : f32
    %9 = vector.broadcast %cst : f32 to vector<128x64xf32>
    %10 = arith.maximumf %8, %9 : vector<128x64xf32>
    %c0_6 = arith.constant 0 : index
    %c0_7 = arith.constant 0 : index
    %11 = vector.load %arg4[%c0_6, %c0_7] : memref<128x64xf32, #tpu.memory_space<vmem>>, vector<128x64xf32>
    tpu.vector_store %arg4[%c0_6, %c0_7], %10 {strides = array<i32>} : memref<128x64xf32, #tpu.memory_space<vmem>>, vector<128x64xf32>,
    return
  }
  func.func @transform_0(%arg0: i32) -> (i32, i32) {
    %c0_i32 = arith.constant 0 : i32
    %c0_i32_0 = arith.constant 0 : i32
    return %arg0, %c0_i32 : i32, i32
  }
  func.func @transform_1(%arg0: i32) -> (i32, i32) {
    %c0_i32 = arith.constant 0 : i32
    %c0_i32_0 = arith.constant 0 : i32
    %c0_i32_1 = arith.constant 0 : i32
    return %c0_i32, %c0_i32_0 : i32, i32
  }
  func.func @transform_2(%arg0: i32) -> (i32, i32) {
    %c0_i32 = arith.constant 0 : i32
    %c0_i32_0 = arith.constant 0 : i32
    return %arg0, %c0_i32 : i32, i32
  }
  func.func @transform_3(%arg0: i32) -> (i32, i32) {
    %c0_i32 = arith.constant 0 : i32
    %c0_i32_0 = arith.constant 0 : i32
    return %arg0, %c0_i32 : i32, i32
  }
}

module attributes {stable_mosaic.version = 11 : i64} {
  func.func @_matmul_kernel(%arg0: i32, %arg1: i32, %arg2: memref<32x128xbf16, #tpu.memory_space<vmem>>, %arg3: memref<128x128xbf16, #tpu.memory_space<vmem>>, %arg4: memref<32x128xf32, #tpu.memory_space<vmem>>, %arg5: memref<32x128xf32, #tpu.memory_space<vmem>>) attributes {dimension_semantics = [#tpu.dimension_semantics<parallel>, #tpu.dimension_semantics<arbitrary>], iteration_bounds = array<i64: 1, 1>, scalar_prefetch = 0 : i64, scratch_operands = 1 : i64, tpu.core_type = #tpu.core_type<tc>, window_params = [{transform_indices = @transform_0, window_bounds = array<i64: 32, 128>}, {transform_indices = @transform_1, window_bounds = array<i64: 128, 128>}, {transform_indices = @transform_2, window_bounds = array<i64: 32, 128>}]} {
    %c0_i32 = arith.constant 0 : i32
    %0 = arith.cmpi eq, %arg1, %c0_i32 : i32
    %1 = arith.extui %0 : i1 to i32
    %c0_i32_0 = arith.constant 0 : i32
    %2 = arith.cmpi ne, %1, %c0_i32_0 : i32
    scf.if %2 {
      %cst_10 = arith.constant 0.000000e+00 : f32
      %12 = vector.broadcast %cst_10 : f32 to vector<32x128xf32>
      %c0_11 = arith.constant 0 : index
      %c0_12 = arith.constant 0 : index
      %13 = vector.load %arg5[%c0_11, %c0_12] : memref<32x128xf32, #tpu.memory_space<vmem>>, vector<32x128xf32>
      tpu.vector_store %arg5[%c0_11, %c0_12], %12 {strides = array<i32>} : memref<32x128xf32, #tpu.memory_space<vmem>>, vector<32x128xf32>,
    } else {
    }
    %c0 = arith.constant 0 : index
    %c0_1 = arith.constant 0 : index
    %3 = vector.load %arg5[%c0, %c0_1] : memref<32x128xf32, #tpu.memory_space<vmem>>, vector<32x128xf32>
    %c0_2 = arith.constant 0 : index
    %c0_3 = arith.constant 0 : index
    %4 = vector.load %arg2[%c0_2, %c0_3] : memref<32x128xbf16, #tpu.memory_space<vmem>>, vector<32x128xbf16>
    %c0_4 = arith.constant 0 : index
    %c0_5 = arith.constant 0 : index
    %5 = vector.load %arg3[%c0_4, %c0_5] : memref<128x128xbf16, #tpu.memory_space<vmem>>, vector<128x128xbf16>
    %cst = arith.constant dense<0.000000e+00> : vector<32x128xf32>
    %6 = tpu.matmul %4, %5, %cst {dimension_numbers = #tpu.dot_dimension_numbers<[1], [0], [0], [1], [0, 0, 1, 1], [], []>} : vector<32x128xbf16>, vector<128x128xbf16>, vector<32x128xf32> -> vector<32x128xf32>
    %7 = arith.addf %3, %6 : vector<32x128xf32>
    %c0_6 = arith.constant 0 : index
    %c0_7 = arith.constant 0 : index
    %8 = vector.load %arg5[%c0_6, %c0_7] : memref<32x128xf32, #tpu.memory_space<vmem>>, vector<32x128xf32>
    tpu.vector_store %arg5[%c0_6, %c0_7], %7 {strides = array<i32>} : memref<32x128xf32, #tpu.memory_space<vmem>>, vector<32x128xf32>,
    %c0_i32_8 = arith.constant 0 : i32
    %9 = arith.cmpi eq, %arg1, %c0_i32_8 : i32
    %10 = arith.extui %9 : i1 to i32
    %c0_i32_9 = arith.constant 0 : i32
    %11 = arith.cmpi ne, %10, %c0_i32_9 : i32
    scf.if %11 {
      %c0_10 = arith.constant 0 : index
      %c0_11 = arith.constant 0 : index
      %12 = vector.load %arg5[%c0_10, %c0_11] : memref<32x128xf32, #tpu.memory_space<vmem>>, vector<32x128xf32>
      %c0_12 = arith.constant 0 : index
      %c0_13 = arith.constant 0 : index
      %13 = vector.load %arg4[%c0_12, %c0_13] : memref<32x128xf32, #tpu.memory_space<vmem>>, vector<32x128xf32>
      tpu.vector_store %arg4[%c0_12, %c0_13], %12 {strides = array<i32>} : memref<32x128xf32, #tpu.memory_space<vmem>>, vector<32x128xf32>,
    } else {
    }
    return
  }
  func.func @transform_0(%arg0: i32, %arg1: i32) -> (i32, i32) {
    %c0_i32 = arith.constant 0 : i32
    return %arg0, %arg1 : i32, i32
  }
  func.func @transform_1(%arg0: i32, %arg1: i32) -> (i32, i32) {
    %c0_i32 = arith.constant 0 : i32
    %c0_i32_0 = arith.constant 0 : i32
    return %arg1, %c0_i32 : i32, i32
  }
  func.func @transform_2(%arg0: i32, %arg1: i32) -> (i32, i32) {
    %c0_i32 = arith.constant 0 : i32
    %c0_i32_0 = arith.constant 0 : i32
    return %arg0, %c0_i32 : i32, i32
  }
}

module attributes {stable_mosaic.version = 11 : i64} {
  func.func @_bn_stats_kernel(%arg0: i32, %arg1: memref<32x128xf32, #tpu.memory_space<vmem>>, %arg2: memref<2x128xf32, #tpu.memory_space<vmem>>, %arg3: memref<2x128xf32, #tpu.memory_space<vmem>>) attributes {dimension_semantics = [#tpu.dimension_semantics<arbitrary>], iteration_bounds = array<i64: 1>, scalar_prefetch = 0 : i64, scratch_operands = 1 : i64, tpu.core_type = #tpu.core_type<tc>, window_params = [{transform_indices = @transform_0, window_bounds = array<i64: 32, 128>}, {pipeline_mode = #tpu.pipeline_mode<synchronous>, transform_indices = @transform_1, window_bounds = array<i64: 2, 128>}]} {
    %c0_i32 = arith.constant 0 : i32
    %0 = arith.cmpi eq, %arg0, %c0_i32 : i32
    %1 = arith.extui %0 : i1 to i32
    %c0_i32_0 = arith.constant 0 : i32
    %2 = arith.cmpi ne, %1, %c0_i32_0 : i32
    scf.if %2 {
      %cst_9 = arith.constant 0.000000e+00 : f32
      %16 = vector.broadcast %cst_9 : f32 to vector<2x128xf32>
      %c0_10 = arith.constant 0 : index
      %c0_11 = arith.constant 0 : index
      %17 = vector.load %arg3[%c0_10, %c0_11] : memref<2x128xf32, #tpu.memory_space<vmem>>, vector<2x128xf32>
      tpu.vector_store %arg3[%c0_10, %c0_11], %16 {strides = array<i32>} : memref<2x128xf32, #tpu.memory_space<vmem>>, vector<2x128xf32>,
    } else {
    }
    %c0 = arith.constant 0 : index
    %c0_1 = arith.constant 0 : index
    %3 = vector.load %arg1[%c0, %c0_1] : memref<32x128xf32, #tpu.memory_space<vmem>>, vector<32x128xf32>
    %cst = arith.constant dense<0.000000e+00> : vector<128xf32>
    %4 = vector.multi_reduction <add>, %3, %cst [0] : vector<32x128xf32> to vector<128xf32>
    %5 = vector.shape_cast %4 : vector<128xf32> to vector<1x128xf32>
    %6 = arith.mulf %3, %3 : vector<32x128xf32>
    %cst_2 = arith.constant dense<0.000000e+00> : vector<128xf32>
    %7 = vector.multi_reduction <add>, %6, %cst_2 [0] : vector<32x128xf32> to vector<128xf32>
    %8 = vector.shape_cast %7 : vector<128xf32> to vector<1x128xf32>
    %c0_3 = arith.constant 0 : index
    %c0_4 = arith.constant 0 : index
    %9 = vector.load %arg3[%c0_3, %c0_4] : memref<2x128xf32, #tpu.memory_space<vmem>>, vector<2x128xf32>
    %10 = tpu.concatenate %5, %8 in 0 : vector<1x128xf32>, vector<1x128xf32> -> vector<2x128xf32>
    %11 = arith.addf %9, %10 : vector<2x128xf32>
    %c0_5 = arith.constant 0 : index
    %c0_6 = arith.constant 0 : index
    %12 = vector.load %arg3[%c0_5, %c0_6] : memref<2x128xf32, #tpu.memory_space<vmem>>, vector<2x128xf32>
    tpu.vector_store %arg3[%c0_5, %c0_6], %11 {strides = array<i32>} : memref<2x128xf32, #tpu.memory_space<vmem>>, vector<2x128xf32>,
    %c0_i32_7 = arith.constant 0 : i32
    %13 = arith.cmpi eq, %arg0, %c0_i32_7 : i32
    %14 = arith.extui %13 : i1 to i32
    %c0_i32_8 = arith.constant 0 : i32
    %15 = arith.cmpi ne, %14, %c0_i32_8 : i32
    scf.if %15 {
      %c0_9 = arith.constant 0 : index
      %c0_10 = arith.constant 0 : index
      %16 = vector.load %arg3[%c0_9, %c0_10] : memref<2x128xf32, #tpu.memory_space<vmem>>, vector<2x128xf32>
      %c0_11 = arith.constant 0 : index
      %c0_12 = arith.constant 0 : index
      %17 = vector.load %arg2[%c0_11, %c0_12] : memref<2x128xf32, #tpu.memory_space<vmem>>, vector<2x128xf32>
      tpu.vector_store %arg2[%c0_11, %c0_12], %16 {strides = array<i32>} : memref<2x128xf32, #tpu.memory_space<vmem>>, vector<2x128xf32>,
    } else {
    }
    return
  }
  func.func @transform_0(%arg0: i32) -> (i32, i32) {
    %c0_i32 = arith.constant 0 : i32
    %c0_i32_0 = arith.constant 0 : i32
    return %arg0, %c0_i32 : i32, i32
  }
  func.func @transform_1(%arg0: i32) -> (i32, i32) {
    %c0_i32 = arith.constant 0 : i32
    %c0_i32_0 = arith.constant 0 : i32
    %c0_i32_1 = arith.constant 0 : i32
    return %c0_i32, %c0_i32_0 : i32, i32
  }
}

module attributes {stable_mosaic.version = 11 : i64} {
  func.func @_bn_norm_kernel(%arg0: i32, %arg1: memref<32x128xf32, #tpu.memory_space<vmem>>, %arg2: memref<2x128xf32, #tpu.memory_space<vmem>>, %arg3: memref<32x128xf32, #tpu.memory_space<vmem>>) attributes {dimension_semantics = [#tpu.dimension_semantics<parallel>], iteration_bounds = array<i64: 1>, scalar_prefetch = 0 : i64, scratch_operands = 0 : i64, tpu.core_type = #tpu.core_type<tc>, window_params = [{transform_indices = @transform_0, window_bounds = array<i64: 32, 128>}, {pipeline_mode = #tpu.pipeline_mode<synchronous>, transform_indices = @transform_1, window_bounds = array<i64: 2, 128>}, {transform_indices = @transform_2, window_bounds = array<i64: 32, 128>}]} {
    %c0 = arith.constant 0 : index
    %c0_0 = arith.constant 0 : index
    %0 = vector.load %arg1[%c0, %c0_0] : memref<32x128xf32, #tpu.memory_space<vmem>>, vector<32x128xf32>
    %c0_1 = arith.constant 0 : index
    %c0_2 = arith.constant 0 : index
    %1 = vector.load %arg2[%c0_1, %c0_2] : memref<2x128xf32, #tpu.memory_space<vmem>>, vector<1x128xf32>
    %2 = vector.broadcast %1 : vector<1x128xf32> to vector<32x128xf32>
    %3 = arith.subf %0, %2 : vector<32x128xf32>
    %c1 = arith.constant 1 : index
    %c0_3 = arith.constant 0 : index
    %4 = vector.load %arg2[%c1, %c0_3] : memref<2x128xf32, #tpu.memory_space<vmem>>, vector<1x128xf32>
    %5 = vector.broadcast %4 : vector<1x128xf32> to vector<32x128xf32>
    %6 = arith.mulf %3, %5 : vector<32x128xf32>
    %c0_4 = arith.constant 0 : index
    %c0_5 = arith.constant 0 : index
    %7 = vector.load %arg3[%c0_4, %c0_5] : memref<32x128xf32, #tpu.memory_space<vmem>>, vector<32x128xf32>
    tpu.vector_store %arg3[%c0_4, %c0_5], %6 {strides = array<i32>} : memref<32x128xf32, #tpu.memory_space<vmem>>, vector<32x128xf32>,
    return
  }
  func.func @transform_0(%arg0: i32) -> (i32, i32) {
    %c0_i32 = arith.constant 0 : i32
    %c0_i32_0 = arith.constant 0 : i32
    return %arg0, %c0_i32 : i32, i32
  }
  func.func @transform_1(%arg0: i32) -> (i32, i32) {
    %c0_i32 = arith.constant 0 : i32
    %c0_i32_0 = arith.constant 0 : i32
    %c0_i32_1 = arith.constant 0 : i32
    return %c0_i32, %c0_i32_0 : i32, i32
  }
  func.func @transform_2(%arg0: i32) -> (i32, i32) {
    %c0_i32 = arith.constant 0 : i32
    %c0_i32_0 = arith.constant 0 : i32
    return %arg0, %c0_i32 : i32, i32
  }
}

module attributes {stable_mosaic.version = 11 : i64} {
  func.func @_bn_norm_kernel(%arg0: i32, %arg1: memref<32x128xf32, #tpu.memory_space<vmem>>, %arg2: memref<2x128xf32, #tpu.memory_space<vmem>>, %arg3: memref<32x128xf32, #tpu.memory_space<vmem>>) attributes {dimension_semantics = [#tpu.dimension_semantics<parallel>], iteration_bounds = array<i64: 1>, scalar_prefetch = 0 : i64, scratch_operands = 0 : i64, tpu.core_type = #tpu.core_type<tc>, window_params = [{transform_indices = @transform_0, window_bounds = array<i64: 32, 128>}, {pipeline_mode = #tpu.pipeline_mode<synchronous>, transform_indices = @transform_1, window_bounds = array<i64: 2, 128>}, {transform_indices = @transform_2, window_bounds = array<i64: 32, 128>}]} {
    %c0 = arith.constant 0 : index
    %c0_0 = arith.constant 0 : index
    %0 = vector.load %arg1[%c0, %c0_0] : memref<32x128xf32, #tpu.memory_space<vmem>>, vector<32x128xf32>
    %c0_1 = arith.constant 0 : index
    %c0_2 = arith.constant 0 : index
    %1 = vector.load %arg2[%c0_1, %c0_2] : memref<2x128xf32, #tpu.memory_space<vmem>>, vector<1x128xf32>
    %2 = vector.broadcast %1 : vector<1x128xf32> to vector<32x128xf32>
    %3 = arith.subf %0, %2 : vector<32x128xf32>
    %c1 = arith.constant 1 : index
    %c0_3 = arith.constant 0 : index
    %4 = vector.load %arg2[%c1, %c0_3] : memref<2x128xf32, #tpu.memory_space<vmem>>, vector<1x128xf32>
    %5 = vector.broadcast %4 : vector<1x128xf32> to vector<32x128xf32>
    %6 = arith.mulf %3, %5 : vector<32x128xf32>
    %cst = arith.constant 0.000000e+00 : f32
    %7 = vector.broadcast %cst : f32 to vector<32x128xf32>
    %8 = arith.maximumf %6, %7 : vector<32x128xf32>
    %c0_4 = arith.constant 0 : index
    %c0_5 = arith.constant 0 : index
    %9 = vector.load %arg3[%c0_4, %c0_5] : memref<32x128xf32, #tpu.memory_space<vmem>>, vector<32x128xf32>
    tpu.vector_store %arg3[%c0_4, %c0_5], %8 {strides = array<i32>} : memref<32x128xf32, #tpu.memory_space<vmem>>, vector<32x128xf32>,
    return
  }
  func.func @transform_0(%arg0: i32) -> (i32, i32) {
    %c0_i32 = arith.constant 0 : i32
    %c0_i32_0 = arith.constant 0 : i32
    return %arg0, %c0_i32 : i32, i32
  }
  func.func @transform_1(%arg0: i32) -> (i32, i32) {
    %c0_i32 = arith.constant 0 : i32
    %c0_i32_0 = arith.constant 0 : i32
    %c0_i32_1 = arith.constant 0 : i32
    return %c0_i32, %c0_i32_0 : i32, i32
  }
  func.func @transform_2(%arg0: i32) -> (i32, i32) {
    %c0_i32 = arith.constant 0 : i32
    %c0_i32_0 = arith.constant 0 : i32
    return %arg0, %c0_i32 : i32, i32
  }
}

module attributes {stable_mosaic.version = 11 : i64} {
  func.func @_matmul_kernel(%arg0: i32, %arg1: i32, %arg2: memref<32x640xbf16, #tpu.memory_space<vmem>>, %arg3: memref<640x128xbf16, #tpu.memory_space<vmem>>, %arg4: memref<32x128xf32, #tpu.memory_space<vmem>>, %arg5: memref<32x128xf32, #tpu.memory_space<vmem>>) attributes {dimension_semantics = [#tpu.dimension_semantics<parallel>, #tpu.dimension_semantics<arbitrary>], iteration_bounds = array<i64: 1, 1>, scalar_prefetch = 0 : i64, scratch_operands = 1 : i64, tpu.core_type = #tpu.core_type<tc>, window_params = [{transform_indices = @transform_0, window_bounds = array<i64: 32, 640>}, {transform_indices = @transform_1, window_bounds = array<i64: 640, 128>}, {transform_indices = @transform_2, window_bounds = array<i64: 32, 128>}]} {
    %c0_i32 = arith.constant 0 : i32
    %0 = arith.cmpi eq, %arg1, %c0_i32 : i32
    %1 = arith.extui %0 : i1 to i32
    %c0_i32_0 = arith.constant 0 : i32
    %2 = arith.cmpi ne, %1, %c0_i32_0 : i32
    scf.if %2 {
      %cst_10 = arith.constant 0.000000e+00 : f32
      %12 = vector.broadcast %cst_10 : f32 to vector<32x128xf32>
      %c0_11 = arith.constant 0 : index
      %c0_12 = arith.constant 0 : index
      %13 = vector.load %arg5[%c0_11, %c0_12] : memref<32x128xf32, #tpu.memory_space<vmem>>, vector<32x128xf32>
      tpu.vector_store %arg5[%c0_11, %c0_12], %12 {strides = array<i32>} : memref<32x128xf32, #tpu.memory_space<vmem>>, vector<32x128xf32>,
    } else {
    }
    %c0 = arith.constant 0 : index
    %c0_1 = arith.constant 0 : index
    %3 = vector.load %arg5[%c0, %c0_1] : memref<32x128xf32, #tpu.memory_space<vmem>>, vector<32x128xf32>
    %c0_2 = arith.constant 0 : index
    %c0_3 = arith.constant 0 : index
    %4 = vector.load %arg2[%c0_2, %c0_3] : memref<32x640xbf16, #tpu.memory_space<vmem>>, vector<32x640xbf16>
    %c0_4 = arith.constant 0 : index
    %c0_5 = arith.constant 0 : index
    %5 = vector.load %arg3[%c0_4, %c0_5] : memref<640x128xbf16, #tpu.memory_space<vmem>>, vector<640x128xbf16>
    %cst = arith.constant dense<0.000000e+00> : vector<32x128xf32>
    %6 = tpu.matmul %4, %5, %cst {dimension_numbers = #tpu.dot_dimension_numbers<[1], [0], [0], [1], [0, 0, 1, 1], [], []>} : vector<32x640xbf16>, vector<640x128xbf16>, vector<32x128xf32> -> vector<32x128xf32>
    %7 = arith.addf %3, %6 : vector<32x128xf32>
    %c0_6 = arith.constant 0 : index
    %c0_7 = arith.constant 0 : index
    %8 = vector.load %arg5[%c0_6, %c0_7] : memref<32x128xf32, #tpu.memory_space<vmem>>, vector<32x128xf32>
    tpu.vector_store %arg5[%c0_6, %c0_7], %7 {strides = array<i32>} : memref<32x128xf32, #tpu.memory_space<vmem>>, vector<32x128xf32>,
    %c0_i32_8 = arith.constant 0 : i32
    %9 = arith.cmpi eq, %arg1, %c0_i32_8 : i32
    %10 = arith.extui %9 : i1 to i32
    %c0_i32_9 = arith.constant 0 : i32
    %11 = arith.cmpi ne, %10, %c0_i32_9 : i32
    scf.if %11 {
      %c0_10 = arith.constant 0 : index
      %c0_11 = arith.constant 0 : index
      %12 = vector.load %arg5[%c0_10, %c0_11] : memref<32x128xf32, #tpu.memory_space<vmem>>, vector<32x128xf32>
      %c0_12 = arith.constant 0 : index
      %c0_13 = arith.constant 0 : index
      %13 = vector.load %arg4[%c0_12, %c0_13] : memref<32x128xf32, #tpu.memory_space<vmem>>, vector<32x128xf32>
      tpu.vector_store %arg4[%c0_12, %c0_13], %12 {strides = array<i32>} : memref<32x128xf32, #tpu.memory_space<vmem>>, vector<32x128xf32>,
    } else {
    }
    return
  }
  func.func @transform_0(%arg0: i32, %arg1: i32) -> (i32, i32) {
    %c0_i32 = arith.constant 0 : i32
    return %arg0, %arg1 : i32, i32
  }
  func.func @transform_1(%arg0: i32, %arg1: i32) -> (i32, i32) {
    %c0_i32 = arith.constant 0 : i32
    %c0_i32_0 = arith.constant 0 : i32
    return %arg1, %c0_i32 : i32, i32
  }
  func.func @transform_2(%arg0: i32, %arg1: i32) -> (i32, i32) {
    %c0_i32 = arith.constant 0 : i32
    %c0_i32_0 = arith.constant 0 : i32
    return %arg0, %c0_i32 : i32, i32
  }
}

module attributes {stable_mosaic.version = 11 : i64} {
  func.func @_matmul_kernel(%arg0: i32, %arg1: i32, %arg2: memref<32x384xbf16, #tpu.memory_space<vmem>>, %arg3: memref<384x128xbf16, #tpu.memory_space<vmem>>, %arg4: memref<32x128xf32, #tpu.memory_space<vmem>>, %arg5: memref<32x128xf32, #tpu.memory_space<vmem>>) attributes {dimension_semantics = [#tpu.dimension_semantics<parallel>, #tpu.dimension_semantics<arbitrary>], iteration_bounds = array<i64: 1, 3>, scalar_prefetch = 0 : i64, scratch_operands = 1 : i64, tpu.core_type = #tpu.core_type<tc>, window_params = [{transform_indices = @transform_0, window_bounds = array<i64: 32, 384>}, {transform_indices = @transform_1, window_bounds = array<i64: 384, 128>}, {transform_indices = @transform_2, window_bounds = array<i64: 32, 128>}]} {
    %c0_i32 = arith.constant 0 : i32
    %0 = arith.cmpi eq, %arg1, %c0_i32 : i32
    %1 = arith.extui %0 : i1 to i32
    %c0_i32_0 = arith.constant 0 : i32
    %2 = arith.cmpi ne, %1, %c0_i32_0 : i32
    scf.if %2 {
      %cst_9 = arith.constant 0.000000e+00 : f32
      %12 = vector.broadcast %cst_9 : f32 to vector<32x128xf32>
      %c0_10 = arith.constant 0 : index
      %c0_11 = arith.constant 0 : index
      %13 = vector.load %arg5[%c0_10, %c0_11] : memref<32x128xf32, #tpu.memory_space<vmem>>, vector<32x128xf32>
      tpu.vector_store %arg5[%c0_10, %c0_11], %12 {strides = array<i32>} : memref<32x128xf32, #tpu.memory_space<vmem>>, vector<32x128xf32>,
    } else {
    }
    %c0 = arith.constant 0 : index
    %c0_1 = arith.constant 0 : index
    %3 = vector.load %arg5[%c0, %c0_1] : memref<32x128xf32, #tpu.memory_space<vmem>>, vector<32x128xf32>
    %c0_2 = arith.constant 0 : index
    %c0_3 = arith.constant 0 : index
    %4 = vector.load %arg2[%c0_2, %c0_3] : memref<32x384xbf16, #tpu.memory_space<vmem>>, vector<32x384xbf16>
    %c0_4 = arith.constant 0 : index
    %c0_5 = arith.constant 0 : index
    %5 = vector.load %arg3[%c0_4, %c0_5] : memref<384x128xbf16, #tpu.memory_space<vmem>>, vector<384x128xbf16>
    %cst = arith.constant dense<0.000000e+00> : vector<32x128xf32>
    %6 = tpu.matmul %4, %5, %cst {dimension_numbers = #tpu.dot_dimension_numbers<[1], [0], [0], [1], [0, 0, 1, 1], [], []>} : vector<32x384xbf16>, vector<384x128xbf16>, vector<32x128xf32> -> vector<32x128xf32>
    %7 = arith.addf %3, %6 : vector<32x128xf32>
    %c0_6 = arith.constant 0 : index
    %c0_7 = arith.constant 0 : index
    %8 = vector.load %arg5[%c0_6, %c0_7] : memref<32x128xf32, #tpu.memory_space<vmem>>, vector<32x128xf32>
    tpu.vector_store %arg5[%c0_6, %c0_7], %7 {strides = array<i32>} : memref<32x128xf32, #tpu.memory_space<vmem>>, vector<32x128xf32>,
    %c2_i32 = arith.constant 2 : i32
    %9 = arith.cmpi eq, %arg1, %c2_i32 : i32
    %10 = arith.extui %9 : i1 to i32
    %c0_i32_8 = arith.constant 0 : i32
    %11 = arith.cmpi ne, %10, %c0_i32_8 : i32
    scf.if %11 {
      %c0_9 = arith.constant 0 : index
      %c0_10 = arith.constant 0 : index
      %12 = vector.load %arg5[%c0_9, %c0_10] : memref<32x128xf32, #tpu.memory_space<vmem>>, vector<32x128xf32>
      %c0_11 = arith.constant 0 : index
      %c0_12 = arith.constant 0 : index
      %13 = vector.load %arg4[%c0_11, %c0_12] : memref<32x128xf32, #tpu.memory_space<vmem>>, vector<32x128xf32>
      tpu.vector_store %arg4[%c0_11, %c0_12], %12 {strides = array<i32>} : memref<32x128xf32, #tpu.memory_space<vmem>>, vector<32x128xf32>,
    } else {
    }
    return
  }
  func.func @transform_0(%arg0: i32, %arg1: i32) -> (i32, i32) {
    %c0_i32 = arith.constant 0 : i32
    return %arg0, %arg1 : i32, i32
  }
  func.func @transform_1(%arg0: i32, %arg1: i32) -> (i32, i32) {
    %c0_i32 = arith.constant 0 : i32
    %c0_i32_0 = arith.constant 0 : i32
    return %arg1, %c0_i32 : i32, i32
  }
  func.func @transform_2(%arg0: i32, %arg1: i32) -> (i32, i32) {
    %c0_i32 = arith.constant 0 : i32
    %c0_i32_0 = arith.constant 0 : i32
    return %arg0, %c0_i32 : i32, i32
  }
}

module attributes {stable_mosaic.version = 11 : i64} {
  func.func @_bn_norm_res_kernel(%arg0: i32, %arg1: memref<32x128xf32, #tpu.memory_space<vmem>>, %arg2: memref<2x128xf32, #tpu.memory_space<vmem>>, %arg3: memref<32x128xf32, #tpu.memory_space<vmem>>, %arg4: memref<32x128xf32, #tpu.memory_space<vmem>>) attributes {dimension_semantics = [#tpu.dimension_semantics<parallel>], iteration_bounds = array<i64: 1>, scalar_prefetch = 0 : i64, scratch_operands = 0 : i64, tpu.core_type = #tpu.core_type<tc>, window_params = [{transform_indices = @transform_0, window_bounds = array<i64: 32, 128>}, {pipeline_mode = #tpu.pipeline_mode<synchronous>, transform_indices = @transform_1, window_bounds = array<i64: 2, 128>}, {transform_indices = @transform_2, window_bounds = array<i64: 32, 128>}, {transform_indices = @transform_3, window_bounds = array<i64: 32, 128>}]} {
    %c0 = arith.constant 0 : index
    %c0_0 = arith.constant 0 : index
    %0 = vector.load %arg1[%c0, %c0_0] : memref<32x128xf32, #tpu.memory_space<vmem>>, vector<32x128xf32>
    %c0_1 = arith.constant 0 : index
    %c0_2 = arith.constant 0 : index
    %1 = vector.load %arg2[%c0_1, %c0_2] : memref<2x128xf32, #tpu.memory_space<vmem>>, vector<1x128xf32>
    %2 = vector.broadcast %1 : vector<1x128xf32> to vector<32x128xf32>
    %3 = arith.subf %0, %2 : vector<32x128xf32>
    %c1 = arith.constant 1 : index
    %c0_3 = arith.constant 0 : index
    %4 = vector.load %arg2[%c1, %c0_3] : memref<2x128xf32, #tpu.memory_space<vmem>>, vector<1x128xf32>
    %5 = vector.broadcast %4 : vector<1x128xf32> to vector<32x128xf32>
    %6 = arith.mulf %3, %5 : vector<32x128xf32>
    %c0_4 = arith.constant 0 : index
    %c0_5 = arith.constant 0 : index
    %7 = vector.load %arg3[%c0_4, %c0_5] : memref<32x128xf32, #tpu.memory_space<vmem>>, vector<32x128xf32>
    %8 = arith.addf %6, %7 : vector<32x128xf32>
    %cst = arith.constant 0.000000e+00 : f32
    %9 = vector.broadcast %cst : f32 to vector<32x128xf32>
    %10 = arith.maximumf %8, %9 : vector<32x128xf32>
    %c0_6 = arith.constant 0 : index
    %c0_7 = arith.constant 0 : index
    %11 = vector.load %arg4[%c0_6, %c0_7] : memref<32x128xf32, #tpu.memory_space<vmem>>, vector<32x128xf32>
    tpu.vector_store %arg4[%c0_6, %c0_7], %10 {strides = array<i32>} : memref<32x128xf32, #tpu.memory_space<vmem>>, vector<32x128xf32>,
    return
  }
  func.func @transform_0(%arg0: i32) -> (i32, i32) {
    %c0_i32 = arith.constant 0 : i32
    %c0_i32_0 = arith.constant 0 : i32
    return %arg0, %c0_i32 : i32, i32
  }
  func.func @transform_1(%arg0: i32) -> (i32, i32) {
    %c0_i32 = arith.constant 0 : i32
    %c0_i32_0 = arith.constant 0 : i32
    %c0_i32_1 = arith.constant 0 : i32
    return %c0_i32, %c0_i32_0 : i32, i32
  }
  func.func @transform_2(%arg0: i32) -> (i32, i32) {
    %c0_i32 = arith.constant 0 : i32
    %c0_i32_0 = arith.constant 0 : i32
    return %arg0, %c0_i32 : i32, i32
  }
  func.func @transform_3(%arg0: i32) -> (i32, i32) {
    %c0_i32 = arith.constant 0 : i32
    %c0_i32_0 = arith.constant 0 : i32
    return %arg0, %c0_i32 : i32, i32
  }
}

module attributes {stable_mosaic.version = 11 : i64} {
  func.func @_matmul_kernel(%arg0: i32, %arg1: i32, %arg2: memref<8x128xbf16, #tpu.memory_space<vmem>>, %arg3: memref<128x256xbf16, #tpu.memory_space<vmem>>, %arg4: memref<8x256xf32, #tpu.memory_space<vmem>>, %arg5: memref<8x256xf32, #tpu.memory_space<vmem>>) attributes {dimension_semantics = [#tpu.dimension_semantics<parallel>, #tpu.dimension_semantics<arbitrary>], iteration_bounds = array<i64: 1, 1>, scalar_prefetch = 0 : i64, scratch_operands = 1 : i64, tpu.core_type = #tpu.core_type<tc>, window_params = [{transform_indices = @transform_0, window_bounds = array<i64: 8, 128>}, {transform_indices = @transform_1, window_bounds = array<i64: 128, 256>}, {transform_indices = @transform_2, window_bounds = array<i64: 8, 256>}]} {
    %c0_i32 = arith.constant 0 : i32
    %0 = arith.cmpi eq, %arg1, %c0_i32 : i32
    %1 = arith.extui %0 : i1 to i32
    %c0_i32_0 = arith.constant 0 : i32
    %2 = arith.cmpi ne, %1, %c0_i32_0 : i32
    scf.if %2 {
      %cst_10 = arith.constant 0.000000e+00 : f32
      %12 = vector.broadcast %cst_10 : f32 to vector<8x256xf32>
      %c0_11 = arith.constant 0 : index
      %c0_12 = arith.constant 0 : index
      %13 = vector.load %arg5[%c0_11, %c0_12] : memref<8x256xf32, #tpu.memory_space<vmem>>, vector<8x256xf32>
      tpu.vector_store %arg5[%c0_11, %c0_12], %12 {strides = array<i32>} : memref<8x256xf32, #tpu.memory_space<vmem>>, vector<8x256xf32>,
    } else {
    }
    %c0 = arith.constant 0 : index
    %c0_1 = arith.constant 0 : index
    %3 = vector.load %arg5[%c0, %c0_1] : memref<8x256xf32, #tpu.memory_space<vmem>>, vector<8x256xf32>
    %c0_2 = arith.constant 0 : index
    %c0_3 = arith.constant 0 : index
    %4 = vector.load %arg2[%c0_2, %c0_3] : memref<8x128xbf16, #tpu.memory_space<vmem>>, vector<8x128xbf16>
    %c0_4 = arith.constant 0 : index
    %c0_5 = arith.constant 0 : index
    %5 = vector.load %arg3[%c0_4, %c0_5] : memref<128x256xbf16, #tpu.memory_space<vmem>>, vector<128x256xbf16>
    %cst = arith.constant dense<0.000000e+00> : vector<8x256xf32>
    %6 = tpu.matmul %4, %5, %cst {dimension_numbers = #tpu.dot_dimension_numbers<[1], [0], [0], [1], [0, 0, 1, 1], [], []>} : vector<8x128xbf16>, vector<128x256xbf16>, vector<8x256xf32> -> vector<8x256xf32>
    %7 = arith.addf %3, %6 : vector<8x256xf32>
    %c0_6 = arith.constant 0 : index
    %c0_7 = arith.constant 0 : index
    %8 = vector.load %arg5[%c0_6, %c0_7] : memref<8x256xf32, #tpu.memory_space<vmem>>, vector<8x256xf32>
    tpu.vector_store %arg5[%c0_6, %c0_7], %7 {strides = array<i32>} : memref<8x256xf32, #tpu.memory_space<vmem>>, vector<8x256xf32>,
    %c0_i32_8 = arith.constant 0 : i32
    %9 = arith.cmpi eq, %arg1, %c0_i32_8 : i32
    %10 = arith.extui %9 : i1 to i32
    %c0_i32_9 = arith.constant 0 : i32
    %11 = arith.cmpi ne, %10, %c0_i32_9 : i32
    scf.if %11 {
      %c0_10 = arith.constant 0 : index
      %c0_11 = arith.constant 0 : index
      %12 = vector.load %arg5[%c0_10, %c0_11] : memref<8x256xf32, #tpu.memory_space<vmem>>, vector<8x256xf32>
      %c0_12 = arith.constant 0 : index
      %c0_13 = arith.constant 0 : index
      %13 = vector.load %arg4[%c0_12, %c0_13] : memref<8x256xf32, #tpu.memory_space<vmem>>, vector<8x256xf32>
      tpu.vector_store %arg4[%c0_12, %c0_13], %12 {strides = array<i32>} : memref<8x256xf32, #tpu.memory_space<vmem>>, vector<8x256xf32>,
    } else {
    }
    return
  }
  func.func @transform_0(%arg0: i32, %arg1: i32) -> (i32, i32) {
    %c0_i32 = arith.constant 0 : i32
    return %arg0, %arg1 : i32, i32
  }
  func.func @transform_1(%arg0: i32, %arg1: i32) -> (i32, i32) {
    %c0_i32 = arith.constant 0 : i32
    %c0_i32_0 = arith.constant 0 : i32
    return %arg1, %c0_i32 : i32, i32
  }
  func.func @transform_2(%arg0: i32, %arg1: i32) -> (i32, i32) {
    %c0_i32 = arith.constant 0 : i32
    %c0_i32_0 = arith.constant 0 : i32
    return %arg0, %c0_i32 : i32, i32
  }
}

module attributes {stable_mosaic.version = 11 : i64} {
  func.func @_bn_stats_kernel(%arg0: i32, %arg1: memref<8x256xf32, #tpu.memory_space<vmem>>, %arg2: memref<2x256xf32, #tpu.memory_space<vmem>>, %arg3: memref<2x256xf32, #tpu.memory_space<vmem>>) attributes {dimension_semantics = [#tpu.dimension_semantics<arbitrary>], iteration_bounds = array<i64: 1>, scalar_prefetch = 0 : i64, scratch_operands = 1 : i64, tpu.core_type = #tpu.core_type<tc>, window_params = [{transform_indices = @transform_0, window_bounds = array<i64: 8, 256>}, {pipeline_mode = #tpu.pipeline_mode<synchronous>, transform_indices = @transform_1, window_bounds = array<i64: 2, 256>}]} {
    %c0_i32 = arith.constant 0 : i32
    %0 = arith.cmpi eq, %arg0, %c0_i32 : i32
    %1 = arith.extui %0 : i1 to i32
    %c0_i32_0 = arith.constant 0 : i32
    %2 = arith.cmpi ne, %1, %c0_i32_0 : i32
    scf.if %2 {
      %cst_9 = arith.constant 0.000000e+00 : f32
      %16 = vector.broadcast %cst_9 : f32 to vector<2x256xf32>
      %c0_10 = arith.constant 0 : index
      %c0_11 = arith.constant 0 : index
      %17 = vector.load %arg3[%c0_10, %c0_11] : memref<2x256xf32, #tpu.memory_space<vmem>>, vector<2x256xf32>
      tpu.vector_store %arg3[%c0_10, %c0_11], %16 {strides = array<i32>} : memref<2x256xf32, #tpu.memory_space<vmem>>, vector<2x256xf32>,
    } else {
    }
    %c0 = arith.constant 0 : index
    %c0_1 = arith.constant 0 : index
    %3 = vector.load %arg1[%c0, %c0_1] : memref<8x256xf32, #tpu.memory_space<vmem>>, vector<8x256xf32>
    %cst = arith.constant dense<0.000000e+00> : vector<256xf32>
    %4 = vector.multi_reduction <add>, %3, %cst [0] : vector<8x256xf32> to vector<256xf32>
    %5 = vector.shape_cast %4 : vector<256xf32> to vector<1x256xf32>
    %6 = arith.mulf %3, %3 : vector<8x256xf32>
    %cst_2 = arith.constant dense<0.000000e+00> : vector<256xf32>
    %7 = vector.multi_reduction <add>, %6, %cst_2 [0] : vector<8x256xf32> to vector<256xf32>
    %8 = vector.shape_cast %7 : vector<256xf32> to vector<1x256xf32>
    %c0_3 = arith.constant 0 : index
    %c0_4 = arith.constant 0 : index
    %9 = vector.load %arg3[%c0_3, %c0_4] : memref<2x256xf32, #tpu.memory_space<vmem>>, vector<2x256xf32>
    %10 = tpu.concatenate %5, %8 in 0 : vector<1x256xf32>, vector<1x256xf32> -> vector<2x256xf32>
    %11 = arith.addf %9, %10 : vector<2x256xf32>
    %c0_5 = arith.constant 0 : index
    %c0_6 = arith.constant 0 : index
    %12 = vector.load %arg3[%c0_5, %c0_6] : memref<2x256xf32, #tpu.memory_space<vmem>>, vector<2x256xf32>
    tpu.vector_store %arg3[%c0_5, %c0_6], %11 {strides = array<i32>} : memref<2x256xf32, #tpu.memory_space<vmem>>, vector<2x256xf32>,
    %c0_i32_7 = arith.constant 0 : i32
    %13 = arith.cmpi eq, %arg0, %c0_i32_7 : i32
    %14 = arith.extui %13 : i1 to i32
    %c0_i32_8 = arith.constant 0 : i32
    %15 = arith.cmpi ne, %14, %c0_i32_8 : i32
    scf.if %15 {
      %c0_9 = arith.constant 0 : index
      %c0_10 = arith.constant 0 : index
      %16 = vector.load %arg3[%c0_9, %c0_10] : memref<2x256xf32, #tpu.memory_space<vmem>>, vector<2x256xf32>
      %c0_11 = arith.constant 0 : index
      %c0_12 = arith.constant 0 : index
      %17 = vector.load %arg2[%c0_11, %c0_12] : memref<2x256xf32, #tpu.memory_space<vmem>>, vector<2x256xf32>
      tpu.vector_store %arg2[%c0_11, %c0_12], %16 {strides = array<i32>} : memref<2x256xf32, #tpu.memory_space<vmem>>, vector<2x256xf32>,
    } else {
    }
    return
  }
  func.func @transform_0(%arg0: i32) -> (i32, i32) {
    %c0_i32 = arith.constant 0 : i32
    %c0_i32_0 = arith.constant 0 : i32
    return %arg0, %c0_i32 : i32, i32
  }
  func.func @transform_1(%arg0: i32) -> (i32, i32) {
    %c0_i32 = arith.constant 0 : i32
    %c0_i32_0 = arith.constant 0 : i32
    %c0_i32_1 = arith.constant 0 : i32
    return %c0_i32, %c0_i32_0 : i32, i32
  }
}

module attributes {stable_mosaic.version = 11 : i64} {
  func.func @_bn_norm_kernel(%arg0: i32, %arg1: memref<8x256xf32, #tpu.memory_space<vmem>>, %arg2: memref<2x256xf32, #tpu.memory_space<vmem>>, %arg3: memref<8x256xf32, #tpu.memory_space<vmem>>) attributes {dimension_semantics = [#tpu.dimension_semantics<parallel>], iteration_bounds = array<i64: 1>, scalar_prefetch = 0 : i64, scratch_operands = 0 : i64, tpu.core_type = #tpu.core_type<tc>, window_params = [{transform_indices = @transform_0, window_bounds = array<i64: 8, 256>}, {pipeline_mode = #tpu.pipeline_mode<synchronous>, transform_indices = @transform_1, window_bounds = array<i64: 2, 256>}, {transform_indices = @transform_2, window_bounds = array<i64: 8, 256>}]} {
    %c0 = arith.constant 0 : index
    %c0_0 = arith.constant 0 : index
    %0 = vector.load %arg1[%c0, %c0_0] : memref<8x256xf32, #tpu.memory_space<vmem>>, vector<8x256xf32>
    %c0_1 = arith.constant 0 : index
    %c0_2 = arith.constant 0 : index
    %1 = vector.load %arg2[%c0_1, %c0_2] : memref<2x256xf32, #tpu.memory_space<vmem>>, vector<1x256xf32>
    %2 = vector.broadcast %1 : vector<1x256xf32> to vector<8x256xf32>
    %3 = arith.subf %0, %2 : vector<8x256xf32>
    %c1 = arith.constant 1 : index
    %c0_3 = arith.constant 0 : index
    %4 = vector.load %arg2[%c1, %c0_3] : memref<2x256xf32, #tpu.memory_space<vmem>>, vector<1x256xf32>
    %5 = vector.broadcast %4 : vector<1x256xf32> to vector<8x256xf32>
    %6 = arith.mulf %3, %5 : vector<8x256xf32>
    %c0_4 = arith.constant 0 : index
    %c0_5 = arith.constant 0 : index
    %7 = vector.load %arg3[%c0_4, %c0_5] : memref<8x256xf32, #tpu.memory_space<vmem>>, vector<8x256xf32>
    tpu.vector_store %arg3[%c0_4, %c0_5], %6 {strides = array<i32>} : memref<8x256xf32, #tpu.memory_space<vmem>>, vector<8x256xf32>,
    return
  }
  func.func @transform_0(%arg0: i32) -> (i32, i32) {
    %c0_i32 = arith.constant 0 : i32
    %c0_i32_0 = arith.constant 0 : i32
    return %arg0, %c0_i32 : i32, i32
  }
  func.func @transform_1(%arg0: i32) -> (i32, i32) {
    %c0_i32 = arith.constant 0 : i32
    %c0_i32_0 = arith.constant 0 : i32
    %c0_i32_1 = arith.constant 0 : i32
    return %c0_i32, %c0_i32_0 : i32, i32
  }
  func.func @transform_2(%arg0: i32) -> (i32, i32) {
    %c0_i32 = arith.constant 0 : i32
    %c0_i32_0 = arith.constant 0 : i32
    return %arg0, %c0_i32 : i32, i32
  }
}

module attributes {stable_mosaic.version = 11 : i64} {
  func.func @_bn_norm_kernel(%arg0: i32, %arg1: memref<8x256xf32, #tpu.memory_space<vmem>>, %arg2: memref<2x256xf32, #tpu.memory_space<vmem>>, %arg3: memref<8x256xf32, #tpu.memory_space<vmem>>) attributes {dimension_semantics = [#tpu.dimension_semantics<parallel>], iteration_bounds = array<i64: 1>, scalar_prefetch = 0 : i64, scratch_operands = 0 : i64, tpu.core_type = #tpu.core_type<tc>, window_params = [{transform_indices = @transform_0, window_bounds = array<i64: 8, 256>}, {pipeline_mode = #tpu.pipeline_mode<synchronous>, transform_indices = @transform_1, window_bounds = array<i64: 2, 256>}, {transform_indices = @transform_2, window_bounds = array<i64: 8, 256>}]} {
    %c0 = arith.constant 0 : index
    %c0_0 = arith.constant 0 : index
    %0 = vector.load %arg1[%c0, %c0_0] : memref<8x256xf32, #tpu.memory_space<vmem>>, vector<8x256xf32>
    %c0_1 = arith.constant 0 : index
    %c0_2 = arith.constant 0 : index
    %1 = vector.load %arg2[%c0_1, %c0_2] : memref<2x256xf32, #tpu.memory_space<vmem>>, vector<1x256xf32>
    %2 = vector.broadcast %1 : vector<1x256xf32> to vector<8x256xf32>
    %3 = arith.subf %0, %2 : vector<8x256xf32>
    %c1 = arith.constant 1 : index
    %c0_3 = arith.constant 0 : index
    %4 = vector.load %arg2[%c1, %c0_3] : memref<2x256xf32, #tpu.memory_space<vmem>>, vector<1x256xf32>
    %5 = vector.broadcast %4 : vector<1x256xf32> to vector<8x256xf32>
    %6 = arith.mulf %3, %5 : vector<8x256xf32>
    %cst = arith.constant 0.000000e+00 : f32
    %7 = vector.broadcast %cst : f32 to vector<8x256xf32>
    %8 = arith.maximumf %6, %7 : vector<8x256xf32>
    %c0_4 = arith.constant 0 : index
    %c0_5 = arith.constant 0 : index
    %9 = vector.load %arg3[%c0_4, %c0_5] : memref<8x256xf32, #tpu.memory_space<vmem>>, vector<8x256xf32>
    tpu.vector_store %arg3[%c0_4, %c0_5], %8 {strides = array<i32>} : memref<8x256xf32, #tpu.memory_space<vmem>>, vector<8x256xf32>,
    return
  }
  func.func @transform_0(%arg0: i32) -> (i32, i32) {
    %c0_i32 = arith.constant 0 : i32
    %c0_i32_0 = arith.constant 0 : i32
    return %arg0, %c0_i32 : i32, i32
  }
  func.func @transform_1(%arg0: i32) -> (i32, i32) {
    %c0_i32 = arith.constant 0 : i32
    %c0_i32_0 = arith.constant 0 : i32
    %c0_i32_1 = arith.constant 0 : i32
    return %c0_i32, %c0_i32_0 : i32, i32
  }
  func.func @transform_2(%arg0: i32) -> (i32, i32) {
    %c0_i32 = arith.constant 0 : i32
    %c0_i32_0 = arith.constant 0 : i32
    return %arg0, %c0_i32 : i32, i32
  }
}

module attributes {stable_mosaic.version = 11 : i64} {
  func.func @_matmul_kernel(%arg0: i32, %arg1: i32, %arg2: memref<8x384xbf16, #tpu.memory_space<vmem>>, %arg3: memref<384x256xbf16, #tpu.memory_space<vmem>>, %arg4: memref<8x256xf32, #tpu.memory_space<vmem>>, %arg5: memref<8x256xf32, #tpu.memory_space<vmem>>) attributes {dimension_semantics = [#tpu.dimension_semantics<parallel>, #tpu.dimension_semantics<arbitrary>], iteration_bounds = array<i64: 1, 3>, scalar_prefetch = 0 : i64, scratch_operands = 1 : i64, tpu.core_type = #tpu.core_type<tc>, window_params = [{transform_indices = @transform_0, window_bounds = array<i64: 8, 384>}, {transform_indices = @transform_1, window_bounds = array<i64: 384, 256>}, {transform_indices = @transform_2, window_bounds = array<i64: 8, 256>}]} {
    %c0_i32 = arith.constant 0 : i32
    %0 = arith.cmpi eq, %arg1, %c0_i32 : i32
    %1 = arith.extui %0 : i1 to i32
    %c0_i32_0 = arith.constant 0 : i32
    %2 = arith.cmpi ne, %1, %c0_i32_0 : i32
    scf.if %2 {
      %cst_9 = arith.constant 0.000000e+00 : f32
      %12 = vector.broadcast %cst_9 : f32 to vector<8x256xf32>
      %c0_10 = arith.constant 0 : index
      %c0_11 = arith.constant 0 : index
      %13 = vector.load %arg5[%c0_10, %c0_11] : memref<8x256xf32, #tpu.memory_space<vmem>>, vector<8x256xf32>
      tpu.vector_store %arg5[%c0_10, %c0_11], %12 {strides = array<i32>} : memref<8x256xf32, #tpu.memory_space<vmem>>, vector<8x256xf32>,
    } else {
    }
    %c0 = arith.constant 0 : index
    %c0_1 = arith.constant 0 : index
    %3 = vector.load %arg5[%c0, %c0_1] : memref<8x256xf32, #tpu.memory_space<vmem>>, vector<8x256xf32>
    %c0_2 = arith.constant 0 : index
    %c0_3 = arith.constant 0 : index
    %4 = vector.load %arg2[%c0_2, %c0_3] : memref<8x384xbf16, #tpu.memory_space<vmem>>, vector<8x384xbf16>
    %c0_4 = arith.constant 0 : index
    %c0_5 = arith.constant 0 : index
    %5 = vector.load %arg3[%c0_4, %c0_5] : memref<384x256xbf16, #tpu.memory_space<vmem>>, vector<384x256xbf16>
    %cst = arith.constant dense<0.000000e+00> : vector<8x256xf32>
    %6 = tpu.matmul %4, %5, %cst {dimension_numbers = #tpu.dot_dimension_numbers<[1], [0], [0], [1], [0, 0, 1, 1], [], []>} : vector<8x384xbf16>, vector<384x256xbf16>, vector<8x256xf32> -> vector<8x256xf32>
    %7 = arith.addf %3, %6 : vector<8x256xf32>
    %c0_6 = arith.constant 0 : index
    %c0_7 = arith.constant 0 : index
    %8 = vector.load %arg5[%c0_6, %c0_7] : memref<8x256xf32, #tpu.memory_space<vmem>>, vector<8x256xf32>
    tpu.vector_store %arg5[%c0_6, %c0_7], %7 {strides = array<i32>} : memref<8x256xf32, #tpu.memory_space<vmem>>, vector<8x256xf32>,
    %c2_i32 = arith.constant 2 : i32
    %9 = arith.cmpi eq, %arg1, %c2_i32 : i32
    %10 = arith.extui %9 : i1 to i32
    %c0_i32_8 = arith.constant 0 : i32
    %11 = arith.cmpi ne, %10, %c0_i32_8 : i32
    scf.if %11 {
      %c0_9 = arith.constant 0 : index
      %c0_10 = arith.constant 0 : index
      %12 = vector.load %arg5[%c0_9, %c0_10] : memref<8x256xf32, #tpu.memory_space<vmem>>, vector<8x256xf32>
      %c0_11 = arith.constant 0 : index
      %c0_12 = arith.constant 0 : index
      %13 = vector.load %arg4[%c0_11, %c0_12] : memref<8x256xf32, #tpu.memory_space<vmem>>, vector<8x256xf32>
      tpu.vector_store %arg4[%c0_11, %c0_12], %12 {strides = array<i32>} : memref<8x256xf32, #tpu.memory_space<vmem>>, vector<8x256xf32>,
    } else {
    }
    return
  }
  func.func @transform_0(%arg0: i32, %arg1: i32) -> (i32, i32) {
    %c0_i32 = arith.constant 0 : i32
    return %arg0, %arg1 : i32, i32
  }
  func.func @transform_1(%arg0: i32, %arg1: i32) -> (i32, i32) {
    %c0_i32 = arith.constant 0 : i32
    %c0_i32_0 = arith.constant 0 : i32
    return %arg1, %c0_i32 : i32, i32
  }
  func.func @transform_2(%arg0: i32, %arg1: i32) -> (i32, i32) {
    %c0_i32 = arith.constant 0 : i32
    %c0_i32_0 = arith.constant 0 : i32
    return %arg0, %c0_i32 : i32, i32
  }
}

module attributes {stable_mosaic.version = 11 : i64} {
  func.func @_bn_norm_res_kernel(%arg0: i32, %arg1: memref<8x256xf32, #tpu.memory_space<vmem>>, %arg2: memref<2x256xf32, #tpu.memory_space<vmem>>, %arg3: memref<8x256xf32, #tpu.memory_space<vmem>>, %arg4: memref<8x256xf32, #tpu.memory_space<vmem>>) attributes {dimension_semantics = [#tpu.dimension_semantics<parallel>], iteration_bounds = array<i64: 1>, scalar_prefetch = 0 : i64, scratch_operands = 0 : i64, tpu.core_type = #tpu.core_type<tc>, window_params = [{transform_indices = @transform_0, window_bounds = array<i64: 8, 256>}, {pipeline_mode = #tpu.pipeline_mode<synchronous>, transform_indices = @transform_1, window_bounds = array<i64: 2, 256>}, {transform_indices = @transform_2, window_bounds = array<i64: 8, 256>}, {transform_indices = @transform_3, window_bounds = array<i64: 8, 256>}]} {
    %c0 = arith.constant 0 : index
    %c0_0 = arith.constant 0 : index
    %0 = vector.load %arg1[%c0, %c0_0] : memref<8x256xf32, #tpu.memory_space<vmem>>, vector<8x256xf32>
    %c0_1 = arith.constant 0 : index
    %c0_2 = arith.constant 0 : index
    %1 = vector.load %arg2[%c0_1, %c0_2] : memref<2x256xf32, #tpu.memory_space<vmem>>, vector<1x256xf32>
    %2 = vector.broadcast %1 : vector<1x256xf32> to vector<8x256xf32>
    %3 = arith.subf %0, %2 : vector<8x256xf32>
    %c1 = arith.constant 1 : index
    %c0_3 = arith.constant 0 : index
    %4 = vector.load %arg2[%c1, %c0_3] : memref<2x256xf32, #tpu.memory_space<vmem>>, vector<1x256xf32>
    %5 = vector.broadcast %4 : vector<1x256xf32> to vector<8x256xf32>
    %6 = arith.mulf %3, %5 : vector<8x256xf32>
    %c0_4 = arith.constant 0 : index
    %c0_5 = arith.constant 0 : index
    %7 = vector.load %arg3[%c0_4, %c0_5] : memref<8x256xf32, #tpu.memory_space<vmem>>, vector<8x256xf32>
    %8 = arith.addf %6, %7 : vector<8x256xf32>
    %cst = arith.constant 0.000000e+00 : f32
    %9 = vector.broadcast %cst : f32 to vector<8x256xf32>
    %10 = arith.maximumf %8, %9 : vector<8x256xf32>
    %c0_6 = arith.constant 0 : index
    %c0_7 = arith.constant 0 : index
    %11 = vector.load %arg4[%c0_6, %c0_7] : memref<8x256xf32, #tpu.memory_space<vmem>>, vector<8x256xf32>
    tpu.vector_store %arg4[%c0_6, %c0_7], %10 {strides = array<i32>} : memref<8x256xf32, #tpu.memory_space<vmem>>, vector<8x256xf32>,
    return
  }
  func.func @transform_0(%arg0: i32) -> (i32, i32) {
    %c0_i32 = arith.constant 0 : i32
    %c0_i32_0 = arith.constant 0 : i32
    return %arg0, %c0_i32 : i32, i32
  }
  func.func @transform_1(%arg0: i32) -> (i32, i32) {
    %c0_i32 = arith.constant 0 : i32
    %c0_i32_0 = arith.constant 0 : i32
    %c0_i32_1 = arith.constant 0 : i32
    return %c0_i32, %c0_i32_0 : i32, i32
  }
  func.func @transform_2(%arg0: i32) -> (i32, i32) {
    %c0_i32 = arith.constant 0 : i32
    %c0_i32_0 = arith.constant 0 : i32
    return %arg0, %c0_i32 : i32, i32
  }
  func.func @transform_3(%arg0: i32) -> (i32, i32) {
    %c0_i32 = arith.constant 0 : i32
    %c0_i32_0 = arith.constant 0 : i32
    return %arg0, %c0_i32 : i32, i32
  }
}

module attributes {stable_mosaic.version = 11 : i64} {
  func.func @_matmul_kernel(%arg0: i32, %arg1: i32, %arg2: memref<8x768xbf16, #tpu.memory_space<vmem>>, %arg3: memref<768x256xbf16, #tpu.memory_space<vmem>>, %arg4: memref<8x256xf32, #tpu.memory_space<vmem>>, %arg5: memref<8x256xf32, #tpu.memory_space<vmem>>) attributes {dimension_semantics = [#tpu.dimension_semantics<parallel>, #tpu.dimension_semantics<arbitrary>], iteration_bounds = array<i64: 1, 3>, scalar_prefetch = 0 : i64, scratch_operands = 1 : i64, tpu.core_type = #tpu.core_type<tc>, window_params = [{transform_indices = @transform_0, window_bounds = array<i64: 8, 768>}, {transform_indices = @transform_1, window_bounds = array<i64: 768, 256>}, {transform_indices = @transform_2, window_bounds = array<i64: 8, 256>}]} {
    %c0_i32 = arith.constant 0 : i32
    %0 = arith.cmpi eq, %arg1, %c0_i32 : i32
    %1 = arith.extui %0 : i1 to i32
    %c0_i32_0 = arith.constant 0 : i32
    %2 = arith.cmpi ne, %1, %c0_i32_0 : i32
    scf.if %2 {
      %cst_9 = arith.constant 0.000000e+00 : f32
      %12 = vector.broadcast %cst_9 : f32 to vector<8x256xf32>
      %c0_10 = arith.constant 0 : index
      %c0_11 = arith.constant 0 : index
      %13 = vector.load %arg5[%c0_10, %c0_11] : memref<8x256xf32, #tpu.memory_space<vmem>>, vector<8x256xf32>
      tpu.vector_store %arg5[%c0_10, %c0_11], %12 {strides = array<i32>} : memref<8x256xf32, #tpu.memory_space<vmem>>, vector<8x256xf32>,
    } else {
    }
    %c0 = arith.constant 0 : index
    %c0_1 = arith.constant 0 : index
    %3 = vector.load %arg5[%c0, %c0_1] : memref<8x256xf32, #tpu.memory_space<vmem>>, vector<8x256xf32>
    %c0_2 = arith.constant 0 : index
    %c0_3 = arith.constant 0 : index
    %4 = vector.load %arg2[%c0_2, %c0_3] : memref<8x768xbf16, #tpu.memory_space<vmem>>, vector<8x768xbf16>
    %c0_4 = arith.constant 0 : index
    %c0_5 = arith.constant 0 : index
    %5 = vector.load %arg3[%c0_4, %c0_5] : memref<768x256xbf16, #tpu.memory_space<vmem>>, vector<768x256xbf16>
    %cst = arith.constant dense<0.000000e+00> : vector<8x256xf32>
    %6 = tpu.matmul %4, %5, %cst {dimension_numbers = #tpu.dot_dimension_numbers<[1], [0], [0], [1], [0, 0, 1, 1], [], []>} : vector<8x768xbf16>, vector<768x256xbf16>, vector<8x256xf32> -> vector<8x256xf32>
    %7 = arith.addf %3, %6 : vector<8x256xf32>
    %c0_6 = arith.constant 0 : index
    %c0_7 = arith.constant 0 : index
    %8 = vector.load %arg5[%c0_6, %c0_7] : memref<8x256xf32, #tpu.memory_space<vmem>>, vector<8x256xf32>
    tpu.vector_store %arg5[%c0_6, %c0_7], %7 {strides = array<i32>} : memref<8x256xf32, #tpu.memory_space<vmem>>, vector<8x256xf32>,
    %c2_i32 = arith.constant 2 : i32
    %9 = arith.cmpi eq, %arg1, %c2_i32 : i32
    %10 = arith.extui %9 : i1 to i32
    %c0_i32_8 = arith.constant 0 : i32
    %11 = arith.cmpi ne, %10, %c0_i32_8 : i32
    scf.if %11 {
      %c0_9 = arith.constant 0 : index
      %c0_10 = arith.constant 0 : index
      %12 = vector.load %arg5[%c0_9, %c0_10] : memref<8x256xf32, #tpu.memory_space<vmem>>, vector<8x256xf32>
      %c0_11 = arith.constant 0 : index
      %c0_12 = arith.constant 0 : index
      %13 = vector.load %arg4[%c0_11, %c0_12] : memref<8x256xf32, #tpu.memory_space<vmem>>, vector<8x256xf32>
      tpu.vector_store %arg4[%c0_11, %c0_12], %12 {strides = array<i32>} : memref<8x256xf32, #tpu.memory_space<vmem>>, vector<8x256xf32>,
    } else {
    }
    return
  }
  func.func @transform_0(%arg0: i32, %arg1: i32) -> (i32, i32) {
    %c0_i32 = arith.constant 0 : i32
    return %arg0, %arg1 : i32, i32
  }
  func.func @transform_1(%arg0: i32, %arg1: i32) -> (i32, i32) {
    %c0_i32 = arith.constant 0 : i32
    %c0_i32_0 = arith.constant 0 : i32
    return %arg1, %c0_i32 : i32, i32
  }
  func.func @transform_2(%arg0: i32, %arg1: i32) -> (i32, i32) {
    %c0_i32 = arith.constant 0 : i32
    %c0_i32_0 = arith.constant 0 : i32
    return %arg0, %c0_i32 : i32, i32
  }
}

module attributes {stable_mosaic.version = 11 : i64} {
  func.func @_matmul_kernel(%arg0: i32, %arg1: i32, %arg2: memref<8x768xbf16, #tpu.memory_space<vmem>>, %arg3: memref<768x512xbf16, #tpu.memory_space<vmem>>, %arg4: memref<8x512xf32, #tpu.memory_space<vmem>>, %arg5: memref<8x512xf32, #tpu.memory_space<vmem>>) attributes {dimension_semantics = [#tpu.dimension_semantics<parallel>, #tpu.dimension_semantics<arbitrary>], iteration_bounds = array<i64: 1, 3>, scalar_prefetch = 0 : i64, scratch_operands = 1 : i64, tpu.core_type = #tpu.core_type<tc>, window_params = [{transform_indices = @transform_0, window_bounds = array<i64: 8, 768>}, {transform_indices = @transform_1, window_bounds = array<i64: 768, 512>}, {transform_indices = @transform_2, window_bounds = array<i64: 8, 512>}]} {
    %c0_i32 = arith.constant 0 : i32
    %0 = arith.cmpi eq, %arg1, %c0_i32 : i32
    %1 = arith.extui %0 : i1 to i32
    %c0_i32_0 = arith.constant 0 : i32
    %2 = arith.cmpi ne, %1, %c0_i32_0 : i32
    scf.if %2 {
      %cst_9 = arith.constant 0.000000e+00 : f32
      %12 = vector.broadcast %cst_9 : f32 to vector<8x512xf32>
      %c0_10 = arith.constant 0 : index
      %c0_11 = arith.constant 0 : index
      %13 = vector.load %arg5[%c0_10, %c0_11] : memref<8x512xf32, #tpu.memory_space<vmem>>, vector<8x512xf32>
      tpu.vector_store %arg5[%c0_10, %c0_11], %12 {strides = array<i32>} : memref<8x512xf32, #tpu.memory_space<vmem>>, vector<8x512xf32>,
    } else {
    }
    %c0 = arith.constant 0 : index
    %c0_1 = arith.constant 0 : index
    %3 = vector.load %arg5[%c0, %c0_1] : memref<8x512xf32, #tpu.memory_space<vmem>>, vector<8x512xf32>
    %c0_2 = arith.constant 0 : index
    %c0_3 = arith.constant 0 : index
    %4 = vector.load %arg2[%c0_2, %c0_3] : memref<8x768xbf16, #tpu.memory_space<vmem>>, vector<8x768xbf16>
    %c0_4 = arith.constant 0 : index
    %c0_5 = arith.constant 0 : index
    %5 = vector.load %arg3[%c0_4, %c0_5] : memref<768x512xbf16, #tpu.memory_space<vmem>>, vector<768x512xbf16>
    %cst = arith.constant dense<0.000000e+00> : vector<8x512xf32>
    %6 = tpu.matmul %4, %5, %cst {dimension_numbers = #tpu.dot_dimension_numbers<[1], [0], [0], [1], [0, 0, 1, 1], [], []>} : vector<8x768xbf16>, vector<768x512xbf16>, vector<8x512xf32> -> vector<8x512xf32>
    %7 = arith.addf %3, %6 : vector<8x512xf32>
    %c0_6 = arith.constant 0 : index
    %c0_7 = arith.constant 0 : index
    %8 = vector.load %arg5[%c0_6, %c0_7] : memref<8x512xf32, #tpu.memory_space<vmem>>, vector<8x512xf32>
    tpu.vector_store %arg5[%c0_6, %c0_7], %7 {strides = array<i32>} : memref<8x512xf32, #tpu.memory_space<vmem>>, vector<8x512xf32>,
    %c2_i32 = arith.constant 2 : i32
    %9 = arith.cmpi eq, %arg1, %c2_i32 : i32
    %10 = arith.extui %9 : i1 to i32
    %c0_i32_8 = arith.constant 0 : i32
    %11 = arith.cmpi ne, %10, %c0_i32_8 : i32
    scf.if %11 {
      %c0_9 = arith.constant 0 : index
      %c0_10 = arith.constant 0 : index
      %12 = vector.load %arg5[%c0_9, %c0_10] : memref<8x512xf32, #tpu.memory_space<vmem>>, vector<8x512xf32>
      %c0_11 = arith.constant 0 : index
      %c0_12 = arith.constant 0 : index
      %13 = vector.load %arg4[%c0_11, %c0_12] : memref<8x512xf32, #tpu.memory_space<vmem>>, vector<8x512xf32>
      tpu.vector_store %arg4[%c0_11, %c0_12], %12 {strides = array<i32>} : memref<8x512xf32, #tpu.memory_space<vmem>>, vector<8x512xf32>,
    } else {
    }
    return
  }
  func.func @transform_0(%arg0: i32, %arg1: i32) -> (i32, i32) {
    %c0_i32 = arith.constant 0 : i32
    return %arg0, %arg1 : i32, i32
  }
  func.func @transform_1(%arg0: i32, %arg1: i32) -> (i32, i32) {
    %c0_i32 = arith.constant 0 : i32
    %c0_i32_0 = arith.constant 0 : i32
    return %arg1, %c0_i32 : i32, i32
  }
  func.func @transform_2(%arg0: i32, %arg1: i32) -> (i32, i32) {
    %c0_i32 = arith.constant 0 : i32
    %c0_i32_0 = arith.constant 0 : i32
    return %arg0, %c0_i32 : i32, i32
  }
}

module attributes {stable_mosaic.version = 11 : i64} {
  func.func @_bn_stats_kernel(%arg0: i32, %arg1: memref<8x512xf32, #tpu.memory_space<vmem>>, %arg2: memref<2x512xf32, #tpu.memory_space<vmem>>, %arg3: memref<2x512xf32, #tpu.memory_space<vmem>>) attributes {dimension_semantics = [#tpu.dimension_semantics<arbitrary>], iteration_bounds = array<i64: 1>, scalar_prefetch = 0 : i64, scratch_operands = 1 : i64, tpu.core_type = #tpu.core_type<tc>, window_params = [{transform_indices = @transform_0, window_bounds = array<i64: 8, 512>}, {pipeline_mode = #tpu.pipeline_mode<synchronous>, transform_indices = @transform_1, window_bounds = array<i64: 2, 512>}]} {
    %c0_i32 = arith.constant 0 : i32
    %0 = arith.cmpi eq, %arg0, %c0_i32 : i32
    %1 = arith.extui %0 : i1 to i32
    %c0_i32_0 = arith.constant 0 : i32
    %2 = arith.cmpi ne, %1, %c0_i32_0 : i32
    scf.if %2 {
      %cst_9 = arith.constant 0.000000e+00 : f32
      %16 = vector.broadcast %cst_9 : f32 to vector<2x512xf32>
      %c0_10 = arith.constant 0 : index
      %c0_11 = arith.constant 0 : index
      %17 = vector.load %arg3[%c0_10, %c0_11] : memref<2x512xf32, #tpu.memory_space<vmem>>, vector<2x512xf32>
      tpu.vector_store %arg3[%c0_10, %c0_11], %16 {strides = array<i32>} : memref<2x512xf32, #tpu.memory_space<vmem>>, vector<2x512xf32>,
    } else {
    }
    %c0 = arith.constant 0 : index
    %c0_1 = arith.constant 0 : index
    %3 = vector.load %arg1[%c0, %c0_1] : memref<8x512xf32, #tpu.memory_space<vmem>>, vector<8x512xf32>
    %cst = arith.constant dense<0.000000e+00> : vector<512xf32>
    %4 = vector.multi_reduction <add>, %3, %cst [0] : vector<8x512xf32> to vector<512xf32>
    %5 = vector.shape_cast %4 : vector<512xf32> to vector<1x512xf32>
    %6 = arith.mulf %3, %3 : vector<8x512xf32>
    %cst_2 = arith.constant dense<0.000000e+00> : vector<512xf32>
    %7 = vector.multi_reduction <add>, %6, %cst_2 [0] : vector<8x512xf32> to vector<512xf32>
    %8 = vector.shape_cast %7 : vector<512xf32> to vector<1x512xf32>
    %c0_3 = arith.constant 0 : index
    %c0_4 = arith.constant 0 : index
    %9 = vector.load %arg3[%c0_3, %c0_4] : memref<2x512xf32, #tpu.memory_space<vmem>>, vector<2x512xf32>
    %10 = tpu.concatenate %5, %8 in 0 : vector<1x512xf32>, vector<1x512xf32> -> vector<2x512xf32>
    %11 = arith.addf %9, %10 : vector<2x512xf32>
    %c0_5 = arith.constant 0 : index
    %c0_6 = arith.constant 0 : index
    %12 = vector.load %arg3[%c0_5, %c0_6] : memref<2x512xf32, #tpu.memory_space<vmem>>, vector<2x512xf32>
    tpu.vector_store %arg3[%c0_5, %c0_6], %11 {strides = array<i32>} : memref<2x512xf32, #tpu.memory_space<vmem>>, vector<2x512xf32>,
    %c0_i32_7 = arith.constant 0 : i32
    %13 = arith.cmpi eq, %arg0, %c0_i32_7 : i32
    %14 = arith.extui %13 : i1 to i32
    %c0_i32_8 = arith.constant 0 : i32
    %15 = arith.cmpi ne, %14, %c0_i32_8 : i32
    scf.if %15 {
      %c0_9 = arith.constant 0 : index
      %c0_10 = arith.constant 0 : index
      %16 = vector.load %arg3[%c0_9, %c0_10] : memref<2x512xf32, #tpu.memory_space<vmem>>, vector<2x512xf32>
      %c0_11 = arith.constant 0 : index
      %c0_12 = arith.constant 0 : index
      %17 = vector.load %arg2[%c0_11, %c0_12] : memref<2x512xf32, #tpu.memory_space<vmem>>, vector<2x512xf32>
      tpu.vector_store %arg2[%c0_11, %c0_12], %16 {strides = array<i32>} : memref<2x512xf32, #tpu.memory_space<vmem>>, vector<2x512xf32>,
    } else {
    }
    return
  }
  func.func @transform_0(%arg0: i32) -> (i32, i32) {
    %c0_i32 = arith.constant 0 : i32
    %c0_i32_0 = arith.constant 0 : i32
    return %arg0, %c0_i32 : i32, i32
  }
  func.func @transform_1(%arg0: i32) -> (i32, i32) {
    %c0_i32 = arith.constant 0 : i32
    %c0_i32_0 = arith.constant 0 : i32
    %c0_i32_1 = arith.constant 0 : i32
    return %c0_i32, %c0_i32_0 : i32, i32
  }
}

module attributes {stable_mosaic.version = 11 : i64} {
  func.func @_matmul_kernel(%arg0: i32, %arg1: i32, %arg2: memref<8x256xbf16, #tpu.memory_space<vmem>>, %arg3: memref<256x512xbf16, #tpu.memory_space<vmem>>, %arg4: memref<8x512xf32, #tpu.memory_space<vmem>>, %arg5: memref<8x512xf32, #tpu.memory_space<vmem>>) attributes {dimension_semantics = [#tpu.dimension_semantics<parallel>, #tpu.dimension_semantics<arbitrary>], iteration_bounds = array<i64: 1, 1>, scalar_prefetch = 0 : i64, scratch_operands = 1 : i64, tpu.core_type = #tpu.core_type<tc>, window_params = [{transform_indices = @transform_0, window_bounds = array<i64: 8, 256>}, {transform_indices = @transform_1, window_bounds = array<i64: 256, 512>}, {transform_indices = @transform_2, window_bounds = array<i64: 8, 512>}]} {
    %c0_i32 = arith.constant 0 : i32
    %0 = arith.cmpi eq, %arg1, %c0_i32 : i32
    %1 = arith.extui %0 : i1 to i32
    %c0_i32_0 = arith.constant 0 : i32
    %2 = arith.cmpi ne, %1, %c0_i32_0 : i32
    scf.if %2 {
      %cst_10 = arith.constant 0.000000e+00 : f32
      %12 = vector.broadcast %cst_10 : f32 to vector<8x512xf32>
      %c0_11 = arith.constant 0 : index
      %c0_12 = arith.constant 0 : index
      %13 = vector.load %arg5[%c0_11, %c0_12] : memref<8x512xf32, #tpu.memory_space<vmem>>, vector<8x512xf32>
      tpu.vector_store %arg5[%c0_11, %c0_12], %12 {strides = array<i32>} : memref<8x512xf32, #tpu.memory_space<vmem>>, vector<8x512xf32>,
    } else {
    }
    %c0 = arith.constant 0 : index
    %c0_1 = arith.constant 0 : index
    %3 = vector.load %arg5[%c0, %c0_1] : memref<8x512xf32, #tpu.memory_space<vmem>>, vector<8x512xf32>
    %c0_2 = arith.constant 0 : index
    %c0_3 = arith.constant 0 : index
    %4 = vector.load %arg2[%c0_2, %c0_3] : memref<8x256xbf16, #tpu.memory_space<vmem>>, vector<8x256xbf16>
    %c0_4 = arith.constant 0 : index
    %c0_5 = arith.constant 0 : index
    %5 = vector.load %arg3[%c0_4, %c0_5] : memref<256x512xbf16, #tpu.memory_space<vmem>>, vector<256x512xbf16>
    %cst = arith.constant dense<0.000000e+00> : vector<8x512xf32>
    %6 = tpu.matmul %4, %5, %cst {dimension_numbers = #tpu.dot_dimension_numbers<[1], [0], [0], [1], [0, 0, 1, 1], [], []>} : vector<8x256xbf16>, vector<256x512xbf16>, vector<8x512xf32> -> vector<8x512xf32>
    %7 = arith.addf %3, %6 : vector<8x512xf32>
    %c0_6 = arith.constant 0 : index
    %c0_7 = arith.constant 0 : index
    %8 = vector.load %arg5[%c0_6, %c0_7] : memref<8x512xf32, #tpu.memory_space<vmem>>, vector<8x512xf32>
    tpu.vector_store %arg5[%c0_6, %c0_7], %7 {strides = array<i32>} : memref<8x512xf32, #tpu.memory_space<vmem>>, vector<8x512xf32>,
    %c0_i32_8 = arith.constant 0 : i32
    %9 = arith.cmpi eq, %arg1, %c0_i32_8 : i32
    %10 = arith.extui %9 : i1 to i32
    %c0_i32_9 = arith.constant 0 : i32
    %11 = arith.cmpi ne, %10, %c0_i32_9 : i32
    scf.if %11 {
      %c0_10 = arith.constant 0 : index
      %c0_11 = arith.constant 0 : index
      %12 = vector.load %arg5[%c0_10, %c0_11] : memref<8x512xf32, #tpu.memory_space<vmem>>, vector<8x512xf32>
      %c0_12 = arith.constant 0 : index
      %c0_13 = arith.constant 0 : index
      %13 = vector.load %arg4[%c0_12, %c0_13] : memref<8x512xf32, #tpu.memory_space<vmem>>, vector<8x512xf32>
      tpu.vector_store %arg4[%c0_12, %c0_13], %12 {strides = array<i32>} : memref<8x512xf32, #tpu.memory_space<vmem>>, vector<8x512xf32>,
    } else {
    }
    return
  }
  func.func @transform_0(%arg0: i32, %arg1: i32) -> (i32, i32) {
    %c0_i32 = arith.constant 0 : i32
    return %arg0, %arg1 : i32, i32
  }
  func.func @transform_1(%arg0: i32, %arg1: i32) -> (i32, i32) {
    %c0_i32 = arith.constant 0 : i32
    %c0_i32_0 = arith.constant 0 : i32
    return %arg1, %c0_i32 : i32, i32
  }
  func.func @transform_2(%arg0: i32, %arg1: i32) -> (i32, i32) {
    %c0_i32 = arith.constant 0 : i32
    %c0_i32_0 = arith.constant 0 : i32
    return %arg0, %c0_i32 : i32, i32
  }
}

module attributes {stable_mosaic.version = 11 : i64} {
  func.func @_bn_norm_kernel(%arg0: i32, %arg1: memref<8x512xf32, #tpu.memory_space<vmem>>, %arg2: memref<2x512xf32, #tpu.memory_space<vmem>>, %arg3: memref<8x512xf32, #tpu.memory_space<vmem>>) attributes {dimension_semantics = [#tpu.dimension_semantics<parallel>], iteration_bounds = array<i64: 1>, scalar_prefetch = 0 : i64, scratch_operands = 0 : i64, tpu.core_type = #tpu.core_type<tc>, window_params = [{transform_indices = @transform_0, window_bounds = array<i64: 8, 512>}, {pipeline_mode = #tpu.pipeline_mode<synchronous>, transform_indices = @transform_1, window_bounds = array<i64: 2, 512>}, {transform_indices = @transform_2, window_bounds = array<i64: 8, 512>}]} {
    %c0 = arith.constant 0 : index
    %c0_0 = arith.constant 0 : index
    %0 = vector.load %arg1[%c0, %c0_0] : memref<8x512xf32, #tpu.memory_space<vmem>>, vector<8x512xf32>
    %c0_1 = arith.constant 0 : index
    %c0_2 = arith.constant 0 : index
    %1 = vector.load %arg2[%c0_1, %c0_2] : memref<2x512xf32, #tpu.memory_space<vmem>>, vector<1x512xf32>
    %2 = vector.broadcast %1 : vector<1x512xf32> to vector<8x512xf32>
    %3 = arith.subf %0, %2 : vector<8x512xf32>
    %c1 = arith.constant 1 : index
    %c0_3 = arith.constant 0 : index
    %4 = vector.load %arg2[%c1, %c0_3] : memref<2x512xf32, #tpu.memory_space<vmem>>, vector<1x512xf32>
    %5 = vector.broadcast %4 : vector<1x512xf32> to vector<8x512xf32>
    %6 = arith.mulf %3, %5 : vector<8x512xf32>
    %cst = arith.constant 0.000000e+00 : f32
    %7 = vector.broadcast %cst : f32 to vector<8x512xf32>
    %8 = arith.maximumf %6, %7 : vector<8x512xf32>
    %c0_4 = arith.constant 0 : index
    %c0_5 = arith.constant 0 : index
    %9 = vector.load %arg3[%c0_4, %c0_5] : memref<8x512xf32, #tpu.memory_space<vmem>>, vector<8x512xf32>
    tpu.vector_store %arg3[%c0_4, %c0_5], %8 {strides = array<i32>} : memref<8x512xf32, #tpu.memory_space<vmem>>, vector<8x512xf32>,
    return
  }
  func.func @transform_0(%arg0: i32) -> (i32, i32) {
    %c0_i32 = arith.constant 0 : i32
    %c0_i32_0 = arith.constant 0 : i32
    return %arg0, %c0_i32 : i32, i32
  }
  func.func @transform_1(%arg0: i32) -> (i32, i32) {
    %c0_i32 = arith.constant 0 : i32
    %c0_i32_0 = arith.constant 0 : i32
    %c0_i32_1 = arith.constant 0 : i32
    return %c0_i32, %c0_i32_0 : i32, i32
  }
  func.func @transform_2(%arg0: i32) -> (i32, i32) {
    %c0_i32 = arith.constant 0 : i32
    %c0_i32_0 = arith.constant 0 : i32
    return %arg0, %c0_i32 : i32, i32
  }
}

module attributes {stable_mosaic.version = 11 : i64} {
  func.func @_bn_norm_kernel(%arg0: i32, %arg1: memref<8x512xf32, #tpu.memory_space<vmem>>, %arg2: memref<2x512xf32, #tpu.memory_space<vmem>>, %arg3: memref<8x512xf32, #tpu.memory_space<vmem>>) attributes {dimension_semantics = [#tpu.dimension_semantics<parallel>], iteration_bounds = array<i64: 1>, scalar_prefetch = 0 : i64, scratch_operands = 0 : i64, tpu.core_type = #tpu.core_type<tc>, window_params = [{transform_indices = @transform_0, window_bounds = array<i64: 8, 512>}, {pipeline_mode = #tpu.pipeline_mode<synchronous>, transform_indices = @transform_1, window_bounds = array<i64: 2, 512>}, {transform_indices = @transform_2, window_bounds = array<i64: 8, 512>}]} {
    %c0 = arith.constant 0 : index
    %c0_0 = arith.constant 0 : index
    %0 = vector.load %arg1[%c0, %c0_0] : memref<8x512xf32, #tpu.memory_space<vmem>>, vector<8x512xf32>
    %c0_1 = arith.constant 0 : index
    %c0_2 = arith.constant 0 : index
    %1 = vector.load %arg2[%c0_1, %c0_2] : memref<2x512xf32, #tpu.memory_space<vmem>>, vector<1x512xf32>
    %2 = vector.broadcast %1 : vector<1x512xf32> to vector<8x512xf32>
    %3 = arith.subf %0, %2 : vector<8x512xf32>
    %c1 = arith.constant 1 : index
    %c0_3 = arith.constant 0 : index
    %4 = vector.load %arg2[%c1, %c0_3] : memref<2x512xf32, #tpu.memory_space<vmem>>, vector<1x512xf32>
    %5 = vector.broadcast %4 : vector<1x512xf32> to vector<8x512xf32>
    %6 = arith.mulf %3, %5 : vector<8x512xf32>
    %c0_4 = arith.constant 0 : index
    %c0_5 = arith.constant 0 : index
    %7 = vector.load %arg3[%c0_4, %c0_5] : memref<8x512xf32, #tpu.memory_space<vmem>>, vector<8x512xf32>
    tpu.vector_store %arg3[%c0_4, %c0_5], %6 {strides = array<i32>} : memref<8x512xf32, #tpu.memory_space<vmem>>, vector<8x512xf32>,
    return
  }
  func.func @transform_0(%arg0: i32) -> (i32, i32) {
    %c0_i32 = arith.constant 0 : i32
    %c0_i32_0 = arith.constant 0 : i32
    return %arg0, %c0_i32 : i32, i32
  }
  func.func @transform_1(%arg0: i32) -> (i32, i32) {
    %c0_i32 = arith.constant 0 : i32
    %c0_i32_0 = arith.constant 0 : i32
    %c0_i32_1 = arith.constant 0 : i32
    return %c0_i32, %c0_i32_0 : i32, i32
  }
  func.func @transform_2(%arg0: i32) -> (i32, i32) {
    %c0_i32 = arith.constant 0 : i32
    %c0_i32_0 = arith.constant 0 : i32
    return %arg0, %c0_i32 : i32, i32
  }
}

module attributes {stable_mosaic.version = 11 : i64} {
  func.func @_matmul_kernel(%arg0: i32, %arg1: i32, %arg2: memref<8x768xbf16, #tpu.memory_space<vmem>>, %arg3: memref<768x512xbf16, #tpu.memory_space<vmem>>, %arg4: memref<8x512xf32, #tpu.memory_space<vmem>>, %arg5: memref<8x512xf32, #tpu.memory_space<vmem>>) attributes {dimension_semantics = [#tpu.dimension_semantics<parallel>, #tpu.dimension_semantics<arbitrary>], iteration_bounds = array<i64: 1, 6>, scalar_prefetch = 0 : i64, scratch_operands = 1 : i64, tpu.core_type = #tpu.core_type<tc>, window_params = [{transform_indices = @transform_0, window_bounds = array<i64: 8, 768>}, {transform_indices = @transform_1, window_bounds = array<i64: 768, 512>}, {transform_indices = @transform_2, window_bounds = array<i64: 8, 512>}]} {
    %c0_i32 = arith.constant 0 : i32
    %0 = arith.cmpi eq, %arg1, %c0_i32 : i32
    %1 = arith.extui %0 : i1 to i32
    %c0_i32_0 = arith.constant 0 : i32
    %2 = arith.cmpi ne, %1, %c0_i32_0 : i32
    scf.if %2 {
      %cst_9 = arith.constant 0.000000e+00 : f32
      %12 = vector.broadcast %cst_9 : f32 to vector<8x512xf32>
      %c0_10 = arith.constant 0 : index
      %c0_11 = arith.constant 0 : index
      %13 = vector.load %arg5[%c0_10, %c0_11] : memref<8x512xf32, #tpu.memory_space<vmem>>, vector<8x512xf32>
      tpu.vector_store %arg5[%c0_10, %c0_11], %12 {strides = array<i32>} : memref<8x512xf32, #tpu.memory_space<vmem>>, vector<8x512xf32>,
    } else {
    }
    %c0 = arith.constant 0 : index
    %c0_1 = arith.constant 0 : index
    %3 = vector.load %arg5[%c0, %c0_1] : memref<8x512xf32, #tpu.memory_space<vmem>>, vector<8x512xf32>
    %c0_2 = arith.constant 0 : index
    %c0_3 = arith.constant 0 : index
    %4 = vector.load %arg2[%c0_2, %c0_3] : memref<8x768xbf16, #tpu.memory_space<vmem>>, vector<8x768xbf16>
    %c0_4 = arith.constant 0 : index
    %c0_5 = arith.constant 0 : index
    %5 = vector.load %arg3[%c0_4, %c0_5] : memref<768x512xbf16, #tpu.memory_space<vmem>>, vector<768x512xbf16>
    %cst = arith.constant dense<0.000000e+00> : vector<8x512xf32>
    %6 = tpu.matmul %4, %5, %cst {dimension_numbers = #tpu.dot_dimension_numbers<[1], [0], [0], [1], [0, 0, 1, 1], [], []>} : vector<8x768xbf16>, vector<768x512xbf16>, vector<8x512xf32> -> vector<8x512xf32>
    %7 = arith.addf %3, %6 : vector<8x512xf32>
    %c0_6 = arith.constant 0 : index
    %c0_7 = arith.constant 0 : index
    %8 = vector.load %arg5[%c0_6, %c0_7] : memref<8x512xf32, #tpu.memory_space<vmem>>, vector<8x512xf32>
    tpu.vector_store %arg5[%c0_6, %c0_7], %7 {strides = array<i32>} : memref<8x512xf32, #tpu.memory_space<vmem>>, vector<8x512xf32>,
    %c5_i32 = arith.constant 5 : i32
    %9 = arith.cmpi eq, %arg1, %c5_i32 : i32
    %10 = arith.extui %9 : i1 to i32
    %c0_i32_8 = arith.constant 0 : i32
    %11 = arith.cmpi ne, %10, %c0_i32_8 : i32
    scf.if %11 {
      %c0_9 = arith.constant 0 : index
      %c0_10 = arith.constant 0 : index
      %12 = vector.load %arg5[%c0_9, %c0_10] : memref<8x512xf32, #tpu.memory_space<vmem>>, vector<8x512xf32>
      %c0_11 = arith.constant 0 : index
      %c0_12 = arith.constant 0 : index
      %13 = vector.load %arg4[%c0_11, %c0_12] : memref<8x512xf32, #tpu.memory_space<vmem>>, vector<8x512xf32>
      tpu.vector_store %arg4[%c0_11, %c0_12], %12 {strides = array<i32>} : memref<8x512xf32, #tpu.memory_space<vmem>>, vector<8x512xf32>,
    } else {
    }
    return
  }
  func.func @transform_0(%arg0: i32, %arg1: i32) -> (i32, i32) {
    %c0_i32 = arith.constant 0 : i32
    return %arg0, %arg1 : i32, i32
  }
  func.func @transform_1(%arg0: i32, %arg1: i32) -> (i32, i32) {
    %c0_i32 = arith.constant 0 : i32
    %c0_i32_0 = arith.constant 0 : i32
    return %arg1, %c0_i32 : i32, i32
  }
  func.func @transform_2(%arg0: i32, %arg1: i32) -> (i32, i32) {
    %c0_i32 = arith.constant 0 : i32
    %c0_i32_0 = arith.constant 0 : i32
    return %arg0, %c0_i32 : i32, i32
  }
}

module attributes {stable_mosaic.version = 11 : i64} {
  func.func @_bn_norm_res_kernel(%arg0: i32, %arg1: memref<8x512xf32, #tpu.memory_space<vmem>>, %arg2: memref<2x512xf32, #tpu.memory_space<vmem>>, %arg3: memref<8x512xf32, #tpu.memory_space<vmem>>, %arg4: memref<8x512xf32, #tpu.memory_space<vmem>>) attributes {dimension_semantics = [#tpu.dimension_semantics<parallel>], iteration_bounds = array<i64: 1>, scalar_prefetch = 0 : i64, scratch_operands = 0 : i64, tpu.core_type = #tpu.core_type<tc>, window_params = [{transform_indices = @transform_0, window_bounds = array<i64: 8, 512>}, {pipeline_mode = #tpu.pipeline_mode<synchronous>, transform_indices = @transform_1, window_bounds = array<i64: 2, 512>}, {transform_indices = @transform_2, window_bounds = array<i64: 8, 512>}, {transform_indices = @transform_3, window_bounds = array<i64: 8, 512>}]} {
    %c0 = arith.constant 0 : index
    %c0_0 = arith.constant 0 : index
    %0 = vector.load %arg1[%c0, %c0_0] : memref<8x512xf32, #tpu.memory_space<vmem>>, vector<8x512xf32>
    %c0_1 = arith.constant 0 : index
    %c0_2 = arith.constant 0 : index
    %1 = vector.load %arg2[%c0_1, %c0_2] : memref<2x512xf32, #tpu.memory_space<vmem>>, vector<1x512xf32>
    %2 = vector.broadcast %1 : vector<1x512xf32> to vector<8x512xf32>
    %3 = arith.subf %0, %2 : vector<8x512xf32>
    %c1 = arith.constant 1 : index
    %c0_3 = arith.constant 0 : index
    %4 = vector.load %arg2[%c1, %c0_3] : memref<2x512xf32, #tpu.memory_space<vmem>>, vector<1x512xf32>
    %5 = vector.broadcast %4 : vector<1x512xf32> to vector<8x512xf32>
    %6 = arith.mulf %3, %5 : vector<8x512xf32>
    %c0_4 = arith.constant 0 : index
    %c0_5 = arith.constant 0 : index
    %7 = vector.load %arg3[%c0_4, %c0_5] : memref<8x512xf32, #tpu.memory_space<vmem>>, vector<8x512xf32>
    %8 = arith.addf %6, %7 : vector<8x512xf32>
    %cst = arith.constant 0.000000e+00 : f32
    %9 = vector.broadcast %cst : f32 to vector<8x512xf32>
    %10 = arith.maximumf %8, %9 : vector<8x512xf32>
    %c0_6 = arith.constant 0 : index
    %c0_7 = arith.constant 0 : index
    %11 = vector.load %arg4[%c0_6, %c0_7] : memref<8x512xf32, #tpu.memory_space<vmem>>, vector<8x512xf32>
    tpu.vector_store %arg4[%c0_6, %c0_7], %10 {strides = array<i32>} : memref<8x512xf32, #tpu.memory_space<vmem>>, vector<8x512xf32>,
    return
  }
  func.func @transform_0(%arg0: i32) -> (i32, i32) {
    %c0_i32 = arith.constant 0 : i32
    %c0_i32_0 = arith.constant 0 : i32
    return %arg0, %c0_i32 : i32, i32
  }
  func.func @transform_1(%arg0: i32) -> (i32, i32) {
    %c0_i32 = arith.constant 0 : i32
    %c0_i32_0 = arith.constant 0 : i32
    %c0_i32_1 = arith.constant 0 : i32
    return %c0_i32, %c0_i32_0 : i32, i32
  }
  func.func @transform_2(%arg0: i32) -> (i32, i32) {
    %c0_i32 = arith.constant 0 : i32
    %c0_i32_0 = arith.constant 0 : i32
    return %arg0, %c0_i32 : i32, i32
  }
  func.func @transform_3(%arg0: i32) -> (i32, i32) {
    %c0_i32 = arith.constant 0 : i32
    %c0_i32_0 = arith.constant 0 : i32
    return %arg0, %c0_i32 : i32, i32
  }
}

</mosaic_0001>

<bundles_post_ra>
// kernel: resnet_forward.62
= control target key start
LH: loop header
LB: loop body
LE: loop exit
PB: predicated region body
PF: predicated region fallthrough
CT: control target
= control target key end

     0   :  { %vm277_vm0 = vcmask 523264   ;;  %s949_s0 = inlined_call_operand.vmem [shape: f32[512,64], index: 0, kind: input, shape index: {}]   ;;  %s950_s1 = inlined_call_operand.vmem [shape: f32[2,64], index: 1, kind: input, shape index: {}]   ;;  %s951_s2 = inlined_call_operand.vmem [shape: f32[512,64], index: 2, kind: output, shape index: {}]  }
   0x1   :  { %v11_v0 = vld [vmem:[%s949_s0] sm:$0xff]  ;;  %v12_v4 = vld [vmem:[%s949_s0 + $0x8] sm:$0xff]  ;;  %v13_v5 = vld [vmem:[%s949_s0 + $0x10] sm:$0xff] }
   0x2   :  { %v369_v1 = vld [vmem:[%s950_s1] ss:$0 sm:$0xff]  ;;  %v374_v2 = vld [vmem:[%s950_s1 + $0x1] ss:$0 sm:$0xff]  ;;  %v14_v6 = vld [vmem:[%s949_s0 + $0x18] sm:$0xff] }
   0x3   :  { %v80_v3 = vsub.f32 %v11_v0, %v369_v1  ;;  %v81_v7 = vsub.f32 %v12_v4, %v369_v1  ;;  %v82_v8 = vsub.f32 %v13_v5, %v369_v1  ;;  %v83_v9 = vsub.f32 %v14_v6, %v369_v1  ;;  %v15_v10 = vld [vmem:[%s949_s0 + $0x20] sm:$0xff]  ;;  %v16_v11 = vld [vmem:[%s949_s0 + $0x28] sm:$0xff]  ;;  %v17_v12 = vld [vmem:[%s949_s0 + $0x30] sm:$0xff] }
   0x4   :  { %v84_v14 = vsub.f32 %v15_v10, %v369_v1  ;;  %v85_v15 = vsub.f32 %v16_v11, %v369_v1  ;;  %v86_v16 = vsub.f32 %v17_v12, %v369_v1  ;;  %v18_v17 = vld [vmem:[%s949_s0 + $0x38] sm:$0xff]  ;;  %v19_v22 = vld [vmem:[%s949_s0 + $0x40] sm:$0xff]  ;;  %v20_v27 = vld [vmem:[%s949_s0 + $0x48] sm:$0xff] }
   0x5   :  { %v149_v13 = vmul.f32 %v374_v2, %v80_v3  ;;  %v150_v18 = vmul.f32 %v374_v2, %v81_v7  ;;  %v151_v19 = vmul.f32 %v374_v2, %v82_v8  ;;  %v152_v20 = vmul.f32 %v374_v2, %v83_v9  ;;  %v21_v28 = vld [vmem:[%s949_s0 + $0x50] sm:$0xff]  ;;  %v22_v29 = vld [vmem:[%s949_s0 + $0x58] sm:$0xff]  ;;  %v23_v34 = vld [vmem:[%s949_s0 + $0x60] sm:$0xff] }
   0x6   :  { %v87_v21 = vsub.f32 %v18_v17, %v369_v1  ;;  %v153_v24 = vmul.f32 %v374_v2, %v84_v14  ;;  %v154_v25 = vmul.f32 %v374_v2, %v85_v15  ;;  %v155_v26 = vmul.f32 %v374_v2, %v86_v16  ;;  %v24_v35 = vld [vmem:[%s949_s0 + $0x68] sm:$0xff]  ;;  %v25_v36 = vld [vmem:[%s949_s0 + $0x70] sm:$0xff]  ;;  %v26_v41 = vld [vmem:[%s949_s0 + $0x78] sm:$0xff] }
   0x7   :  { %v213_v23 = vmax.f32 %v149_v13, 0.0  ;;  %v214_v30 = vmax.f32 %v150_v18, 0.0  ;;  %v215_v31 = vmax.f32 %v151_v19, 0.0  ;;  %v216_v32 = vmax.f32 %v152_v20, 0.0  ;;  %v27_v54 = vld [vmem:[%s949_s0 + $0x80] sm:$0xff]  ;;  %v28_v59 = vld [vmem:[%s949_s0 + $0x88] sm:$0xff] }
   0x8   :  { %v156_v33 = vmul.f32 %v374_v2, %v87_v21  ;;  %v217_v37 = vmax.f32 %v153_v24, 0.0  ;;  %v218_v38 = vmax.f32 %v154_v25, 0.0  ;;  %v219_v39 = vmax.f32 %v155_v26, 0.0  ;;  %v29_v60 = vld [vmem:[%s949_s0 + $0x90] sm:$0xff]  ;;  %v30_v61 = vld [vmem:[%s949_s0 + $0x98] sm:$0xff]  ;;  %v31_v4 = vld [vmem:[%s949_s0 + $0xa0] sm:$0xff] }
   0x9   :  { %278 = vst.msk [vmem:[%s951_s2] sm:$0xff] %vm277_vm0, %v213_v23  ;;  %v88_v40 = vsub.f32 %v19_v22, %v369_v1  ;;  %279 = vst.msk [vmem:[%s951_s2 + $0x8] sm:$0xff] %vm277_vm0, %v214_v30  ;;  %v89_v43 = vsub.f32 %v20_v27, %v369_v1  ;;  %v90_v44 = vsub.f32 %v21_v28, %v369_v1  ;;  %v32_v5 = vld [vmem:[%s949_s0 + $0xa8] sm:$0xff]  ;;  %v33_v6 = vld [vmem:[%s949_s0 + $0xb0] sm:$0xff] }
   0xa   :  { %280 = vst.msk [vmem:[%s951_s2 + $0x10] sm:$0xff] %vm277_vm0, %v215_v31  ;;  %281 = vst.msk [vmem:[%s951_s2 + $0x18] sm:$0xff] %vm277_vm0, %v216_v32  ;;  %v220_v42 = vmax.f32 %v156_v33, 0.0  ;;  %v91_v45 = vsub.f32 %v22_v29, %v369_v1  ;;  %v92_v47 = vsub.f32 %v23_v34, %v369_v1  ;;  %v93_v48 = vsub.f32 %v24_v35, %v369_v1  ;;  %v34_v11 = vld [vmem:[%s949_s0 + $0xb8] sm:$0xff]  ;;  %v35_v24 = vld [vmem:[%s949_s0 + $0xc0] sm:$0xff] }
   0xb   :  { %282 = vst.msk [vmem:[%s951_s2 + $0x20] sm:$0xff] %vm277_vm0, %v217_v37  ;;  %283 = vst.msk [vmem:[%s951_s2 + $0x28] sm:$0xff] %vm277_vm0, %v218_v38  ;;  %v157_v46 = vmul.f32 %v374_v2, %v88_v40  ;;  %v94_v49 = vsub.f32 %v25_v36, %v369_v1  ;;  %v158_v50 = vmul.f32 %v374_v2, %v89_v43  ;;  %v36_v29 = vld [vmem:[%s949_s0 + $0xc8] sm:$0xff]  ;;  %v37_v30 = vld [vmem:[%s949_s0 + $0xd0] sm:$0xff] }
   0xc   :  { %284 = vst.msk [vmem:[%s951_s2 + $0x30] sm:$0xff] %vm277_vm0, %v219_v39  ;;  %285 = vst.msk [vmem:[%s951_s2 + $0x38] sm:$0xff] %vm277_vm0, %v220_v42  ;;  %v159_v51 = vmul.f32 %v374_v2, %v90_v44  ;;  %v160_v52 = vmul.f32 %v374_v2, %v91_v45  ;;  %v95_v53 = vsub.f32 %v26_v41, %v369_v1  ;;  %v38_v31 = vld [vmem:[%s949_s0 + $0xd8] sm:$0xff]  ;;  %v39_v36 = vld [vmem:[%s949_s0 + $0xe0] sm:$0xff] }
   0xd   :  { %v221_v55 = vmax.f32 %v157_v46, 0.0  ;;  %v161_v56 = vmul.f32 %v374_v2, %v92_v47  ;;  %v162_v57 = vmul.f32 %v374_v2, %v93_v48  ;;  %v163_v58 = vmul.f32 %v374_v2, %v94_v49  ;;  %v40_v37 = vld [vmem:[%s949_s0 + $0xe8] sm:$0xff]  ;;  %v41_v38 = vld [vmem:[%s949_s0 + $0xf0] sm:$0xff]  ;;  %v42_v43 = vld [vmem:[%s949_s0 + $0xf8] sm:$0xff] }
   0xe   :  { %v222_v62 = vmax.f32 %v158_v50, 0.0  ;;  %v223_v63 = vmax.f32 %v159_v51, 0.0  ;;  %v224_v0 = vmax.f32 %v160_v52, 0.0  ;;  %v164_v3 = vmul.f32 %v374_v2, %v95_v53 }
   0xf   :  { %286 = vst.msk [vmem:[%s951_s2 + $0x40] sm:$0xff] %vm277_vm0, %v221_v55  ;;  %v225_v7 = vmax.f32 %v161_v56, 0.0  ;;  %v226_v8 = vmax.f32 %v162_v57, 0.0  ;;  %v227_v9 = vmax.f32 %v163_v58, 0.0  ;;  %v96_v10 = vsub.f32 %v27_v54, %v369_v1  ;;  %v43_v56 = vld [vmem:[%s949_s0 + $0x100] sm:$0xff] }
  0x10   :  { %287 = vst.msk [vmem:[%s951_s2 + $0x48] sm:$0xff] %vm277_vm0, %v222_v62  ;;  %288 = vst.msk [vmem:[%s951_s2 + $0x50] sm:$0xff] %vm277_vm0, %v223_v63  ;;  %v228_v12 = vmax.f32 %v164_v3, 0.0  ;;  %v97_v13 = vsub.f32 %v28_v59, %v369_v1  ;;  %v98_v14 = vsub.f32 %v29_v60, %v369_v1  ;;  %v99_v15 = vsub.f32 %v30_v61, %v369_v1  ;;  %v44_v61 = vld [vmem:[%s949_s0 + $0x108] sm:$0xff]  ;;  %v45_v62 = vld [vmem:[%s949_s0 + $0x110] sm:$0xff] }
  0x11   :  { %289 = vst.msk [vmem:[%s951_s2 + $0x58] sm:$0xff] %vm277_vm0, %v224_v0  ;;  %290 = vst.msk [vmem:[%s951_s2 + $0x60] sm:$0xff] %vm277_vm0, %v225_v7  ;;  %v165_v16 = vmul.f32 %v374_v2, %v96_v10  ;;  %v100_v17 = vsub.f32 %v31_v4, %v369_v1  ;;  %v101_v18 = vsub.f32 %v32_v5, %v369_v1  ;;  %v46_v63 = vld [vmem:[%s949_s0 + $0x118] sm:$0xff]  ;;  %v48_v7 = vld [vmem:[%s949_s0 + $0x128] sm:$0xff] }
  0x12   :  { %291 = vst.msk [vmem:[%s951_s2 + $0x68] sm:$0xff] %vm277_vm0, %v226_v8  ;;  %292 = vst.msk [vmem:[%s951_s2 + $0x70] sm:$0xff] %vm277_vm0, %v227_v9  ;;  %v102_v19 = vsub.f32 %v33_v6, %v369_v1  ;;  %v166_v20 = vmul.f32 %v374_v2, %v97_v13  ;;  %v167_v21 = vmul.f32 %v374_v2, %v98_v14  ;;  %v47_v6 = vld [vmem:[%s949_s0 + $0x120] sm:$0xff]  ;;  %v49_v8 = vld [vmem:[%s949_s0 + $0x130] sm:$0xff] }
  0x13   :  { %293 = vst.msk [vmem:[%s951_s2 + $0x78] sm:$0xff] %vm277_vm0, %v228_v12  ;;  %v168_v22 = vmul.f32 %v374_v2, %v99_v15  ;;  %v103_v23 = vsub.f32 %v34_v11, %v369_v1  ;;  %v229_v25 = vmax.f32 %v165_v16, 0.0  ;;  %v169_v26 = vmul.f32 %v374_v2, %v100_v17  ;;  %v50_v13 = vld [vmem:[%s949_s0 + $0x138] sm:$0xff] }
  0x14   :  { %v170_v27 = vmul.f32 %v374_v2, %v101_v18  ;;  %v171_v28 = vmul.f32 %v374_v2, %v102_v19  ;;  %v230_v32 = vmax.f32 %v166_v20, 0.0  ;;  %v231_v33 = vmax.f32 %v167_v21, 0.0 }
  0x15   :  { %v232_v34 = vmax.f32 %v168_v22, 0.0  ;;  %v172_v35 = vmul.f32 %v374_v2, %v103_v23  ;;  %294 = vst.msk [vmem:[%s951_s2 + $0x80] sm:$0xff] %vm277_vm0, %v229_v25  ;;  %v233_v39 = vmax.f32 %v169_v26, 0.0  ;;  %v104_v42 = vsub.f32 %v35_v24, %v369_v1  ;;  %v51_v26 = vld [vmem:[%s949_s0 + $0x140] sm:$0xff] }
  0x16   :  { %v234_v40 = vmax.f32 %v170_v27, 0.0  ;;  %v235_v41 = vmax.f32 %v171_v28, 0.0  ;;  %295 = vst.msk [vmem:[%s951_s2 + $0x88] sm:$0xff] %vm277_vm0, %v230_v32  ;;  %296 = vst.msk [vmem:[%s951_s2 + $0x90] sm:$0xff] %vm277_vm0, %v231_v33  ;;  %v105_v45 = vsub.f32 %v36_v29, %v369_v1  ;;  %v106_v46 = vsub.f32 %v37_v30, %v369_v1  ;;  %v53_v32 = vld [vmem:[%s949_s0 + $0x150] sm:$0xff]  ;;  %v54_v33 = vld [vmem:[%s949_s0 + $0x158] sm:$0xff] }
  0x17   :  { %297 = vst.msk [vmem:[%s951_s2 + $0x98] sm:$0xff] %vm277_vm0, %v232_v34  ;;  %v236_v44 = vmax.f32 %v172_v35, 0.0  ;;  %v107_v47 = vsub.f32 %v38_v31, %v369_v1  ;;  %298 = vst.msk [vmem:[%s951_s2 + $0xa0] sm:$0xff] %vm277_vm0, %v233_v39  ;;  %v173_v48 = vmul.f32 %v374_v2, %v104_v42  ;;  %v108_v49 = vsub.f32 %v39_v36, %v369_v1  ;;  %v52_v31 = vld [vmem:[%s949_s0 + $0x148] sm:$0xff] }
  0x18   :  { %299 = vst.msk [vmem:[%s951_s2 + $0xa8] sm:$0xff] %vm277_vm0, %v234_v40  ;;  %300 = vst.msk [vmem:[%s951_s2 + $0xb0] sm:$0xff] %vm277_vm0, %v235_v41  ;;  %v109_v50 = vsub.f32 %v40_v37, %v369_v1  ;;  %v110_v51 = vsub.f32 %v41_v38, %v369_v1  ;;  %v174_v52 = vmul.f32 %v374_v2, %v105_v45  ;;  %v55_v38 = vld [vmem:[%s949_s0 + $0x160] sm:$0xff]  ;;  %v56_v39 = vld [vmem:[%s949_s0 + $0x168] sm:$0xff] }
  0x19   :  { %301 = vst.msk [vmem:[%s951_s2 + $0xb8] sm:$0xff] %vm277_vm0, %v236_v44  ;;  %v175_v53 = vmul.f32 %v374_v2, %v106_v46  ;;  %v176_v54 = vmul.f32 %v374_v2, %v107_v47  ;;  %v111_v55 = vsub.f32 %v42_v43, %v369_v1  ;;  %v237_v57 = vmax.f32 %v173_v48, 0.0  ;;  %v57_v40 = vld [vmem:[%s949_s0 + $0x170] sm:$0xff]  ;;  %v58_v45 = vld [vmem:[%s949_s0 + $0x178] sm:$0xff] }
  0x1a   :  { %v177_v58 = vmul.f32 %v374_v2, %v108_v49  ;;  %v178_v59 = vmul.f32 %v374_v2, %v109_v50  ;;  %v179_v60 = vmul.f32 %v374_v2, %v110_v51  ;;  %v238_v0 = vmax.f32 %v174_v52, 0.0 }
  0x1b   :  { %v239_v3 = vmax.f32 %v175_v53, 0.0  ;;  %v240_v4 = vmax.f32 %v176_v54, 0.0  ;;  %v180_v5 = vmul.f32 %v374_v2, %v111_v55  ;;  %302 = vst.msk [vmem:[%s951_s2 + $0xc0] sm:$0xff] %vm277_vm0, %v237_v57  ;;  %v112_v12 = vsub.f32 %v43_v56, %v369_v1 }
  0x1c   :  { %v241_v9 = vmax.f32 %v177_v58, 0.0  ;;  %v242_v10 = vmax.f32 %v178_v59, 0.0  ;;  %v243_v11 = vmax.f32 %v179_v60, 0.0  ;;  %303 = vst.msk [vmem:[%s951_s2 + $0xc8] sm:$0xff] %vm277_vm0, %v238_v0  ;;  %v113_v15 = vsub.f32 %v44_v61, %v369_v1  ;;  %v59_v58 = vld [vmem:[%s949_s0 + $0x180] sm:$0xff]  ;;  %v61_v0 = vld [vmem:[%s949_s0 + $0x190] sm:$0xff] }
  0x1d   :  { %304 = vst.msk [vmem:[%s951_s2 + $0xd0] sm:$0xff] %vm277_vm0, %v239_v3  ;;  %305 = vst.msk [vmem:[%s951_s2 + $0xd8] sm:$0xff] %vm277_vm0, %v240_v4  ;;  %v244_v14 = vmax.f32 %v180_v5, 0.0  ;;  %v114_v16 = vsub.f32 %v45_v62, %v369_v1  ;;  %v115_v17 = vsub.f32 %v46_v63, %v369_v1  ;;  %v181_v18 = vmul.f32 %v374_v2, %v112_v12  ;;  %v60_v63 = vld [vmem:[%s949_s0 + $0x188] sm:$0xff]  ;;  %v62_v3 = vld [vmem:[%s949_s0 + $0x198] sm:$0xff] }
  0x1e   :  { %306 = vst.msk [vmem:[%s951_s2 + $0xe0] sm:$0xff] %vm277_vm0, %v241_v9  ;;  %307 = vst.msk [vmem:[%s951_s2 + $0xe8] sm:$0xff] %vm277_vm0, %v242_v10  ;;  %v116_v19 = vsub.f32 %v47_v6, %v369_v1  ;;  %v117_v20 = vsub.f32 %v48_v7, %v369_v1  ;;  %v118_v21 = vsub.f32 %v49_v8, %v369_v1  ;;  %v63_v8 = vld [vmem:[%s949_s0 + $0x1a0] sm:$0xff]  ;;  %v64_v9 = vld [vmem:[%s949_s0 + $0x1a8] sm:$0xff] }
  0x1f   :  { %308 = vst.msk [vmem:[%s951_s2 + $0xf0] sm:$0xff] %vm277_vm0, %v243_v11  ;;  %309 = vst.msk [vmem:[%s951_s2 + $0xf8] sm:$0xff] %vm277_vm0, %v244_v14  ;;  %v182_v22 = vmul.f32 %v374_v2, %v113_v15  ;;  %v183_v23 = vmul.f32 %v374_v2, %v114_v16  ;;  %v184_v24 = vmul.f32 %v374_v2, %v115_v17  ;;  %v245_v27 = vmax.f32 %v181_v18, 0.0  ;;  %v65_v10 = vld [vmem:[%s949_s0 + $0x1b0] sm:$0xff]  ;;  %v66_v15 = vld [vmem:[%s949_s0 + $0x1b8] sm:$0xff] }
  0x20   :  { %v119_v25 = vsub.f32 %v50_v13, %v369_v1  ;;  %v185_v28 = vmul.f32 %v374_v2, %v116_v19  ;;  %v186_v29 = vmul.f32 %v374_v2, %v117_v20  ;;  %v187_v30 = vmul.f32 %v374_v2, %v118_v21 }
  0x21   :  { %v246_v34 = vmax.f32 %v182_v22, 0.0  ;;  %v247_v35 = vmax.f32 %v183_v23, 0.0  ;;  %v248_v36 = vmax.f32 %v184_v24, 0.0  ;;  %310 = vst.msk [vmem:[%s951_s2 + $0x100] sm:$0xff] %vm277_vm0, %v245_v27  ;;  %v120_v44 = vsub.f32 %v51_v26, %v369_v1 }
  0x22   :  { %v188_v37 = vmul.f32 %v374_v2, %v119_v25  ;;  %v249_v41 = vmax.f32 %v185_v28, 0.0  ;;  %v250_v42 = vmax.f32 %v186_v29, 0.0  ;;  %v251_v43 = vmax.f32 %v187_v30, 0.0  ;;  %v67_v28 = vld [vmem:[%s949_s0 + $0x1c0] sm:$0xff] }
  0x23   :  { %311 = vst.msk [vmem:[%s951_s2 + $0x108] sm:$0xff] %vm277_vm0, %v246_v34  ;;  %312 = vst.msk [vmem:[%s951_s2 + $0x110] sm:$0xff] %vm277_vm0, %v247_v35  ;;  %v121_v47 = vsub.f32 %v52_v31, %v369_v1  ;;  %v122_v48 = vsub.f32 %v53_v32, %v369_v1  ;;  %v123_v49 = vsub.f32 %v54_v33, %v369_v1  ;;  %v68_v33 = vld [vmem:[%s949_s0 + $0x1c8] sm:$0xff]  ;;  %v69_v34 = vld [vmem:[%s949_s0 + $0x1d0] sm:$0xff] }
  0x24   :  { %313 = vst.msk [vmem:[%s951_s2 + $0x118] sm:$0xff] %vm277_vm0, %v248_v36  ;;  %v252_v46 = vmax.f32 %v188_v37, 0.0  ;;  %314 = vst.msk [vmem:[%s951_s2 + $0x120] sm:$0xff] %vm277_vm0, %v249_v41  ;;  %v189_v50 = vmul.f32 %v374_v2, %v120_v44  ;;  %v124_v51 = vsub.f32 %v55_v38, %v369_v1  ;;  %v125_v52 = vsub.f32 %v56_v39, %v369_v1  ;;  %v70_v35 = vld [vmem:[%s949_s0 + $0x1d8] sm:$0xff]  ;;  %v72_v41 = vld [vmem:[%s949_s0 + $0x1e8] sm:$0xff] }
  0x25   :  { %315 = vst.msk [vmem:[%s951_s2 + $0x128] sm:$0xff] %vm277_vm0, %v250_v42  ;;  %316 = vst.msk [vmem:[%s951_s2 + $0x130] sm:$0xff] %vm277_vm0, %v251_v43  ;;  %v126_v53 = vsub.f32 %v57_v40, %v369_v1  ;;  %v190_v54 = vmul.f32 %v374_v2, %v121_v47  ;;  %v191_v55 = vmul.f32 %v374_v2, %v122_v48  ;;  %v71_v40 = vld [vmem:[%s949_s0 + $0x1e0] sm:$0xff]  ;;  %v73_v42 = vld [vmem:[%s949_s0 + $0x1f0] sm:$0xff] }
  0x26   :  { %317 = vst.msk [vmem:[%s951_s2 + $0x138] sm:$0xff] %vm277_vm0, %v252_v46  ;;  %v192_v56 = vmul.f32 %v374_v2, %v123_v49  ;;  %v127_v57 = vsub.f32 %v58_v45, %v369_v1  ;;  %v253_v59 = vmax.f32 %v189_v50, 0.0  ;;  %v193_v60 = vmul.f32 %v374_v2, %v124_v51  ;;  %v74_v47 = vld [vmem:[%s949_s0 + $0x1f8] sm:$0xff] }
  0x27   :  { %v194_v61 = vmul.f32 %v374_v2, %v125_v52  ;;  %v195_v62 = vmul.f32 %v374_v2, %v126_v53  ;;  %v254_v4 = vmax.f32 %v190_v54, 0.0  ;;  %v255_v5 = vmax.f32 %v191_v55, 0.0 }
  0x28   :  { %v256_v6 = vmax.f32 %v192_v56, 0.0  ;;  %v196_v7 = vmul.f32 %v374_v2, %v127_v57  ;;  %318 = vst.msk [vmem:[%s951_s2 + $0x140] sm:$0xff] %vm277_vm0, %v253_v59  ;;  %v257_v11 = vmax.f32 %v193_v60, 0.0  ;;  %v128_v14 = vsub.f32 %v59_v58, %v369_v1 }
  0x29   :  { %v258_v12 = vmax.f32 %v194_v61, 0.0  ;;  %v259_v13 = vmax.f32 %v195_v62, 0.0  ;;  %319 = vst.msk [vmem:[%s951_s2 + $0x148] sm:$0xff] %vm277_vm0, %v254_v4  ;;  %320 = vst.msk [vmem:[%s951_s2 + $0x150] sm:$0xff] %vm277_vm0, %v255_v5  ;;  %v129_v17 = vsub.f32 %v60_v63, %v369_v1  ;;  %v130_v18 = vsub.f32 %v61_v0, %v369_v1 }
  0x2a   :  { %321 = vst.msk [vmem:[%s951_s2 + $0x158] sm:$0xff] %vm277_vm0, %v256_v6  ;;  %v260_v16 = vmax.f32 %v196_v7, 0.0  ;;  %v131_v19 = vsub.f32 %v62_v3, %v369_v1  ;;  %322 = vst.msk [vmem:[%s951_s2 + $0x160] sm:$0xff] %vm277_vm0, %v257_v11  ;;  %v197_v20 = vmul.f32 %v374_v2, %v128_v14  ;;  %v132_v21 = vsub.f32 %v63_v8, %v369_v1 }
  0x2b   :  { %323 = vst.msk [vmem:[%s951_s2 + $0x168] sm:$0xff] %vm277_vm0, %v258_v12  ;;  %324 = vst.msk [vmem:[%s951_s2 + $0x170] sm:$0xff] %vm277_vm0, %v259_v13  ;;  %v133_v22 = vsub.f32 %v64_v9, %v369_v1  ;;  %v134_v23 = vsub.f32 %v65_v10, %v369_v1  ;;  %v198_v24 = vmul.f32 %v374_v2, %v129_v17 }
  0x2c   :  { %325 = vst.msk [vmem:[%s951_s2 + $0x178] sm:$0xff] %vm277_vm0, %v260_v16  ;;  %v199_v25 = vmul.f32 %v374_v2, %v130_v18  ;;  %v200_v26 = vmul.f32 %v374_v2, %v131_v19  ;;  %v135_v27 = vsub.f32 %v66_v15, %v369_v1  ;;  %v261_v29 = vmax.f32 %v197_v20, 0.0 }
  0x2d   :  { %v201_v30 = vmul.f32 %v374_v2, %v132_v21  ;;  %v202_v31 = vmul.f32 %v374_v2, %v133_v22  ;;  %v203_v32 = vmul.f32 %v374_v2, %v134_v23  ;;  %v262_v36 = vmax.f32 %v198_v24, 0.0 }
  0x2e   :  { %v263_v37 = vmax.f32 %v199_v25, 0.0  ;;  %v264_v38 = vmax.f32 %v200_v26, 0.0  ;;  %v204_v39 = vmul.f32 %v374_v2, %v135_v27  ;;  %326 = vst.msk [vmem:[%s951_s2 + $0x180] sm:$0xff] %vm277_vm0, %v261_v29  ;;  %v136_v46 = vsub.f32 %v67_v28, %v369_v1 }
  0x2f   :  { %v265_v43 = vmax.f32 %v201_v30, 0.0  ;;  %v266_v44 = vmax.f32 %v202_v31, 0.0  ;;  %v267_v45 = vmax.f32 %v203_v32, 0.0  ;;  %327 = vst.msk [vmem:[%s951_s2 + $0x188] sm:$0xff] %vm277_vm0, %v262_v36  ;;  %v137_v49 = vsub.f32 %v68_v33, %v369_v1 }
  0x30   :  { %328 = vst.msk [vmem:[%s951_s2 + $0x190] sm:$0xff] %vm277_vm0, %v263_v37  ;;  %329 = vst.msk [vmem:[%s951_s2 + $0x198] sm:$0xff] %vm277_vm0, %v264_v38  ;;  %v268_v48 = vmax.f32 %v204_v39, 0.0  ;;  %v138_v50 = vsub.f32 %v69_v34, %v369_v1  ;;  %v139_v51 = vsub.f32 %v70_v35, %v369_v1  ;;  %v205_v52 = vmul.f32 %v374_v2, %v136_v46 }
  0x31   :  { %330 = vst.msk [vmem:[%s951_s2 + $0x1a0] sm:$0xff] %vm277_vm0, %v265_v43  ;;  %331 = vst.msk [vmem:[%s951_s2 + $0x1a8] sm:$0xff] %vm277_vm0, %v266_v44  ;;  %v140_v53 = vsub.f32 %v71_v40, %v369_v1  ;;  %v141_v54 = vsub.f32 %v72_v41, %v369_v1  ;;  %v142_v55 = vsub.f32 %v73_v42, %v369_v1 }
  0x32   :  { %332 = vst.msk [vmem:[%s951_s2 + $0x1b0] sm:$0xff] %vm277_vm0, %v267_v45  ;;  %333 = vst.msk [vmem:[%s951_s2 + $0x1b8] sm:$0xff] %vm277_vm0, %v268_v48  ;;  %v206_v56 = vmul.f32 %v374_v2, %v137_v49  ;;  %v207_v57 = vmul.f32 %v374_v2, %v138_v50  ;;  %v208_v58 = vmul.f32 %v374_v2, %v139_v51  ;;  %v269_v60 = vmax.f32 %v205_v52, 0.0 }
  0x33   :  { %v143_v59 = vsub.f32 %v74_v47, %v369_v1  ;;  %v209_v61 = vmul.f32 %v374_v2, %v140_v53  ;;  %v210_v62 = vmul.f32 %v374_v2, %v141_v54  ;;  %v211_v63 = vmul.f32 %v374_v2, %v142_v55 }
  0x34   :  { %v270_v0 = vmax.f32 %v206_v56, 0.0  ;;  %v271_v3 = vmax.f32 %v207_v57, 0.0  ;;  %v272_v4 = vmax.f32 %v208_v58, 0.0  ;;  %334 = vst.msk [vmem:[%s951_s2 + $0x1c0] sm:$0xff] %vm277_vm0, %v269_v60 }
  0x35   :  { %v212_v5 = vmul.f32 %v374_v2, %v143_v59  ;;  %v273_v6 = vmax.f32 %v209_v61, 0.0  ;;  %v274_v7 = vmax.f32 %v210_v62, 0.0  ;;  %v275_v1 = vmax.f32 %v211_v63, 0.0 }
  0x36   :  { %335 = vst.msk [vmem:[%s951_s2 + $0x1c8] sm:$0xff] %vm277_vm0, %v270_v0  ;;  %336 = vst.msk [vmem:[%s951_s2 + $0x1d0] sm:$0xff] %vm277_vm0, %v271_v3 }
  0x37   :  { %337 = vst.msk [vmem:[%s951_s2 + $0x1d8] sm:$0xff] %vm277_vm0, %v272_v4  ;;  %v276_v2 = vmax.f32 %v212_v5, 0.0  ;;  %338 = vst.msk [vmem:[%s951_s2 + $0x1e0] sm:$0xff] %vm277_vm0, %v273_v6 }
  0x38   :  { %339 = vst.msk [vmem:[%s951_s2 + $0x1e8] sm:$0xff] %vm277_vm0, %v274_v7  ;;  %340 = vst.msk [vmem:[%s951_s2 + $0x1f0] sm:$0xff] %vm277_vm0, %v275_v1 }
  0x39   :  { %341 = vst.msk [vmem:[%s951_s2 + $0x1f8] sm:$0xff] %vm277_vm0, %v276_v2 }

// kernel: resnet_forward.61
= control target key start
LH: loop header
LB: loop body
LE: loop exit
PB: predicated region body
PF: predicated region fallthrough
CT: control target
= control target key end

     0   :  { %vm12_vm0 = vcmask 517120   ;;  %vm78_vm1 = vcmask 523264   ;;  %v425_v0 = vmov 0.0   ;;  %vm410_vm2 = vcmask 1040384   ;;  %s1294_s0 = inlined_call_operand.vmem [shape: f32[512,64], index: 0, kind: input, shape index: {}]   ;;  %s1295_s1 = inlined_call_operand.vmem [shape: f32[2,64], index: 1, kind: output, shape index: {}]  }
   0x1   :  { %13 = vst.msk [vmem:[#allocation2] sm:$0x3] %vm12_vm0, %v425_v0  ;;  %v440_v1 = vld [vmem:[%s1294_s0] sm:$0xff]  ;;  %v445_v2 = vld [vmem:[%s1294_s0 + $0x8] sm:$0xff]  ;;  %v450_v3 = vld [vmem:[%s1294_s0 + $0x10] sm:$0xff] }
   0x2   :  { %v79_v4 = vsel %vm78_vm1, %v440_v1, 0.0  ;;  %v80_v5 = vsel %vm78_vm1, %v445_v2, 0.0  ;;  %v82_v6 = vsel %vm78_vm1, %v450_v3, 0.0  ;;  %v461_v7 = vld [vmem:[%s1294_s0 + $0x18] sm:$0xff]  ;;  %v468_v10 = vld [vmem:[%s1294_s0 + $0x20] sm:$0xff]  ;;  %v475_v13 = vld [vmem:[%s1294_s0 + $0x28] sm:$0xff] }
   0x3   :  { %v81_v8 = vadd.f32 %v80_v5, %v79_v4  ;;  %v84_v9 = vsel %vm78_vm1, %v461_v7, 0.0  ;;  %v86_v12 = vsel %vm78_vm1, %v468_v10, 0.0  ;;  %v88_v15 = vsel %vm78_vm1, %v475_v13, 0.0  ;;  %v482_v16 = vld [vmem:[%s1294_s0 + $0x30] sm:$0xff]  ;;  %v487_v18 = vld [vmem:[%s1294_s0 + $0x38] sm:$0xff]  ;;  %v492_v19 = vld [vmem:[%s1294_s0 + $0x40] sm:$0xff] }
   0x4   :  { %v90_v20 = vsel %vm78_vm1, %v482_v16, 0.0  ;;  %v499_v21 = vld [vmem:[%s1294_s0 + $0x48] sm:$0xff]  ;;  %v504_v22 = vld [vmem:[%s1294_s0 + $0x50] sm:$0xff]  ;;  %v509_v23 = vld [vmem:[%s1294_s0 + $0x58] sm:$0xff]  ;;  %v92_v25 = vsel %vm78_vm1, %v487_v18, 0.0  ;;  %v94_v26 = vsel %vm78_vm1, %v492_v19, 0.0 }
   0x5   :  { %v83_v11 = vadd.f32 %v82_v6, %v81_v8  ;;  %v518_v27 = vld [vmem:[%s1294_s0 + $0x108] sm:$0xff]  ;;  %v523_v28 = vld [vmem:[%s1294_s0 + $0x110] sm:$0xff]  ;;  %v528_v29 = vld [vmem:[%s1294_s0 + $0x118] sm:$0xff]  ;;  %v96_v30 = vsel %vm78_vm1, %v499_v21, 0.0  ;;  %v98_v31 = vsel %vm78_vm1, %v504_v22, 0.0  ;;  %v536_v32 = vsel %vm78_vm1, %v509_v23, 0.0 }
   0x6   :  { %v541_v33 = vld [vmem:[%s1294_s0 + $0x120] sm:$0xff]  ;;  %v546_v34 = vld [vmem:[%s1294_s0 + $0x128] sm:$0xff]  ;;  %v551_v35 = vld [vmem:[%s1294_s0 + $0x130] sm:$0xff]  ;;  %v555_v37 = vsel %vm78_vm1, %v518_v27, 0.0  ;;  %v559_v38 = vsel %vm78_vm1, %v523_v28, 0.0  ;;  %v563_v39 = vsel %vm78_vm1, %v528_v29, 0.0 }
   0x7   :  { %v85_v14 = vadd.f32 %v84_v9, %v83_v11  ;;  %1314 = vst [vmem:[#allocation3_spill] sm:$0xff] %v555_v37  ;;  %1315 = vst [vmem:[#allocation4_spill] sm:$0xff] %v559_v38  ;;  %v568_v40 = vld [vmem:[%s1294_s0 + $0x138] sm:$0xff]  ;;  %v573_v41 = vld [vmem:[%s1294_s0 + $0x140] sm:$0xff]  ;;  %v582_v43 = vsel %vm78_vm1, %v541_v33, 0.0  ;;  %v586_v44 = vsel %vm78_vm1, %v546_v34, 0.0  ;;  %v214_v37 = vmul.f32 %v450_v3, %v450_v3 }
   0x8   :  { %1316 = vst [vmem:[#allocation5_spill] sm:$0xff] %v563_v39  ;;  %v578_v42 = vld [vmem:[%s1294_s0 + $0x148] sm:$0xff]  ;;  %1317 = vst [vmem:[#allocation6_spill] sm:$0xff] %v582_v43  ;;  %v590_v45 = vsel %vm78_vm1, %v551_v35, 0.0  ;;  %v595_v46 = vld [vmem:[%s1294_s0 + $0x150] sm:$0xff]  ;;  %v609_v50 = vsel %vm78_vm1, %v568_v40, 0.0 }
   0x9   :  { %v87_v17 = vadd.f32 %v86_v12, %v85_v14  ;;  %1318 = vst [vmem:[#allocation7_spill] sm:$0xff] %v586_v44  ;;  %1319 = vst [vmem:[#allocation8_spill] sm:$0xff] %v590_v45  ;;  %v600_v47 = vld [vmem:[%s1294_s0 + $0x158] sm:$0xff]  ;;  %v605_v48 = vld [vmem:[%s1294_s0 + $0x160] sm:$0xff]  ;;  %v613_v51 = vsel %vm78_vm1, %v573_v41, 0.0  ;;  %v617_v52 = vsel %vm78_vm1, %v578_v42, 0.0 }
   0xa   :  { %1320 = vst [vmem:[#allocation9_spill] sm:$0xff] %v609_v50  ;;  %1321 = vst [vmem:[#allocation10_spill] sm:$0xff] %v613_v51  ;;  %v622_v53 = vld [vmem:[%s1294_s0 + $0x168] sm:$0xff]  ;;  %v627_v54 = vld [vmem:[%s1294_s0 + $0x170] sm:$0xff]  ;;  %v636_v56 = vsel %vm78_vm1, %v595_v46, 0.0  ;;  %v640_v57 = vsel %vm78_vm1, %v600_v47, 0.0 }
   0xb   :  { %v89_v24 = vadd.f32 %v88_v15, %v87_v17  ;;  %1322 = vst [vmem:[#allocation11_spill] sm:$0xff] %v617_v52  ;;  %v632_v55 = vld [vmem:[%s1294_s0 + $0x178] sm:$0xff]  ;;  %1323 = vst [vmem:[#allocation12_spill] sm:$0xff] %v636_v56  ;;  %v644_v58 = vsel %vm78_vm1, %v605_v48, 0.0  ;;  %v649_v59 = vld [vmem:[%s1294_s0 + $0x180] sm:$0xff]  ;;  %v663_v63 = vsel %vm78_vm1, %v622_v53, 0.0 }
   0xc   :  { %1324 = vst [vmem:[#allocation13_spill] sm:$0xff] %v640_v57  ;;  %1325 = vst [vmem:[#allocation14_spill] sm:$0xff] %v644_v58  ;;  %v654_v60 = vld [vmem:[%s1294_s0 + $0x188] sm:$0xff]  ;;  %v659_v61 = vld [vmem:[%s1294_s0 + $0x190] sm:$0xff]  ;;  %v667_v0 = vsel %vm78_vm1, %v627_v54, 0.0  ;;  %v671_v4 = vsel %vm78_vm1, %v632_v55, 0.0 }
   0xd   :  { %v91_v36 = vadd.f32 %v90_v20, %v89_v24  ;;  %1326 = vst [vmem:[#allocation15_spill] sm:$0xff] %v663_v63  ;;  %1327 = vst [vmem:[#allocation16_spill] sm:$0xff] %v667_v0  ;;  %v676_v5 = vld [vmem:[%s1294_s0 + $0x198] sm:$0xff]  ;;  %v681_v6 = vld [vmem:[%s1294_s0 + $0x1a0] sm:$0xff]  ;;  %v690_v9 = vsel %vm78_vm1, %v649_v59, 0.0  ;;  %v694_v11 = vsel %vm78_vm1, %v654_v60, 0.0 }
   0xe   :  { %1328 = vst [vmem:[#allocation17_spill] sm:$0xff] %v671_v4  ;;  %v686_v8 = vld [vmem:[%s1294_s0 + $0x1a8] sm:$0xff]  ;;  %1329 = vst [vmem:[#allocation18_spill] sm:$0xff] %v690_v9  ;;  %v698_v12 = vsel %vm78_vm1, %v659_v61, 0.0  ;;  %v703_v14 = vld [vmem:[%s1294_s0 + $0x60] sm:$0xff] }
   0xf   :  { %v93_v49 = vadd.f32 %v92_v25, %v91_v36  ;;  %1330 = vst [vmem:[#allocation19_spill] sm:$0xff] %v694_v11  ;;  %1331 = vst [vmem:[#allocation20_spill] sm:$0xff] %v698_v12  ;;  %v708_v15 = vld [vmem:[%s1294_s0 + $0x1b0] sm:$0xff]  ;;  %v713_v17 = vld [vmem:[%s1294_s0 + $0x1b8] sm:$0xff]  ;;  %v722_v25 = vsel %vm78_vm1, %v676_v5, 0.0  ;;  %v730_v36 = vsel %vm78_vm1, %v686_v8, 0.0 }
  0x10   :  { %v718_v20 = vld [vmem:[%s1294_s0 + $0x1c0] sm:$0xff]  ;;  %1332 = vst [vmem:[#allocation21_spill] sm:$0xff] %v722_v25  ;;  %1334 = vst [vmem:[#allocation23_spill] sm:$0xff] %v730_v36  ;;  %v753_v36 = vsel %vm78_vm1, %v713_v17, 0.0  ;;  %v767_v11 = vld [vmem:[%s1294_s0 + $0x1e8] sm:$0xff] }
  0x11   :  { %v95_v62 = vadd.f32 %v94_v26, %v93_v49  ;;  %v726_v26 = vsel %vm78_vm1, %v681_v6, 0.0  ;;  %v735_v49 = vld [vmem:[%s1294_s0 + $0x1c8] sm:$0xff]  ;;  %1336 = vst [vmem:[#allocation25_spill] sm:$0xff] %v753_v36  ;;  %v757_v25 = vsel %vm78_vm1, %v718_v20, 0.0  ;;  %v762_v12 = vld [vmem:[%s1294_s0 + $0x1e0] sm:$0xff]  ;;  %v789_v0 = vld [vmem:[%s1294_s0 + $0x1f8] sm:$0xff] }
  0x12   :  { %1333 = vst [vmem:[#allocation22_spill] sm:$0xff] %v726_v26  ;;  %v749_v26 = vsel %vm78_vm1, %v708_v15, 0.0  ;;  %1337 = vst [vmem:[#allocation26_spill] sm:$0xff] %v757_v25  ;;  %v776_v9 = vsel %vm78_vm1, %v735_v49, 0.0  ;;  %v811_v58 = vsel %vm78_vm1, %v789_v0, 0.0  ;;  %v840_v56 = vld [vmem:[%s1294_s0 + $0x90] sm:$0xff] }
  0x13   :  { %v97_v24 = vadd.f32 %v96_v30, %v95_v62  ;;  %v740_v30 = vld [vmem:[%s1294_s0 + $0x1d0] sm:$0xff]  ;;  %v745_v62 = vld [vmem:[%s1294_s0 + $0x1d8] sm:$0xff]  ;;  %1335 = vst [vmem:[#allocation24_spill] sm:$0xff] %v749_v26  ;;  %1339 = vst [vmem:[#allocation28_spill] sm:$0xff] %v776_v9  ;;  %v799_v9 = vsel %vm78_vm1, %v767_v11, 0.0 }
  0x14   :  { %v772_v26 = vld [vmem:[%s1294_s0 + $0x1f0] sm:$0xff]  ;;  %v780_v25 = vsel %vm78_vm1, %v740_v30, 0.0  ;;  %v784_v4 = vsel %vm78_vm1, %v745_v62, 0.0  ;;  %1342 = vst [vmem:[#allocation31_spill] sm:$0xff] %v789_v0  ;;  %1344 = vst [vmem:[#allocation33_spill] sm:$0xff] %v799_v9  ;;  %v845_v52 = vld [vmem:[%s1294_s0 + $0x98] sm:$0xff] }
  0x15   :  { %1338 = vst [vmem:[#allocation27_spill] sm:$0xff] %v772_v26  ;;  %v99_v36 = vadd.f32 %v98_v31, %v97_v24  ;;  %1340 = vst [vmem:[#allocation29_spill] sm:$0xff] %v780_v25  ;;  %v102_v31 = vsel %vm78_vm1, %v703_v14, 0.0  ;;  %v795_v24 = vsel %vm78_vm1, %v762_v12, 0.0  ;;  %v803_v25 = vsel %vm78_vm1, %v772_v26, 0.0  ;;  %v28_v9 = vld [vmem:[%s1294_s0 + $0x70] sm:$0xff] }
  0x16   :  { %1341 = vst [vmem:[#allocation30_spill] sm:$0xff] %v784_v4  ;;  %1343 = vst [vmem:[#allocation32_spill] sm:$0xff] %v795_v24  ;;  %v27_v4 = vld [vmem:[%s1294_s0 + $0x68] sm:$0xff]  ;;  %v850_v51 = vld [vmem:[%s1294_s0 + $0xa0] sm:$0xff]  ;;  %v116_v39 = vsel %vm78_vm1, %v845_v52, 0.0 }
  0x17   :  { %1345 = vst [vmem:[#allocation34_spill] sm:$0xff] %v803_v25  ;;  %v101_v63 = vadd.f32 %v536_v32, %v99_v36  ;;  %1346 = vst [vmem:[#allocation35_spill] sm:$0xff] %v811_v58  ;;  %v104_v24 = vsel %vm78_vm1, %v27_v4, 0.0  ;;  %v820_v25 = vld [vmem:[%s1294_s0 + $0x78] sm:$0xff]  ;;  %v825_v32 = vld [vmem:[%s1294_s0 + $0x80] sm:$0xff]  ;;  %v106_v58 = vsel %vm78_vm1, %v28_v9, 0.0 }
  0x18   :  { %1347 = vst [vmem:[#allocation36_spill] sm:$0xff] %v820_v25  ;;  %1348 = vst [vmem:[#allocation37_spill] sm:$0xff] %v825_v32  ;;  %v830_v36 = vld [vmem:[%s1294_s0 + $0x88] sm:$0xff]  ;;  %v866_v43 = vld [vmem:[%s1294_s0 + $0xb0] sm:$0xff]  ;;  %v118_v38 = vsel %vm78_vm1, %v850_v51, 0.0 }
  0x19   :  { %v103_v57 = vadd.f32 %v102_v31, %v101_v63  ;;  %1349 = vst [vmem:[#allocation38_spill] sm:$0xff] %v830_v36  ;;  %v212_v63 = vmul.f32 %v440_v1, %v440_v1  ;;  %v213_v31 = vmul.f32 %v445_v2, %v445_v2  ;;  %1350 = vst [vmem:[#allocation39_spill] sm:$0xff] %v840_v56  ;;  %v108_v1 = vsel %vm78_vm1, %v820_v25, 0.0  ;;  %v861_v44 = vld [vmem:[%s1294_s0 + $0xa8] sm:$0xff]  ;;  %v907_v0 = vld [vmem:[%s1294_s0 + $0xd8] sm:$0xff] }
  0x1a   :  { %1351 = vst [vmem:[#allocation40_spill] sm:$0xff] %v845_v52  ;;  %1352 = vst [vmem:[#allocation41_spill] sm:$0xff] %v850_v51  ;;  %v110_v2 = vsel %vm78_vm1, %v825_v32, 0.0  ;;  %v112_v45 = vsel %vm78_vm1, %v830_v36, 0.0  ;;  %v884_v36 = vld [vmem:[%s1294_s0 + $0xc0] sm:$0xff]  ;;  %v889_v32 = vld [vmem:[%s1294_s0 + $0xc8] sm:$0xff]  ;;  %v215_v25 = vmul.f32 %v461_v7, %v461_v7 }
  0x1b   :  { %v105_v50 = vadd.f32 %v104_v24, %v103_v57  ;;  %1353 = vst [vmem:[#allocation42_spill] sm:$0xff] %v861_v44  ;;  %1354 = vst [vmem:[#allocation43_spill] sm:$0xff] %v866_v43  ;;  %v871_v57 = vld [vmem:[%s1294_s0 + $0xb8] sm:$0xff]  ;;  %v114_v24 = vsel %vm78_vm1, %v840_v56, 0.0  ;;  %v894_v52 = vld [vmem:[%s1294_s0 + $0xd0] sm:$0xff]  ;;  %v120_v51 = vsel %vm78_vm1, %v861_v44, 0.0 }
  0x1c   :  { %1355 = vst [vmem:[#allocation44_spill] sm:$0xff] %v871_v57  ;;  %1356 = vst [vmem:[#allocation45_spill] sm:$0xff] %v884_v36  ;;  %v900_v3 = vsel %vm78_vm1, %v866_v43, 0.0  ;;  %v912_v26 = vld [vmem:[%s1294_s0 + $0xe0] sm:$0xff]  ;;  %v924_v7 = vsel %vm78_vm1, %v889_v32, 0.0  ;;  %v928_v43 = vsel %vm78_vm1, %v894_v52, 0.0 }
  0x1d   :  { %1357 = vst [vmem:[#allocation46_spill] sm:$0xff] %v889_v32  ;;  %1358 = vst [vmem:[#allocation47_spill] sm:$0xff] %v894_v52  ;;  %v107_v56 = vadd.f32 %v106_v58, %v105_v50  ;;  %v916_v50 = vsel %vm78_vm1, %v871_v57, 0.0  ;;  %v920_v58 = vsel %vm78_vm1, %v884_v36, 0.0  ;;  %v933_v44 = vld [vmem:[%s1294_s0 + $0xe8] sm:$0xff]  ;;  %v938_v57 = vld [vmem:[%s1294_s0 + $0xf0] sm:$0xff]  ;;  %v216_v52 = vmul.f32 %v468_v10, %v468_v10 }
  0x1e   :  { %1359 = vst [vmem:[#allocation48_spill] sm:$0xff] %v907_v0  ;;  %1360 = vst [vmem:[#allocation49_spill] sm:$0xff] %v912_v26  ;;  %v946_v32 = vsel %vm78_vm1, %v912_v26, 0.0  ;;  %v219_v26 = vmul.f32 %v487_v18, %v487_v18  ;;  %v220_v10 = vmul.f32 %v492_v19, %v492_v19  ;;  %v245_v18 = vmul.f32 %v518_v27, %v518_v27 }
  0x1f   :  { %1361 = vst [vmem:[#allocation50_spill] sm:$0xff] %v920_v58  ;;  %1362 = vst [vmem:[#allocation51_spill] sm:$0xff] %v924_v7  ;;  %v109_v36 = vadd.f32 %v108_v1, %v107_v56  ;;  %v942_v58 = vsel %vm78_vm1, %v907_v0, 0.0  ;;  %v956_v7 = vsel %vm78_vm1, %v938_v57, 0.0  ;;  %v217_v56 = vmul.f32 %v475_v13, %v475_v13 }
  0x20   :  { %1363 = vst [vmem:[#allocation52_spill] sm:$0xff] %v928_v43  ;;  %1364 = vst [vmem:[#allocation53_spill] sm:$0xff] %v933_v44  ;;  %v952_v43 = vsel %vm78_vm1, %v933_v44, 0.0  ;;  %v218_v1 = vmul.f32 %v482_v16, %v482_v16  ;;  %v221_v44 = vmul.f32 %v499_v21, %v499_v21  ;;  %v224_v13 = vmul.f32 %v703_v14, %v703_v14 }
  0x21   :  { %1365 = vst [vmem:[#allocation54_spill] sm:$0xff] %v938_v57  ;;  %1366 = vst [vmem:[#allocation55_spill] sm:$0xff] %v956_v7  ;;  %v111_v0 = vadd.f32 %v110_v2, %v109_v36  ;;  %v222_v57 = vmul.f32 %v504_v22, %v504_v22  ;;  %v223_v7 = vmul.f32 %v509_v23, %v509_v23 }
  0x22   :  { %v974_v16 = vmul.f32 %v27_v4, %v27_v4  ;;  %v976_v2 = vmul.f32 %v28_v9, %v28_v9  ;;  %v246_v19 = vmul.f32 %v523_v28, %v523_v28  ;;  %v247_v21 = vmul.f32 %v528_v29, %v528_v29 }
  0x23   :  { %v113_v36 = vadd.f32 %v112_v45, %v111_v0  ;;  %v248_v22 = vmul.f32 %v541_v33, %v541_v33  ;;  %v249_v23 = vmul.f32 %v546_v34, %v546_v34  ;;  %v250_v45 = vmul.f32 %v551_v35, %v551_v35 }
  0x24   :  { %v251_v4 = vmul.f32 %v568_v40, %v568_v40  ;;  %v252_v27 = vmul.f32 %v573_v41, %v573_v41  ;;  %v253_v28 = vmul.f32 %v578_v42, %v578_v42  ;;  %v254_v29 = vmul.f32 %v595_v46, %v595_v46 }
  0x25   :  { %v115_v0 = vadd.f32 %v114_v24, %v113_v36  ;;  %v255_v33 = vmul.f32 %v600_v47, %v600_v47  ;;  %v276_v34 = vsel %vm78_vm1, %v212_v63, 0.0  ;;  %v277_v35 = vsel %vm78_vm1, %v213_v31, 0.0 }
  0x26   :  { %v256_v40 = vmul.f32 %v605_v48, %v605_v48  ;;  %v278_v14 = vadd.f32 %v277_v35, %v276_v34  ;;  %v279_v41 = vsel %vm78_vm1, %v214_v37, 0.0  ;;  %v257_v42 = vmul.f32 %v622_v53, %v622_v53  ;;  %v1368_v34 = vld [vmem:[#allocation31_spill] sm:$0xff] }
  0x27   :  { %v117_v9 = vadd.f32 %v116_v39, %v115_v0  ;;  %v258_v46 = vmul.f32 %v627_v54, %v627_v54  ;;  %v259_v47 = vmul.f32 %v632_v55, %v632_v55  ;;  %v281_v63 = vsel %vm78_vm1, %v215_v25, 0.0  ;;  %v1367_v0 = vld [vmem:[#allocation27_spill] sm:$0xff] }
  0x28   :  { %v260_v39 = vmul.f32 %v649_v59, %v649_v59  ;;  %v261_v48 = vmul.f32 %v654_v60, %v654_v60  ;;  %v280_v31 = vadd.f32 %v279_v41, %v278_v14  ;;  %v262_v37 = vmul.f32 %v659_v61, %v659_v61  ;;  %v1369_v41 = vld [vmem:[#allocation50_spill] sm:$0xff] }
  0x29   :  { %v119_v24 = vadd.f32 %v118_v38, %v117_v9  ;;  %v263_v53 = vmul.f32 %v676_v5, %v676_v5  ;;  %v264_v54 = vmul.f32 %v681_v6, %v681_v6  ;;  %v283_v55 = vsel %vm78_vm1, %v216_v52, 0.0 }
  0x2a   :  { %v265_v38 = vmul.f32 %v686_v8, %v686_v8  ;;  %v266_v59 = vmul.f32 %v708_v15, %v708_v15  ;;  %v282_v60 = vadd.f32 %v281_v63, %v280_v31  ;;  %v267_v36 = vmul.f32 %v713_v17, %v713_v17 }
  0x2b   :  { %v121_v25 = vadd.f32 %v120_v51, %v119_v24  ;;  %v268_v61 = vmul.f32 %v718_v20, %v718_v20  ;;  %v269_v5 = vmul.f32 %v735_v49, %v735_v49  ;;  %v285_v6 = vsel %vm78_vm1, %v217_v56, 0.0 }
  0x2c   :  { %v270_v52 = vmul.f32 %v740_v30, %v740_v30  ;;  %v271_v8 = vmul.f32 %v745_v62, %v745_v62  ;;  %v284_v15 = vadd.f32 %v283_v55, %v282_v60  ;;  %v272_v17 = vmul.f32 %v762_v12, %v762_v12 }
  0x2d   :  { %v123_v51 = vadd.f32 %v900_v3, %v121_v25  ;;  %v273_v20 = vmul.f32 %v767_v11, %v767_v11  ;;  %v274_v49 = vmul.f32 %v1367_v0, %v1367_v0  ;;  %v287_v56 = vsel %vm78_vm1, %v218_v1, 0.0  ;;  %v1371_v25 = vld [vmem:[#allocation52_spill] sm:$0xff] }
  0x2e   :  { %v275_v30 = vmul.f32 %v1368_v34, %v1368_v34  ;;  %v286_v35 = vadd.f32 %v285_v6, %v284_v15  ;;  %v289_v62 = vsel %vm78_vm1, %v219_v26, 0.0  ;;  %v291_v9 = vsel %vm78_vm1, %v220_v10, 0.0  ;;  %v1373_v34 = vld [vmem:[#allocation55_spill] sm:$0xff] }
  0x2f   :  { %v125_v3 = vadd.f32 %v916_v50, %v123_v51  ;;  %v293_v12 = vsel %vm78_vm1, %v221_v44, 0.0  ;;  %v295_v14 = vsel %vm78_vm1, %v222_v57, 0.0  ;;  %v297_v11 = vsel %vm78_vm1, %v223_v7, 0.0  ;;  %v1370_v7 = vld [vmem:[#allocation51_spill] sm:$0xff] }
  0x30   :  { %v288_v24 = vadd.f32 %v287_v56, %v286_v35  ;;  %v299_v1 = vsel %vm78_vm1, %v224_v13, 0.0  ;;  %v1057_v50 = vsel %vm78_vm1, %v245_v18, 0.0  ;;  %v1060_v31 = vsel %vm78_vm1, %v246_v19, 0.0  ;;  %v1372_v56 = vld [vmem:[#allocation36_spill] sm:$0xff] }
  0x31   :  { %v127_v63 = vadd.f32 %v1369_v41, %v125_v3  ;;  %v1063_v26 = vsel %vm78_vm1, %v247_v21, 0.0  ;;  %v1066_v44 = vsel %vm78_vm1, %v248_v22, 0.0  ;;  %v1069_v57 = vsel %vm78_vm1, %v249_v23, 0.0 }
  0x32   :  { %v290_v55 = vadd.f32 %v289_v62, %v288_v24  ;;  %v1073_v13 = vsel %vm78_vm1, %v250_v45, 0.0  ;;  %v1076_v18 = vsel %vm78_vm1, %v251_v4, 0.0  ;;  %v1079_v19 = vsel %vm78_vm1, %v252_v27, 0.0  ;;  %v1374_v62 = vld [vmem:[#allocation37_spill] sm:$0xff] }
  0x33   :  { %v129_v10 = vadd.f32 %v1370_v7, %v127_v63  ;;  %v1082_v21 = vsel %vm78_vm1, %v253_v28, 0.0  ;;  %v1085_v22 = vsel %vm78_vm1, %v254_v29, 0.0  ;;  %v1088_v23 = vsel %vm78_vm1, %v255_v33, 0.0 }
  0x34   :  { %v292_v6 = vadd.f32 %v291_v9, %v290_v55  ;;  %v1092_v45 = vsel %vm78_vm1, %v256_v40, 0.0  ;;  %v1095_v4 = vsel %vm78_vm1, %v257_v42, 0.0  ;;  %v1098_v27 = vsel %vm78_vm1, %v258_v46, 0.0 }
  0x35   :  { %v131_v60 = vadd.f32 %v1371_v25, %v129_v10  ;;  %v1101_v28 = vsel %vm78_vm1, %v259_v47, 0.0  ;;  %v1104_v29 = vsel %vm78_vm1, %v260_v39, 0.0  ;;  %v1107_v33 = vsel %vm78_vm1, %v261_v48, 0.0  ;;  %v1376_v10 = vld [vmem:[#allocation39_spill] sm:$0xff] }
  0x36   :  { %v294_v15 = vadd.f32 %v293_v12, %v292_v6  ;;  %v1111_v40 = vsel %vm78_vm1, %v262_v37, 0.0  ;;  %v1114_v42 = vsel %vm78_vm1, %v263_v53, 0.0  ;;  %v1117_v46 = vsel %vm78_vm1, %v264_v54, 0.0  ;;  %v1377_v25 = vld [vmem:[#allocation3_spill] sm:$0xff] }
  0x37   :  { %v133_v51 = vadd.f32 %v942_v58, %v131_v60  ;;  %v1120_v47 = vsel %vm78_vm1, %v265_v38, 0.0  ;;  %v1123_v39 = vsel %vm78_vm1, %v266_v59, 0.0  ;;  %v1126_v48 = vsel %vm78_vm1, %v267_v36, 0.0 }
  0x38   :  { %v296_v0 = vadd.f32 %v295_v14, %v294_v15  ;;  %v1130_v37 = vsel %vm78_vm1, %v268_v61, 0.0  ;;  %v1133_v53 = vsel %vm78_vm1, %v269_v5, 0.0  ;;  %v1136_v54 = vsel %vm78_vm1, %v270_v52, 0.0 }
  0x39   :  { %v135_v58 = vadd.f32 %v946_v32, %v133_v51  ;;  %v1139_v38 = vsel %vm78_vm1, %v271_v8, 0.0  ;;  %v1142_v59 = vsel %vm78_vm1, %v272_v17, 0.0  ;;  %v1145_v36 = vsel %vm78_vm1, %v273_v20, 0.0  ;;  %v1150_v32 = vld [vmem:[%s1294_s0 + $0xf8] sm:$0xff]  ;;  %v1378_v51 = vld [vmem:[#allocation40_spill] sm:$0xff] }
  0x3a   :  { %v298_v5 = vadd.f32 %v297_v11, %v296_v0  ;;  %v1154_v52 = vsel %vm78_vm1, %v274_v49, 0.0  ;;  %v1157_v8 = vsel %vm78_vm1, %v275_v30, 0.0  ;;  %v140_v17 = vsel %vm78_vm1, %v1150_v32, 0.0 }
  0x3b   :  { %v137_v61 = vadd.f32 %v952_v43, %v135_v58  ;;  %v227_v20 = vmul.f32 %v1372_v56, %v1372_v56  ;;  %v301_v3 = vsel %vm78_vm1, %v974_v16, 0.0  ;;  %v1168_v43 = vld [vmem:[%s1294_s0 + $0x100] sm:$0xff]  ;;  %v228_v9 = vmul.f32 %v1374_v62, %v1374_v62  ;;  %v1379_v58 = vld [vmem:[#allocation4_spill] sm:$0xff] }
  0x3c   :  { %v300_v35 = vadd.f32 %v299_v1, %v298_v5  ;;  %v142_v30 = vsel %vm78_vm1, %v1168_v43, 0.0  ;;  %v303_v12 = vsel %vm78_vm1, %v976_v2, 0.0  ;;  %v1375_v16 = vld [vmem:[#allocation38_spill] sm:$0xff]  ;;  %v230_v1 = vmul.f32 %v1376_v10, %v1376_v10  ;;  %v1380_v5 = vld [vmem:[#allocation41_spill] sm:$0xff] }
  0x3d   :  { %v139_v49 = vadd.f32 %v1373_v34, %v137_v61  ;;  %v229_v41 = vmul.f32 %v1375_v16, %v1375_v16  ;;  %v305_v63 = vsel %vm78_vm1, %v227_v20, 0.0  ;;  %v307_v55 = vsel %vm78_vm1, %v228_v9, 0.0  ;;  %v1381_v20 = vld [vmem:[#allocation5_spill] sm:$0xff]  ;;  %v1383_v62 = vld [vmem:[#allocation6_spill] sm:$0xff] }
  0x3e   :  { %v302_v11 = vadd.f32 %v301_v3, %v300_v35  ;;  %v231_v2 = vmul.f32 %v1378_v51, %v1378_v51  ;;  %v311_v56 = vsel %vm78_vm1, %v230_v1, 0.0 }
  0x3f   :  { %v141_v14 = vadd.f32 %v140_v17, %v139_v49  ;;  %v309_v15 = vsel %vm78_vm1, %v229_v41, 0.0  ;;  %v232_v17 = vmul.f32 %v1380_v5, %v1380_v5  ;;  %v1382_v49 = vld [vmem:[#allocation42_spill] sm:$0xff]  ;;  %v1385_v41 = vld [vmem:[#allocation7_spill] sm:$0xff] }
  0x40   :  { %v304_v7 = vadd.f32 %v303_v12, %v302_v11  ;;  %v233_v35 = vmul.f32 %v1382_v49, %v1382_v49 }
  0x41   :  { %v143_v24 = vadd.f32 %v142_v30, %v141_v14  ;;  %v313_v30 = vsel %vm78_vm1, %v231_v2, 0.0  ;;  %v1384_v14 = vld [vmem:[#allocation43_spill] sm:$0xff]  ;;  %v315_v16 = vsel %vm78_vm1, %v232_v17, 0.0 }
  0x42   :  { %v306_v6 = vadd.f32 %v305_v63, %v304_v7  ;;  %v234_v11 = vmul.f32 %v1384_v14, %v1384_v14  ;;  %v1386_v7 = vld [vmem:[#allocation44_spill] sm:$0xff]  ;;  %v317_v1 = vsel %vm78_vm1, %v233_v35, 0.0 }
  0x43   :  { %v145_v60 = vadd.f32 %v1377_v25, %v143_v24  ;;  %v235_v10 = vmul.f32 %v1386_v7, %v1386_v7 }
  0x44   :  { %v308_v61 = vadd.f32 %v307_v55, %v306_v6  ;;  %v1387_v55 = vld [vmem:[#allocation8_spill] sm:$0xff]  ;;  %v1388_v6 = vld [vmem:[#allocation45_spill] sm:$0xff]  ;;  %v319_v2 = vsel %vm78_vm1, %v234_v11, 0.0 }
  0x45   :  { %v147_v0 = vadd.f32 %v1379_v58, %v145_v60  ;;  %v236_v51 = vmul.f32 %v1388_v6, %v1388_v6  ;;  %v321_v17 = vsel %vm78_vm1, %v235_v10, 0.0 }
  0x46   :  { %v310_v34 = vadd.f32 %v309_v15, %v308_v61  ;;  %v1389_v15 = vld [vmem:[#allocation9_spill] sm:$0xff]  ;;  %v1390_v61 = vld [vmem:[#allocation46_spill] sm:$0xff] }
  0x47   :  { %v149_v3 = vadd.f32 %v1381_v20, %v147_v0  ;;  %v237_v5 = vmul.f32 %v1390_v61, %v1390_v61  ;;  %v323_v35 = vsel %vm78_vm1, %v236_v51, 0.0 }
  0x48   :  { %v312_v12 = vadd.f32 %v311_v56, %v310_v34  ;;  %v1391_v56 = vld [vmem:[#allocation10_spill] sm:$0xff]  ;;  %v1392_v34 = vld [vmem:[#allocation47_spill] sm:$0xff] }
  0x49   :  { %v151_v9 = vadd.f32 %v1383_v62, %v149_v3  ;;  %v238_v49 = vmul.f32 %v1392_v34, %v1392_v34  ;;  %v325_v11 = vsel %vm78_vm1, %v237_v5, 0.0 }
  0x4a   :  { %v314_v24 = vadd.f32 %v313_v30, %v312_v12  ;;  %v1393_v30 = vld [vmem:[#allocation11_spill] sm:$0xff]  ;;  %v1394_v12 = vld [vmem:[#allocation48_spill] sm:$0xff] }
  0x4b   :  { %v153_v63 = vadd.f32 %v1385_v41, %v151_v9  ;;  %v239_v14 = vmul.f32 %v1394_v12, %v1394_v12  ;;  %v327_v10 = vsel %vm78_vm1, %v238_v49, 0.0  ;;  %v1402_v49 = vld [vmem:[#allocation16_spill] sm:$0xff]  ;;  %v1403_v12 = vld [vmem:[#allocation17_spill] sm:$0xff] }
  0x4c   :  { %v316_v60 = vadd.f32 %v315_v16, %v314_v24  ;;  %v1395_v16 = vld [vmem:[#allocation12_spill] sm:$0xff]  ;;  %v1396_v24 = vld [vmem:[#allocation49_spill] sm:$0xff] }
  0x4d   :  { %v155_v25 = vadd.f32 %v1387_v55, %v153_v63  ;;  %v240_v7 = vmul.f32 %v1396_v24, %v1396_v24  ;;  %v329_v51 = vsel %vm78_vm1, %v239_v14, 0.0 }
  0x4e   :  { %v318_v0 = vadd.f32 %v317_v1, %v316_v60  ;;  %v1397_v1 = vld [vmem:[#allocation13_spill] sm:$0xff] }
  0x4f   :  { %v157_v58 = vadd.f32 %v1389_v15, %v155_v25  ;;  %v1398_v60 = vld [vmem:[#allocation53_spill] sm:$0xff]  ;;  %v331_v5 = vsel %vm78_vm1, %v240_v7, 0.0  ;;  %v1405_v7 = vld [vmem:[#allocation19_spill] sm:$0xff] }
  0x50   :  { %v320_v3 = vadd.f32 %v319_v2, %v318_v0  ;;  %v241_v6 = vmul.f32 %v1398_v60, %v1398_v60  ;;  %v1399_v2 = vld [vmem:[#allocation14_spill] sm:$0xff] }
  0x51   :  { %v159_v20 = vadd.f32 %v1391_v56, %v157_v58  ;;  %v1400_v0 = vld [vmem:[#allocation54_spill] sm:$0xff] }
  0x52   :  { %v322_v9 = vadd.f32 %v321_v17, %v320_v3  ;;  %v242_v61 = vmul.f32 %v1400_v0, %v1400_v0  ;;  %v1401_v17 = vld [vmem:[#allocation15_spill] sm:$0xff]  ;;  %v243_v3 = vmul.f32 %v1150_v32, %v1150_v32  ;;  %v333_v34 = vsel %vm78_vm1, %v241_v6, 0.0  ;;  %v1407_v6 = vld [vmem:[#allocation21_spill] sm:$0xff] }
  0x53   :  { %v161_v62 = vadd.f32 %v1393_v30, %v159_v20  ;;  %v1409_v0 = vld [vmem:[#allocation23_spill] sm:$0xff] }
  0x54   :  { %v324_v63 = vadd.f32 %v323_v35, %v322_v9  ;;  %v335_v9 = vsel %vm78_vm1, %v242_v61, 0.0 }
  0x55   :  { %v163_v41 = vadd.f32 %v1395_v16, %v161_v62  ;;  %v244_v62 = vmul.f32 %v1168_v43, %v1168_v43  ;;  %v337_v16 = vsel %vm78_vm1, %v243_v3, 0.0  ;;  %v1411_v3 = vld [vmem:[#allocation25_spill] sm:$0xff] }
  0x56   :  { %v326_v25 = vadd.f32 %v325_v11, %v324_v63 }
  0x57   :  { %v165_v55 = vadd.f32 %v1397_v1, %v163_v41  ;;  %v1404_v41 = vld [vmem:[#allocation18_spill] sm:$0xff]  ;;  %v339_v32 = vsel %vm78_vm1, %v244_v62, 0.0  ;;  %v1413_v62 = vld [vmem:[#allocation28_spill] sm:$0xff] }
  0x58   :  { %v328_v58 = vadd.f32 %v327_v10, %v326_v25 }
  0x59   :  { %v167_v15 = vadd.f32 %v1399_v2, %v165_v55  ;;  %v1406_v55 = vld [vmem:[#allocation20_spill] sm:$0xff]  ;;  %v1408_v2 = vld [vmem:[#allocation22_spill] sm:$0xff] }
  0x5a   :  { %v330_v20 = vadd.f32 %v329_v51, %v328_v58 }
  0x5b   :  { %v169_v56 = vadd.f32 %v1401_v17, %v167_v15  ;;  %v1410_v17 = vld [vmem:[#allocation24_spill] sm:$0xff] }
  0x5c   :  { %v332_v30 = vadd.f32 %v331_v5, %v330_v20 }
  0x5d   :  { %v171_v35 = vadd.f32 %v1402_v49, %v169_v56 }
  0x5e   :  { %v334_v11 = vadd.f32 %v333_v34, %v332_v30 }
  0x5f   :  { %v173_v14 = vadd.f32 %v1403_v12, %v171_v35  ;;  %v1412_v35 = vld [vmem:[#allocation26_spill] sm:$0xff]  ;;  %v1414_v12 = vld [vmem:[#allocation29_spill] sm:$0xff] }
  0x60   :  { %v336_v24 = vadd.f32 %v335_v9, %v334_v11  ;;  %v1415_v11 = vld [vmem:[#allocation30_spill] sm:$0xff] }
  0x61   :  { %v175_v63 = vadd.f32 %v1404_v41, %v173_v14  ;;  %v1416_v41 = vld [vmem:[#allocation32_spill] sm:$0xff] }
  0x62   :  { %v338_v1 = vadd.f32 %v337_v16, %v336_v24  ;;  %v1417_v24 = vld [vmem:[#allocation33_spill] sm:$0xff] }
  0x63   :  { %v177_v10 = vadd.f32 %v1405_v7, %v175_v63  ;;  %v1418_v7 = vld [vmem:[#allocation34_spill] sm:$0xff] }
  0x64   :  { %v340_v60 = vadd.f32 %v339_v32, %v338_v1  ;;  %v1419_v1 = vld [vmem:[#allocation35_spill] sm:$0xff] }
  0x65   :  { %v179_v25 = vadd.f32 %v1406_v55, %v177_v10 }
  0x66   :  { %v342_v51 = vadd.f32 %v1057_v50, %v340_v60 }
  0x67   :  { %v181_v43 = vadd.f32 %v1407_v6, %v179_v25 }
  0x68   :  { %v344_v58 = vadd.f32 %v1060_v31, %v342_v51 }
  0x69   :  { %v183_v15 = vadd.f32 %v1408_v2, %v181_v43 }
  0x6a   :  { %v346_v5 = vadd.f32 %v1063_v26, %v344_v58 }
  0x6b   :  { %v185_v61 = vadd.f32 %v1409_v0, %v183_v15 }
  0x6c   :  { %v348_v20 = vadd.f32 %v1066_v44, %v346_v5 }
  0x6d   :  { %v187_v56 = vadd.f32 %v1410_v17, %v185_v61  ;;  %v409_v17 = vld [vmem:[#allocation2] sm:$0x3] }
  0x6e   :  { %v350_v49 = vadd.f32 %v1069_v57, %v348_v20 }
  0x6f   :  { %v189_v34 = vadd.f32 %v1411_v3, %v187_v56 }
  0x70   :  { %v352_v50 = vadd.f32 %v1073_v13, %v350_v49 }
  0x71   :  { %v191_v30 = vadd.f32 %v1412_v35, %v189_v34 }
  0x72   :  { %v354_v31 = vadd.f32 %v1076_v18, %v352_v50 }
  0x73   :  { %v193_v9 = vadd.f32 %v1413_v62, %v191_v30 }
  0x74   :  { %v356_v26 = vadd.f32 %v1079_v19, %v354_v31 }
  0x75   :  { %v195_v14 = vadd.f32 %v1414_v12, %v193_v9 }
  0x76   :  { %v358_v44 = vadd.f32 %v1082_v21, %v356_v26 }
  0x77   :  { %v197_v16 = vadd.f32 %v1415_v11, %v195_v14 }
  0x78   :  { %v360_v57 = vadd.f32 %v1085_v22, %v358_v44 }
  0x79   :  { %v199_v63 = vadd.f32 %v1416_v41, %v197_v16 }
  0x7a   :  { %v362_v13 = vadd.f32 %v1088_v23, %v360_v57 }
  0x7b   :  { %v201_v32 = vadd.f32 %v1417_v24, %v199_v63 }
  0x7c   :  { %v364_v18 = vadd.f32 %v1092_v45, %v362_v13 }
  0x7d   :  { %v203_v10 = vadd.f32 %v1418_v7, %v201_v32 }
  0x7e   :  { %v366_v19 = vadd.f32 %v1095_v4, %v364_v18 }
  0x7f   :  { %v205_v55 = vadd.f32 %v1419_v1, %v203_v10 }
  0x80   :  { %v368_v25 = vadd.f32 %v1098_v27, %v366_v19 }
  0x81   :  { %v206_v2 = vrot.slane %v205_v55, 4 }
  0x82   :  { %v370_v21 = vadd.f32 %v1101_v28, %v368_v25 }
  0x84   :  { %v372_v60 = vadd.f32 %v1104_v29, %v370_v21 }
  0x86   :  { %v374_v22 = vadd.f32 %v1107_v33, %v372_v60 }
  0x88   :  { %v376_v6 = vadd.f32 %v1111_v40, %v374_v22  ;;  %v207_v40 = vadd.f32 %v206_v2, %v205_v55 }
  0x8a   :  { %v378_v23 = vadd.f32 %v1114_v42, %v376_v6  ;;  %v208_v15 = vrot.slane %v207_v40, 2 }
  0x8c   :  { %v380_v43 = vadd.f32 %v1117_v46, %v378_v23 }
  0x8e   :  { %v382_v45 = vadd.f32 %v1120_v47, %v380_v43 }
  0x90   :  { %v384_v51 = vadd.f32 %v1123_v39, %v382_v45 }
  0x92   :  { %v386_v4 = vadd.f32 %v1126_v48, %v384_v51  ;;  %v209_v48 = vadd.f32 %v208_v15, %v207_v40 }
  0x94   :  { %v388_v27 = vadd.f32 %v1130_v37, %v386_v4  ;;  %v210_v0 = vrot.slane %v209_v48, 1 }
  0x96   :  { %v390_v28 = vadd.f32 %v1133_v53, %v388_v27  ;;  %v211_v5 = vadd.f32 %v210_v0, %v209_v48 }
  0x98   :  { %v392_v29 = vadd.f32 %v1136_v54, %v390_v28 }
  0x9a   :  { %v394_v33 = vadd.f32 %v1139_v38, %v392_v29 }
  0x9c   :  { %v396_v42 = vadd.f32 %v1142_v59, %v394_v33 }
  0x9e   :  { %v398_v46 = vadd.f32 %v1145_v36, %v396_v42 }
  0xa0   :  { %v400_v47 = vadd.f32 %v1154_v52, %v398_v46 }
  0xa2   :  { %v402_v39 = vadd.f32 %v1157_v8, %v400_v47 }
  0xa4   :  { %v403_v58 = vrot.slane %v402_v39, 4 }
  0xa6   :  { %v404_v37 = vadd.f32 %v403_v58, %v402_v39 }
  0xa8   :  { %v405_v53 = vrot.slane %v404_v37, 2 }
  0xaa   :  { %v406_v61 = vadd.f32 %v405_v53, %v404_v37 }
  0xac   :  { %v407_v54 = vrot.slane %v406_v61, 1 }
  0xae   :  { %v408_v38 = vadd.f32 %v407_v54, %v406_v61 }
  0xb0   :  { %v411_v56 = vsel %vm410_vm2, %v211_v5, %v408_v38 }
  0xb1   :  { %v412_v59 = vadd.f32 %v411_v56, %v409_v17 }
  0xb3   :  { %414 = vst.msk [vmem:[#allocation2] sm:$0x3] %vm12_vm0, %v412_v59 }
  0xba   :  { %v418_v36 = vld [vmem:[#allocation2] sm:$0x3] }
  0xbb   :  { %419 = vst.msk [vmem:[%s1295_s1] sm:$0x3] %vm12_vm0, %v418_v36 }

// kernel: resnet_forward.60
= control target key start
LH: loop header
LB: loop body
LE: loop exit
PB: predicated region body
PF: predicated region fallthrough
CT: control target
= control target key end

     0   :  { %s1288_s9 = smov 0   ;;  %s1290_s10 = smov 0   ;;  %s1540_s0 = inlined_call_operand.vmem [shape: bf16[512,256], index: 0, kind: input, shape index: {}]   ;;  %s1541_s1 = inlined_call_operand.vmem [shape: bf16[256,64], index: 1, kind: input, shape index: {}]   ;;  %s1542_s2 = inlined_call_operand.vmem [shape: f32[512,64], index: 2, kind: output, shape index: {}]  }
   0x1   :  { %s1292_s11 = smov 0  }
   0x2 LB: > { %s24_s12 = sadd.s32 1, %s1266_s10  ;;  %p974_p0 = scmp.ge.s32.totalorder %s1270_s11, 1  ;;  %s1270_s11 = sphi %s1292_s11, %s12_s11   ;;  %s1266_s10 = sphi %s1290_s10, %s1544_s10   ;;  %s1262_s9 = sphi %s1288_s9, %s1543_s9  }
   0x3   : > { %p26_p1 = scmp.ge.s32.totalorder %s24_s12, 2  ;;  %p144_p2 = scmp.lt.s32.totalorder %s1270_s11, 3 }
   0x5   : > { %s1546_s12 = smov (%p26_p1, %s24_s12), 0  ;;  %p145_p3 = pnand %p974_p0, %p144_p2 }
   0x6   : > { %v1184_v0 = vld [vmem:[%s1541_s1 + $0x40] sm:$0xff] (!%p145_p3)   ;;  %s975_s15 = sshll.u32 (!%p145_p3), %s1262_s9, 5  ;;  %v1186_v2 = vld [vmem:[%s1541_s1 + $0x48] sm:$0xff] (!%p145_p3)   ;;  %v1188_v4 = vld [vmem:[%s1541_s1 + $0x50] sm:$0xff] (!%p145_p3)   ;;  %vm205_vm0 = vcmask (!%p145_p3), 523264   ;;  %v1272_v48 = vmov (!%p145_p3), 0.0  }
   0x7   : > { %148 = sbr.rel (%p145_p3) target bundleno = 324 (0x144), region = 28  ;;  %v1185_v1 = vld [vmem:[%s1541_s1] sm:$0xff] (!%p145_p3)   ;;  %1031 = vmatprep.subr.bf16.mxu0 (!%p145_p3), %v1184_v0  ;;  %1143 = vmatprep.subr.bf16.mxu1 (!%p145_p3), %v1184_v0  ;;  %v1187_v3 = vld [vmem:[%s1541_s1 + $0x8] sm:$0xff] (!%p145_p3)   ;;  %p178_p4 = scmp.lt.s32.totalorder (!%p145_p3), %s975_s15, 63  ;;  %v1189_v5 = vld [vmem:[%s1541_s1 + $0x10] sm:$0xff] (!%p145_p3)   ;;  %206 = vst.msk [vmem:[#allocation2] sm:$0xff] (!%p145_p3), %vm205_vm0, %v1272_v48 }
   0x8   : > { %1032 = vmatpush3.bf16.msra.mxu0 (!%p145_p3), %v1185_v1  ;;  %1151 = vmatpush3.bf16.msra.mxu1 (!%p145_p3), %v1185_v1  ;;  %v1190_v6 = vld [vmem:[%s1541_s1 + $0x58] sm:$0xff] (!%p145_p3)   ;;  %v1192_v8 = vld [vmem:[%s1541_s1 + $0x60] sm:$0xff] (!%p145_p3)   ;;  %v1194_v10 = vld [vmem:[%s1541_s1 + $0x68] sm:$0xff] (!%p145_p3)   ;;  %207 = vst.msk [vmem:[#allocation2 + $0x8] sm:$0xff] (!%p145_p3), %vm205_vm0, %v1272_v48 }
   0x9   : > { %1033 = vmatprep.subr.bf16.mxu0 (!%p145_p3), %v1186_v2  ;;  %1144 = vmatprep.subr.bf16.mxu1 (!%p145_p3), %v1186_v2  ;;  %v1191_v7 = vld [vmem:[%s1541_s1 + $0x18] sm:$0xff] (!%p145_p3)   ;;  %v1193_v9 = vld [vmem:[%s1541_s1 + $0x20] sm:$0xff] (!%p145_p3)   ;;  %v1195_v13 = vld [vmem:[%s1541_s1 + $0x28] sm:$0xff] (!%p145_p3)   ;;  %208 = vst.msk [vmem:[#allocation2 + $0x10] sm:$0xff] (!%p145_p3), %vm205_vm0, %v1272_v48 }
   0xa   : > { %v1196_v14 = vld [vmem:[%s1541_s1 + $0x70] sm:$0xff] (!%p145_p3)   ;;  %v1198_v16 = vld [vmem:[%s1541_s1 + $0x78] sm:$0xff] (!%p145_p3)   ;;  %209 = vst.msk [vmem:[#allocation2 + $0x18] sm:$0xff] (!%p145_p3), %vm205_vm0, %v1272_v48  ;;  %210 = vst.msk [vmem:[#allocation2 + $0x20] sm:$0xff] (!%p145_p3), %vm205_vm0, %v1272_v48 }
   0xb   : > { %v1197_v15 = vld [vmem:[%s1541_s1 + $0x30] sm:$0xff] (!%p145_p3)   ;;  %v1199_v17 = vld [vmem:[%s1541_s1 + $0x38] sm:$0xff] (!%p145_p3)   ;;  %211 = vst.msk [vmem:[#allocation2 + $0x28] sm:$0xff] (!%p145_p3), %vm205_vm0, %v1272_v48  ;;  %212 = vst.msk [vmem:[#allocation2 + $0x30] sm:$0xff] (!%p145_p3), %vm205_vm0, %v1272_v48 }
   0xc   : > { %1034 = vmatpush3.bf16.msra.mxu0 (!%p145_p3), %v1187_v3  ;;  %1152 = vmatpush3.bf16.msra.mxu1 (!%p145_p3), %v1187_v3  ;;  %213 = vst.msk [vmem:[#allocation2 + $0x38] sm:$0xff] (!%p145_p3), %vm205_vm0, %v1272_v48  ;;  %214 = vst.msk [vmem:[#allocation2 + $0x40] sm:$0xff] (!%p145_p3), %vm205_vm0, %v1272_v48 }
   0xd   : > { %1035 = vmatprep.subr.bf16.mxu0 (!%p145_p3), %v1188_v4  ;;  %1145 = vmatprep.subr.bf16.mxu1 (!%p145_p3), %v1188_v4  ;;  %215 = vst.msk [vmem:[#allocation2 + $0x48] sm:$0xff] (!%p145_p3), %vm205_vm0, %v1272_v48  ;;  %216 = vst.msk [vmem:[#allocation2 + $0x50] sm:$0xff] (!%p145_p3), %vm205_vm0, %v1272_v48 }
   0xe   : > { %s1548_s15 = smov (!%p178_p4, %s975_s15), 63  ;;  %217 = vst.msk [vmem:[#allocation2 + $0x58] sm:$0xff] %vm205_vm0, %v1272_v48  ;;  %218 = vst.msk [vmem:[#allocation2 + $0x60] sm:$0xff] %vm205_vm0, %v1272_v48  ;;  %v238_v51 = vld [vmem:[#allocation2] sm:$0xff] }
   0xf   : > { %s1030_s30 = sshll.u32 %s1548_s15, 3  ;;  %219 = vst.msk [vmem:[#allocation2 + $0x68] sm:$0xff] %vm205_vm0, %v1272_v48  ;;  %220 = vst.msk [vmem:[#allocation2 + $0x70] sm:$0xff] %vm205_vm0, %v1272_v48  ;;  %v239_v59 = vld [vmem:[#allocation2 + $0x8] sm:$0xff] }
  0x10   : > { %1036 = vmatpush3.bf16.msra.mxu0 %v1189_v5  ;;  %1153 = vmatpush3.bf16.msra.mxu1 %v1189_v5  ;;  %s1341_s7 = scalar_lea.vmem %s1540_s0, %s1030_s30  ;;  %221 = vst.msk [vmem:[#allocation2 + $0x78] sm:$0xff] %vm205_vm0, %v1272_v48  ;;  %222 = vst.msk [vmem:[#allocation2 + $0x80] sm:$0xff] %vm205_vm0, %v1272_v48  ;;  %s1437_s28 = scalar_lea.vmem %s1542_s2, %s1030_s30 }
  0x11   : > { %1037 = vmatprep.subr.bf16.mxu0 %v1190_v6  ;;  %1146 = vmatprep.subr.bf16.mxu1 %v1190_v6  ;;  %v1202_v11 = vld [vmem:[%s1341_s7 + $0x4] ss:$8 sps:$4 sm:$0xff]   ;;  %v1200_v18 = vld [vmem:[%s1341_s7] ss:$8 sps:$4 sm:$0xff]   ;;  %v1206_v20 = vld [vmem:[%s1341_s7 + $0x14] ss:$8 sps:$4 sm:$0xff]  }
  0x12   : > { %v1205_v12 = vld [vmem:[%s1341_s7 + $0x84] ss:$8 sps:$4 sm:$0xff]   ;;  %622 = vmatprep.mubr.bf16.mxu0 %v1202_v11  ;;  %v1203_v19 = vld [vmem:[%s1341_s7 + $0x80] ss:$8 sps:$4 sm:$0xff]   ;;  %v1208_v21 = vld [vmem:[%s1341_s7 + $0x94] ss:$8 sps:$4 sm:$0xff]  }
  0x13   : > { %686 = vmatprep.mubr.bf16.mxu1 %v1205_v12  ;;  %v1210_v22 = vld [vmem:[%s1341_s7 + $0x10] ss:$8 sps:$4 sm:$0xff]   ;;  %v1212_v24 = vld [vmem:[%s1341_s7 + $0x24] ss:$8 sps:$4 sm:$0xff]   ;;  %v1216_v26 = vld [vmem:[%s1341_s7 + $0x20] ss:$8 sps:$4 sm:$0xff]  }
  0x14   : > { %1038 = vmatpush3.bf16.msra.mxu0 %v1191_v7  ;;  %1154 = vmatpush3.bf16.msra.mxu1 %v1191_v7  ;;  %v1211_v23 = vld [vmem:[%s1341_s7 + $0x90] ss:$8 sps:$4 sm:$0xff]   ;;  %v1214_v25 = vld [vmem:[%s1341_s7 + $0xa4] ss:$8 sps:$4 sm:$0xff]   ;;  %v1217_v27 = vld [vmem:[%s1341_s7 + $0xa0] ss:$8 sps:$4 sm:$0xff]  }
  0x15   : > { %1039 = vmatprep.subr.bf16.mxu0 %v1192_v8  ;;  %1147 = vmatprep.subr.bf16.mxu1 %v1192_v8  ;;  %v1218_v28 = vld [vmem:[%s1341_s7 + $0x34] ss:$8 sps:$4 sm:$0xff]   ;;  %v1222_v30 = vld [vmem:[%s1341_s7 + $0x30] ss:$8 sps:$4 sm:$0xff]   ;;  %v1224_v32 = vld [vmem:[%s1341_s7 + $0x44] ss:$8 sps:$4 sm:$0xff]  }
  0x16   : > { %v1220_v29 = vld [vmem:[%s1341_s7 + $0xb4] ss:$8 sps:$4 sm:$0xff]   ;;  %v1223_v31 = vld [vmem:[%s1341_s7 + $0xb0] ss:$8 sps:$4 sm:$0xff]   ;;  %v1226_v33 = vld [vmem:[%s1341_s7 + $0xc4] ss:$8 sps:$4 sm:$0xff]  }
  0x17   : > { %v1228_v34 = vld [vmem:[%s1341_s7 + $0x40] ss:$8 sps:$4 sm:$0xff]   ;;  %v1230_v36 = vld [vmem:[%s1341_s7 + $0x54] ss:$8 sps:$4 sm:$0xff]   ;;  %v1234_v38 = vld [vmem:[%s1341_s7 + $0x50] ss:$8 sps:$4 sm:$0xff]  }
  0x18   : > { %1040 = vmatpush3.bf16.msra.mxu0 %v1193_v9  ;;  %1155 = vmatpush3.bf16.msra.mxu1 %v1193_v9  ;;  %v1229_v35 = vld [vmem:[%s1341_s7 + $0xc0] ss:$8 sps:$4 sm:$0xff]   ;;  %v1232_v37 = vld [vmem:[%s1341_s7 + $0xd4] ss:$8 sps:$4 sm:$0xff]   ;;  %v1235_v39 = vld [vmem:[%s1341_s7 + $0xd0] ss:$8 sps:$4 sm:$0xff]  }
  0x19   : > { %1041 = vmatprep.subr.bf16.mxu0 %v1194_v10  ;;  %1148 = vmatprep.subr.bf16.mxu1 %v1194_v10  ;;  %v1236_v40 = vld [vmem:[%s1341_s7 + $0x64] ss:$8 sps:$4 sm:$0xff]   ;;  %v1240_v42 = vld [vmem:[%s1341_s7 + $0x60] ss:$8 sps:$4 sm:$0xff]   ;;  %v1242_v44 = vld [vmem:[%s1341_s7 + $0x74] ss:$8 sps:$4 sm:$0xff]  }
  0x1a   : > { %v1238_v41 = vld [vmem:[%s1341_s7 + $0xe4] ss:$8 sps:$4 sm:$0xff]   ;;  %v1241_v43 = vld [vmem:[%s1341_s7 + $0xe0] ss:$8 sps:$4 sm:$0xff]   ;;  %v1244_v45 = vld [vmem:[%s1341_s7 + $0xf4] ss:$8 sps:$4 sm:$0xff]  }
  0x1b   : > { %v1246_v46 = vld [vmem:[%s1341_s7 + $0x70] ss:$8 sps:$4 sm:$0xff]   ;;  %223 = vst.msk [vmem:[#allocation2 + $0x88] sm:$0xff] %vm205_vm0, %v1272_v48  ;;  %224 = vst.msk [vmem:[#allocation2 + $0x90] sm:$0xff] %vm205_vm0, %v1272_v48  ;;  %v254_v53 = vld [vmem:[#allocation2 + $0x80] sm:$0xff] }
  0x1c   : > { %1042 = vmatpush3.bf16.msra.mxu0 %v1195_v13  ;;  %1156 = vmatpush3.bf16.msra.mxu1 %v1195_v13  ;;  %v1247_v47 = vld [vmem:[%s1341_s7 + $0xf0] ss:$8 sps:$4 sm:$0xff]   ;;  %225 = vst.msk [vmem:[#allocation2 + $0x98] sm:$0xff] %vm205_vm0, %v1272_v48  ;;  %226 = vst.msk [vmem:[#allocation2 + $0xa0] sm:$0xff] %vm205_vm0, %v1272_v48 }
  0x1d   : > { %1043 = vmatprep.subr.bf16.mxu0 %v1196_v14  ;;  %1149 = vmatprep.subr.bf16.mxu1 %v1196_v14  ;;  %227 = vst.msk [vmem:[#allocation2 + $0xa8] sm:$0xff] %vm205_vm0, %v1272_v48  ;;  %228 = vst.msk [vmem:[#allocation2 + $0xb0] sm:$0xff] %vm205_vm0, %v1272_v48  ;;  %v240_v7 = vld [vmem:[#allocation2 + $0x10] sm:$0xff] }
  0x1e   : > { %229 = vst.msk [vmem:[#allocation2 + $0xb8] sm:$0xff] %vm205_vm0, %v1272_v48  ;;  %230 = vst.msk [vmem:[#allocation2 + $0xc0] sm:$0xff] %vm205_vm0, %v1272_v48 }
  0x1f   : > { %231 = vst.msk [vmem:[#allocation2 + $0xc8] sm:$0xff] %vm205_vm0, %v1272_v48  ;;  %232 = vst.msk [vmem:[#allocation2 + $0xd0] sm:$0xff] %vm205_vm0, %v1272_v48 }
  0x20   : > { %1044 = vmatpush3.bf16.msra.mxu0 %v1197_v15  ;;  %1157 = vmatpush3.bf16.msra.mxu1 %v1197_v15  ;;  %233 = vst.msk [vmem:[#allocation2 + $0xd8] sm:$0xff] %vm205_vm0, %v1272_v48  ;;  %234 = vst.msk [vmem:[#allocation2 + $0xe0] sm:$0xff] %vm205_vm0, %v1272_v48  ;;  %v241_v15 = vld [vmem:[#allocation2 + $0x18] sm:$0xff] }
  0x21   : > { %1045 = vmatprep.subr.bf16.mxu0 %v1198_v16  ;;  %1150 = vmatprep.subr.bf16.mxu1 %v1198_v16  ;;  %235 = vst.msk [vmem:[#allocation2 + $0xe8] sm:$0xff] %vm205_vm0, %v1272_v48  ;;  %236 = vst.msk [vmem:[#allocation2 + $0xf0] sm:$0xff] %vm205_vm0, %v1272_v48 }
  0x22   : > { %237 = vst.msk [vmem:[#allocation2 + $0xf8] sm:$0xff] %vm205_vm0, %v1272_v48  ;;  %v255_v61 = vld [vmem:[#allocation2 + $0x88] sm:$0xff]  ;;  %v256_v9 = vld [vmem:[#allocation2 + $0x90] sm:$0xff] }
  0x24   : > { %1046 = vmatpush3.bf16.msra.mxu0 %v1199_v17  ;;  %1158 = vmatpush3.bf16.msra.mxu1 %v1199_v17  ;;  %v257_v17 = vld [vmem:[#allocation2 + $0x98] sm:$0xff] }
  0x27   : > { %623 = vmatmul.mubr.bf16.vlgmr.msra.gmra.mrb[0].mxu0 %v1200_v18  ;;  %687 = vmatmul.mubr.bf16.vlgmr.msra.gmra.mrb[0].mxu1 %v1203_v19 }
  0x28   : > { %630 = vmatprep.mubr.bf16.mxu0 %v1206_v20  ;;  %694 = vmatprep.mubr.bf16.mxu1 %v1208_v21 }
  0x2f   : > { %631 = vmatmul.mubr.bf16.gmra.mrb[4].mxu0 %v1210_v22  ;;  %695 = vmatmul.mubr.bf16.gmra.mrb[4].mxu1 %v1211_v23 }
  0x30   : > { %638 = vmatprep.mubr.bf16.mxu0 %v1212_v24  ;;  %702 = vmatprep.mubr.bf16.mxu1 %v1214_v25 }
  0x37   : > { %639 = vmatmul.mubr.bf16.gmra.mrb[8].mxu0 %v1216_v26  ;;  %703 = vmatmul.mubr.bf16.gmra.mrb[8].mxu1 %v1217_v27 }
  0x38   : > { %646 = vmatprep.mubr.bf16.mxu0 %v1218_v28  ;;  %710 = vmatprep.mubr.bf16.mxu1 %v1220_v29 }
  0x3f   : > { %647 = vmatmul.mubr.bf16.gmra.mrb[12].mxu0 %v1222_v30  ;;  %711 = vmatmul.mubr.bf16.gmra.mrb[12].mxu1 %v1223_v31  ;;  %v242_v31 = vld [vmem:[#allocation2 + $0x20] sm:$0xff] }
  0x40   : > { %654 = vmatprep.mubr.bf16.mxu0 %v1224_v32  ;;  %718 = vmatprep.mubr.bf16.mxu1 %v1226_v33  ;;  %v258_v33 = vld [vmem:[#allocation2 + $0xa0] sm:$0xff] }
  0x47   : > { %655 = vmatmul.mubr.bf16.gmra.mrb[16].mxu0 %v1228_v34  ;;  %719 = vmatmul.mubr.bf16.gmra.mrb[16].mxu1 %v1229_v35 }
  0x48   : > { %662 = vmatprep.mubr.bf16.mxu0 %v1230_v36  ;;  %726 = vmatprep.mubr.bf16.mxu1 %v1232_v37 }
  0x4f   : > { %663 = vmatmul.mubr.bf16.gmra.mrb[20].mxu0 %v1234_v38  ;;  %727 = vmatmul.mubr.bf16.gmra.mrb[20].mxu1 %v1235_v39  ;;  %v243_v39 = vld [vmem:[#allocation2 + $0x28] sm:$0xff] }
  0x50   : > { %670 = vmatprep.mubr.bf16.mxu0 %v1236_v40  ;;  %734 = vmatprep.mubr.bf16.mxu1 %v1238_v41  ;;  %v259_v41 = vld [vmem:[#allocation2 + $0xa8] sm:$0xff] }
  0x57   : > { %671 = vmatmul.mubr.bf16.gmra.mrb[24].mxu0 %v1240_v42  ;;  %735 = vmatmul.mubr.bf16.gmra.mrb[24].mxu1 %v1241_v43 }
  0x58   : > { %678 = vmatprep.mubr.bf16.mxu0 %v1242_v44  ;;  %742 = vmatprep.mubr.bf16.mxu1 %v1244_v45 }
  0x5f   : > { %679 = vmatmul.mubr.bf16.gmra.mrb[28].mxu0 %v1246_v46  ;;  %743 = vmatmul.mubr.bf16.gmra.mrb[28].mxu1 %v1247_v47 }
  0xfa   : > { %v1047_v49 = vpop.f32.mrb[0].mxu0  ;;  %v1095_v50 = vpop.f32.mrb[0].mxu1 }
  0xfb   : > { %v1048_v52 = vpop.f32.mrb[1].mxu0  ;;  %v1096_v54 = vpop.f32.mrb[1].mxu1 }
  0xfc   : > { %v1049_v55 = vadd.f32 %v1048_v52, %v1047_v49  ;;  %v1097_v56 = vadd.f32 %v1096_v54, %v1095_v50  ;;  %v1050_v57 = vpop.f32.mrb[2].mxu0  ;;  %v1098_v58 = vpop.f32.mrb[2].mxu1 }
  0xfd   : > { %v1051_v60 = vpop.f32.mrb[3].mxu0  ;;  %v1099_v62 = vpop.f32.mrb[3].mxu1 }
  0xfe   : > { %v751_v63 = vadd.f32 %v1049_v55, %v238_v51  ;;  %v767_v0 = vadd.f32 %v1097_v56, %v254_v53  ;;  %v1052_v1 = vadd.f32 %v1051_v60, %v1050_v57  ;;  %v1100_v2 = vadd.f32 %v1099_v62, %v1098_v58  ;;  %v244_v55 = vld [vmem:[#allocation2 + $0x30] sm:$0xff] }
  0xff   : > { %v260_v57 = vld [vmem:[#allocation2 + $0xb0] sm:$0xff] }
 0x100   : > { %784 = vst.msk [vmem:[#allocation2] sm:$0xff] %vm205_vm0, %v751_v63  ;;  %800 = vst.msk [vmem:[#allocation2 + $0x80] sm:$0xff] %vm205_vm0, %v767_v0  ;;  %v752_v3 = vadd.f32 %v1052_v1, %v239_v59  ;;  %v768_v4 = vadd.f32 %v1100_v2, %v255_v61  ;;  %v245_v63 = vld [vmem:[#allocation2 + $0x38] sm:$0xff] }
 0x101   : > { %v261_v1 = vld [vmem:[#allocation2 + $0xb8] sm:$0xff] }
 0x102   : > { %785 = vst.msk [vmem:[#allocation2 + $0x8] sm:$0xff] %vm205_vm0, %v752_v3  ;;  %801 = vst.msk [vmem:[#allocation2 + $0x88] sm:$0xff] %vm205_vm0, %v768_v4  ;;  %v1053_v5 = vpop.f32.mrb[4].mxu0  ;;  %v1101_v6 = vpop.f32.mrb[4].mxu1 }
 0x103   : > { %v1054_v8 = vpop.f32.mrb[5].mxu0  ;;  %v1102_v10 = vpop.f32.mrb[5].mxu1 }
 0x104   : > { %v1055_v11 = vadd.f32 %v1054_v8, %v1053_v5  ;;  %v1103_v12 = vadd.f32 %v1102_v10, %v1101_v6  ;;  %v1056_v13 = vpop.f32.mrb[6].mxu0  ;;  %v1104_v14 = vpop.f32.mrb[6].mxu1 }
 0x105   : > { %v1057_v16 = vpop.f32.mrb[7].mxu0  ;;  %v1105_v18 = vpop.f32.mrb[7].mxu1 }
 0x106   : > { %v753_v19 = vadd.f32 %v1055_v11, %v240_v7  ;;  %v769_v20 = vadd.f32 %v1103_v12, %v256_v9  ;;  %v1058_v21 = vadd.f32 %v1057_v16, %v1056_v13  ;;  %v1106_v22 = vadd.f32 %v1105_v18, %v1104_v14 }
 0x107   : > { %v819_v23 = vld [vmem:[#allocation2] sm:$0xff] }
 0x108   : > { %v835_v24 = vld [vmem:[#allocation2 + $0x80] sm:$0xff]  ;;  %851 = vst.msk [vmem:[%s1437_s28] sm:$0xff] %vm205_vm0, %v819_v23  ;;  %786 = vst.msk [vmem:[#allocation2 + $0x10] sm:$0xff] %vm205_vm0, %v753_v19  ;;  %v754_v25 = vadd.f32 %v1058_v21, %v241_v15  ;;  %v770_v26 = vadd.f32 %v1106_v22, %v257_v17  ;;  %v247_v23 = vld [vmem:[#allocation2 + $0x48] sm:$0xff] }
 0x109   : > { %867 = vst.msk [vmem:[%s1437_s28 + $0x80] sm:$0xff] %vm205_vm0, %v835_v24  ;;  %802 = vst.msk [vmem:[#allocation2 + $0x90] sm:$0xff] %vm205_vm0, %v769_v20  ;;  %v820_v27 = vld [vmem:[#allocation2 + $0x8] sm:$0xff]  ;;  %v246_v15 = vld [vmem:[#allocation2 + $0x40] sm:$0xff] }
 0x10a   : > { %v836_v28 = vld [vmem:[#allocation2 + $0x88] sm:$0xff]  ;;  %852 = vst.msk [vmem:[%s1437_s28 + $0x8] sm:$0xff] %vm205_vm0, %v820_v27  ;;  %787 = vst.msk [vmem:[#allocation2 + $0x18] sm:$0xff] %vm205_vm0, %v754_v25  ;;  %v1059_v29 = vpop.f32.mrb[8].mxu0  ;;  %v1107_v30 = vpop.f32.mrb[8].mxu1  ;;  %v262_v17 = vld [vmem:[#allocation2 + $0xc0] sm:$0xff] }
 0x10b   : > { %868 = vst.msk [vmem:[%s1437_s28 + $0x88] sm:$0xff] %vm205_vm0, %v836_v28  ;;  %803 = vst.msk [vmem:[#allocation2 + $0x98] sm:$0xff] %vm205_vm0, %v770_v26  ;;  %v1060_v32 = vpop.f32.mrb[9].mxu0  ;;  %v1108_v34 = vpop.f32.mrb[9].mxu1  ;;  %v263_v25 = vld [vmem:[#allocation2 + $0xc8] sm:$0xff] }
 0x10c   : > { %v1061_v35 = vadd.f32 %v1060_v32, %v1059_v29  ;;  %v1109_v36 = vadd.f32 %v1108_v34, %v1107_v30  ;;  %v1062_v37 = vpop.f32.mrb[10].mxu0  ;;  %v1110_v38 = vpop.f32.mrb[10].mxu1 }
 0x10d   : > { %v1063_v40 = vpop.f32.mrb[11].mxu0  ;;  %v1111_v42 = vpop.f32.mrb[11].mxu1 }
 0x10e   : > { %v755_v43 = vadd.f32 %v1061_v35, %v242_v31  ;;  %v771_v44 = vadd.f32 %v1109_v36, %v258_v33  ;;  %v1064_v45 = vadd.f32 %v1063_v40, %v1062_v37  ;;  %v1112_v46 = vadd.f32 %v1111_v42, %v1110_v38 }
 0x10f   : > { %v821_v47 = vld [vmem:[#allocation2 + $0x10] sm:$0xff] }
 0x110   : > { %v837_v48 = vld [vmem:[#allocation2 + $0x90] sm:$0xff]  ;;  %853 = vst.msk [vmem:[%s1437_s28 + $0x10] sm:$0xff] %vm205_vm0, %v821_v47  ;;  %788 = vst.msk [vmem:[#allocation2 + $0x20] sm:$0xff] %vm205_vm0, %v755_v43  ;;  %v756_v49 = vadd.f32 %v1064_v45, %v243_v39  ;;  %v772_v50 = vadd.f32 %v1112_v46, %v259_v41  ;;  %v249_v47 = vld [vmem:[#allocation2 + $0x58] sm:$0xff] }
 0x111   : > { %869 = vst.msk [vmem:[%s1437_s28 + $0x90] sm:$0xff] %vm205_vm0, %v837_v48  ;;  %804 = vst.msk [vmem:[#allocation2 + $0xa0] sm:$0xff] %vm205_vm0, %v771_v44  ;;  %v822_v51 = vld [vmem:[#allocation2 + $0x18] sm:$0xff]  ;;  %v248_v39 = vld [vmem:[#allocation2 + $0x50] sm:$0xff] }
 0x112   : > { %v838_v52 = vld [vmem:[#allocation2 + $0x98] sm:$0xff]  ;;  %854 = vst.msk [vmem:[%s1437_s28 + $0x18] sm:$0xff] %vm205_vm0, %v822_v51  ;;  %789 = vst.msk [vmem:[#allocation2 + $0x28] sm:$0xff] %vm205_vm0, %v756_v49  ;;  %v1065_v53 = vpop.f32.mrb[12].mxu0  ;;  %v1113_v54 = vpop.f32.mrb[12].mxu1  ;;  %v264_v41 = vld [vmem:[#allocation2 + $0xd0] sm:$0xff] }
 0x113   : > { %870 = vst.msk [vmem:[%s1437_s28 + $0x98] sm:$0xff] %vm205_vm0, %v838_v52  ;;  %805 = vst.msk [vmem:[#allocation2 + $0xa8] sm:$0xff] %vm205_vm0, %v772_v50  ;;  %v1066_v56 = vpop.f32.mrb[13].mxu0  ;;  %v1114_v58 = vpop.f32.mrb[13].mxu1  ;;  %v265_v49 = vld [vmem:[#allocation2 + $0xd8] sm:$0xff] }
 0x114   : > { %v1067_v59 = vadd.f32 %v1066_v56, %v1065_v53  ;;  %v1115_v60 = vadd.f32 %v1114_v58, %v1113_v54  ;;  %v1068_v61 = vpop.f32.mrb[14].mxu0  ;;  %v1116_v62 = vpop.f32.mrb[14].mxu1 }
 0x115   : > { %v1069_v0 = vpop.f32.mrb[15].mxu0  ;;  %v1117_v2 = vpop.f32.mrb[15].mxu1 }
 0x116   : > { %v757_v3 = vadd.f32 %v1067_v59, %v244_v55  ;;  %v773_v4 = vadd.f32 %v1115_v60, %v260_v57  ;;  %v1070_v5 = vadd.f32 %v1069_v0, %v1068_v61  ;;  %v1118_v6 = vadd.f32 %v1117_v2, %v1116_v62 }
 0x117   : > { %v823_v7 = vld [vmem:[#allocation2 + $0x20] sm:$0xff] }
 0x118   : > { %v839_v8 = vld [vmem:[#allocation2 + $0xa0] sm:$0xff]  ;;  %855 = vst.msk [vmem:[%s1437_s28 + $0x20] sm:$0xff] %vm205_vm0, %v823_v7  ;;  %790 = vst.msk [vmem:[#allocation2 + $0x30] sm:$0xff] %vm205_vm0, %v757_v3  ;;  %v758_v9 = vadd.f32 %v1070_v5, %v245_v63  ;;  %v774_v10 = vadd.f32 %v1118_v6, %v261_v1  ;;  %v251_v7 = vld [vmem:[#allocation2 + $0x68] sm:$0xff] }
 0x119   : > { %871 = vst.msk [vmem:[%s1437_s28 + $0xa0] sm:$0xff] %vm205_vm0, %v839_v8  ;;  %806 = vst.msk [vmem:[#allocation2 + $0xb0] sm:$0xff] %vm205_vm0, %v773_v4  ;;  %v824_v11 = vld [vmem:[#allocation2 + $0x28] sm:$0xff]  ;;  %v250_v63 = vld [vmem:[#allocation2 + $0x60] sm:$0xff] }
 0x11a   : > { %v840_v12 = vld [vmem:[#allocation2 + $0xa8] sm:$0xff]  ;;  %856 = vst.msk [vmem:[%s1437_s28 + $0x28] sm:$0xff] %vm205_vm0, %v824_v11  ;;  %791 = vst.msk [vmem:[#allocation2 + $0x38] sm:$0xff] %vm205_vm0, %v758_v9  ;;  %v1071_v13 = vpop.f32.mrb[16].mxu0  ;;  %v1119_v14 = vpop.f32.mrb[16].mxu1  ;;  %v266_v1 = vld [vmem:[#allocation2 + $0xe0] sm:$0xff] }
 0x11b   : > { %872 = vst.msk [vmem:[%s1437_s28 + $0xa8] sm:$0xff] %vm205_vm0, %v840_v12  ;;  %807 = vst.msk [vmem:[#allocation2 + $0xb8] sm:$0xff] %vm205_vm0, %v774_v10  ;;  %v1072_v16 = vpop.f32.mrb[17].mxu0  ;;  %v1120_v18 = vpop.f32.mrb[17].mxu1  ;;  %v267_v9 = vld [vmem:[#allocation2 + $0xe8] sm:$0xff] }
 0x11c   : > { %v1073_v19 = vadd.f32 %v1072_v16, %v1071_v13  ;;  %v1121_v20 = vadd.f32 %v1120_v18, %v1119_v14  ;;  %v1074_v21 = vpop.f32.mrb[18].mxu0  ;;  %v1122_v22 = vpop.f32.mrb[18].mxu1 }
 0x11d   : > { %v1075_v24 = vpop.f32.mrb[19].mxu0  ;;  %v1123_v26 = vpop.f32.mrb[19].mxu1 }
 0x11e   : > { %v759_v27 = vadd.f32 %v1073_v19, %v246_v15  ;;  %v775_v28 = vadd.f32 %v1121_v20, %v262_v17  ;;  %v1076_v29 = vadd.f32 %v1075_v24, %v1074_v21  ;;  %v1124_v30 = vadd.f32 %v1123_v26, %v1122_v22 }
 0x11f   : > { %v825_v31 = vld [vmem:[#allocation2 + $0x30] sm:$0xff] }
 0x120   : > { %v841_v32 = vld [vmem:[#allocation2 + $0xb0] sm:$0xff]  ;;  %857 = vst.msk [vmem:[%s1437_s28 + $0x30] sm:$0xff] %vm205_vm0, %v825_v31  ;;  %792 = vst.msk [vmem:[#allocation2 + $0x40] sm:$0xff] %vm205_vm0, %v759_v27  ;;  %v760_v33 = vadd.f32 %v1076_v29, %v247_v23  ;;  %v776_v34 = vadd.f32 %v1124_v30, %v263_v25  ;;  %v253_v31 = vld [vmem:[#allocation2 + $0x78] sm:$0xff] }
 0x121   : > { %873 = vst.msk [vmem:[%s1437_s28 + $0xb0] sm:$0xff] %vm205_vm0, %v841_v32  ;;  %808 = vst.msk [vmem:[#allocation2 + $0xc0] sm:$0xff] %vm205_vm0, %v775_v28  ;;  %v826_v35 = vld [vmem:[#allocation2 + $0x38] sm:$0xff]  ;;  %v252_v23 = vld [vmem:[#allocation2 + $0x70] sm:$0xff] }
 0x122   : > { %v842_v36 = vld [vmem:[#allocation2 + $0xb8] sm:$0xff]  ;;  %858 = vst.msk [vmem:[%s1437_s28 + $0x38] sm:$0xff] %vm205_vm0, %v826_v35  ;;  %793 = vst.msk [vmem:[#allocation2 + $0x48] sm:$0xff] %vm205_vm0, %v760_v33  ;;  %v1077_v37 = vpop.f32.mrb[20].mxu0  ;;  %v1125_v38 = vpop.f32.mrb[20].mxu1  ;;  %v268_v25 = vld [vmem:[#allocation2 + $0xf0] sm:$0xff] }
 0x123   : > { %874 = vst.msk [vmem:[%s1437_s28 + $0xb8] sm:$0xff] %vm205_vm0, %v842_v36  ;;  %809 = vst.msk [vmem:[#allocation2 + $0xc8] sm:$0xff] %vm205_vm0, %v776_v34  ;;  %v1078_v40 = vpop.f32.mrb[21].mxu0  ;;  %v1126_v42 = vpop.f32.mrb[21].mxu1  ;;  %v269_v33 = vld [vmem:[#allocation2 + $0xf8] sm:$0xff] }
 0x124   : > { %v1079_v43 = vadd.f32 %v1078_v40, %v1077_v37  ;;  %v1127_v44 = vadd.f32 %v1126_v42, %v1125_v38  ;;  %v1080_v45 = vpop.f32.mrb[22].mxu0  ;;  %v1128_v46 = vpop.f32.mrb[22].mxu1 }
 0x125   : > { %v1081_v48 = vpop.f32.mrb[23].mxu0  ;;  %v1129_v50 = vpop.f32.mrb[23].mxu1 }
 0x126   : > { %v761_v51 = vadd.f32 %v1079_v43, %v248_v39  ;;  %v777_v52 = vadd.f32 %v1127_v44, %v264_v41  ;;  %v1082_v53 = vadd.f32 %v1081_v48, %v1080_v45  ;;  %v1130_v54 = vadd.f32 %v1129_v50, %v1128_v46 }
 0x127   : > { %v827_v55 = vld [vmem:[#allocation2 + $0x40] sm:$0xff] }
 0x128   : > { %v843_v56 = vld [vmem:[#allocation2 + $0xc0] sm:$0xff]  ;;  %859 = vst.msk [vmem:[%s1437_s28 + $0x40] sm:$0xff] %vm205_vm0, %v827_v55  ;;  %794 = vst.msk [vmem:[#allocation2 + $0x50] sm:$0xff] %vm205_vm0, %v761_v51  ;;  %v762_v57 = vadd.f32 %v1082_v53, %v249_v47  ;;  %v778_v58 = vadd.f32 %v1130_v54, %v265_v49 }
 0x129   : > { %875 = vst.msk [vmem:[%s1437_s28 + $0xc0] sm:$0xff] %vm205_vm0, %v843_v56  ;;  %810 = vst.msk [vmem:[#allocation2 + $0xd0] sm:$0xff] %vm205_vm0, %v777_v52  ;;  %v828_v59 = vld [vmem:[#allocation2 + $0x48] sm:$0xff] }
 0x12a   : > { %v844_v60 = vld [vmem:[#allocation2 + $0xc8] sm:$0xff]  ;;  %860 = vst.msk [vmem:[%s1437_s28 + $0x48] sm:$0xff] %vm205_vm0, %v828_v59  ;;  %795 = vst.msk [vmem:[#allocation2 + $0x58] sm:$0xff] %vm205_vm0, %v762_v57  ;;  %v1083_v61 = vpop.f32.mrb[24].mxu0  ;;  %v1131_v62 = vpop.f32.mrb[24].mxu1 }
 0x12b   : > { %876 = vst.msk [vmem:[%s1437_s28 + $0xc8] sm:$0xff] %vm205_vm0, %v844_v60  ;;  %811 = vst.msk [vmem:[#allocation2 + $0xd8] sm:$0xff] %vm205_vm0, %v778_v58  ;;  %v1084_v0 = vpop.f32.mrb[25].mxu0  ;;  %v1132_v2 = vpop.f32.mrb[25].mxu1 }
 0x12c   : > { %v1085_v3 = vadd.f32 %v1084_v0, %v1083_v61  ;;  %v1133_v4 = vadd.f32 %v1132_v2, %v1131_v62  ;;  %v1086_v5 = vpop.f32.mrb[26].mxu0  ;;  %v1134_v6 = vpop.f32.mrb[26].mxu1 }
 0x12d   : > { %v1087_v8 = vpop.f32.mrb[27].mxu0  ;;  %v1135_v10 = vpop.f32.mrb[27].mxu1 }
 0x12e   : > { %v763_v11 = vadd.f32 %v1085_v3, %v250_v63  ;;  %v779_v12 = vadd.f32 %v1133_v4, %v266_v1  ;;  %v1088_v13 = vadd.f32 %v1087_v8, %v1086_v5  ;;  %v1136_v14 = vadd.f32 %v1135_v10, %v1134_v6 }
 0x12f   : > { %v829_v15 = vld [vmem:[#allocation2 + $0x50] sm:$0xff] }
 0x130   : > { %v845_v16 = vld [vmem:[#allocation2 + $0xd0] sm:$0xff]  ;;  %861 = vst.msk [vmem:[%s1437_s28 + $0x50] sm:$0xff] %vm205_vm0, %v829_v15  ;;  %796 = vst.msk [vmem:[#allocation2 + $0x60] sm:$0xff] %vm205_vm0, %v763_v11  ;;  %v764_v17 = vadd.f32 %v1088_v13, %v251_v7  ;;  %v780_v18 = vadd.f32 %v1136_v14, %v267_v9 }
 0x131   : > { %877 = vst.msk [vmem:[%s1437_s28 + $0xd0] sm:$0xff] %vm205_vm0, %v845_v16  ;;  %812 = vst.msk [vmem:[#allocation2 + $0xe0] sm:$0xff] %vm205_vm0, %v779_v12  ;;  %v830_v19 = vld [vmem:[#allocation2 + $0x58] sm:$0xff] }
 0x132   : > { %v846_v20 = vld [vmem:[#allocation2 + $0xd8] sm:$0xff]  ;;  %862 = vst.msk [vmem:[%s1437_s28 + $0x58] sm:$0xff] %vm205_vm0, %v830_v19  ;;  %797 = vst.msk [vmem:[#allocation2 + $0x68] sm:$0xff] %vm205_vm0, %v764_v17  ;;  %v1089_v21 = vpop.f32.mrb[28].mxu0  ;;  %v1137_v22 = vpop.f32.mrb[28].mxu1 }
 0x133   : > { %878 = vst.msk [vmem:[%s1437_s28 + $0xd8] sm:$0xff] %vm205_vm0, %v846_v20  ;;  %813 = vst.msk [vmem:[#allocation2 + $0xe8] sm:$0xff] %vm205_vm0, %v780_v18  ;;  %v1090_v24 = vpop.f32.mrb[29].mxu0  ;;  %v1138_v26 = vpop.f32.mrb[29].mxu1 }
 0x134   : > { %v1091_v27 = vadd.f32 %v1090_v24, %v1089_v21  ;;  %v1139_v28 = vadd.f32 %v1138_v26, %v1137_v22  ;;  %v1092_v29 = vpop.f32.mrb[30].mxu0  ;;  %v1140_v30 = vpop.f32.mrb[30].mxu1 }
 0x135   : > { %v1093_v32 = vpop.f32.mrb[31].mxu0  ;;  %v1141_v34 = vpop.f32.mrb[31].mxu1 }
 0x136   : > { %v765_v35 = vadd.f32 %v1091_v27, %v252_v23  ;;  %v781_v36 = vadd.f32 %v1139_v28, %v268_v25  ;;  %v1094_v37 = vadd.f32 %v1093_v32, %v1092_v29  ;;  %v1142_v38 = vadd.f32 %v1141_v34, %v1140_v30 }
 0x137   : > { %v831_v39 = vld [vmem:[#allocation2 + $0x60] sm:$0xff] }
 0x138   : > { %v847_v40 = vld [vmem:[#allocation2 + $0xe0] sm:$0xff]  ;;  %863 = vst.msk [vmem:[%s1437_s28 + $0x60] sm:$0xff] %vm205_vm0, %v831_v39  ;;  %798 = vst.msk [vmem:[#allocation2 + $0x70] sm:$0xff] %vm205_vm0, %v765_v35  ;;  %v766_v41 = vadd.f32 %v1094_v37, %v253_v31  ;;  %v782_v42 = vadd.f32 %v1142_v38, %v269_v33 }
 0x139   : > { %879 = vst.msk [vmem:[%s1437_s28 + $0xe0] sm:$0xff] %vm205_vm0, %v847_v40  ;;  %814 = vst.msk [vmem:[#allocation2 + $0xf0] sm:$0xff] %vm205_vm0, %v781_v36  ;;  %v832_v43 = vld [vmem:[#allocation2 + $0x68] sm:$0xff] }
 0x13a   : > { %v848_v44 = vld [vmem:[#allocation2 + $0xe8] sm:$0xff]  ;;  %864 = vst.msk [vmem:[%s1437_s28 + $0x68] sm:$0xff] %vm205_vm0, %v832_v43  ;;  %799 = vst.msk [vmem:[#allocation2 + $0x78] sm:$0xff] %vm205_vm0, %v766_v41 }
 0x13b   : > { %880 = vst.msk [vmem:[%s1437_s28 + $0xe8] sm:$0xff] %vm205_vm0, %v848_v44  ;;  %815 = vst.msk [vmem:[#allocation2 + $0xf8] sm:$0xff] %vm205_vm0, %v782_v42 }
 0x13f   : > { %v833_v45 = vld [vmem:[#allocation2 + $0x70] sm:$0xff] }
 0x140   : > { %v849_v46 = vld [vmem:[#allocation2 + $0xf0] sm:$0xff]  ;;  %865 = vst.msk [vmem:[%s1437_s28 + $0x70] sm:$0xff] %vm205_vm0, %v833_v45 }
 0x141   : > { %881 = vst.msk [vmem:[%s1437_s28 + $0xf0] sm:$0xff] %vm205_vm0, %v849_v46  ;;  %v834_v47 = vld [vmem:[#allocation2 + $0x78] sm:$0xff] }
 0x142   : > { %v850_v48 = vld [vmem:[#allocation2 + $0xf8] sm:$0xff]  ;;  %866 = vst.msk [vmem:[%s1437_s28 + $0x78] sm:$0xff] %vm205_vm0, %v834_v47 }
 0x143   : > { %882 = vst.msk [vmem:[%s1437_s28 + $0xf8] sm:$0xff] %vm205_vm0, %v850_v48 }
 0x144 PF: > { %s12_s11 = sadd.s32 1, %s1270_s11   ;;  %s1543_s9 = smov %s1266_s10 }
 0x145   : > { %p9_p5 = scmp.ge.s32.totalorder %s12_s11, 4   ;;  %s1544_s10 = smov %s1546_s12 }
 0x147   :  { %11 = sbr.rel (!%p9_p5) target bundleno = 2 (0x2), region = 69 }

// kernel: resnet_forward.64
= control target key start
LH: loop header
LB: loop body
LE: loop exit
PB: predicated region body
PF: predicated region fallthrough
CT: control target
= control target key end

     0   :  { %vm12_vm0 = vcmask 517120   ;;  %vm30_vm1 = vcmask 523264   ;;  %v137_v0 = vmov 0.0   ;;  %vm122_vm2 = vcmask 1040384   ;;  %s234_s0 = inlined_call_operand.vmem [shape: f32[128,64], index: 0, kind: input, shape index: {}]   ;;  %s235_s1 = inlined_call_operand.vmem [shape: f32[2,64], index: 1, kind: output, shape index: {}]  }
   0x1   :  { %13 = vst.msk [vmem:[#allocation2] sm:$0x3] %vm12_vm0, %v137_v0  ;;  %v14_v1 = vld [vmem:[%s234_s0] sm:$0xff]  ;;  %v15_v2 = vld [vmem:[%s234_s0 + $0x8] sm:$0xff]  ;;  %v16_v3 = vld [vmem:[%s234_s0 + $0x10] sm:$0xff] }
   0x2   :  { %v31_v4 = vsel %vm30_vm1, %v14_v1, 0.0  ;;  %v32_v5 = vsel %vm30_vm1, %v15_v2, 0.0  ;;  %v34_v6 = vsel %vm30_vm1, %v16_v3, 0.0  ;;  %v17_v7 = vld [vmem:[%s234_s0 + $0x18] sm:$0xff]  ;;  %v18_v10 = vld [vmem:[%s234_s0 + $0x20] sm:$0xff]  ;;  %v19_v13 = vld [vmem:[%s234_s0 + $0x28] sm:$0xff]  ;;  %v68_v15 = vmul.f32 %v14_v1, %v14_v1 }
   0x3   :  { %v33_v8 = vadd.f32 %v32_v5, %v31_v4  ;;  %v36_v9 = vsel %vm30_vm1, %v17_v7, 0.0  ;;  %v38_v12 = vsel %vm30_vm1, %v18_v10, 0.0  ;;  %v69_v16 = vmul.f32 %v15_v2, %v15_v2  ;;  %v20_v19 = vld [vmem:[%s234_s0 + $0x30] sm:$0xff]  ;;  %v21_v24 = vld [vmem:[%s234_s0 + $0x38] sm:$0xff]  ;;  %v22_v31 = vld [vmem:[%s234_s0 + $0x40] sm:$0xff] }
   0x4   :  { %v70_v17 = vmul.f32 %v16_v3, %v16_v3  ;;  %v40_v18 = vsel %vm30_vm1, %v19_v13, 0.0  ;;  %v71_v21 = vmul.f32 %v17_v7, %v17_v7  ;;  %v42_v22 = vsel %vm30_vm1, %v20_v19, 0.0  ;;  %v23_v37 = vld [vmem:[%s234_s0 + $0x48] sm:$0xff]  ;;  %v24_v43 = vld [vmem:[%s234_s0 + $0x50] sm:$0xff]  ;;  %v25_v49 = vld [vmem:[%s234_s0 + $0x58] sm:$0xff] }
   0x5   :  { %v35_v11 = vadd.f32 %v34_v6, %v33_v8  ;;  %v72_v23 = vmul.f32 %v18_v10, %v18_v10  ;;  %v84_v26 = vsel %vm30_vm1, %v68_v15, 0.0  ;;  %v85_v27 = vsel %vm30_vm1, %v69_v16, 0.0  ;;  %v26_v55 = vld [vmem:[%s234_s0 + $0x60] sm:$0xff]  ;;  %v27_v61 = vld [vmem:[%s234_s0 + $0x68] sm:$0xff]  ;;  %v28_v3 = vld [vmem:[%s234_s0 + $0x70] sm:$0xff] }
   0x6   :  { %v87_v28 = vsel %vm30_vm1, %v70_v17, 0.0  ;;  %v44_v29 = vsel %vm30_vm1, %v21_v24, 0.0  ;;  %v86_v30 = vadd.f32 %v85_v27, %v84_v26  ;;  %v73_v33 = vmul.f32 %v19_v13, %v19_v13 }
   0x7   :  { %v37_v14 = vadd.f32 %v36_v9, %v35_v11  ;;  %v89_v34 = vsel %vm30_vm1, %v71_v21, 0.0  ;;  %v46_v35 = vsel %vm30_vm1, %v22_v31, 0.0  ;;  %v74_v39 = vmul.f32 %v20_v19, %v20_v19  ;;  %v29_v9 = vld [vmem:[%s234_s0 + $0x78] sm:$0xff] }
   0x8   :  { %v88_v36 = vadd.f32 %v87_v28, %v86_v30  ;;  %v91_v40 = vsel %vm30_vm1, %v72_v23, 0.0  ;;  %v48_v41 = vsel %vm30_vm1, %v23_v37, 0.0  ;;  %v75_v45 = vmul.f32 %v21_v24, %v21_v24 }
   0x9   :  { %v39_v20 = vadd.f32 %v38_v12, %v37_v14  ;;  %v93_v46 = vsel %vm30_vm1, %v73_v33, 0.0  ;;  %v50_v47 = vsel %vm30_vm1, %v24_v43, 0.0  ;;  %v76_v51 = vmul.f32 %v22_v31, %v22_v31 }
   0xa   :  { %v90_v42 = vadd.f32 %v89_v34, %v88_v36  ;;  %v95_v52 = vsel %vm30_vm1, %v74_v39, 0.0  ;;  %v52_v53 = vsel %vm30_vm1, %v25_v49, 0.0  ;;  %v77_v57 = vmul.f32 %v23_v37, %v23_v37 }
   0xb   :  { %v41_v25 = vadd.f32 %v40_v18, %v39_v20  ;;  %v97_v58 = vsel %vm30_vm1, %v75_v45, 0.0  ;;  %v54_v59 = vsel %vm30_vm1, %v26_v55, 0.0  ;;  %v78_v63 = vmul.f32 %v24_v43, %v24_v43  ;;  %v121_v43 = vld [vmem:[#allocation2] sm:$0x3] }
   0xc   :  { %v92_v48 = vadd.f32 %v91_v40, %v90_v42  ;;  %v99_v0 = vsel %vm30_vm1, %v76_v51, 0.0  ;;  %v56_v1 = vsel %vm30_vm1, %v27_v61, 0.0  ;;  %v79_v5 = vmul.f32 %v25_v49, %v25_v49 }
   0xd   :  { %v43_v32 = vadd.f32 %v42_v22, %v41_v25  ;;  %v101_v6 = vsel %vm30_vm1, %v77_v57, 0.0  ;;  %v58_v7 = vsel %vm30_vm1, %v28_v3, 0.0  ;;  %v80_v11 = vmul.f32 %v26_v55, %v26_v55 }
   0xe   :  { %v94_v54 = vadd.f32 %v93_v46, %v92_v48  ;;  %v103_v12 = vsel %vm30_vm1, %v78_v63, 0.0  ;;  %v60_v13 = vsel %vm30_vm1, %v29_v9, 0.0  ;;  %v81_v16 = vmul.f32 %v27_v61, %v27_v61 }
   0xf   :  { %v45_v38 = vadd.f32 %v44_v29, %v43_v32  ;;  %v105_v17 = vsel %vm30_vm1, %v79_v5, 0.0  ;;  %v82_v20 = vmul.f32 %v28_v3, %v28_v3  ;;  %v107_v21 = vsel %vm30_vm1, %v80_v11, 0.0 }
  0x10   :  { %v96_v60 = vadd.f32 %v95_v52, %v94_v54  ;;  %v83_v24 = vmul.f32 %v29_v9, %v29_v9  ;;  %v109_v25 = vsel %vm30_vm1, %v81_v16, 0.0 }
  0x11   :  { %v47_v44 = vadd.f32 %v46_v35, %v45_v38  ;;  %v111_v28 = vsel %vm30_vm1, %v82_v20, 0.0 }
  0x12   :  { %v98_v2 = vadd.f32 %v97_v58, %v96_v60  ;;  %v113_v30 = vsel %vm30_vm1, %v83_v24, 0.0 }
  0x13   :  { %v49_v50 = vadd.f32 %v48_v41, %v47_v44 }
  0x14   :  { %v100_v8 = vadd.f32 %v99_v0, %v98_v2 }
  0x15   :  { %v51_v56 = vadd.f32 %v50_v47, %v49_v50 }
  0x16   :  { %v102_v14 = vadd.f32 %v101_v6, %v100_v8 }
  0x17   :  { %v53_v62 = vadd.f32 %v52_v53, %v51_v56 }
  0x18   :  { %v104_v18 = vadd.f32 %v103_v12, %v102_v14 }
  0x19   :  { %v55_v4 = vadd.f32 %v54_v59, %v53_v62 }
  0x1a   :  { %v106_v22 = vadd.f32 %v105_v17, %v104_v18 }
  0x1b   :  { %v57_v10 = vadd.f32 %v56_v1, %v55_v4 }
  0x1c   :  { %v108_v26 = vadd.f32 %v107_v21, %v106_v22 }
  0x1d   :  { %v59_v15 = vadd.f32 %v58_v7, %v57_v10 }
  0x1e   :  { %v110_v29 = vadd.f32 %v109_v25, %v108_v26 }
  0x1f   :  { %v61_v19 = vadd.f32 %v60_v13, %v59_v15 }
  0x20   :  { %v112_v32 = vadd.f32 %v111_v28, %v110_v29 }
  0x21   :  { %v62_v23 = vrot.slane %v61_v19, 4 }
  0x22   :  { %v114_v33 = vadd.f32 %v113_v30, %v112_v32 }
  0x23   :  { %v63_v27 = vadd.f32 %v62_v23, %v61_v19 }
  0x24   :  { %v115_v35 = vrot.slane %v114_v33, 4 }
  0x25   :  { %v64_v31 = vrot.slane %v63_v27, 2 }
  0x26   :  { %v116_v36 = vadd.f32 %v115_v35, %v114_v33 }
  0x27   :  { %v65_v34 = vadd.f32 %v64_v31, %v63_v27 }
  0x28   :  { %v117_v38 = vrot.slane %v116_v36, 2 }
  0x29   :  { %v66_v37 = vrot.slane %v65_v34, 1 }
  0x2a   :  { %v118_v39 = vadd.f32 %v117_v38, %v116_v36 }
  0x2b   :  { %v67_v40 = vadd.f32 %v66_v37, %v65_v34 }
  0x2c   :  { %v119_v41 = vrot.slane %v118_v39, 1 }
  0x2e   :  { %v120_v42 = vadd.f32 %v119_v41, %v118_v39 }
  0x30   :  { %v123_v44 = vsel %vm122_vm2, %v67_v40, %v120_v42 }
  0x31   :  { %v124_v45 = vadd.f32 %v123_v44, %v121_v43 }
  0x33   :  { %126 = vst.msk [vmem:[#allocation2] sm:$0x3] %vm12_vm0, %v124_v45 }
  0x3a   :  { %v130_v46 = vld [vmem:[#allocation2] sm:$0x3] }
  0x3b   :  { %131 = vst.msk [vmem:[%s235_s1] sm:$0x3] %vm12_vm0, %v130_v46 }

// kernel: resnet_forward.65
= control target key start
LH: loop header
LB: loop body
LE: loop exit
PB: predicated region body
PF: predicated region fallthrough
CT: control target
= control target key end

     0   :  { %vm85_vm0 = vcmask 523264   ;;  %s277_s0 = inlined_call_operand.vmem [shape: f32[128,64], index: 0, kind: input, shape index: {}]   ;;  %s278_s1 = inlined_call_operand.vmem [shape: f32[2,64], index: 1, kind: input, shape index: {}]   ;;  %s279_s2 = inlined_call_operand.vmem [shape: f32[128,64], index: 2, kind: output, shape index: {}]  }
   0x1   :  { %v11_v0 = vld [vmem:[%s277_s0] sm:$0xff]  ;;  %v12_v4 = vld [vmem:[%s277_s0 + $0x8] sm:$0xff]  ;;  %v13_v5 = vld [vmem:[%s277_s0 + $0x10] sm:$0xff] }
   0x2   :  { %v129_v1 = vld [vmem:[%s278_s1] ss:$0 sm:$0xff]  ;;  %v134_v2 = vld [vmem:[%s278_s1 + $0x1] ss:$0 sm:$0xff]  ;;  %v14_v6 = vld [vmem:[%s277_s0 + $0x18] sm:$0xff] }
   0x3   :  { %v32_v3 = vsub.f32 %v11_v0, %v129_v1  ;;  %v33_v7 = vsub.f32 %v12_v4, %v129_v1  ;;  %v34_v8 = vsub.f32 %v13_v5, %v129_v1  ;;  %v35_v9 = vsub.f32 %v14_v6, %v129_v1  ;;  %v15_v10 = vld [vmem:[%s277_s0 + $0x20] sm:$0xff]  ;;  %v16_v11 = vld [vmem:[%s277_s0 + $0x28] sm:$0xff]  ;;  %v17_v12 = vld [vmem:[%s277_s0 + $0x30] sm:$0xff] }
   0x4   :  { %v36_v14 = vsub.f32 %v15_v10, %v129_v1  ;;  %v37_v15 = vsub.f32 %v16_v11, %v129_v1  ;;  %v38_v16 = vsub.f32 %v17_v12, %v129_v1  ;;  %v18_v17 = vld [vmem:[%s277_s0 + $0x38] sm:$0xff]  ;;  %v19_v22 = vld [vmem:[%s277_s0 + $0x40] sm:$0xff]  ;;  %v20_v27 = vld [vmem:[%s277_s0 + $0x48] sm:$0xff] }
   0x5   :  { %v53_v13 = vmul.f32 %v134_v2, %v32_v3  ;;  %v54_v18 = vmul.f32 %v134_v2, %v33_v7  ;;  %v55_v19 = vmul.f32 %v134_v2, %v34_v8  ;;  %v56_v20 = vmul.f32 %v134_v2, %v35_v9  ;;  %v21_v28 = vld [vmem:[%s277_s0 + $0x50] sm:$0xff]  ;;  %v22_v29 = vld [vmem:[%s277_s0 + $0x58] sm:$0xff]  ;;  %v23_v34 = vld [vmem:[%s277_s0 + $0x60] sm:$0xff] }
   0x6   :  { %v39_v21 = vsub.f32 %v18_v17, %v129_v1  ;;  %v57_v24 = vmul.f32 %v134_v2, %v36_v14  ;;  %v58_v25 = vmul.f32 %v134_v2, %v37_v15  ;;  %v59_v26 = vmul.f32 %v134_v2, %v38_v16  ;;  %v24_v35 = vld [vmem:[%s277_s0 + $0x68] sm:$0xff]  ;;  %v25_v36 = vld [vmem:[%s277_s0 + $0x70] sm:$0xff]  ;;  %v26_v41 = vld [vmem:[%s277_s0 + $0x78] sm:$0xff] }
   0x7   :  { %v69_v23 = vmax.f32 %v53_v13, 0.0  ;;  %v70_v30 = vmax.f32 %v54_v18, 0.0  ;;  %v71_v31 = vmax.f32 %v55_v19, 0.0  ;;  %v72_v32 = vmax.f32 %v56_v20, 0.0 }
   0x8   :  { %v60_v33 = vmul.f32 %v134_v2, %v39_v21  ;;  %v73_v37 = vmax.f32 %v57_v24, 0.0  ;;  %v74_v38 = vmax.f32 %v58_v25, 0.0  ;;  %v75_v39 = vmax.f32 %v59_v26, 0.0 }
   0x9   :  { %86 = vst.msk [vmem:[%s279_s2] sm:$0xff] %vm85_vm0, %v69_v23  ;;  %v40_v40 = vsub.f32 %v19_v22, %v129_v1  ;;  %87 = vst.msk [vmem:[%s279_s2 + $0x8] sm:$0xff] %vm85_vm0, %v70_v30  ;;  %v41_v43 = vsub.f32 %v20_v27, %v129_v1  ;;  %v42_v44 = vsub.f32 %v21_v28, %v129_v1 }
   0xa   :  { %88 = vst.msk [vmem:[%s279_s2 + $0x10] sm:$0xff] %vm85_vm0, %v71_v31  ;;  %89 = vst.msk [vmem:[%s279_s2 + $0x18] sm:$0xff] %vm85_vm0, %v72_v32  ;;  %v76_v42 = vmax.f32 %v60_v33, 0.0  ;;  %v43_v45 = vsub.f32 %v22_v29, %v129_v1  ;;  %v44_v47 = vsub.f32 %v23_v34, %v129_v1  ;;  %v45_v48 = vsub.f32 %v24_v35, %v129_v1 }
   0xb   :  { %90 = vst.msk [vmem:[%s279_s2 + $0x20] sm:$0xff] %vm85_vm0, %v73_v37  ;;  %91 = vst.msk [vmem:[%s279_s2 + $0x28] sm:$0xff] %vm85_vm0, %v74_v38  ;;  %v61_v46 = vmul.f32 %v134_v2, %v40_v40  ;;  %v46_v49 = vsub.f32 %v25_v36, %v129_v1  ;;  %v62_v50 = vmul.f32 %v134_v2, %v41_v43 }
   0xc   :  { %92 = vst.msk [vmem:[%s279_s2 + $0x30] sm:$0xff] %vm85_vm0, %v75_v39  ;;  %93 = vst.msk [vmem:[%s279_s2 + $0x38] sm:$0xff] %vm85_vm0, %v76_v42  ;;  %v63_v51 = vmul.f32 %v134_v2, %v42_v44  ;;  %v64_v52 = vmul.f32 %v134_v2, %v43_v45  ;;  %v47_v53 = vsub.f32 %v26_v41, %v129_v1 }
   0xd   :  { %v77_v54 = vmax.f32 %v61_v46, 0.0  ;;  %v65_v55 = vmul.f32 %v134_v2, %v44_v47  ;;  %v66_v56 = vmul.f32 %v134_v2, %v45_v48  ;;  %v67_v57 = vmul.f32 %v134_v2, %v46_v49 }
   0xe   :  { %v78_v58 = vmax.f32 %v62_v50, 0.0  ;;  %v79_v59 = vmax.f32 %v63_v51, 0.0  ;;  %v80_v60 = vmax.f32 %v64_v52, 0.0  ;;  %v68_v61 = vmul.f32 %v134_v2, %v47_v53 }
   0xf   :  { %94 = vst.msk [vmem:[%s279_s2 + $0x40] sm:$0xff] %vm85_vm0, %v77_v54  ;;  %v81_v62 = vmax.f32 %v65_v55, 0.0  ;;  %v82_v63 = vmax.f32 %v66_v56, 0.0  ;;  %v83_v0 = vmax.f32 %v67_v57, 0.0 }
  0x10   :  { %95 = vst.msk [vmem:[%s279_s2 + $0x48] sm:$0xff] %vm85_vm0, %v78_v58  ;;  %96 = vst.msk [vmem:[%s279_s2 + $0x50] sm:$0xff] %vm85_vm0, %v79_v59  ;;  %v84_v1 = vmax.f32 %v68_v61, 0.0 }
  0x11   :  { %97 = vst.msk [vmem:[%s279_s2 + $0x58] sm:$0xff] %vm85_vm0, %v80_v60  ;;  %98 = vst.msk [vmem:[%s279_s2 + $0x60] sm:$0xff] %vm85_vm0, %v81_v62 }
  0x12   :  { %99 = vst.msk [vmem:[%s279_s2 + $0x68] sm:$0xff] %vm85_vm0, %v82_v63  ;;  %100 = vst.msk [vmem:[%s279_s2 + $0x70] sm:$0xff] %vm85_vm0, %v83_v0 }
  0x13   :  { %101 = vst.msk [vmem:[%s279_s2 + $0x78] sm:$0xff] %vm85_vm0, %v84_v1 }

// kernel: resnet_forward.63
= control target key start
LH: loop header
LB: loop body
LE: loop exit
PB: predicated region body
PF: predicated region fallthrough
CT: control target
= control target key end

     0   :  { %vm16_vm0 = vcmask 523264   ;;  %s1745_s1 = inlined_call_operand.vmem [shape: bf16[640,64], index: 1, kind: input, shape index: {}]   ;;  %s1746_s0 = inlined_call_operand.vmem [shape: bf16[128,640], index: 0, kind: input, shape index: {}]   ;;  %s1747_s2 = inlined_call_operand.vmem [shape: f32[128,64], index: 2, kind: output, shape index: {}]  }
   0x1   :  { %v1261_v0 = vld [vmem:[%s1745_s1 + $0x40] sm:$0xff]   ;;  %v1265_v4 = vld [vmem:[%s1745_s1 + $0x48] sm:$0xff]   ;;  %v1269_v8 = vld [vmem:[%s1745_s1 + $0x50] sm:$0xff]  }
   0x2   :  { %v1262_v1 = vld [vmem:[%s1745_s1 + $0xc0] sm:$0xff]   ;;  %1068 = vmatprep.subr.bf16.mxu0 %v1261_v0  ;;  %v1266_v5 = vld [vmem:[%s1745_s1 + $0xc8] sm:$0xff]   ;;  %v1270_v9 = vld [vmem:[%s1745_s1 + $0xd0] sm:$0xff]  }
   0x3   :  { %v1263_v2 = vld [vmem:[%s1745_s1] sm:$0xff]   ;;  %1132 = vmatprep.subr.bf16.mxu1 %v1262_v1  ;;  %v1267_v6 = vld [vmem:[%s1745_s1 + $0x8] sm:$0xff]   ;;  %v1271_v10 = vld [vmem:[%s1745_s1 + $0x10] sm:$0xff]  }
   0x4   :  { %v1264_v3 = vld [vmem:[%s1745_s1 + $0x80] sm:$0xff]   ;;  %1069 = vmatpush3.bf16.msra.mxu0 %v1263_v2  ;;  %v1268_v7 = vld [vmem:[%s1745_s1 + $0x88] sm:$0xff]   ;;  %v1272_v11 = vld [vmem:[%s1745_s1 + $0x90] sm:$0xff]  }
   0x5   :  { %1133 = vmatpush3.bf16.msra.mxu1 %v1264_v3  ;;  %1070 = vmatprep.subr.bf16.mxu0 %v1265_v4  ;;  %v1273_v12 = vld [vmem:[%s1745_s1 + $0x58] sm:$0xff]   ;;  %v1277_v16 = vld [vmem:[%s1745_s1 + $0x60] sm:$0xff]   ;;  %v1281_v20 = vld [vmem:[%s1745_s1 + $0x68] sm:$0xff]  }
   0x6   :  { %1134 = vmatprep.subr.bf16.mxu1 %v1266_v5  ;;  %v1274_v13 = vld [vmem:[%s1745_s1 + $0xd8] sm:$0xff]   ;;  %v1278_v17 = vld [vmem:[%s1745_s1 + $0xe0] sm:$0xff]   ;;  %v1282_v21 = vld [vmem:[%s1745_s1 + $0xe8] sm:$0xff]  }
   0x7   :  { %v1275_v14 = vld [vmem:[%s1745_s1 + $0x18] sm:$0xff]   ;;  %v1279_v18 = vld [vmem:[%s1745_s1 + $0x20] sm:$0xff]   ;;  %v1283_v22 = vld [vmem:[%s1745_s1 + $0x28] sm:$0xff]  }
   0x8   :  { %1071 = vmatpush3.bf16.msra.mxu0 %v1267_v6  ;;  %v1276_v15 = vld [vmem:[%s1745_s1 + $0x98] sm:$0xff]   ;;  %v1280_v19 = vld [vmem:[%s1745_s1 + $0xa0] sm:$0xff]   ;;  %v1284_v23 = vld [vmem:[%s1745_s1 + $0xa8] sm:$0xff]  }
   0x9   :  { %1135 = vmatpush3.bf16.msra.mxu1 %v1268_v7  ;;  %1072 = vmatprep.subr.bf16.mxu0 %v1269_v8  ;;  %v1285_v24 = vld [vmem:[%s1745_s1 + $0x70] sm:$0xff]   ;;  %v1289_v28 = vld [vmem:[%s1745_s1 + $0x78] sm:$0xff]   ;;  %v1298_v35 = vld [vmem:[%s1746_s0 + $0xc] ss:$20 sps:$4 sm:$0xff]  }
   0xa   :  { %1136 = vmatprep.subr.bf16.mxu1 %v1270_v9  ;;  %v1286_v25 = vld [vmem:[%s1745_s1 + $0xf0] sm:$0xff]   ;;  %v1290_v29 = vld [vmem:[%s1745_s1 + $0xf8] sm:$0xff]   ;;  %v1299_v36 = vld [vmem:[%s1745_s1 + $0x100] sm:$0xff]   ;;  %754 = vmatprep.mubr.bf16.mxu1 %v1298_v35 }
   0xb   :  { %v1287_v26 = vld [vmem:[%s1745_s1 + $0x30] sm:$0xff]   ;;  %v1291_v30 = vld [vmem:[%s1745_s1 + $0x38] sm:$0xff]   ;;  %v1300_v37 = vld [vmem:[%s1746_s0 + $0x2c] ss:$20 sps:$4 sm:$0xff]  }
   0xc   :  { %1073 = vmatpush3.bf16.msra.mxu0 %v1271_v10  ;;  %v1288_v27 = vld [vmem:[%s1745_s1 + $0xb0] sm:$0xff]   ;;  %v1292_v31 = vld [vmem:[%s1745_s1 + $0xb8] sm:$0xff]   ;;  %v1306_v39 = vld [vmem:[%s1745_s1 + $0x108] sm:$0xff]  }
   0xd   :  { %1137 = vmatpush3.bf16.msra.mxu1 %v1272_v11  ;;  %1074 = vmatprep.subr.bf16.mxu0 %v1273_v12  ;;  %v1293_v32 = vld [vmem:[%s1746_s0] ss:$20 sps:$4 sm:$0xff]   ;;  %v1295_v33 = vld [vmem:[%s1746_s0 + $0x4] ss:$20 sps:$4 sm:$0xff]   ;;  %v1296_v34 = vld [vmem:[%s1746_s0 + $0x8] ss:$20 sps:$4 sm:$0xff]  }
   0xe   :  { %1138 = vmatprep.subr.bf16.mxu1 %v1274_v13  ;;  %657 = vmatprep.mubr.bf16.mxu0 %v1295_v33  ;;  %v1302_v38 = vld [vmem:[%s1746_s0 + $0x34] ss:$20 sps:$4 sm:$0xff]   ;;  %v1305_v41 = vld [vmem:[%s1746_s0 + $0x30] ss:$20 sps:$4 sm:$0xff]   ;;  %v1320_v45 = vld [vmem:[%s1745_s1 + $0x118] sm:$0xff]  }
   0xf   :  { %v1304_v40 = vld [vmem:[%s1746_s0 + $0x28] ss:$20 sps:$4 sm:$0xff]   ;;  %v1313_v44 = vld [vmem:[%s1745_s1 + $0x110] sm:$0xff]   ;;  %v1312_v47 = vld [vmem:[%s1746_s0 + $0x58] ss:$20 sps:$4 sm:$0xff]  }
  0x10   :  { %1075 = vmatpush3.bf16.msra.mxu0 %v1275_v14  ;;  %v1307_v42 = vld [vmem:[%s1746_s0 + $0x54] ss:$20 sps:$4 sm:$0xff]   ;;  %v1309_v43 = vld [vmem:[%s1746_s0 + $0x5c] ss:$20 sps:$4 sm:$0xff]   ;;  %v1316_v49 = vld [vmem:[%s1746_s0 + $0x84] ss:$20 sps:$4 sm:$0xff]  }
  0x11   :  { %1139 = vmatpush3.bf16.msra.mxu1 %v1276_v15  ;;  %1076 = vmatprep.subr.bf16.mxu0 %v1277_v16  ;;  %v1311_v46 = vld [vmem:[%s1746_s0 + $0x50] ss:$20 sps:$4 sm:$0xff]   ;;  %v1334_v51 = vld [vmem:[%s1745_s1 + $0x128] sm:$0xff]   ;;  %v1319_v53 = vld [vmem:[%s1746_s0 + $0x80] ss:$20 sps:$4 sm:$0xff]   ;;  %v1357_v16 = vmov 0.0  }
  0x12   :  { %1140 = vmatprep.subr.bf16.mxu1 %v1278_v17  ;;  %v1314_v48 = vld [vmem:[%s1746_s0 + $0x7c] ss:$20 sps:$4 sm:$0xff]   ;;  %v1327_v50 = vld [vmem:[%s1745_s1 + $0x120] sm:$0xff]   ;;  %v1318_v52 = vld [vmem:[%s1746_s0 + $0x78] ss:$20 sps:$4 sm:$0xff]   ;;  %19 = vst.msk [vmem:[#allocation2 + $0x10] sm:$0xff] %vm16_vm0, %v1357_v16 }
  0x13   :  { %v1321_v54 = vld [vmem:[%s1746_s0 + $0xa4] ss:$20 sps:$4 sm:$0xff]   ;;  %v1341_v55 = vld [vmem:[%s1745_s1 + $0x130] sm:$0xff]   ;;  %v1323_v56 = vld [vmem:[%s1746_s0 + $0xac] ss:$20 sps:$4 sm:$0xff]   ;;  %17 = vst.msk [vmem:[#allocation2] sm:$0xff] %vm16_vm0, %v1357_v16 }
  0x14   :  { %1077 = vmatpush3.bf16.msra.mxu0 %v1279_v18  ;;  %v1348_v57 = vld [vmem:[%s1745_s1 + $0x138] sm:$0xff]   ;;  %v1325_v58 = vld [vmem:[%s1746_s0 + $0xa0] ss:$20 sps:$4 sm:$0xff]   ;;  %v1333_v63 = vld [vmem:[%s1746_s0 + $0xd0] ss:$20 sps:$4 sm:$0xff]   ;;  %18 = vst.msk [vmem:[#allocation2 + $0x8] sm:$0xff] %vm16_vm0, %v1357_v16 }
  0x15   :  { %1141 = vmatpush3.bf16.msra.mxu1 %v1280_v19  ;;  %1078 = vmatprep.subr.bf16.mxu0 %v1281_v20  ;;  %v1326_v59 = vld [vmem:[%s1746_s0 + $0xa8] ss:$20 sps:$4 sm:$0xff]   ;;  %v1328_v60 = vld [vmem:[%s1746_s0 + $0xcc] ss:$20 sps:$4 sm:$0xff]   ;;  %v1339_v2 = vld [vmem:[%s1746_s0 + $0xf0] ss:$20 sps:$4 sm:$0xff]  }
  0x16   :  { %1142 = vmatprep.subr.bf16.mxu1 %v1282_v21  ;;  %v1330_v61 = vld [vmem:[%s1746_s0 + $0xd4] ss:$20 sps:$4 sm:$0xff]   ;;  %v1337_v1 = vld [vmem:[%s1746_s0 + $0xfc] ss:$20 sps:$4 sm:$0xff]   ;;  %v1340_v3 = vld [vmem:[%s1746_s0 + $0xf8] ss:$20 sps:$4 sm:$0xff]  }
  0x17   :  { %v1332_v62 = vld [vmem:[%s1746_s0 + $0xc8] ss:$20 sps:$4 sm:$0xff]   ;;  %v1344_v5 = vld [vmem:[%s1746_s0 + $0x124] ss:$20 sps:$4 sm:$0xff]   ;;  %v1347_v7 = vld [vmem:[%s1746_s0 + $0x120] ss:$20 sps:$4 sm:$0xff]  }
  0x18   :  { %1079 = vmatpush3.bf16.msra.mxu0 %v1283_v22  ;;  %v1335_v0 = vld [vmem:[%s1746_s0 + $0xf4] ss:$20 sps:$4 sm:$0xff]   ;;  %v1342_v4 = vld [vmem:[%s1746_s0 + $0x11c] ss:$20 sps:$4 sm:$0xff]   ;;  %v1346_v6 = vld [vmem:[%s1746_s0 + $0x118] ss:$20 sps:$4 sm:$0xff]  }
  0x19   :  { %1143 = vmatpush3.bf16.msra.mxu1 %v1284_v23  ;;  %1080 = vmatprep.subr.bf16.mxu0 %v1285_v24  ;;  %v1349_v8 = vld [vmem:[%s1746_s0 + $0x10] ss:$20 sps:$4 sm:$0xff]   ;;  %v1351_v10 = vld [vmem:[%s1746_s0 + $0x38] ss:$20 sps:$4 sm:$0xff]   ;;  %v1353_v12 = vld [vmem:[%s1746_s0 + $0x60] ss:$20 sps:$4 sm:$0xff]  }
  0x1a   :  { %1144 = vmatprep.subr.bf16.mxu1 %v1286_v25  ;;  %v1350_v9 = vld [vmem:[%s1746_s0 + $0xb0] ss:$20 sps:$4 sm:$0xff]   ;;  %v1352_v11 = vld [vmem:[%s1746_s0 + $0xd8] ss:$20 sps:$4 sm:$0xff]   ;;  %v1354_v13 = vld [vmem:[%s1746_s0 + $0x100] ss:$20 sps:$4 sm:$0xff]  }
  0x1b   :  { %v1355_v14 = vld [vmem:[%s1746_s0 + $0x88] ss:$20 sps:$4 sm:$0xff]   ;;  %20 = vst.msk [vmem:[#allocation2 + $0x18] sm:$0xff] %vm16_vm0, %v1357_v16  ;;  %21 = vst.msk [vmem:[#allocation2 + $0x20] sm:$0xff] %vm16_vm0, %v1357_v16 }
  0x1c   :  { %1081 = vmatpush3.bf16.msra.mxu0 %v1287_v26  ;;  %v1356_v15 = vld [vmem:[%s1746_s0 + $0x128] ss:$20 sps:$4 sm:$0xff]   ;;  %22 = vst.msk [vmem:[#allocation2 + $0x28] sm:$0xff] %vm16_vm0, %v1357_v16  ;;  %23 = vst.msk [vmem:[#allocation2 + $0x30] sm:$0xff] %vm16_vm0, %v1357_v16 }
  0x1d   :  { %1145 = vmatpush3.bf16.msra.mxu1 %v1288_v27  ;;  %1082 = vmatprep.subr.bf16.mxu0 %v1289_v28  ;;  %24 = vst.msk [vmem:[#allocation2 + $0x38] sm:$0xff] %vm16_vm0, %v1357_v16  ;;  %25 = vst.msk [vmem:[#allocation2 + $0x40] sm:$0xff] %vm16_vm0, %v1357_v16 }
  0x1e   :  { %1146 = vmatprep.subr.bf16.mxu1 %v1290_v29  ;;  %26 = vst.msk [vmem:[#allocation2 + $0x48] sm:$0xff] %vm16_vm0, %v1357_v16  ;;  %27 = vst.msk [vmem:[#allocation2 + $0x50] sm:$0xff] %vm16_vm0, %v1357_v16 }
  0x1f   :  { %28 = vst.msk [vmem:[#allocation2 + $0x58] sm:$0xff] %vm16_vm0, %v1357_v16  ;;  %29 = vst.msk [vmem:[#allocation2 + $0x60] sm:$0xff] %vm16_vm0, %v1357_v16 }
  0x20   :  { %1083 = vmatpush3.bf16.msra.mxu0 %v1291_v30  ;;  %30 = vst.msk [vmem:[#allocation2 + $0x68] sm:$0xff] %vm16_vm0, %v1357_v16  ;;  %31 = vst.msk [vmem:[#allocation2 + $0x70] sm:$0xff] %vm16_vm0, %v1357_v16 }
  0x21   :  { %1147 = vmatpush3.bf16.msra.mxu1 %v1292_v31  ;;  %1212 = vmatprep.subr.bf16.mxu0 %v1299_v36  ;;  %32 = vst.msk [vmem:[#allocation2 + $0x78] sm:$0xff] %vm16_vm0, %v1357_v16 }
  0x22   :  { %1244 = vmatprep.subr.bf16.mxu1 %v1299_v36 }
  0x23   :  { %658 = vmatmul.mubr.bf16.vlgmr.msra.gmra.mrb[0].mxu0 %v1293_v32 }
  0x24   :  { %755 = vmatmul.mubr.bf16.vlgmr.msra.gmra.mrb[0].mxu1 %v1296_v34  ;;  %1213 = vmatpush3.bf16.msra.mxu0 %v1299_v36 }
  0x25   :  { %1252 = vmatpush3.bf16.msra.mxu1 %v1299_v36  ;;  %665 = vmatprep.mubr.bf16.mxu0 %v1300_v37 }
  0x26   :  { %762 = vmatprep.mubr.bf16.mxu1 %v1302_v38  ;;  %1214 = vmatprep.subr.bf16.mxu0 %v1306_v39 }
  0x27   :  { %1245 = vmatprep.subr.bf16.mxu1 %v1306_v39 }
  0x28   :  { %1215 = vmatpush3.bf16.msra.mxu0 %v1306_v39 }
  0x29   :  { %1253 = vmatpush3.bf16.msra.mxu1 %v1306_v39  ;;  %1216 = vmatprep.subr.bf16.mxu0 %v1313_v44 }
  0x2a   :  { %1246 = vmatprep.subr.bf16.mxu1 %v1313_v44 }
  0x2b   :  { %666 = vmatmul.mubr.bf16.gmra.mrb[4].mxu0 %v1304_v40 }
  0x2c   :  { %763 = vmatmul.mubr.bf16.gmra.mrb[4].mxu1 %v1305_v41  ;;  %673 = vmatprep.mubr.bf16.mxu0 %v1307_v42 }
  0x2d   :  { %770 = vmatprep.mubr.bf16.mxu1 %v1309_v43  ;;  %1217 = vmatpush3.bf16.msra.mxu0 %v1313_v44 }
  0x2e   :  { %1254 = vmatpush3.bf16.msra.mxu1 %v1313_v44  ;;  %1218 = vmatprep.subr.bf16.mxu0 %v1320_v45 }
  0x2f   :  { %1247 = vmatprep.subr.bf16.mxu1 %v1320_v45 }
  0x31   :  { %1219 = vmatpush3.bf16.msra.mxu0 %v1320_v45 }
  0x32   :  { %1255 = vmatpush3.bf16.msra.mxu1 %v1320_v45  ;;  %1220 = vmatprep.subr.bf16.mxu0 %v1327_v50 }
  0x33   :  { %674 = vmatmul.mubr.bf16.gmra.mrb[8].mxu0 %v1311_v46  ;;  %1248 = vmatprep.subr.bf16.mxu1 %v1327_v50 }
  0x34   :  { %771 = vmatmul.mubr.bf16.gmra.mrb[8].mxu1 %v1312_v47  ;;  %681 = vmatprep.mubr.bf16.mxu0 %v1314_v48 }
  0x35   :  { %778 = vmatprep.mubr.bf16.mxu1 %v1316_v49  ;;  %1221 = vmatpush3.bf16.msra.mxu0 %v1327_v50 }
  0x36   :  { %1256 = vmatpush3.bf16.msra.mxu1 %v1327_v50  ;;  %1222 = vmatprep.subr.bf16.mxu0 %v1334_v51 }
  0x37   :  { %1249 = vmatprep.subr.bf16.mxu1 %v1334_v51 }
  0x39   :  { %1223 = vmatpush3.bf16.msra.mxu0 %v1334_v51 }
  0x3a   :  { %1257 = vmatpush3.bf16.msra.mxu1 %v1334_v51  ;;  %1224 = vmatprep.subr.bf16.mxu0 %v1341_v55 }
  0x3b   :  { %682 = vmatmul.mubr.bf16.gmra.mrb[12].mxu0 %v1318_v52  ;;  %1250 = vmatprep.subr.bf16.mxu1 %v1341_v55 }
  0x3c   :  { %779 = vmatmul.mubr.bf16.gmra.mrb[12].mxu1 %v1319_v53  ;;  %689 = vmatprep.mubr.bf16.mxu0 %v1321_v54 }
  0x3d   :  { %786 = vmatprep.mubr.bf16.mxu1 %v1323_v56  ;;  %1225 = vmatpush3.bf16.msra.mxu0 %v1341_v55 }
  0x3e   :  { %1258 = vmatpush3.bf16.msra.mxu1 %v1341_v55  ;;  %1226 = vmatprep.subr.bf16.mxu0 %v1348_v57 }
  0x3f   :  { %1251 = vmatprep.subr.bf16.mxu1 %v1348_v57 }
  0x41   :  { %1227 = vmatpush3.bf16.msra.mxu0 %v1348_v57 }
  0x42   :  { %1259 = vmatpush3.bf16.msra.mxu1 %v1348_v57 }
  0x43   :  { %690 = vmatmul.mubr.bf16.gmra.mrb[16].mxu0 %v1325_v58 }
  0x44   :  { %787 = vmatmul.mubr.bf16.gmra.mrb[16].mxu1 %v1326_v59  ;;  %697 = vmatprep.mubr.bf16.mxu0 %v1328_v60 }
  0x45   :  { %794 = vmatprep.mubr.bf16.mxu1 %v1330_v61 }
  0x4b   :  { %698 = vmatmul.mubr.bf16.gmra.mrb[20].mxu0 %v1332_v62 }
  0x4c   :  { %795 = vmatmul.mubr.bf16.gmra.mrb[20].mxu1 %v1333_v63  ;;  %705 = vmatprep.mubr.bf16.mxu0 %v1335_v0 }
  0x4d   :  { %802 = vmatprep.mubr.bf16.mxu1 %v1337_v1 }
  0x53   :  { %706 = vmatmul.mubr.bf16.gmra.mrb[24].mxu0 %v1339_v2 }
  0x54   :  { %803 = vmatmul.mubr.bf16.gmra.mrb[24].mxu1 %v1340_v3  ;;  %713 = vmatprep.mubr.bf16.mxu0 %v1342_v4 }
  0x55   :  { %810 = vmatprep.mubr.bf16.mxu1 %v1344_v5 }
  0x5b   :  { %714 = vmatmul.mubr.bf16.gmra.mrb[28].mxu0 %v1346_v6 }
  0x5c   :  { %811 = vmatmul.mubr.bf16.gmra.mrb[28].mxu1 %v1347_v7  ;;  %1228 = vmatprep.mubr.bf16.mxu0 %v1349_v8 }
  0x5d   :  { %1236 = vmatprep.mubr.bf16.mxu1 %v1350_v9 }
  0x63   :  { %1229 = vmatmul.mubr.bf16.vlgmr.msra.gmra.mrb[32].mxu0 %v1351_v10 }
  0x64   :  { %1237 = vmatmul.mubr.bf16.vlgmr.msra.gmra.mrb[32].mxu1 %v1352_v11  ;;  %1232 = vmatprep.mubr.bf16.mxu0 %v1353_v12 }
  0x65   :  { %1240 = vmatprep.mubr.bf16.mxu1 %v1354_v13 }
  0x6b   :  { %1233 = vmatmul.mubr.bf16.gmra.mrb[36].mxu0 %v1355_v14 }
  0x6c   :  { %1241 = vmatmul.mubr.bf16.gmra.mrb[36].mxu1 %v1356_v15 }
  0xf6   :  { %v1084_v17 = vpop.f32.mrb[0].mxu0 }
  0xf7   :  { %v1148_v18 = vpop.f32.mrb[0].mxu1  ;;  %v1085_v19 = vpop.f32.mrb[1].mxu0 }
  0xf8   :  { %v1086_v20 = vadd.f32 %v1085_v19, %v1084_v17  ;;  %v1149_v21 = vpop.f32.mrb[1].mxu1  ;;  %v1087_v22 = vpop.f32.mrb[2].mxu0 }
  0xf9   :  { %v1150_v23 = vadd.f32 %v1149_v21, %v1148_v18  ;;  %v1151_v24 = vpop.f32.mrb[2].mxu1  ;;  %v1088_v25 = vpop.f32.mrb[3].mxu0 }
  0xfa   :  { %v1089_v26 = vadd.f32 %v1088_v25, %v1087_v22  ;;  %v1152_v27 = vpop.f32.mrb[3].mxu1 }
  0xfb   :  { %v1153_v28 = vadd.f32 %v1152_v27, %v1151_v24  ;;  %v1629_v29 = vadd.f32 %v1150_v23, %v1086_v20 }
  0xfd   :  { %v1631_v30 = vadd.f32 %v1153_v28, %v1089_v26 }
  0xfe   :  { %v1090_v31 = vpop.f32.mrb[4].mxu0 }
  0xff   :  { %v1154_v32 = vpop.f32.mrb[4].mxu1  ;;  %v1091_v33 = vpop.f32.mrb[5].mxu0 }
 0x100   :  { %v1092_v34 = vadd.f32 %v1091_v33, %v1090_v31  ;;  %v1155_v35 = vpop.f32.mrb[5].mxu1  ;;  %v1093_v36 = vpop.f32.mrb[6].mxu0 }
 0x101   :  { %v1156_v37 = vadd.f32 %v1155_v35, %v1154_v32  ;;  %v1157_v38 = vpop.f32.mrb[6].mxu1  ;;  %v1094_v39 = vpop.f32.mrb[7].mxu0 }
 0x102   :  { %v1095_v40 = vadd.f32 %v1094_v39, %v1093_v36  ;;  %v1158_v41 = vpop.f32.mrb[7].mxu1 }
 0x103   :  { %v1159_v42 = vadd.f32 %v1158_v41, %v1157_v38  ;;  %v1633_v43 = vadd.f32 %v1156_v37, %v1092_v34 }
 0x105   :  { %v1635_v44 = vadd.f32 %v1159_v42, %v1095_v40 }
 0x106   :  { %v1096_v45 = vpop.f32.mrb[8].mxu0 }
 0x107   :  { %v1160_v46 = vpop.f32.mrb[8].mxu1  ;;  %v1097_v47 = vpop.f32.mrb[9].mxu0 }
 0x108   :  { %v1098_v48 = vadd.f32 %v1097_v47, %v1096_v45  ;;  %v1161_v49 = vpop.f32.mrb[9].mxu1  ;;  %v1099_v50 = vpop.f32.mrb[10].mxu0 }
 0x109   :  { %v1162_v51 = vadd.f32 %v1161_v49, %v1160_v46  ;;  %v1163_v52 = vpop.f32.mrb[10].mxu1  ;;  %v1100_v53 = vpop.f32.mrb[11].mxu0 }
 0x10a   :  { %v1101_v54 = vadd.f32 %v1100_v53, %v1099_v50  ;;  %v1164_v55 = vpop.f32.mrb[11].mxu1 }
 0x10b   :  { %v1165_v56 = vadd.f32 %v1164_v55, %v1163_v52  ;;  %v1637_v57 = vadd.f32 %v1162_v51, %v1098_v48 }
 0x10d   :  { %v1639_v58 = vadd.f32 %v1165_v56, %v1101_v54 }
 0x10e   :  { %v1102_v59 = vpop.f32.mrb[12].mxu0 }
 0x10f   :  { %v1166_v60 = vpop.f32.mrb[12].mxu1  ;;  %v1103_v61 = vpop.f32.mrb[13].mxu0 }
 0x110   :  { %v1104_v62 = vadd.f32 %v1103_v61, %v1102_v59  ;;  %v1167_v63 = vpop.f32.mrb[13].mxu1  ;;  %v1105_v0 = vpop.f32.mrb[14].mxu0 }
 0x111   :  { %v1168_v1 = vadd.f32 %v1167_v63, %v1166_v60  ;;  %v1169_v2 = vpop.f32.mrb[14].mxu1  ;;  %v1106_v3 = vpop.f32.mrb[15].mxu0 }
 0x112   :  { %v1107_v4 = vadd.f32 %v1106_v3, %v1105_v0  ;;  %v1170_v5 = vpop.f32.mrb[15].mxu1 }
 0x113   :  { %v1171_v6 = vadd.f32 %v1170_v5, %v1169_v2  ;;  %v1641_v7 = vadd.f32 %v1168_v1, %v1104_v62 }
 0x115   :  { %v1643_v8 = vadd.f32 %v1171_v6, %v1107_v4 }
 0x116   :  { %v1108_v9 = vpop.f32.mrb[16].mxu0 }
 0x117   :  { %v1172_v10 = vpop.f32.mrb[16].mxu1  ;;  %v1109_v11 = vpop.f32.mrb[17].mxu0 }
 0x118   :  { %v1110_v12 = vadd.f32 %v1109_v11, %v1108_v9  ;;  %v1173_v13 = vpop.f32.mrb[17].mxu1  ;;  %v1111_v14 = vpop.f32.mrb[18].mxu0  ;;  %v35_v9 = vld [vmem:[#allocation2 + $0x10] sm:$0xff] }
 0x119   :  { %v1174_v15 = vadd.f32 %v1173_v13, %v1172_v10  ;;  %v1175_v16 = vpop.f32.mrb[18].mxu1  ;;  %v1112_v17 = vpop.f32.mrb[19].mxu0 }
 0x11a   :  { %v1113_v18 = vadd.f32 %v1112_v17, %v1111_v14  ;;  %v1176_v19 = vpop.f32.mrb[19].mxu1  ;;  %v33_v14 = vld [vmem:[#allocation2] sm:$0xff] }
 0x11b   :  { %v1177_v20 = vadd.f32 %v1176_v19, %v1175_v16  ;;  %v789_v21 = vadd.f32 %v1174_v15, %v1110_v12  ;;  %v43_v12 = vld [vmem:[#allocation2 + $0x50] sm:$0xff] }
 0x11d   :  { %v1645_v22 = vadd.f32 %v1177_v20, %v1113_v18  ;;  %v41_v18 = vld [vmem:[#allocation2 + $0x40] sm:$0xff]  ;;  %v36_v20 = vld [vmem:[#allocation2 + $0x18] sm:$0xff] }
 0x11e   :  { %v1114_v23 = vpop.f32.mrb[20].mxu0 }
 0x11f   :  { %v1178_v24 = vpop.f32.mrb[20].mxu1  ;;  %v1115_v25 = vpop.f32.mrb[21].mxu0 }
 0x120   :  { %v1116_v26 = vadd.f32 %v1115_v25, %v1114_v23  ;;  %v1179_v27 = vpop.f32.mrb[21].mxu1  ;;  %v1117_v28 = vpop.f32.mrb[22].mxu0 }
 0x121   :  { %v1180_v31 = vadd.f32 %v1179_v27, %v1178_v24  ;;  %v1181_v32 = vpop.f32.mrb[22].mxu1  ;;  %v1118_v33 = vpop.f32.mrb[23].mxu0  ;;  %v44_v27 = vld [vmem:[#allocation2 + $0x58] sm:$0xff] }
 0x122   :  { %v1119_v34 = vadd.f32 %v1118_v33, %v1117_v28  ;;  %v1182_v35 = vpop.f32.mrb[23].mxu1 }
 0x123   :  { %v1183_v36 = vadd.f32 %v1182_v35, %v1181_v32  ;;  %v797_v37 = vadd.f32 %v1180_v31, %v1116_v26  ;;  %v34_v31 = vld [vmem:[#allocation2 + $0x8] sm:$0xff] }
 0x125   :  { %v800_v38 = vadd.f32 %v1183_v36, %v1119_v34  ;;  %v42_v36 = vld [vmem:[#allocation2 + $0x48] sm:$0xff] }
 0x126   :  { %v1120_v39 = vpop.f32.mrb[24].mxu0 }
 0x127   :  { %v1184_v40 = vpop.f32.mrb[24].mxu1  ;;  %v1121_v41 = vpop.f32.mrb[25].mxu0 }
 0x128   :  { %v1122_v42 = vadd.f32 %v1121_v41, %v1120_v39  ;;  %v1185_v45 = vpop.f32.mrb[25].mxu1  ;;  %v1123_v46 = vpop.f32.mrb[26].mxu0 }
 0x129   :  { %v1186_v47 = vadd.f32 %v1185_v45, %v1184_v40  ;;  %v1187_v48 = vpop.f32.mrb[26].mxu1  ;;  %v1124_v49 = vpop.f32.mrb[27].mxu0 }
 0x12a   :  { %v1125_v50 = vadd.f32 %v1124_v49, %v1123_v46  ;;  %v1188_v51 = vpop.f32.mrb[27].mxu1  ;;  %v37_v46 = vld [vmem:[#allocation2 + $0x20] sm:$0xff] }
 0x12b   :  { %v1189_v52 = vadd.f32 %v1188_v51, %v1187_v48  ;;  %v1647_v53 = vadd.f32 %v1186_v47, %v1122_v42  ;;  %v47_v42 = vld [vmem:[#allocation2 + $0x70] sm:$0xff] }
 0x12d   :  { %v1649_v54 = vadd.f32 %v1189_v52, %v1125_v50  ;;  %v45_v50 = vld [vmem:[#allocation2 + $0x60] sm:$0xff]  ;;  %v40_v52 = vld [vmem:[#allocation2 + $0x38] sm:$0xff] }
 0x12e   :  { %v1126_v55 = vpop.f32.mrb[28].mxu0 }
 0x12f   :  { %v1190_v56 = vpop.f32.mrb[28].mxu1  ;;  %v1127_v59 = vpop.f32.mrb[29].mxu0 }
 0x130   :  { %v1128_v60 = vadd.f32 %v1127_v59, %v1126_v55  ;;  %v1191_v61 = vpop.f32.mrb[29].mxu1  ;;  %v1129_v62 = vpop.f32.mrb[30].mxu0 }
 0x131   :  { %v1192_v63 = vadd.f32 %v1191_v61, %v1190_v56  ;;  %v1193_v0 = vpop.f32.mrb[30].mxu1  ;;  %v1130_v1 = vpop.f32.mrb[31].mxu0  ;;  %v48_v61 = vld [vmem:[#allocation2 + $0x78] sm:$0xff] }
 0x132   :  { %v1131_v2 = vadd.f32 %v1130_v1, %v1129_v62  ;;  %v1194_v3 = vpop.f32.mrb[31].mxu1 }
 0x133   :  { %v1195_v4 = vadd.f32 %v1194_v3, %v1193_v0  ;;  %v813_v5 = vadd.f32 %v1192_v63, %v1128_v60  ;;  %v38_v63 = vld [vmem:[#allocation2 + $0x28] sm:$0xff] }
 0x135   :  { %v1651_v6 = vadd.f32 %v1195_v4, %v1131_v2  ;;  %v46_v4 = vld [vmem:[#allocation2 + $0x68] sm:$0xff] }
 0x136   :  { %v1230_v10 = vpop.f32.mrb[32].mxu0 }
 0x137   :  { %v862_v11 = vadd.f32 %v1230_v10, %v1633_v43  ;;  %v1238_v13 = vpop.f32.mrb[32].mxu1  ;;  %v853_v15 = vpop.f32.mrb[33].mxu0 }
 0x138   :  { %v894_v16 = vadd.f32 %v1238_v13, %v797_v37  ;;  %v854_v17 = vadd.f32 %v853_v15, %v1629_v29  ;;  %v885_v19 = vpop.f32.mrb[33].mxu1  ;;  %v1231_v23 = vpop.f32.mrb[34].mxu0 }
 0x139   :  { %v918_v24 = vadd.f32 %v862_v11, %v35_v9  ;;  %v886_v25 = vadd.f32 %v885_v19, %v789_v21  ;;  %v865_v26 = vadd.f32 %v1231_v23, %v1635_v44  ;;  %v1239_v28 = vpop.f32.mrb[34].mxu1  ;;  %v856_v32 = vpop.f32.mrb[35].mxu0 }
 0x13a   :  { %v926_v43 = vadd.f32 %v894_v16, %v43_v12  ;;  %v916_v33 = vadd.f32 %v854_v17, %v33_v14  ;;  %v897_v34 = vadd.f32 %v1239_v28, %v800_v38  ;;  %v857_v35 = vadd.f32 %v856_v32, %v1631_v30  ;;  %v888_v37 = vpop.f32.mrb[35].mxu1  ;;  %v39_v30 = vld [vmem:[#allocation2 + $0x30] sm:$0xff] }
 0x13b   :  { %935 = vst.msk [vmem:[#allocation2 + $0x10] sm:$0xff] %vm16_vm0, %v918_v24  ;;  %v924_v29 = vadd.f32 %v886_v25, %v41_v18  ;;  %v919_v39 = vadd.f32 %v865_v26, %v36_v20  ;;  %v889_v40 = vadd.f32 %v888_v37, %v1645_v22 }
 0x13c   :  { %943 = vst.msk [vmem:[#allocation2 + $0x50] sm:$0xff] %vm16_vm0, %v926_v43  ;;  %933 = vst.msk [vmem:[#allocation2] sm:$0xff] %vm16_vm0, %v916_v33  ;;  %v927_v44 = vadd.f32 %v897_v34, %v44_v27  ;;  %v917_v21 = vadd.f32 %v857_v35, %v34_v31 }
 0x13d   :  { %941 = vst.msk [vmem:[#allocation2 + $0x40] sm:$0xff] %vm16_vm0, %v924_v29  ;;  %936 = vst.msk [vmem:[#allocation2 + $0x18] sm:$0xff] %vm16_vm0, %v919_v39  ;;  %v925_v38 = vadd.f32 %v889_v40, %v42_v36 }
 0x13e   :  { %944 = vst.msk [vmem:[#allocation2 + $0x58] sm:$0xff] %vm16_vm0, %v927_v44  ;;  %934 = vst.msk [vmem:[#allocation2 + $0x8] sm:$0xff] %vm16_vm0, %v917_v21  ;;  %v1234_v41 = vpop.f32.mrb[36].mxu0 }
 0x13f   :  { %942 = vst.msk [vmem:[#allocation2 + $0x48] sm:$0xff] %vm16_vm0, %v925_v38  ;;  %v878_v22 = vadd.f32 %v1234_v41, %v1641_v7  ;;  %v1242_v45 = vpop.f32.mrb[36].mxu1  ;;  %v869_v47 = vpop.f32.mrb[37].mxu0 }
 0x140   :  { %v910_v48 = vadd.f32 %v1242_v45, %v813_v5  ;;  %v870_v49 = vadd.f32 %v869_v47, %v1637_v57  ;;  %v901_v51 = vpop.f32.mrb[37].mxu1  ;;  %v1235_v55 = vpop.f32.mrb[38].mxu0 }
 0x141   :  { %v922_v56 = vadd.f32 %v878_v22, %v39_v30  ;;  %v902_v59 = vadd.f32 %v901_v51, %v1647_v53  ;;  %v881_v60 = vadd.f32 %v1235_v55, %v1643_v8  ;;  %v1243_v62 = vpop.f32.mrb[38].mxu1  ;;  %v872_v7 = vpop.f32.mrb[39].mxu0 }
 0x142   :  { %v954_v0 = vld [vmem:[#allocation2 + $0x10] sm:$0xff]  ;;  %v930_v1 = vadd.f32 %v910_v48, %v47_v42  ;;  %v920_v2 = vadd.f32 %v870_v49, %v37_v46  ;;  %v913_v3 = vadd.f32 %v1243_v62, %v1651_v6  ;;  %v873_v57 = vadd.f32 %v872_v7, %v1639_v58  ;;  %v904_v5 = vpop.f32.mrb[39].mxu1 }
 0x143   :  { %970 = vst.msk [vmem:[%s1747_s2 + $0x10] sm:$0xff] %vm16_vm0, %v954_v0  ;;  %v962_v53 = vld [vmem:[#allocation2 + $0x50] sm:$0xff]  ;;  %v952_v8 = vld [vmem:[#allocation2] sm:$0xff]  ;;  %939 = vst.msk [vmem:[#allocation2 + $0x30] sm:$0xff] %vm16_vm0, %v922_v56  ;;  %v928_v9 = vadd.f32 %v902_v59, %v45_v50  ;;  %v923_v10 = vadd.f32 %v881_v60, %v40_v52  ;;  %v905_v11 = vadd.f32 %v904_v5, %v1649_v54 }
 0x144   :  { %978 = vst.msk [vmem:[%s1747_s2 + $0x50] sm:$0xff] %vm16_vm0, %v962_v53  ;;  %968 = vst.msk [vmem:[%s1747_s2] sm:$0xff] %vm16_vm0, %v952_v8  ;;  %v960_v58 = vld [vmem:[#allocation2 + $0x40] sm:$0xff]  ;;  %v955_v6 = vld [vmem:[#allocation2 + $0x18] sm:$0xff]  ;;  %v931_v12 = vadd.f32 %v913_v3, %v48_v61  ;;  %v921_v13 = vadd.f32 %v873_v57, %v38_v63 }
 0x145   :  { %947 = vst.msk [vmem:[#allocation2 + $0x70] sm:$0xff] %vm16_vm0, %v930_v1  ;;  %937 = vst.msk [vmem:[#allocation2 + $0x20] sm:$0xff] %vm16_vm0, %v920_v2  ;;  %v963_v54 = vld [vmem:[#allocation2 + $0x58] sm:$0xff]  ;;  %v953_v14 = vld [vmem:[#allocation2 + $0x8] sm:$0xff]  ;;  %v929_v15 = vadd.f32 %v905_v11, %v46_v4 }
 0x146   :  { %976 = vst.msk [vmem:[%s1747_s2 + $0x40] sm:$0xff] %vm16_vm0, %v960_v58  ;;  %971 = vst.msk [vmem:[%s1747_s2 + $0x18] sm:$0xff] %vm16_vm0, %v955_v6  ;;  %v961_v16 = vld [vmem:[#allocation2 + $0x48] sm:$0xff] }
 0x147   :  { %945 = vst.msk [vmem:[#allocation2 + $0x60] sm:$0xff] %vm16_vm0, %v928_v9  ;;  %940 = vst.msk [vmem:[#allocation2 + $0x38] sm:$0xff] %vm16_vm0, %v923_v10 }
 0x148   :  { %979 = vst.msk [vmem:[%s1747_s2 + $0x58] sm:$0xff] %vm16_vm0, %v963_v54  ;;  %969 = vst.msk [vmem:[%s1747_s2 + $0x8] sm:$0xff] %vm16_vm0, %v953_v14 }
 0x149   :  { %948 = vst.msk [vmem:[#allocation2 + $0x78] sm:$0xff] %vm16_vm0, %v931_v12  ;;  %938 = vst.msk [vmem:[#allocation2 + $0x28] sm:$0xff] %vm16_vm0, %v921_v13 }
 0x14a   :  { %977 = vst.msk [vmem:[%s1747_s2 + $0x48] sm:$0xff] %vm16_vm0, %v961_v16  ;;  %946 = vst.msk [vmem:[#allocation2 + $0x68] sm:$0xff] %vm16_vm0, %v929_v15  ;;  %v958_v17 = vld [vmem:[#allocation2 + $0x30] sm:$0xff] }
 0x14b   :  { %974 = vst.msk [vmem:[%s1747_s2 + $0x30] sm:$0xff] %vm16_vm0, %v958_v17 }
 0x14c   :  { %v966_v18 = vld [vmem:[#allocation2 + $0x70] sm:$0xff]  ;;  %v956_v19 = vld [vmem:[#allocation2 + $0x20] sm:$0xff] }
 0x14d   :  { %982 = vst.msk [vmem:[%s1747_s2 + $0x70] sm:$0xff] %vm16_vm0, %v966_v18  ;;  %972 = vst.msk [vmem:[%s1747_s2 + $0x20] sm:$0xff] %vm16_vm0, %v956_v19 }
 0x14e   :  { %v964_v20 = vld [vmem:[#allocation2 + $0x60] sm:$0xff]  ;;  %v959_v23 = vld [vmem:[#allocation2 + $0x38] sm:$0xff] }
 0x14f   :  { %980 = vst.msk [vmem:[%s1747_s2 + $0x60] sm:$0xff] %vm16_vm0, %v964_v20  ;;  %975 = vst.msk [vmem:[%s1747_s2 + $0x38] sm:$0xff] %vm16_vm0, %v959_v23 }
 0x150   :  { %v967_v24 = vld [vmem:[#allocation2 + $0x78] sm:$0xff]  ;;  %v957_v25 = vld [vmem:[#allocation2 + $0x28] sm:$0xff] }
 0x151   :  { %983 = vst.msk [vmem:[%s1747_s2 + $0x78] sm:$0xff] %vm16_vm0, %v967_v24  ;;  %973 = vst.msk [vmem:[%s1747_s2 + $0x28] sm:$0xff] %vm16_vm0, %v957_v25  ;;  %v965_v26 = vld [vmem:[#allocation2 + $0x68] sm:$0xff] }
 0x152   :  { %981 = vst.msk [vmem:[%s1747_s2 + $0x68] sm:$0xff] %vm16_vm0, %v965_v26 }

// kernel: resnet_forward.68
= control target key start
LH: loop header
LB: loop body
LE: loop exit
PB: predicated region body
PF: predicated region fallthrough
CT: control target
= control target key end

     0   :  { %vm120_vm0 = vcmask 523264   ;;  %s365_s0 = inlined_call_operand.vmem [shape: f32[128,64], index: 0, kind: input, shape index: {}]   ;;  %s366_s1 = inlined_call_operand.vmem [shape: f32[2,64], index: 1, kind: input, shape index: {}]   ;;  %s367_s2 = inlined_call_operand.vmem [shape: f32[128,64], index: 2, kind: input, shape index: {}]   ;;  %s368_s3 = inlined_call_operand.vmem [shape: f32[128,64], index: 3, kind: output, shape index: {}]  }
   0x1   :  { %v14_v0 = vld [vmem:[%s365_s0] sm:$0xff]  ;;  %v15_v4 = vld [vmem:[%s365_s0 + $0x8] sm:$0xff]  ;;  %v16_v7 = vld [vmem:[%s365_s0 + $0x10] sm:$0xff] }
   0x2   :  { %v169_v1 = vld [vmem:[%s366_s1] ss:$0 sm:$0xff]  ;;  %v174_v2 = vld [vmem:[%s366_s1 + $0x1] ss:$0 sm:$0xff]  ;;  %v17_v8 = vld [vmem:[%s365_s0 + $0x18] sm:$0xff] }
   0x3   :  { %v35_v3 = vsub.f32 %v14_v0, %v169_v1  ;;  %v72_v5 = vld [vmem:[%s367_s2] sm:$0xff]  ;;  %v36_v6 = vsub.f32 %v15_v4, %v169_v1  ;;  %v73_v10 = vld [vmem:[%s367_s2 + $0x8] sm:$0xff]  ;;  %v37_v11 = vsub.f32 %v16_v7, %v169_v1  ;;  %v74_v12 = vld [vmem:[%s367_s2 + $0x10] sm:$0xff]  ;;  %v38_v13 = vsub.f32 %v17_v8, %v169_v1 }
   0x4   :  { %v18_v14 = vld [vmem:[%s365_s0 + $0x20] sm:$0xff]  ;;  %v75_v16 = vld [vmem:[%s367_s2 + $0x18] sm:$0xff]  ;;  %v19_v18 = vld [vmem:[%s365_s0 + $0x28] sm:$0xff] }
   0x5   :  { %v56_v9 = vmul.f32 %v174_v2, %v35_v3  ;;  %v57_v15 = vmul.f32 %v174_v2, %v36_v6  ;;  %v39_v17 = vsub.f32 %v18_v14, %v169_v1  ;;  %v20_v19 = vld [vmem:[%s365_s0 + $0x30] sm:$0xff]  ;;  %v58_v21 = vmul.f32 %v174_v2, %v37_v11  ;;  %v76_v23 = vld [vmem:[%s367_s2 + $0x20] sm:$0xff]  ;;  %v21_v25 = vld [vmem:[%s365_s0 + $0x38] sm:$0xff] }
   0x6   :  { %v59_v22 = vmul.f32 %v174_v2, %v38_v13  ;;  %v40_v24 = vsub.f32 %v19_v18, %v169_v1  ;;  %v77_v28 = vld [vmem:[%s367_s2 + $0x28] sm:$0xff]  ;;  %v41_v29 = vsub.f32 %v20_v19, %v169_v1  ;;  %v42_v30 = vsub.f32 %v21_v25, %v169_v1  ;;  %v22_v31 = vld [vmem:[%s365_s0 + $0x40] sm:$0xff]  ;;  %v78_v36 = vld [vmem:[%s367_s2 + $0x30] sm:$0xff] }
   0x7   :  { %v88_v20 = vadd.f32 %v72_v5, %v56_v9  ;;  %v89_v26 = vadd.f32 %v73_v10, %v57_v15  ;;  %v60_v27 = vmul.f32 %v174_v2, %v39_v17  ;;  %v90_v33 = vadd.f32 %v74_v12, %v58_v21  ;;  %v79_v37 = vld [vmem:[%s367_s2 + $0x38] sm:$0xff]  ;;  %v23_v38 = vld [vmem:[%s365_s0 + $0x48] sm:$0xff]  ;;  %v24_v43 = vld [vmem:[%s365_s0 + $0x50] sm:$0xff] }
   0x8   :  { %v91_v34 = vadd.f32 %v75_v16, %v59_v22  ;;  %v61_v35 = vmul.f32 %v174_v2, %v40_v24  ;;  %v62_v41 = vmul.f32 %v174_v2, %v41_v29  ;;  %v63_v42 = vmul.f32 %v174_v2, %v42_v30  ;;  %v25_v44 = vld [vmem:[%s365_s0 + $0x58] sm:$0xff]  ;;  %v26_v49 = vld [vmem:[%s365_s0 + $0x60] sm:$0xff]  ;;  %v27_v55 = vld [vmem:[%s365_s0 + $0x68] sm:$0xff] }
   0x9   :  { %v104_v32 = vmax.f32 %v88_v20, 0.0  ;;  %v105_v39 = vmax.f32 %v89_v26, 0.0  ;;  %v92_v40 = vadd.f32 %v76_v23, %v60_v27  ;;  %v106_v45 = vmax.f32 %v90_v33, 0.0  ;;  %v80_v53 = vld [vmem:[%s367_s2 + $0x40] sm:$0xff]  ;;  %v81_v58 = vld [vmem:[%s367_s2 + $0x48] sm:$0xff]  ;;  %v28_v61 = vld [vmem:[%s365_s0 + $0x70] sm:$0xff] }
   0xa   :  { %v107_v46 = vmax.f32 %v91_v34, 0.0  ;;  %v93_v47 = vadd.f32 %v77_v28, %v61_v35  ;;  %v43_v48 = vsub.f32 %v22_v31, %v169_v1  ;;  %v94_v51 = vadd.f32 %v78_v36, %v62_v41  ;;  %v29_v62 = vld [vmem:[%s365_s0 + $0x78] sm:$0xff]  ;;  %v82_v4 = vld [vmem:[%s367_s2 + $0x50] sm:$0xff]  ;;  %v84_v10 = vld [vmem:[%s367_s2 + $0x60] sm:$0xff] }
   0xb   :  { %121 = vst.msk [vmem:[%s368_s3] sm:$0xff] %vm120_vm0, %v104_v32  ;;  %122 = vst.msk [vmem:[%s368_s3 + $0x8] sm:$0xff] %vm120_vm0, %v105_v39  ;;  %v108_v50 = vmax.f32 %v92_v40, 0.0  ;;  %v95_v52 = vadd.f32 %v79_v37, %v63_v42  ;;  %v44_v54 = vsub.f32 %v23_v38, %v169_v1  ;;  %v45_v59 = vsub.f32 %v24_v43, %v169_v1  ;;  %v83_v5 = vld [vmem:[%s367_s2 + $0x58] sm:$0xff]  ;;  %v85_v14 = vld [vmem:[%s367_s2 + $0x68] sm:$0xff] }
   0xc   :  { %123 = vst.msk [vmem:[%s368_s3 + $0x10] sm:$0xff] %vm120_vm0, %v106_v45  ;;  %124 = vst.msk [vmem:[%s368_s3 + $0x18] sm:$0xff] %vm120_vm0, %v107_v46  ;;  %v109_v56 = vmax.f32 %v93_v47, 0.0  ;;  %v64_v57 = vmul.f32 %v174_v2, %v43_v48  ;;  %v46_v60 = vsub.f32 %v25_v44, %v169_v1  ;;  %v110_v63 = vmax.f32 %v94_v51, 0.0  ;;  %v86_v21 = vld [vmem:[%s367_s2 + $0x70] sm:$0xff]  ;;  %v87_v22 = vld [vmem:[%s367_s2 + $0x78] sm:$0xff] }
   0xd   :  { %125 = vst.msk [vmem:[%s368_s3 + $0x20] sm:$0xff] %vm120_vm0, %v108_v50  ;;  %v111_v0 = vmax.f32 %v95_v52, 0.0  ;;  %v65_v3 = vmul.f32 %v174_v2, %v44_v54  ;;  %v47_v6 = vsub.f32 %v26_v49, %v169_v1  ;;  %v66_v8 = vmul.f32 %v174_v2, %v45_v59 }
   0xe   :  { %126 = vst.msk [vmem:[%s368_s3 + $0x28] sm:$0xff] %vm120_vm0, %v109_v56  ;;  %v96_v7 = vadd.f32 %v80_v53, %v64_v57  ;;  %v67_v9 = vmul.f32 %v174_v2, %v46_v60  ;;  %v48_v11 = vsub.f32 %v27_v55, %v169_v1  ;;  %127 = vst.msk [vmem:[%s368_s3 + $0x30] sm:$0xff] %vm120_vm0, %v110_v63 }
   0xf   :  { %128 = vst.msk [vmem:[%s368_s3 + $0x38] sm:$0xff] %vm120_vm0, %v111_v0  ;;  %v97_v12 = vadd.f32 %v81_v58, %v65_v3  ;;  %v68_v13 = vmul.f32 %v174_v2, %v47_v6  ;;  %v49_v15 = vsub.f32 %v28_v61, %v169_v1  ;;  %v50_v16 = vsub.f32 %v29_v62, %v169_v1 }
  0x10   :  { %v112_v17 = vmax.f32 %v96_v7, 0.0  ;;  %v98_v18 = vadd.f32 %v82_v4, %v66_v8  ;;  %v99_v19 = vadd.f32 %v83_v5, %v67_v9  ;;  %v69_v20 = vmul.f32 %v174_v2, %v48_v11 }
  0x11   :  { %v113_v23 = vmax.f32 %v97_v12, 0.0  ;;  %v100_v24 = vadd.f32 %v84_v10, %v68_v13  ;;  %v70_v25 = vmul.f32 %v174_v2, %v49_v15  ;;  %v71_v26 = vmul.f32 %v174_v2, %v50_v16 }
  0x12   :  { %129 = vst.msk [vmem:[%s368_s3 + $0x40] sm:$0xff] %vm120_vm0, %v112_v17  ;;  %v114_v1 = vmax.f32 %v98_v18, 0.0  ;;  %v115_v27 = vmax.f32 %v99_v19, 0.0  ;;  %v101_v28 = vadd.f32 %v85_v14, %v69_v20 }
  0x13   :  { %130 = vst.msk [vmem:[%s368_s3 + $0x48] sm:$0xff] %vm120_vm0, %v113_v23  ;;  %v116_v29 = vmax.f32 %v100_v24, 0.0  ;;  %v102_v30 = vadd.f32 %v86_v21, %v70_v25  ;;  %v103_v31 = vadd.f32 %v87_v22, %v71_v26 }
  0x14   :  { %131 = vst.msk [vmem:[%s368_s3 + $0x50] sm:$0xff] %vm120_vm0, %v114_v1  ;;  %132 = vst.msk [vmem:[%s368_s3 + $0x58] sm:$0xff] %vm120_vm0, %v115_v27  ;;  %v117_v2 = vmax.f32 %v101_v28, 0.0 }
  0x15   :  { %133 = vst.msk [vmem:[%s368_s3 + $0x60] sm:$0xff] %vm120_vm0, %v116_v29  ;;  %v118_v32 = vmax.f32 %v102_v30, 0.0  ;;  %v119_v33 = vmax.f32 %v103_v31, 0.0 }
  0x16   :  { %134 = vst.msk [vmem:[%s368_s3 + $0x68] sm:$0xff] %vm120_vm0, %v117_v2 }
  0x17   :  { %135 = vst.msk [vmem:[%s368_s3 + $0x70] sm:$0xff] %vm120_vm0, %v118_v32  ;;  %136 = vst.msk [vmem:[%s368_s3 + $0x78] sm:$0xff] %vm120_vm0, %v119_v33 }

// kernel: resnet_forward.75
= control target key start
LH: loop header
LB: loop body
LE: loop exit
PB: predicated region body
PF: predicated region fallthrough
CT: control target
= control target key end

     0   :  { %s283_s1 = inlined_call_operand.vmem [shape: bf16[128,128], index: 1, kind: input, shape index: {}]   ;;  %s284_s0 = inlined_call_operand.vmem [shape: bf16[32,128], index: 0, kind: input, shape index: {}]   ;;  %s285_s2 = inlined_call_operand.vmem [shape: f32[32,128], index: 2, kind: output, shape index: {}]  }
   0x1   :  { %v216_v0 = vld [vmem:[%s283_s1] sm:$0xff]   ;;  %v217_v1 = vld [vmem:[%s283_s1 + $0x8] sm:$0xff]   ;;  %v218_v2 = vld [vmem:[%s283_s1 + $0x10] sm:$0xff]  }
   0x2   :  { %196 = vmatprep.subr.bf16.mxu0 %v216_v0  ;;  %v219_v3 = vld [vmem:[%s283_s1 + $0x18] sm:$0xff]   ;;  %v224_v4 = vld [vmem:[%s284_s0] sm:$0xff]   ;;  %v221_v6 = vld [vmem:[%s283_s1 + $0x28] sm:$0xff]  }
   0x3   :  { %197 = vmatpush3.bf16.msra.mxu0 %v216_v0  ;;  %212 = vmatprep.mubr.bf16.mxu0 %v224_v4  ;;  %v220_v5 = vld [vmem:[%s283_s1 + $0x20] sm:$0xff]   ;;  %v222_v7 = vld [vmem:[%s283_s1 + $0x30] sm:$0xff]   ;;  %v223_v8 = vld [vmem:[%s283_s1 + $0x38] sm:$0xff]  }
   0x4   :  { %198 = vmatprep.subr.bf16.mxu0 %v217_v1  ;;  %v225_v9 = vld [vmem:[%s284_s0 + $0x8] sm:$0xff]  }
   0x7   :  { %199 = vmatpush3.bf16.msra.mxu0 %v217_v1 }
   0x8   :  { %200 = vmatprep.subr.bf16.mxu0 %v218_v2 }
   0xb   :  { %201 = vmatpush3.bf16.msra.mxu0 %v218_v2 }
   0xc   :  { %202 = vmatprep.subr.bf16.mxu0 %v219_v3 }
   0xf   :  { %203 = vmatpush3.bf16.msra.mxu0 %v219_v3 }
  0x10   :  { %204 = vmatprep.subr.bf16.mxu0 %v220_v5 }
  0x13   :  { %205 = vmatpush3.bf16.msra.mxu0 %v220_v5 }
  0x14   :  { %206 = vmatprep.subr.bf16.mxu0 %v221_v6 }
  0x17   :  { %207 = vmatpush3.bf16.msra.mxu0 %v221_v6 }
  0x18   :  { %208 = vmatprep.subr.bf16.mxu0 %v222_v7 }
  0x1b   :  { %209 = vmatpush3.bf16.msra.mxu0 %v222_v7 }
  0x1c   :  { %210 = vmatprep.subr.bf16.mxu0 %v223_v8 }
  0x1f   :  { %211 = vmatpush3.bf16.msra.mxu0 %v223_v8 }
  0x22   :  { %213 = vmatmul.mubr.bf16.vlgmr.msra.gmra.mrb[0].mxu0 %v225_v9 }
  0xf5   :  { %v214_v10 = vpop.f32.mrb[0].mxu0 }
  0xf6   :  { %170 = vst [vmem:[%s285_s2 + $0x10] sm:$0xff] %v214_v10  ;;  %v138_v11 = vpop.f32.mrb[1].mxu0 }
  0xf7   :  { %168 = vst [vmem:[%s285_s2] sm:$0xff] %v138_v11  ;;  %v215_v12 = vpop.f32.mrb[2].mxu0 }
  0xf8   :  { %171 = vst [vmem:[%s285_s2 + $0x18] sm:$0xff] %v215_v12  ;;  %v141_v13 = vpop.f32.mrb[3].mxu0 }
  0xf9   :  { %169 = vst [vmem:[%s285_s2 + $0x8] sm:$0xff] %v141_v13 }

// kernel: resnet_forward.76
= control target key start
LH: loop header
LB: loop body
LE: loop exit
PB: predicated region body
PF: predicated region fallthrough
CT: control target
= control target key end

     0   :  { %v54_v0 = vmov 0.0   ;;  %vm40_vm0 = vcmask 1040384   ;;  %s80_s0 = inlined_call_operand.vmem [shape: f32[32,128], index: 0, kind: input, shape index: {}]   ;;  %s81_s1 = inlined_call_operand.vmem [shape: f32[2,128], index: 1, kind: output, shape index: {}]  }
   0x1   :  { %12 = vst [vmem:[#allocation2] sm:$0x3] %v54_v0  ;;  %v13_v1 = vld [vmem:[%s80_s0] sm:$0xff]  ;;  %v14_v2 = vld [vmem:[%s80_s0 + $0x8] sm:$0xff]  ;;  %v15_v3 = vld [vmem:[%s80_s0 + $0x10] sm:$0xff] }
   0x2   :  { %v16_v4 = vld [vmem:[%s80_s0 + $0x18] sm:$0xff]  ;;  %v17_v5 = vadd.f32 %v14_v2, %v13_v1  ;;  %v26_v6 = vmul.f32 %v13_v1, %v13_v1  ;;  %v27_v7 = vmul.f32 %v14_v2, %v14_v2  ;;  %v28_v8 = vmul.f32 %v15_v3, %v15_v3 }
   0x3   :  { %v29_v10 = vmul.f32 %v16_v4, %v16_v4 }
   0x4   :  { %v18_v9 = vadd.f32 %v17_v5, %v15_v3  ;;  %v30_v11 = vadd.f32 %v27_v7, %v26_v6 }
   0x6   :  { %v19_v12 = vadd.f32 %v18_v9, %v16_v4  ;;  %v31_v13 = vadd.f32 %v30_v11, %v28_v8 }
   0x8   :  { %v20_v14 = vrot.slane %v19_v12, 4  ;;  %v32_v15 = vadd.f32 %v31_v13, %v29_v10  ;;  %v39_v27 = vld [vmem:[#allocation2] sm:$0x3] }
   0xa   :  { %v21_v16 = vadd.f32 %v20_v14, %v19_v12  ;;  %v33_v17 = vrot.slane %v32_v15, 4 }
   0xc   :  { %v22_v18 = vrot.slane %v21_v16, 2  ;;  %v34_v19 = vadd.f32 %v33_v17, %v32_v15 }
   0xe   :  { %v23_v20 = vadd.f32 %v22_v18, %v21_v16  ;;  %v35_v21 = vrot.slane %v34_v19, 2 }
  0x10   :  { %v24_v22 = vrot.slane %v23_v20, 1  ;;  %v36_v23 = vadd.f32 %v35_v21, %v34_v19 }
  0x12   :  { %v25_v24 = vadd.f32 %v24_v22, %v23_v20  ;;  %v37_v25 = vrot.slane %v36_v23, 1 }
  0x14   :  { %v38_v26 = vadd.f32 %v37_v25, %v36_v23 }
  0x16   :  { %v41_v28 = vsel %vm40_vm0, %v25_v24, %v38_v26 }
  0x17   :  { %v42_v29 = vadd.f32 %v41_v28, %v39_v27 }
  0x19   :  { %43 = vst [vmem:[#allocation2] sm:$0x3] %v42_v29 }
  0x20   :  { %v47_v30 = vld [vmem:[#allocation2] sm:$0x3] }
  0x21   :  { %48 = vst [vmem:[%s81_s1] sm:$0x3] %v47_v30 }

// kernel: resnet_forward.77
= control target key start
LH: loop header
LB: loop body
LE: loop exit
PB: predicated region body
PF: predicated region fallthrough
CT: control target
= control target key end

     0   :  { %s88_s0 = inlined_call_operand.vmem [shape: f32[32,128], index: 0, kind: input, shape index: {}]   ;;  %s89_s1 = inlined_call_operand.vmem [shape: f32[2,128], index: 1, kind: input, shape index: {}]   ;;  %s90_s2 = inlined_call_operand.vmem [shape: f32[32,128], index: 2, kind: output, shape index: {}]  }
   0x1   :  { %v11_v0 = vld [vmem:[%s88_s0] sm:$0xff]  ;;  %v12_v4 = vld [vmem:[%s88_s0 + $0x8] sm:$0xff]  ;;  %v13_v5 = vld [vmem:[%s88_s0 + $0x10] sm:$0xff] }
   0x2   :  { %v41_v1 = vld [vmem:[%s89_s1] ss:$0 sm:$0xff]  ;;  %v42_v2 = vld [vmem:[%s89_s1 + $0x1] ss:$0 sm:$0xff]  ;;  %v14_v6 = vld [vmem:[%s88_s0 + $0x18] sm:$0xff] }
   0x3   :  { %v20_v3 = vsub.f32 %v11_v0, %v41_v1  ;;  %v21_v7 = vsub.f32 %v12_v4, %v41_v1  ;;  %v22_v8 = vsub.f32 %v13_v5, %v41_v1  ;;  %v23_v9 = vsub.f32 %v14_v6, %v41_v1 }
   0x5   :  { %v29_v10 = vmul.f32 %v42_v2, %v20_v3  ;;  %v30_v11 = vmul.f32 %v42_v2, %v21_v7  ;;  %v31_v12 = vmul.f32 %v42_v2, %v22_v8  ;;  %v32_v13 = vmul.f32 %v42_v2, %v23_v9 }
   0x7   :  { %33 = vst [vmem:[%s90_s2] sm:$0xff] %v29_v10  ;;  %34 = vst [vmem:[%s90_s2 + $0x8] sm:$0xff] %v30_v11 }
   0x8   :  { %35 = vst [vmem:[%s90_s2 + $0x10] sm:$0xff] %v31_v12  ;;  %36 = vst [vmem:[%s90_s2 + $0x18] sm:$0xff] %v32_v13 }

// kernel: resnet_forward.80
= control target key start
LH: loop header
LB: loop body
LE: loop exit
PB: predicated region body
PF: predicated region fallthrough
CT: control target
= control target key end

     0   :  { %s92_s0 = inlined_call_operand.vmem [shape: f32[32,128], index: 0, kind: input, shape index: {}]   ;;  %s93_s1 = inlined_call_operand.vmem [shape: f32[2,128], index: 1, kind: input, shape index: {}]   ;;  %s94_s2 = inlined_call_operand.vmem [shape: f32[32,128], index: 2, kind: output, shape index: {}]  }
   0x1   :  { %v11_v0 = vld [vmem:[%s92_s0] sm:$0xff]  ;;  %v12_v4 = vld [vmem:[%s92_s0 + $0x8] sm:$0xff]  ;;  %v13_v5 = vld [vmem:[%s92_s0 + $0x10] sm:$0xff] }
   0x2   :  { %v45_v1 = vld [vmem:[%s93_s1] ss:$0 sm:$0xff]  ;;  %v46_v2 = vld [vmem:[%s93_s1 + $0x1] ss:$0 sm:$0xff]  ;;  %v14_v6 = vld [vmem:[%s92_s0 + $0x18] sm:$0xff] }
   0x3   :  { %v20_v3 = vsub.f32 %v11_v0, %v45_v1  ;;  %v21_v7 = vsub.f32 %v12_v4, %v45_v1  ;;  %v22_v8 = vsub.f32 %v13_v5, %v45_v1  ;;  %v23_v9 = vsub.f32 %v14_v6, %v45_v1 }
   0x5   :  { %v29_v10 = vmul.f32 %v46_v2, %v20_v3  ;;  %v30_v11 = vmul.f32 %v46_v2, %v21_v7  ;;  %v31_v12 = vmul.f32 %v46_v2, %v22_v8  ;;  %v32_v13 = vmul.f32 %v46_v2, %v23_v9 }
   0x7   :  { %v33_v14 = vmax.f32 %v29_v10, 0.0  ;;  %v34_v15 = vmax.f32 %v30_v11, 0.0  ;;  %v35_v16 = vmax.f32 %v31_v12, 0.0  ;;  %v36_v17 = vmax.f32 %v32_v13, 0.0 }
   0x9   :  { %37 = vst [vmem:[%s94_s2] sm:$0xff] %v33_v14  ;;  %38 = vst [vmem:[%s94_s2 + $0x8] sm:$0xff] %v34_v15 }
   0xa   :  { %39 = vst [vmem:[%s94_s2 + $0x10] sm:$0xff] %v35_v16  ;;  %40 = vst [vmem:[%s94_s2 + $0x18] sm:$0xff] %v36_v17 }

// kernel: resnet_forward.78
= control target key start
LH: loop header
LB: loop body
LE: loop exit
PB: predicated region body
PF: predicated region fallthrough
CT: control target
= control target key end

     0   :  { %s945_s1 = inlined_call_operand.vmem [shape: bf16[640,128], index: 1, kind: input, shape index: {}]   ;;  %s946_s0 = inlined_call_operand.vmem [shape: bf16[32,640], index: 0, kind: input, shape index: {}]   ;;  %s947_s2 = inlined_call_operand.vmem [shape: f32[32,128], index: 2, kind: output, shape index: {}]  }
   0x1   :  { %v714_v0 = vld [vmem:[%s945_s1 + $0x40] sm:$0xff]   ;;  %v718_v4 = vld [vmem:[%s945_s1 + $0x48] sm:$0xff]   ;;  %v722_v8 = vld [vmem:[%s945_s1 + $0x50] sm:$0xff]  }
   0x2   :  { %v715_v1 = vld [vmem:[%s945_s1 + $0xc0] sm:$0xff]   ;;  %628 = vmatprep.subr.bf16.mxu0 %v714_v0  ;;  %v719_v5 = vld [vmem:[%s945_s1 + $0xc8] sm:$0xff]   ;;  %v723_v9 = vld [vmem:[%s945_s1 + $0xd0] sm:$0xff]  }
   0x3   :  { %v716_v2 = vld [vmem:[%s945_s1] sm:$0xff]   ;;  %656 = vmatprep.subr.bf16.mxu1 %v715_v1  ;;  %v720_v6 = vld [vmem:[%s945_s1 + $0x8] sm:$0xff]   ;;  %v724_v10 = vld [vmem:[%s945_s1 + $0x10] sm:$0xff]  }
   0x4   :  { %v717_v3 = vld [vmem:[%s945_s1 + $0x80] sm:$0xff]   ;;  %629 = vmatpush3.bf16.msra.mxu0 %v716_v2  ;;  %v721_v7 = vld [vmem:[%s945_s1 + $0x88] sm:$0xff]   ;;  %v725_v11 = vld [vmem:[%s945_s1 + $0x90] sm:$0xff]  }
   0x5   :  { %657 = vmatpush3.bf16.msra.mxu1 %v717_v3  ;;  %630 = vmatprep.subr.bf16.mxu0 %v718_v4  ;;  %v726_v12 = vld [vmem:[%s945_s1 + $0x58] sm:$0xff]   ;;  %v730_v16 = vld [vmem:[%s945_s1 + $0x60] sm:$0xff]   ;;  %v734_v20 = vld [vmem:[%s945_s1 + $0x68] sm:$0xff]  }
   0x6   :  { %658 = vmatprep.subr.bf16.mxu1 %v719_v5  ;;  %v727_v13 = vld [vmem:[%s945_s1 + $0xd8] sm:$0xff]   ;;  %v731_v17 = vld [vmem:[%s945_s1 + $0xe0] sm:$0xff]   ;;  %v735_v21 = vld [vmem:[%s945_s1 + $0xe8] sm:$0xff]  }
   0x7   :  { %v728_v14 = vld [vmem:[%s945_s1 + $0x18] sm:$0xff]   ;;  %v732_v18 = vld [vmem:[%s945_s1 + $0x20] sm:$0xff]   ;;  %v736_v22 = vld [vmem:[%s945_s1 + $0x28] sm:$0xff]  }
   0x8   :  { %631 = vmatpush3.bf16.msra.mxu0 %v720_v6  ;;  %v729_v15 = vld [vmem:[%s945_s1 + $0x98] sm:$0xff]   ;;  %v733_v19 = vld [vmem:[%s945_s1 + $0xa0] sm:$0xff]   ;;  %v737_v23 = vld [vmem:[%s945_s1 + $0xa8] sm:$0xff]  }
   0x9   :  { %659 = vmatpush3.bf16.msra.mxu1 %v721_v7  ;;  %632 = vmatprep.subr.bf16.mxu0 %v722_v8  ;;  %v738_v24 = vld [vmem:[%s945_s1 + $0x70] sm:$0xff]   ;;  %v742_v28 = vld [vmem:[%s945_s1 + $0x78] sm:$0xff]   ;;  %v751_v35 = vld [vmem:[%s946_s0 + $0xc] ss:$20 sps:$4 sm:$0xff]  }
   0xa   :  { %660 = vmatprep.subr.bf16.mxu1 %v723_v9  ;;  %v739_v25 = vld [vmem:[%s945_s1 + $0xf0] sm:$0xff]   ;;  %v743_v29 = vld [vmem:[%s945_s1 + $0xf8] sm:$0xff]   ;;  %v752_v36 = vld [vmem:[%s945_s1 + $0x100] sm:$0xff]   ;;  %489 = vmatprep.mubr.bf16.mxu1 %v751_v35 }
   0xb   :  { %v740_v26 = vld [vmem:[%s945_s1 + $0x30] sm:$0xff]   ;;  %v744_v30 = vld [vmem:[%s945_s1 + $0x38] sm:$0xff]   ;;  %v753_v37 = vld [vmem:[%s945_s1 + $0x108] sm:$0xff]  }
   0xc   :  { %633 = vmatpush3.bf16.msra.mxu0 %v724_v10  ;;  %v741_v27 = vld [vmem:[%s945_s1 + $0xb0] sm:$0xff]   ;;  %v745_v31 = vld [vmem:[%s945_s1 + $0xb8] sm:$0xff]   ;;  %v757_v39 = vld [vmem:[%s946_s0 + $0x2c] ss:$20 sps:$4 sm:$0xff]  }
   0xd   :  { %661 = vmatpush3.bf16.msra.mxu1 %v725_v11  ;;  %634 = vmatprep.subr.bf16.mxu0 %v726_v12  ;;  %v746_v32 = vld [vmem:[%s946_s0] ss:$20 sps:$4 sm:$0xff]   ;;  %v748_v33 = vld [vmem:[%s946_s0 + $0x4] ss:$20 sps:$4 sm:$0xff]   ;;  %v749_v34 = vld [vmem:[%s946_s0 + $0x8] ss:$20 sps:$4 sm:$0xff]  }
   0xe   :  { %662 = vmatprep.subr.bf16.mxu1 %v727_v13  ;;  %440 = vmatprep.mubr.bf16.mxu0 %v748_v33  ;;  %v754_v38 = vld [vmem:[%s945_s1 + $0x110] sm:$0xff]   ;;  %v755_v41 = vld [vmem:[%s945_s1 + $0x118] sm:$0xff]   ;;  %v756_v45 = vld [vmem:[%s945_s1 + $0x120] sm:$0xff]  }
   0xf   :  { %v759_v40 = vld [vmem:[%s946_s0 + $0x34] ss:$20 sps:$4 sm:$0xff]   ;;  %v763_v43 = vld [vmem:[%s946_s0 + $0x30] ss:$20 sps:$4 sm:$0xff]   ;;  %v765_v48 = vld [vmem:[%s945_s1 + $0x138] sm:$0xff]  }
  0x10   :  { %635 = vmatpush3.bf16.msra.mxu0 %v728_v14  ;;  %v762_v42 = vld [vmem:[%s946_s0 + $0x28] ss:$20 sps:$4 sm:$0xff]   ;;  %v766_v44 = vld [vmem:[%s946_s0 + $0x10] ss:$20 sps:$4 sm:$0xff]   ;;  %v767_v49 = vld [vmem:[%s946_s0 + $0x38] ss:$20 sps:$4 sm:$0xff]  }
  0x11   :  { %663 = vmatpush3.bf16.msra.mxu1 %v729_v15  ;;  %636 = vmatprep.subr.bf16.mxu0 %v730_v16  ;;  %v761_v46 = vld [vmem:[%s945_s1 + $0x128] sm:$0xff]   ;;  %v764_v47 = vld [vmem:[%s945_s1 + $0x130] sm:$0xff]  }
  0x12   :  { %664 = vmatprep.subr.bf16.mxu1 %v731_v17 }
  0x14   :  { %637 = vmatpush3.bf16.msra.mxu0 %v732_v18 }
  0x15   :  { %665 = vmatpush3.bf16.msra.mxu1 %v733_v19  ;;  %638 = vmatprep.subr.bf16.mxu0 %v734_v20 }
  0x16   :  { %666 = vmatprep.subr.bf16.mxu1 %v735_v21 }
  0x18   :  { %639 = vmatpush3.bf16.msra.mxu0 %v736_v22 }
  0x19   :  { %667 = vmatpush3.bf16.msra.mxu1 %v737_v23  ;;  %640 = vmatprep.subr.bf16.mxu0 %v738_v24 }
  0x1a   :  { %668 = vmatprep.subr.bf16.mxu1 %v739_v25 }
  0x1c   :  { %641 = vmatpush3.bf16.msra.mxu0 %v740_v26 }
  0x1d   :  { %669 = vmatpush3.bf16.msra.mxu1 %v741_v27  ;;  %642 = vmatprep.subr.bf16.mxu0 %v742_v28 }
  0x1e   :  { %670 = vmatprep.subr.bf16.mxu1 %v743_v29 }
  0x20   :  { %643 = vmatpush3.bf16.msra.mxu0 %v744_v30 }
  0x21   :  { %671 = vmatpush3.bf16.msra.mxu1 %v745_v31  ;;  %694 = vmatprep.subr.bf16.mxu0 %v752_v36 }
  0x23   :  { %441 = vmatmul.mubr.bf16.vlgmr.msra.gmra.mrb[0].mxu0 %v746_v32 }
  0x24   :  { %490 = vmatmul.mubr.bf16.vlgmr.msra.gmra.mrb[0].mxu1 %v749_v34  ;;  %695 = vmatpush3.bf16.msra.mxu0 %v752_v36 }
  0x25   :  { %696 = vmatprep.subr.bf16.mxu0 %v753_v37  ;;  %448 = vmatprep.mubr.bf16.mxu0 %v757_v39 }
  0x26   :  { %497 = vmatprep.mubr.bf16.mxu1 %v759_v40 }
  0x28   :  { %697 = vmatpush3.bf16.msra.mxu0 %v753_v37 }
  0x29   :  { %698 = vmatprep.subr.bf16.mxu0 %v754_v38 }
  0x2b   :  { %449 = vmatmul.mubr.bf16.gmra.mrb[4].mxu0 %v762_v42 }
  0x2c   :  { %498 = vmatmul.mubr.bf16.gmra.mrb[4].mxu1 %v763_v43  ;;  %699 = vmatpush3.bf16.msra.mxu0 %v754_v38 }
  0x2d   :  { %700 = vmatprep.subr.bf16.mxu0 %v755_v41  ;;  %710 = vmatprep.mubr.bf16.mxu0 %v766_v44 }
  0x30   :  { %701 = vmatpush3.bf16.msra.mxu0 %v755_v41 }
  0x31   :  { %702 = vmatprep.subr.bf16.mxu0 %v756_v45 }
  0x34   :  { %703 = vmatpush3.bf16.msra.mxu0 %v756_v45 }
  0x35   :  { %704 = vmatprep.subr.bf16.mxu0 %v761_v46 }
  0x38   :  { %705 = vmatpush3.bf16.msra.mxu0 %v761_v46 }
  0x39   :  { %706 = vmatprep.subr.bf16.mxu0 %v764_v47 }
  0x3c   :  { %707 = vmatpush3.bf16.msra.mxu0 %v764_v47 }
  0x3d   :  { %708 = vmatprep.subr.bf16.mxu0 %v765_v48 }
  0x40   :  { %709 = vmatpush3.bf16.msra.mxu0 %v765_v48 }
  0x43   :  { %711 = vmatmul.mubr.bf16.vlgmr.msra.gmra.mrb[8].mxu0 %v767_v49 }
  0xf6   :  { %v644_v50 = vpop.f32.mrb[0].mxu0 }
  0xf7   :  { %v672_v51 = vpop.f32.mrb[0].mxu1  ;;  %v645_v52 = vpop.f32.mrb[1].mxu0 }
  0xf8   :  { %v646_v53 = vadd.f32 %v645_v52, %v644_v50  ;;  %v673_v54 = vpop.f32.mrb[1].mxu1  ;;  %v647_v55 = vpop.f32.mrb[2].mxu0 }
  0xf9   :  { %v674_v56 = vadd.f32 %v673_v54, %v672_v51  ;;  %v675_v57 = vpop.f32.mrb[2].mxu1  ;;  %v648_v58 = vpop.f32.mrb[3].mxu0 }
  0xfa   :  { %v649_v59 = vadd.f32 %v648_v58, %v647_v55  ;;  %v676_v60 = vpop.f32.mrb[3].mxu1 }
  0xfb   :  { %v677_v61 = vadd.f32 %v676_v60, %v675_v57  ;;  %v492_v62 = vadd.f32 %v674_v56, %v646_v53 }
  0xfd   :  { %v495_v63 = vadd.f32 %v677_v61, %v649_v59 }
  0xfe   :  { %v650_v0 = vpop.f32.mrb[4].mxu0 }
  0xff   :  { %v678_v1 = vpop.f32.mrb[4].mxu1  ;;  %v651_v2 = vpop.f32.mrb[5].mxu0 }
 0x100   :  { %v652_v3 = vadd.f32 %v651_v2, %v650_v0  ;;  %v679_v4 = vpop.f32.mrb[5].mxu1  ;;  %v653_v5 = vpop.f32.mrb[6].mxu0 }
 0x101   :  { %v680_v6 = vadd.f32 %v679_v4, %v678_v1  ;;  %v681_v7 = vpop.f32.mrb[6].mxu1  ;;  %v654_v8 = vpop.f32.mrb[7].mxu0 }
 0x102   :  { %v655_v9 = vadd.f32 %v654_v8, %v653_v5  ;;  %v682_v10 = vpop.f32.mrb[7].mxu1 }
 0x103   :  { %v683_v11 = vadd.f32 %v682_v10, %v681_v7  ;;  %v500_v12 = vadd.f32 %v680_v6, %v652_v3 }
 0x105   :  { %v503_v13 = vadd.f32 %v683_v11, %v655_v9 }
 0x116   :  { %v712_v14 = vpop.f32.mrb[8].mxu0 }
 0x117   :  { %v549_v15 = vadd.f32 %v712_v14, %v500_v12  ;;  %v540_v16 = vpop.f32.mrb[9].mxu0 }
 0x118   :  { %v541_v17 = vadd.f32 %v540_v16, %v492_v62  ;;  %v713_v18 = vpop.f32.mrb[10].mxu0 }
 0x119   :  { %572 = vst [vmem:[%s947_s2 + $0x10] sm:$0xff] %v549_v15  ;;  %v552_v19 = vadd.f32 %v713_v18, %v503_v13  ;;  %v543_v20 = vpop.f32.mrb[11].mxu0 }
 0x11a   :  { %570 = vst [vmem:[%s947_s2] sm:$0xff] %v541_v17  ;;  %v544_v21 = vadd.f32 %v543_v20, %v495_v63 }
 0x11b   :  { %573 = vst [vmem:[%s947_s2 + $0x18] sm:$0xff] %v552_v19 }
 0x11c   :  { %571 = vst [vmem:[%s947_s2 + $0x8] sm:$0xff] %v544_v21 }

// kernel: resnet_forward.83
= control target key start
LH: loop header
LB: loop body
LE: loop exit
PB: predicated region body
PF: predicated region fallthrough
CT: control target
= control target key end

     0   :  { %s120_s0 = inlined_call_operand.vmem [shape: f32[32,128], index: 0, kind: input, shape index: {}]   ;;  %s121_s1 = inlined_call_operand.vmem [shape: f32[2,128], index: 1, kind: input, shape index: {}]   ;;  %s122_s2 = inlined_call_operand.vmem [shape: f32[32,128], index: 2, kind: input, shape index: {}]   ;;  %s123_s3 = inlined_call_operand.vmem [shape: f32[32,128], index: 3, kind: output, shape index: {}]  }
   0x1   :  { %v14_v0 = vld [vmem:[%s120_s0] sm:$0xff]  ;;  %v15_v4 = vld [vmem:[%s120_s0 + $0x8] sm:$0xff]  ;;  %v16_v7 = vld [vmem:[%s120_s0 + $0x10] sm:$0xff] }
   0x2   :  { %v56_v1 = vld [vmem:[%s121_s1] ss:$0 sm:$0xff]  ;;  %v57_v2 = vld [vmem:[%s121_s1 + $0x1] ss:$0 sm:$0xff]  ;;  %v17_v8 = vld [vmem:[%s120_s0 + $0x18] sm:$0xff] }
   0x3   :  { %v23_v3 = vsub.f32 %v14_v0, %v56_v1  ;;  %v36_v5 = vld [vmem:[%s122_s2] sm:$0xff]  ;;  %v24_v6 = vsub.f32 %v15_v4, %v56_v1  ;;  %v37_v10 = vld [vmem:[%s122_s2 + $0x8] sm:$0xff]  ;;  %v25_v11 = vsub.f32 %v16_v7, %v56_v1  ;;  %v26_v12 = vsub.f32 %v17_v8, %v56_v1  ;;  %v38_v14 = vld [vmem:[%s122_s2 + $0x10] sm:$0xff] }
   0x4   :  { %v39_v15 = vld [vmem:[%s122_s2 + $0x18] sm:$0xff] }
   0x5   :  { %v32_v9 = vmul.f32 %v57_v2, %v23_v3  ;;  %v33_v13 = vmul.f32 %v57_v2, %v24_v6  ;;  %v34_v17 = vmul.f32 %v57_v2, %v25_v11  ;;  %v35_v18 = vmul.f32 %v57_v2, %v26_v12 }
   0x7   :  { %v40_v16 = vadd.f32 %v36_v5, %v32_v9  ;;  %v41_v19 = vadd.f32 %v37_v10, %v33_v13  ;;  %v42_v21 = vadd.f32 %v38_v14, %v34_v17  ;;  %v43_v22 = vadd.f32 %v39_v15, %v35_v18 }
   0x9   :  { %v44_v20 = vmax.f32 %v40_v16, 0.0  ;;  %v45_v23 = vmax.f32 %v41_v19, 0.0  ;;  %v46_v24 = vmax.f32 %v42_v21, 0.0  ;;  %v47_v25 = vmax.f32 %v43_v22, 0.0 }
   0xb   :  { %48 = vst [vmem:[%s123_s3] sm:$0xff] %v44_v20  ;;  %49 = vst [vmem:[%s123_s3 + $0x8] sm:$0xff] %v45_v23 }
   0xc   :  { %50 = vst [vmem:[%s123_s3 + $0x10] sm:$0xff] %v46_v24  ;;  %51 = vst [vmem:[%s123_s3 + $0x18] sm:$0xff] %v47_v25 }

// kernel: resnet_forward.81
= control target key start
LH: loop header
LB: loop body
LE: loop exit
PB: predicated region body
PF: predicated region fallthrough
CT: control target
= control target key end

     0   :  { %s919_s9 = smov 0   ;;  %s921_s10 = smov 0   ;;  %s1032_s0 = inlined_call_operand.vmem [shape: bf16[32,1152], index: 0, kind: input, shape index: {}]   ;;  %s1033_s1 = inlined_call_operand.vmem [shape: bf16[1152,128], index: 1, kind: input, shape index: {}]   ;;  %s1034_s2 = inlined_call_operand.vmem [shape: f32[32,128], index: 2, kind: output, shape index: {}]  }
   0x1   :  { %s923_s11 = smov 0   ;;  %s925_s12 = smov 0  }
   0x2   :  { %s927_s13 = smov 0  }
   0x3 LB: > { %s21_s14 = sadd.s32 1, %s897_s12  ;;  %p40_p1 = scmp.ne.s32.totalorder %s889_s10, %s885_s9  ;;  %s901_s13 = sphi %s927_s13, %s12_s13   ;;  %s897_s12 = sphi %s925_s12, %s1038_s12   ;;  %s893_s11 = sphi %s923_s11, %s1037_s11   ;;  %s889_s10 = sphi %s921_s10, %s1036_s10   ;;  %s885_s9 = sphi %s919_s9, %s1035_s9  }
   0x4   : > { %p22_p0 = scmp.ge.s32.totalorder %s21_s14, 3  ;;  %p41_p2 = scmp.eq.s32.totalorder %s901_s13, 0 }
   0x5   : > { %s33_s16 = sadd.s32 1, %s889_s10  ;;  %p681_p5 = scmp.ge.s32.totalorder %s901_s13, 3 }
   0x6   : > { %s1040_s14 = smov (%p22_p0, %s21_s14), 0  ;;  %p42_p3 = por %p41_p2, %p40_p1 }
   0x7   : > { %s29_s15 = ssub.s32 %s897_s12, %s1040_s14  ;;  %118 = sbr.rel (%p681_p5) target bundleno = 23 (0x17), region = 16 }
   0x8   : > { %p31_p4 = scmp.eq.s32.totalorder %s29_s15, 0 }
   0xa   : > { %s954_s17 = scalar_select %p31_p4, %s889_s10, %s33_s16  }
   0xe   : > { %121 = sbr.rel (!%p42_p3) target bundleno = 23 (0x17), region = 20  ;;  %s123_s18 = sand.u32 (%p42_p3), 1, %s889_s10  }
   0xf   : > { %s729_s19 = smul.u32 (%p42_p3), 12, %s897_s12 }
  0x10   : > { %s788_s20 = smul.u32 (%p42_p3), 48, %s123_s18 }
  0x11   : > { %s131_s23 = scalar_lea.vmem (%p42_p3), %s1032_s0, %s729_s19 }
  0x12   : > { %v146_v0 = vld [vmem:[%s131_s23] sm:$0xff] (%p42_p3)  ;;  %v150_v2 = vld [vmem:[%s131_s23 + $0x48] sm:$0xff] (%p42_p3)  ;;  %s125_s24 = scalar_lea.vmem (%p42_p3), [#allocation3], %s788_s20  ;;  %v687_v6 = vld [vmem:[%s131_s23 + $0x50] sm:$0xf] (%p42_p3) }
  0x13   : > { %v148_v1 = vld [vmem:[%s131_s23 + $0x24] sm:$0xff] (%p42_p3)  ;;  %147 = vst [vmem:[%s125_s24] sm:$0xff] (%p42_p3), %v146_v0  ;;  %151 = vst [vmem:[%s125_s24 + $0x18] sm:$0xff] (%p42_p3), %v150_v2  ;;  %v152_v3 = vld [vmem:[%s131_s23 + $0x6c] sm:$0xff] (%p42_p3) }
  0x14   : > { %149 = vst [vmem:[%s125_s24 + $0xc] sm:$0xff] (%p42_p3), %v148_v1  ;;  %v683_v4 = vld [vmem:[%s131_s23 + $0x8] sm:$0xf] (%p42_p3)  ;;  %v685_v5 = vld [vmem:[%s131_s23 + $0x2c] sm:$0xf] (%p42_p3)  ;;  %153 = vst [vmem:[%s125_s24 + $0x24] sm:$0xff] (%p42_p3), %v152_v3 }
  0x15   : > { %684 = vst [vmem:[%s125_s24 + $0x8] sm:$0xf] %v683_v4  ;;  %686 = vst [vmem:[%s125_s24 + $0x14] sm:$0xf] %v685_v5  ;;  %v689_v7 = vld [vmem:[%s131_s23 + $0x74] sm:$0xf] }
  0x16   : > { %688 = vst [vmem:[%s125_s24 + $0x20] sm:$0xf] %v687_v6  ;;  %690 = vst [vmem:[%s125_s24 + $0x2c] sm:$0xf] %v689_v7 }
  0x17 PF: > { %p691_p6 = scmp.ge.s32.totalorder %s901_s13, 1  ;;  %p182_p7 = scmp.lt.s32.totalorder %s901_s13, 4 }
  0x19   : > { %p183_p8 = pnand %p691_p6, %p182_p7 }
  0x1a   : > { %s189_s25 = sand.u32 (!%p183_p8), 1, %s885_s9   ;;  %s217_s26 = smul.u32 (!%p183_p8), 48, %s893_s11 }
  0x1b   : > { %186 = sbr.rel (%p183_p8) target bundleno = 312 (0x138), region = 50  ;;  %p693_p10 = scmp.ne.s32.totalorder (!%p183_p8), %s893_s11, 0 }
  0x1c   : > { %s789_s27 = smul.u32 (!%p183_p8), 48, %s189_s25  ;;  %p218_p9 = scmp.lt.s32.totalorder (!%p183_p8), %s217_s26, 143 }
  0x1e   : > { %s971_s4 = scalar_lea.vmem (!%p183_p8), [#allocation3], %s789_s27 }
  0x22   : > { %s1042_s26 = smov (!%p218_p9, %s217_s26), 143  ;;  %233 = sbr.rel (%p693_p10) target bundleno = 41 (0x29), region = 58 }
  0x23   : > { %s692_s28 = sshll.u32 %s1042_s26, 2  ;;  %v903_v8 = vmov (!%p693_p10), 0.0  }
  0x24   : > { %s969_s3 = scalar_lea.vmem %s1033_s1, %s692_s28  ;;  %234 = vst [vmem:[#allocation2] sm:$0xff] (!%p693_p10), %v903_v8  ;;  %235 = vst [vmem:[#allocation2 + $0x8] sm:$0xff] (!%p693_p10), %v903_v8 }
  0x25   : > { %236 = vst [vmem:[#allocation2 + $0x10] sm:$0xff] (!%p693_p10), %v903_v8  ;;  %237 = vst [vmem:[#allocation2 + $0x18] sm:$0xff] (!%p693_p10), %v903_v8 }
  0x29 PF: > { %v831_v9 = vld [vmem:[%s969_s3 + $0x40] sm:$0xff]   ;;  %v834_v12 = vld [vmem:[%s969_s3 + $0x48] sm:$0xff]   ;;  %v837_v15 = vld [vmem:[%s969_s3 + $0x50] sm:$0xff]   ;;  %p724_p11 = scmp.ne.s32.totalorder %s893_s11, 2 }
  0x2a   : > { %v832_v10 = vld [vmem:[%s969_s3] sm:$0xff]   ;;  %730 = vmatprep.subr.bf16.mxu0 %v831_v9  ;;  %v835_v13 = vld [vmem:[%s969_s3 + $0x8] sm:$0xff]   ;;  %v838_v16 = vld [vmem:[%s969_s3 + $0x10] sm:$0xff]  }
  0x2b   : > { %v833_v11 = vld [vmem:[%s969_s3 + $0x80] sm:$0xff]   ;;  %731 = vmatpush3.bf16.msra.mxu0 %v832_v10  ;;  %v836_v14 = vld [vmem:[%s969_s3 + $0x88] sm:$0xff]   ;;  %v839_v17 = vld [vmem:[%s969_s3 + $0x90] sm:$0xff]  }
  0x2c   : > { %768 = vmatprep.subr.bf16.mxu1 %v833_v11  ;;  %732 = vmatprep.subr.bf16.mxu0 %v834_v12  ;;  %v840_v18 = vld [vmem:[%s969_s3 + $0x58] sm:$0xff]   ;;  %v843_v21 = vld [vmem:[%s969_s3 + $0x60] sm:$0xff]   ;;  %v846_v24 = vld [vmem:[%s969_s3 + $0x68] sm:$0xff]  }
  0x2d   : > { %769 = vmatpush3.bf16.msra.mxu1 %v833_v11  ;;  %v841_v19 = vld [vmem:[%s969_s3 + $0x18] sm:$0xff]   ;;  %v845_v22 = vld [vmem:[%s969_s3 + $0xa0] sm:$0xff]   ;;  %v848_v25 = vld [vmem:[%s969_s3 + $0xa8] sm:$0xff]  }
  0x2e   : > { %770 = vmatprep.subr.bf16.mxu1 %v836_v14  ;;  %v842_v20 = vld [vmem:[%s969_s3 + $0x98] sm:$0xff]   ;;  %v844_v23 = vld [vmem:[%s969_s3 + $0x20] sm:$0xff]   ;;  %v847_v26 = vld [vmem:[%s969_s3 + $0x28] sm:$0xff]  }
  0x2f   : > { %733 = vmatpush3.bf16.msra.mxu0 %v835_v13  ;;  %v849_v27 = vld [vmem:[%s969_s3 + $0x70] sm:$0xff]   ;;  %v852_v30 = vld [vmem:[%s969_s3 + $0x78] sm:$0xff]   ;;  %v238_v45 = vld [vmem:[#allocation2] sm:$0xff] }
  0x30   : > { %734 = vmatprep.subr.bf16.mxu0 %v837_v15  ;;  %v850_v28 = vld [vmem:[%s969_s3 + $0x30] sm:$0xff]   ;;  %v854_v31 = vld [vmem:[%s969_s3 + $0xb8] sm:$0xff]   ;;  %v239_v50 = vld [vmem:[#allocation2 + $0x8] sm:$0xff] }
  0x31   : > { %771 = vmatpush3.bf16.msra.mxu1 %v836_v14  ;;  %v851_v29 = vld [vmem:[%s969_s3 + $0xb0] sm:$0xff]   ;;  %v853_v34 = vld [vmem:[%s969_s3 + $0x38] sm:$0xff]  }
  0x32   : > { %772 = vmatprep.subr.bf16.mxu1 %v839_v17  ;;  %v857_v32 = vld [vmem:[%s971_s4 + $0x4] ss:$12 sps:$4 sm:$0xff]   ;;  %v858_v33 = vld [vmem:[%s971_s4 + $0x8] ss:$12 sps:$4 sm:$0xff]   ;;  %v855_v35 = vld [vmem:[%s971_s4] ss:$12 sps:$4 sm:$0xff]  }
  0x33   : > { %735 = vmatpush3.bf16.msra.mxu0 %v838_v16  ;;  %506 = vmatprep.mubr.bf16.mxu0 %v857_v32  ;;  %v860_v36 = vld [vmem:[%s971_s4 + $0x1c] ss:$12 sps:$4 sm:$0xff]   ;;  %v859_v37 = vld [vmem:[%s971_s4 + $0x20] ss:$12 sps:$4 sm:$0xff]   ;;  %v862_v38 = vld [vmem:[%s971_s4 + $0x18] ss:$12 sps:$4 sm:$0xff]  }
  0x34   : > { %736 = vmatprep.subr.bf16.mxu0 %v840_v18  ;;  %784 = vmatprep.mubr.bf16.mxu1 %v858_v33  ;;  %v240_v59 = vld [vmem:[#allocation2 + $0x10] sm:$0xff]  ;;  %v241_v63 = vld [vmem:[#allocation2 + $0x18] sm:$0xff] }
  0x35   : > { %773 = vmatpush3.bf16.msra.mxu1 %v839_v17 }
  0x36   : > { %774 = vmatprep.subr.bf16.mxu1 %v842_v20 }
  0x37   : > { %737 = vmatpush3.bf16.msra.mxu0 %v841_v19 }
  0x38   : > { %738 = vmatprep.subr.bf16.mxu0 %v843_v21 }
  0x39   : > { %775 = vmatpush3.bf16.msra.mxu1 %v842_v20 }
  0x3a   : > { %776 = vmatprep.subr.bf16.mxu1 %v845_v22 }
  0x3b   : > { %739 = vmatpush3.bf16.msra.mxu0 %v844_v23 }
  0x3c   : > { %740 = vmatprep.subr.bf16.mxu0 %v846_v24 }
  0x3d   : > { %777 = vmatpush3.bf16.msra.mxu1 %v845_v22 }
  0x3e   : > { %778 = vmatprep.subr.bf16.mxu1 %v848_v25 }
  0x3f   : > { %741 = vmatpush3.bf16.msra.mxu0 %v847_v26 }
  0x40   : > { %742 = vmatprep.subr.bf16.mxu0 %v849_v27 }
  0x41   : > { %779 = vmatpush3.bf16.msra.mxu1 %v848_v25 }
  0x42   : > { %780 = vmatprep.subr.bf16.mxu1 %v851_v29 }
  0x43   : > { %743 = vmatpush3.bf16.msra.mxu0 %v850_v28 }
  0x44   : > { %744 = vmatprep.subr.bf16.mxu0 %v852_v30 }
  0x45   : > { %781 = vmatpush3.bf16.msra.mxu1 %v851_v29 }
  0x46   : > { %782 = vmatprep.subr.bf16.mxu1 %v854_v31 }
  0x47   : > { %745 = vmatpush3.bf16.msra.mxu0 %v853_v34 }
  0x49   : > { %783 = vmatpush3.bf16.msra.mxu1 %v854_v31 }
  0x4a   : > { %507 = vmatmul.mubr.bf16.vlgmr.msra.gmra.mrb[0].mxu0 %v855_v35 }
  0x4b   : > { %514 = vmatprep.mubr.bf16.mxu0 %v860_v36 }
  0x4c   : > { %785 = vmatmul.mubr.bf16.vlgmr.msra.gmra.mrb[0].mxu1 %v859_v37 }
  0x52   : > { %515 = vmatmul.mubr.bf16.gmra.mrb[4].mxu0 %v862_v38 }
 0x11d   : > { %v746_v39 = vpop.f32.mrb[0].mxu0 }
 0x11e   : > { %v747_v40 = vpop.f32.mrb[1].mxu0 }
 0x11f   : > { %v748_v41 = vadd.f32 %v747_v40, %v746_v39  ;;  %v749_v42 = vpop.f32.mrb[2].mxu0  ;;  %v786_v43 = vpop.f32.mrb[0].mxu1 }
 0x120   : > { %v750_v44 = vpop.f32.mrb[3].mxu0  ;;  %v557_v46 = vpop.f32.mrb[1].mxu1 }
 0x121   : > { %v751_v47 = vadd.f32 %v750_v44, %v749_v42  ;;  %v558_v48 = vadd.f32 %v748_v41, %v557_v46  ;;  %v787_v49 = vpop.f32.mrb[2].mxu1 }
 0x122   : > { %v560_v51 = vpop.f32.mrb[3].mxu1 }
 0x123   : > { %v572_v52 = vadd.f32 %v558_v48, %v238_v45  ;;  %v561_v53 = vadd.f32 %v751_v47, %v560_v51 }
 0x125   : > { %576 = vst [vmem:[#allocation2] sm:$0xff] %v572_v52  ;;  %v573_v54 = vadd.f32 %v561_v53, %v239_v50  ;;  %v752_v55 = vpop.f32.mrb[4].mxu0 }
 0x126   : > { %v753_v56 = vpop.f32.mrb[5].mxu0 }
 0x127   : > { %577 = vst [vmem:[#allocation2 + $0x8] sm:$0xff] %v573_v54  ;;  %v754_v57 = vadd.f32 %v753_v56, %v752_v55  ;;  %v755_v58 = vpop.f32.mrb[6].mxu0 }
 0x128   : > { %v756_v60 = vpop.f32.mrb[7].mxu0 }
 0x129   : > { %v566_v61 = vadd.f32 %v786_v43, %v754_v57  ;;  %v757_v62 = vadd.f32 %v756_v60, %v755_v58  ;;  %583 = sbr.rel (%p724_p11) target bundleno = 312 (0x138), region = 62 }
 0x12b   : > { %v574_v0 = vadd.f32 %v566_v61, %v240_v59  ;;  %v569_v1 = vadd.f32 %v787_v49, %v757_v62 }
 0x12c   : > { %v584_v3 = vld [vmem:[#allocation2] sm:$0xff] (!%p724_p11) }
 0x12d   : > { %578 = vst [vmem:[#allocation2 + $0x10] sm:$0xff] %v574_v0  ;;  %v575_v2 = vadd.f32 %v569_v1, %v241_v63  ;;  %588 = vst [vmem:[%s1034_s2] sm:$0xff] (!%p724_p11), %v584_v3 }
 0x12e   : > { %v585_v4 = vld [vmem:[#allocation2 + $0x8] sm:$0xff] (!%p724_p11) }
 0x12f   : > { %579 = vst [vmem:[#allocation2 + $0x18] sm:$0xff] %v575_v2  ;;  %589 = vst [vmem:[%s1034_s2 + $0x8] sm:$0xff] (!%p724_p11), %v585_v4 }
 0x134   : > { %v586_v5 = vld [vmem:[#allocation2 + $0x10] sm:$0xff] }
 0x135   : > { %590 = vst [vmem:[%s1034_s2 + $0x10] sm:$0xff] %v586_v5 }
 0x136   : > { %v587_v6 = vld [vmem:[#allocation2 + $0x18] sm:$0xff] }
 0x137   : > { %591 = vst [vmem:[%s1034_s2 + $0x18] sm:$0xff] %v587_v6 }
 0x138 PF: > { %s12_s13 = sadd.s32 1, %s901_s13   ;;  %s1035_s9 = smov %s889_s10 }
 0x139   : > { %p9_p12 = scmp.ge.s32.totalorder %s12_s13, 5   ;;  %s1036_s10 = smov %s954_s17 }
 0x13a   : > { %s1037_s11 = smov %s897_s12  ;;  %s1038_s12 = smov %s1040_s14 }
 0x13b   :  { %11 = sbr.rel (!%p9_p12) target bundleno = 3 (0x3), region = 106 }

// kernel: resnet_forward.91
= control target key start
LH: loop header
LB: loop body
LE: loop exit
PB: predicated region body
PF: predicated region fallthrough
CT: control target
= control target key end

     0   :  { %v69_v0 = vmov 0.0   ;;  %v70_v15 = vmov 1983009808   ;;  %v51_v17 = vlaneseq  ;;  %vm42_vm0 = vcmask 1040384   ;;  %s90_s0 = inlined_call_operand.vmem [shape: f32[8,256], index: 0, kind: input, shape index: {}]   ;;  %s91_s1 = inlined_call_operand.vmem [shape: f32[2,256], index: 1, kind: output, shape index: {}]  }
   0x1   :  { %12 = vst [vmem:[#allocation2] sm:$0xf] %v69_v0  ;;  %v13_v1 = vld [vmem:[%s90_s0] sm:$0xff]  ;;  %v14_v2 = vld [vmem:[%s90_s0 + $0x8] sm:$0xff]  ;;  %v49_v16 = vunpack.c.l.s4 %v70_v15 }
   0x2   :  { %v15_v3 = vrot.slane %v13_v1, 4  ;;  %v21_v4 = vrot.slane %v14_v2, 4  ;;  %v27_v5 = vmul.f32 %v13_v1, %v13_v1  ;;  %v28_v6 = vmul.f32 %v14_v2, %v14_v2 }
   0x3   :  { %v50_v26 = vunpack.c.0.s8 %v49_v16  ;;  %v52_v27 = vshrl.u32 %v51_v17, 7 }
   0x4   :  { %v16_v7 = vadd.f32 %v15_v3, %v13_v1  ;;  %v22_v8 = vadd.f32 %v21_v4, %v14_v2  ;;  %v29_v9 = vrot.slane %v27_v5, 4  ;;  %v35_v10 = vrot.slane %v28_v6, 4 }
   0x5   :  { %v53_v34 = vsub.s32 %v50_v26, %v52_v27 }
   0x6   :  { %v17_v11 = vrot.slane %v16_v7, 2  ;;  %v23_v12 = vrot.slane %v22_v8, 2  ;;  %v30_v13 = vadd.f32 %v29_v9, %v27_v5  ;;  %v36_v14 = vadd.f32 %v35_v10, %v28_v6 }
   0x8   :  { %v18_v18 = vadd.f32 %v17_v11, %v16_v7  ;;  %v24_v19 = vadd.f32 %v23_v12, %v22_v8  ;;  %v31_v20 = vrot.slane %v30_v13, 2  ;;  %v37_v21 = vrot.slane %v36_v14, 2  ;;  %v41_v38 = vld [vmem:[#allocation2] sm:$0xf] }
   0xa   :  { %v19_v22 = vrot.slane %v18_v18, 1  ;;  %v25_v23 = vrot.slane %v24_v19, 1  ;;  %v32_v24 = vadd.f32 %v31_v20, %v30_v13  ;;  %v38_v25 = vadd.f32 %v37_v21, %v36_v14 }
   0xc   :  { %v20_v28 = vadd.f32 %v19_v22, %v18_v18  ;;  %v26_v29 = vadd.f32 %v25_v23, %v24_v19  ;;  %v33_v30 = vrot.slane %v32_v24, 1  ;;  %v39_v31 = vrot.slane %v38_v25, 1 }
   0xe   :  { %v34_v32 = vadd.f32 %v33_v30, %v32_v24  ;;  %v40_v33 = vadd.f32 %v39_v31, %v38_v25 }
  0x10   :  { %v43_v35 = vsel %vm42_vm0, %v20_v28, %v34_v32  ;;  %v44_v36 = vsel %vm42_vm0, %v26_v29, %v40_v33 }
  0x11   :  { %v47_v37 = vcombine.low %v43_v35, %v44_v36 }
  0x13   :  { %v54_v39 = vrot.slane %v47_v37, %v53_v34 }
  0x15   :  { %v56_v40 = vadd.f32 %v54_v39, %v41_v38 }
  0x17   :  { %57 = vst [vmem:[#allocation2] sm:$0xf] %v56_v40 }
  0x1e   :  { %v61_v41 = vld [vmem:[#allocation2] sm:$0xf] }
  0x1f   :  { %62 = vst [vmem:[%s91_s1] sm:$0xf] %v61_v41 }

// kernel: resnet_forward.90
= control target key start
LH: loop header
LB: loop body
LE: loop exit
PB: predicated region body
PF: predicated region fallthrough
CT: control target
= control target key end

     0   :  { %v214_v1 = vmov 0   ;;  %s287_s1 = inlined_call_operand.vmem [shape: bf16[128,256], index: 1, kind: input, shape index: {}]   ;;  %s288_s0 = inlined_call_operand.vmem [shape: bf16[8,128], index: 0, kind: input, shape index: {}]   ;;  %s289_s2 = inlined_call_operand.vmem [shape: f32[8,256], index: 2, kind: output, shape index: {}]  }
   0x1   :  { %v190_v0 = vld [vmem:[%s287_s1 + $0x4] ss:$8 sps:$4 sm:$0xff]   ;;  %149 = vmatprep.mubr.bf16.mxu0 %v214_v1  ;;  %v192_v2 = vld [vmem:[%s287_s1] ss:$8 sps:$4 sm:$0xff]   ;;  %v193_v3 = vld [vmem:[%s287_s1 + $0x14] ss:$8 sps:$4 sm:$0xff]  }
   0x2   :  { %117 = vmatprep.subr.bf16.mxu0 %v190_v0  ;;  %v195_v4 = vld [vmem:[%s287_s1 + $0x10] ss:$8 sps:$4 sm:$0xff]   ;;  %v196_v5 = vld [vmem:[%s287_s1 + $0x24] ss:$8 sps:$4 sm:$0xff]   ;;  %v198_v6 = vld [vmem:[%s287_s1 + $0x20] ss:$8 sps:$4 sm:$0xff]  }
   0x3   :  { %118 = vmatpush1.bf16.msra.mxu0 %v192_v2  ;;  %v199_v7 = vld [vmem:[%s287_s1 + $0x34] ss:$8 sps:$4 sm:$0xff]   ;;  %v201_v8 = vld [vmem:[%s287_s1 + $0x30] ss:$8 sps:$4 sm:$0xff]   ;;  %v202_v9 = vld [vmem:[%s287_s1 + $0x44] ss:$8 sps:$4 sm:$0xff]  }
   0x4   :  { %119 = vmatprep.subr.bf16.mxu0 %v193_v3  ;;  %v204_v10 = vld [vmem:[%s287_s1 + $0x40] ss:$8 sps:$4 sm:$0xff]   ;;  %v205_v11 = vld [vmem:[%s287_s1 + $0x54] ss:$8 sps:$4 sm:$0xff]   ;;  %v207_v12 = vld [vmem:[%s287_s1 + $0x50] ss:$8 sps:$4 sm:$0xff]  }
   0x5   :  { %v208_v13 = vld [vmem:[%s287_s1 + $0x64] ss:$8 sps:$4 sm:$0xff]   ;;  %v210_v14 = vld [vmem:[%s287_s1 + $0x60] ss:$8 sps:$4 sm:$0xff]   ;;  %v211_v15 = vld [vmem:[%s287_s1 + $0x74] ss:$8 sps:$4 sm:$0xff]  }
   0x6   :  { %v213_v16 = vld [vmem:[%s287_s1 + $0x70] ss:$8 sps:$4 sm:$0xff]   ;;  %v20_v17 = vld [vmem:[%s288_s0] sm:$0xf] }
   0x7   :  { %120 = vmatpush1.bf16.msra.mxu0 %v195_v4 }
   0x8   :  { %121 = vmatprep.subr.bf16.mxu0 %v196_v5 }
   0xb   :  { %122 = vmatpush1.bf16.msra.mxu0 %v198_v6 }
   0xc   :  { %123 = vmatprep.subr.bf16.mxu0 %v199_v7 }
   0xf   :  { %124 = vmatpush1.bf16.msra.mxu0 %v201_v8 }
  0x10   :  { %125 = vmatprep.subr.bf16.mxu0 %v202_v9 }
  0x13   :  { %126 = vmatpush1.bf16.msra.mxu0 %v204_v10 }
  0x14   :  { %127 = vmatprep.subr.bf16.mxu0 %v205_v11 }
  0x17   :  { %128 = vmatpush1.bf16.msra.mxu0 %v207_v12 }
  0x18   :  { %129 = vmatprep.subr.bf16.mxu0 %v208_v13 }
  0x1b   :  { %130 = vmatpush1.bf16.msra.mxu0 %v210_v14 }
  0x1c   :  { %131 = vmatprep.subr.bf16.mxu0 %v211_v15 }
  0x1f   :  { %132 = vmatpush1.bf16.msra.mxu0 %v213_v16 }
  0x22   :  { %150 = vmatmul.mubr.bf16.vlgmr.msra.gmra.mrb[0].mxu0 %v20_v17 }
  0xf5   :  { %v151_v18 = vpop.f32.mrb[0].mxu0 }
  0xf6   :  { %167 = vst [vmem:[%s289_s2] sm:$0xff] %v151_v18  ;;  %v153_v19 = vpop.f32.mrb[1].mxu0 }
  0xf7   :  { %168 = vst [vmem:[%s289_s2 + $0x8] sm:$0xff] %v153_v19  ;;  %v155_v20 = vpop.f32.mrb[2].mxu0 }
  0xf8   :  { %v156_v21 = vpop.f32.mrb[3].mxu0 }

// kernel: resnet_forward.92
= control target key start
LH: loop header
LB: loop body
LE: loop exit
PB: predicated region body
PF: predicated region fallthrough
CT: control target
= control target key end

     0   :  { %v15_v0 = vlaneseq  ;;  %s82_s1 = inlined_call_operand.vmem [shape: f32[2,256], index: 1, kind: input, shape index: {}]   ;;  %s83_s0 = inlined_call_operand.vmem [shape: f32[8,256], index: 0, kind: input, shape index: {}]   ;;  %s84_s2 = inlined_call_operand.vmem [shape: f32[8,256], index: 2, kind: output, shape index: {}]  }
   0x1   :  { %v13_v2 = vld [vmem:[%s82_s1] ss:$2 sm:$0x3]  ;;  %v48_v3 = vld [vmem:[%s82_s1 + $0x1] ss:$2 sm:$0x3] }
   0x2   :  { %v16_v1 = vshrl.u32 %v15_v0, 7  ;;  %v11_v6 = vld [vmem:[%s83_s0] sm:$0xff]  ;;  %v12_v7 = vld [vmem:[%s83_s0 + $0x8] sm:$0xff] }
   0x4   :  { %v17_v4 = vsub.s32 0, %v16_v1  ;;  %v21_v5 = vsub.s32 1, %v16_v1 }
   0x6   :  { %v18_v8 = vrot.slane %v13_v2, %v17_v4  ;;  %v33_v9 = vrot.slane %v48_v3, %v17_v4  ;;  %v22_v10 = vrot.slane %v13_v2, %v21_v5  ;;  %v37_v11 = vrot.slane %v48_v3, %v21_v5 }
   0x8   :  { %v25_v12 = vsub.f32 %v11_v6, %v18_v8  ;;  %v26_v13 = vsub.f32 %v12_v7, %v22_v10 }
   0xa   :  { %v40_v14 = vmul.f32 %v33_v9, %v25_v12  ;;  %v41_v15 = vmul.f32 %v37_v11, %v26_v13 }
   0xc   :  { %42 = vst [vmem:[%s84_s2] sm:$0xff] %v40_v14  ;;  %43 = vst [vmem:[%s84_s2 + $0x8] sm:$0xff] %v41_v15 }

// kernel: resnet_forward.95
= control target key start
LH: loop header
LB: loop body
LE: loop exit
PB: predicated region body
PF: predicated region fallthrough
CT: control target
= control target key end

     0   :  { %v15_v0 = vlaneseq  ;;  %s84_s1 = inlined_call_operand.vmem [shape: f32[2,256], index: 1, kind: input, shape index: {}]   ;;  %s85_s0 = inlined_call_operand.vmem [shape: f32[8,256], index: 0, kind: input, shape index: {}]   ;;  %s86_s2 = inlined_call_operand.vmem [shape: f32[8,256], index: 2, kind: output, shape index: {}]  }
   0x1   :  { %v13_v2 = vld [vmem:[%s84_s1] ss:$2 sm:$0x3]  ;;  %v50_v3 = vld [vmem:[%s84_s1 + $0x1] ss:$2 sm:$0x3] }
   0x2   :  { %v16_v1 = vshrl.u32 %v15_v0, 7  ;;  %v11_v6 = vld [vmem:[%s85_s0] sm:$0xff]  ;;  %v12_v7 = vld [vmem:[%s85_s0 + $0x8] sm:$0xff] }
   0x4   :  { %v17_v4 = vsub.s32 0, %v16_v1  ;;  %v21_v5 = vsub.s32 1, %v16_v1 }
   0x6   :  { %v18_v8 = vrot.slane %v13_v2, %v17_v4  ;;  %v33_v9 = vrot.slane %v50_v3, %v17_v4  ;;  %v22_v10 = vrot.slane %v13_v2, %v21_v5  ;;  %v37_v11 = vrot.slane %v50_v3, %v21_v5 }
   0x8   :  { %v25_v12 = vsub.f32 %v11_v6, %v18_v8  ;;  %v26_v13 = vsub.f32 %v12_v7, %v22_v10 }
   0xa   :  { %v40_v14 = vmul.f32 %v33_v9, %v25_v12  ;;  %v41_v15 = vmul.f32 %v37_v11, %v26_v13 }
   0xc   :  { %v42_v16 = vmax.f32 %v40_v14, 0.0  ;;  %v43_v17 = vmax.f32 %v41_v15, 0.0 }
   0xe   :  { %44 = vst [vmem:[%s86_s2] sm:$0xff] %v42_v16  ;;  %45 = vst [vmem:[%s86_s2 + $0x8] sm:$0xff] %v43_v17 }

// kernel: resnet_forward.93
= control target key start
LH: loop header
LB: loop body
LE: loop exit
PB: predicated region body
PF: predicated region fallthrough
CT: control target
= control target key end

     0   :  { %s886_s9 = smov 0   ;;  %s888_s10 = smov 0   ;;  %s985_s0 = inlined_call_operand.vmem [shape: bf16[8,1152], index: 0, kind: input, shape index: {}]   ;;  %s986_s1 = inlined_call_operand.vmem [shape: bf16[1152,256], index: 1, kind: input, shape index: {}]   ;;  %s987_s2 = inlined_call_operand.vmem [shape: f32[8,256], index: 2, kind: output, shape index: {}]  }
   0x1   :  { %s890_s11 = smov 0  }
   0x2 LB: > { %s21_s12 = sadd.s32 1, %s863_s10  ;;  %p683_p0 = scmp.ge.s32.totalorder %s867_s11, 1  ;;  %s867_s11 = sphi %s890_s11, %s12_s11   ;;  %s863_s10 = sphi %s888_s10, %s989_s10   ;;  %s859_s9 = sphi %s886_s9, %s988_s9  }
   0x3   : > { %p22_p1 = scmp.ge.s32.totalorder %s21_s12, 3  ;;  %p143_p2 = scmp.lt.s32.totalorder %s867_s11, 4 }
   0x5   : > { %s991_s12 = smov (%p22_p1, %s21_s12), 0  ;;  %p144_p3 = pnand %p683_p0, %p143_p2 }
   0x6   : > { %s175_s13 = smul.u32 (!%p144_p3), 3, %s859_s9  ;;  %p687_p6 = scmp.ne.s32.totalorder (!%p144_p3), %s859_s9, 0 }
   0x7   : > { %147 = sbr.rel (%p144_p3) target bundleno = 315 (0x13b), region = 28 }
   0x8   : > { %s185_s14 = smul.u32 (!%p144_p3), 48, %s859_s9  ;;  %p178_p4 = scmp.lt.s32.totalorder (!%p144_p3), %s175_s13, 8 }
   0xa   : > { %p186_p5 = scmp.lt.s32.totalorder (!%p144_p3), %s185_s14, 143 }
   0xe   : > { %s993_s13 = smov (!%p178_p4, %s175_s13), 8  ;;  %s995_s14 = smov (!%p186_p5, %s185_s14), 143 }
   0xf   : > { %s684_s15 = sshll.u32 %s993_s13, 2  ;;  %s743_s19 = sshll.u32 %s995_s14, 3  ;;  %v869_v0 = vmov (!%p687_p6), 0.0  }
  0x10   : > { %s911_s18 = scalar_lea.vmem %s985_s0, %s684_s15  ;;  %s916_s22 = scalar_lea.vmem %s986_s1, %s743_s19  ;;  %202 = vst [vmem:[#allocation2] sm:$0xff] (!%p687_p6), %v869_v0  ;;  %203 = vst [vmem:[#allocation2 + $0x8] sm:$0xff] (!%p687_p6), %v869_v0 }
  0x11   : > { %201 = sbr.rel (%p687_p6) target bundleno = 24 (0x18), region = 32 }
  0x18 PF: > { %v770_v1 = vld [vmem:[%s916_s22 + $0x4] ss:$8 sps:$4 sm:$0xff]   ;;  %v772_v2 = vld [vmem:[%s916_s22] ss:$8 sps:$4 sm:$0xff]   ;;  %v870_v3 = vmov 0   ;;  %p739_p7 = scmp.ne.s32.totalorder %s859_s9, 2 }
  0x19   : > { %580 = vmatprep.mubr.bf16.mxu1 %v870_v3  ;;  %507 = vmatprep.subr.bf16.mxu0 %v770_v1  ;;  %v773_v4 = vld [vmem:[%s916_s22 + $0x14] ss:$8 sps:$4 sm:$0xff]   ;;  %v775_v5 = vld [vmem:[%s916_s22 + $0x10] ss:$8 sps:$4 sm:$0xff]   ;;  %v776_v6 = vld [vmem:[%s916_s22 + $0x24] ss:$8 sps:$4 sm:$0xff]  }
  0x1a   : > { %508 = vmatpush1.bf16.msra.mxu0 %v772_v2  ;;  %v778_v7 = vld [vmem:[%s916_s22 + $0x20] ss:$8 sps:$4 sm:$0xff]   ;;  %v779_v8 = vld [vmem:[%s916_s22 + $0x34] ss:$8 sps:$4 sm:$0xff]   ;;  %v781_v9 = vld [vmem:[%s916_s22 + $0x30] ss:$8 sps:$4 sm:$0xff]  }
  0x1b   : > { %509 = vmatprep.subr.bf16.mxu0 %v773_v4  ;;  %v794_v10 = vld [vmem:[%s916_s22 + $0x104] ss:$8 sps:$4 sm:$0xff]   ;;  %v796_v11 = vld [vmem:[%s916_s22 + $0x100] ss:$8 sps:$4 sm:$0xff]   ;;  %v800_v13 = vld [vmem:[%s916_s22 + $0x114] ss:$8 sps:$4 sm:$0xff]  }
  0x1c   : > { %v782_v12 = vld [vmem:[%s916_s22 + $0x44] ss:$8 sps:$4 sm:$0xff]   ;;  %548 = vmatprep.subr.bf16.mxu1 %v794_v10  ;;  %v802_v14 = vld [vmem:[%s916_s22 + $0x110] ss:$8 sps:$4 sm:$0xff]   ;;  %v784_v15 = vld [vmem:[%s916_s22 + $0x40] ss:$8 sps:$4 sm:$0xff]  }
  0x1d   : > { %549 = vmatpush1.bf16.msra.mxu1 %v796_v11  ;;  %v785_v16 = vld [vmem:[%s916_s22 + $0x54] ss:$8 sps:$4 sm:$0xff]   ;;  %v806_v17 = vld [vmem:[%s916_s22 + $0x124] ss:$8 sps:$4 sm:$0xff]   ;;  %v808_v18 = vld [vmem:[%s916_s22 + $0x120] ss:$8 sps:$4 sm:$0xff]  }
  0x1e   : > { %510 = vmatpush1.bf16.msra.mxu0 %v775_v5  ;;  %550 = vmatprep.subr.bf16.mxu1 %v800_v13  ;;  %v787_v19 = vld [vmem:[%s916_s22 + $0x50] ss:$8 sps:$4 sm:$0xff]   ;;  %v812_v20 = vld [vmem:[%s916_s22 + $0x134] ss:$8 sps:$4 sm:$0xff]   ;;  %v788_v21 = vld [vmem:[%s916_s22 + $0x64] ss:$8 sps:$4 sm:$0xff]  }
  0x1f   : > { %511 = vmatprep.subr.bf16.mxu0 %v776_v6  ;;  %v814_v22 = vld [vmem:[%s916_s22 + $0x130] ss:$8 sps:$4 sm:$0xff]   ;;  %v790_v23 = vld [vmem:[%s916_s22 + $0x60] ss:$8 sps:$4 sm:$0xff]   ;;  %v818_v24 = vld [vmem:[%s916_s22 + $0x144] ss:$8 sps:$4 sm:$0xff]  }
  0x20   : > { %v791_v25 = vld [vmem:[%s916_s22 + $0x74] ss:$8 sps:$4 sm:$0xff]   ;;  %v820_v26 = vld [vmem:[%s916_s22 + $0x140] ss:$8 sps:$4 sm:$0xff]   ;;  %v793_v27 = vld [vmem:[%s916_s22 + $0x70] ss:$8 sps:$4 sm:$0xff]  }
  0x21   : > { %551 = vmatpush1.bf16.msra.mxu1 %v802_v14  ;;  %v824_v28 = vld [vmem:[%s916_s22 + $0x154] ss:$8 sps:$4 sm:$0xff]   ;;  %v797_v29 = vld [vmem:[%s916_s22 + $0x84] ss:$8 sps:$4 sm:$0xff]   ;;  %v826_v30 = vld [vmem:[%s916_s22 + $0x150] ss:$8 sps:$4 sm:$0xff]  }
  0x22   : > { %512 = vmatpush1.bf16.msra.mxu0 %v778_v7  ;;  %552 = vmatprep.subr.bf16.mxu1 %v806_v17  ;;  %v799_v31 = vld [vmem:[%s916_s22 + $0x80] ss:$8 sps:$4 sm:$0xff]   ;;  %v830_v32 = vld [vmem:[%s916_s22 + $0x164] ss:$8 sps:$4 sm:$0xff]   ;;  %v803_v33 = vld [vmem:[%s916_s22 + $0x94] ss:$8 sps:$4 sm:$0xff]  }
  0x23   : > { %513 = vmatprep.subr.bf16.mxu0 %v779_v8  ;;  %v206_v34 = vld [vmem:[%s911_s18] sm:$0xff]  ;;  %v805_v37 = vld [vmem:[%s916_s22 + $0x90] ss:$8 sps:$4 sm:$0xff]   ;;  %v836_v38 = vld [vmem:[%s916_s22 + $0x174] ss:$8 sps:$4 sm:$0xff]  }
  0x24   : > { %v689_v35 = vcombine.high %v206_v34, %v206_v34  ;;  %v832_v36 = vld [vmem:[%s916_s22 + $0x160] ss:$8 sps:$4 sm:$0xff]   ;;  %v809_v39 = vld [vmem:[%s916_s22 + $0xa4] ss:$8 sps:$4 sm:$0xff]   ;;  %v838_v40 = vld [vmem:[%s916_s22 + $0x170] ss:$8 sps:$4 sm:$0xff]   ;;  %v688_v53 = vcombine.low %v206_v34, %v206_v34 }
  0x25   : > { %553 = vmatpush1.bf16.msra.mxu1 %v808_v18  ;;  %v811_v41 = vld [vmem:[%s916_s22 + $0xa0] ss:$8 sps:$4 sm:$0xff]   ;;  %v815_v42 = vld [vmem:[%s916_s22 + $0xb4] ss:$8 sps:$4 sm:$0xff]   ;;  %v817_v44 = vld [vmem:[%s916_s22 + $0xb0] ss:$8 sps:$4 sm:$0xff]  }
  0x26   : > { %514 = vmatpush1.bf16.msra.mxu0 %v781_v9  ;;  %554 = vmatprep.subr.bf16.mxu1 %v812_v20  ;;  %v842_v43 = vld [vmem:[%s911_s18 + $0x8] ss:$0 sps:$4 sm:$0xff]   ;;  %v821_v45 = vld [vmem:[%s916_s22 + $0xc4] ss:$8 sps:$4 sm:$0xff]   ;;  %v827_v47 = vld [vmem:[%s916_s22 + $0xd4] ss:$8 sps:$4 sm:$0xff]  }
  0x27   : > { %515 = vmatprep.subr.bf16.mxu0 %v782_v12  ;;  %539 = vmatprep.mubr.bf16.mxu0 %v689_v35  ;;  %v823_v46 = vld [vmem:[%s916_s22 + $0xc0] ss:$8 sps:$4 sm:$0xff]   ;;  %v829_v48 = vld [vmem:[%s916_s22 + $0xd0] ss:$8 sps:$4 sm:$0xff]   ;;  %v833_v49 = vld [vmem:[%s916_s22 + $0xe4] ss:$8 sps:$4 sm:$0xff]  }
  0x28   : > { %v835_v50 = vld [vmem:[%s916_s22 + $0xe0] ss:$8 sps:$4 sm:$0xff]   ;;  %v839_v51 = vld [vmem:[%s916_s22 + $0xf4] ss:$8 sps:$4 sm:$0xff]   ;;  %v841_v52 = vld [vmem:[%s916_s22 + $0xf0] ss:$8 sps:$4 sm:$0xff]  }
  0x29   : > { %555 = vmatpush1.bf16.msra.mxu1 %v814_v22  ;;  %v204_v58 = vld [vmem:[#allocation2] sm:$0xff]  ;;  %v205_v61 = vld [vmem:[#allocation2 + $0x8] sm:$0xff] }
  0x2a   : > { %516 = vmatpush1.bf16.msra.mxu0 %v784_v15  ;;  %556 = vmatprep.subr.bf16.mxu1 %v818_v24 }
  0x2b   : > { %517 = vmatprep.subr.bf16.mxu0 %v785_v16 }
  0x2d   : > { %557 = vmatpush1.bf16.msra.mxu1 %v820_v26 }
  0x2e   : > { %518 = vmatpush1.bf16.msra.mxu0 %v787_v19  ;;  %558 = vmatprep.subr.bf16.mxu1 %v824_v28 }
  0x2f   : > { %519 = vmatprep.subr.bf16.mxu0 %v788_v21 }
  0x31   : > { %559 = vmatpush1.bf16.msra.mxu1 %v826_v30 }
  0x32   : > { %520 = vmatpush1.bf16.msra.mxu0 %v790_v23  ;;  %560 = vmatprep.subr.bf16.mxu1 %v830_v32 }
  0x33   : > { %521 = vmatprep.subr.bf16.mxu0 %v791_v25 }
  0x35   : > { %561 = vmatpush1.bf16.msra.mxu1 %v832_v36 }
  0x36   : > { %522 = vmatpush1.bf16.msra.mxu0 %v793_v27  ;;  %562 = vmatprep.subr.bf16.mxu1 %v836_v38 }
  0x37   : > { %523 = vmatprep.subr.bf16.mxu0 %v797_v29 }
  0x39   : > { %563 = vmatpush1.bf16.msra.mxu1 %v838_v40 }
  0x3a   : > { %524 = vmatpush1.bf16.msra.mxu0 %v799_v31 }
  0x3b   : > { %525 = vmatprep.subr.bf16.mxu0 %v803_v33 }
  0x3c   : > { %581 = vmatmul.mubr.bf16.vlgmr.msra.gmra.mrb[0].mxu1 %v842_v43 }
  0x3e   : > { %526 = vmatpush1.bf16.msra.mxu0 %v805_v37 }
  0x3f   : > { %527 = vmatprep.subr.bf16.mxu0 %v809_v39 }
  0x42   : > { %528 = vmatpush1.bf16.msra.mxu0 %v811_v41 }
  0x43   : > { %529 = vmatprep.subr.bf16.mxu0 %v815_v42 }
  0x46   : > { %530 = vmatpush1.bf16.msra.mxu0 %v817_v44 }
  0x47   : > { %531 = vmatprep.subr.bf16.mxu0 %v821_v45 }
  0x4a   : > { %532 = vmatpush1.bf16.msra.mxu0 %v823_v46 }
  0x4b   : > { %533 = vmatprep.subr.bf16.mxu0 %v827_v47 }
  0x4e   : > { %534 = vmatpush1.bf16.msra.mxu0 %v829_v48 }
  0x4f   : > { %535 = vmatprep.subr.bf16.mxu0 %v833_v49 }
  0x52   : > { %536 = vmatpush1.bf16.msra.mxu0 %v835_v50 }
  0x53   : > { %537 = vmatprep.subr.bf16.mxu0 %v839_v51 }
  0x56   : > { %538 = vmatpush1.bf16.msra.mxu0 %v841_v52 }
  0x59   : > { %540 = vmatmul.mubr.bf16.vlgmr.msra.gmra.mrb[0].mxu0 %v688_v53 }
 0x10f   : > { %v582_v54 = vpop.f32.mrb[0].mxu1 }
 0x110   : > { %v584_v55 = vpop.f32.mrb[1].mxu1 }
 0x111   : > { %v586_v56 = vpop.f32.mrb[2].mxu1 }
 0x112   : > { %v587_v57 = vpop.f32.mrb[3].mxu1 }
 0x12c   : > { %v541_v59 = vpop.f32.mrb[0].mxu0  ;;  %596 = sbr.rel (%p739_p7) target bundleno = 315 (0x13b), region = 36 }
 0x12d   : > { %v583_v60 = vadd.f32 %v582_v54, %v541_v59  ;;  %v543_v62 = vpop.f32.mrb[1].mxu0 }
 0x12e   : > { %v585_v63 = vadd.f32 %v584_v55, %v543_v62  ;;  %v545_v0 = vpop.f32.mrb[2].mxu0 }
 0x12f   : > { %v589_v1 = vadd.f32 %v583_v60, %v204_v58  ;;  %v546_v2 = vpop.f32.mrb[3].mxu0 }
 0x130   : > { %v590_v3 = vadd.f32 %v585_v63, %v205_v61 }
 0x131   : > { %591 = vst [vmem:[#allocation2] sm:$0xff] %v589_v1 }
 0x132   : > { %592 = vst [vmem:[#allocation2 + $0x8] sm:$0xff] %v590_v3 }
 0x138   : > { %v597_v4 = vld [vmem:[#allocation2] sm:$0xff] }
 0x139   : > { %v598_v5 = vld [vmem:[#allocation2 + $0x8] sm:$0xff]  ;;  %599 = vst [vmem:[%s987_s2] sm:$0xff] %v597_v4 }
 0x13a   : > { %600 = vst [vmem:[%s987_s2 + $0x8] sm:$0xff] %v598_v5 }
 0x13b PF: > { %s12_s11 = sadd.s32 1, %s867_s11   ;;  %s988_s9 = smov %s863_s10 }
 0x13c   : > { %p9_p8 = scmp.ge.s32.totalorder %s12_s11, 5   ;;  %s989_s10 = smov %s991_s12 }
 0x13e   :  { %11 = sbr.rel (!%p9_p8) target bundleno = 2 (0x2), region = 69 }

// kernel: resnet_forward.98
= control target key start
LH: loop header
LB: loop body
LE: loop exit
PB: predicated region body
PF: predicated region fallthrough
CT: control target
= control target key end

     0   :  { %v18_v0 = vlaneseq  ;;  %s102_s1 = inlined_call_operand.vmem [shape: f32[2,256], index: 1, kind: input, shape index: {}]   ;;  %s103_s0 = inlined_call_operand.vmem [shape: f32[8,256], index: 0, kind: input, shape index: {}]   ;;  %s104_s2 = inlined_call_operand.vmem [shape: f32[8,256], index: 2, kind: input, shape index: {}]   ;;  %s105_s3 = inlined_call_operand.vmem [shape: f32[8,256], index: 3, kind: output, shape index: {}]  }
   0x1   :  { %v16_v2 = vld [vmem:[%s102_s1] ss:$2 sm:$0x3]  ;;  %v57_v3 = vld [vmem:[%s102_s1 + $0x1] ss:$2 sm:$0x3] }
   0x2   :  { %v19_v1 = vshrl.u32 %v18_v0, 7  ;;  %v14_v6 = vld [vmem:[%s103_s0] sm:$0xff]  ;;  %v15_v7 = vld [vmem:[%s103_s0 + $0x8] sm:$0xff] }
   0x3   :  { %v45_v14 = vld [vmem:[%s104_s2] sm:$0xff]  ;;  %v46_v15 = vld [vmem:[%s104_s2 + $0x8] sm:$0xff] }
   0x4   :  { %v20_v4 = vsub.s32 0, %v19_v1  ;;  %v24_v5 = vsub.s32 1, %v19_v1 }
   0x6   :  { %v21_v8 = vrot.slane %v16_v2, %v20_v4  ;;  %v36_v9 = vrot.slane %v57_v3, %v20_v4  ;;  %v25_v10 = vrot.slane %v16_v2, %v24_v5  ;;  %v40_v11 = vrot.slane %v57_v3, %v24_v5 }
   0x8   :  { %v28_v12 = vsub.f32 %v14_v6, %v21_v8  ;;  %v29_v13 = vsub.f32 %v15_v7, %v25_v10 }
   0xa   :  { %v43_v16 = vmul.f32 %v36_v9, %v28_v12  ;;  %v44_v17 = vmul.f32 %v40_v11, %v29_v13 }
   0xc   :  { %v47_v18 = vadd.f32 %v45_v14, %v43_v16  ;;  %v48_v19 = vadd.f32 %v46_v15, %v44_v17 }
   0xe   :  { %v49_v20 = vmax.f32 %v47_v18, 0.0  ;;  %v50_v21 = vmax.f32 %v48_v19, 0.0 }
  0x10   :  { %51 = vst [vmem:[%s105_s3] sm:$0xff] %v49_v20  ;;  %52 = vst [vmem:[%s105_s3 + $0x8] sm:$0xff] %v50_v21 }

// kernel: resnet_forward.96
= control target key start
LH: loop header
LB: loop body
LE: loop exit
PB: predicated region body
PF: predicated region fallthrough
CT: control target
= control target key end

     0   :  { %s1349_s9 = smov 0   ;;  %s1351_s10 = smov 0   ;;  %s1503_s0 = inlined_call_operand.vmem [shape: bf16[8,2304], index: 0, kind: input, shape index: {}]   ;;  %s1504_s1 = inlined_call_operand.vmem [shape: bf16[2304,256], index: 1, kind: input, shape index: {}]   ;;  %s1505_s2 = inlined_call_operand.vmem [shape: f32[8,256], index: 2, kind: output, shape index: {}]  }
   0x1   :  { %s1353_s11 = smov 0  }
   0x2 LB: > { %s21_s12 = sadd.s32 1, %s1327_s10  ;;  %p1022_p0 = scmp.ge.s32.totalorder %s1331_s11, 1  ;;  %s1331_s11 = sphi %s1353_s11, %s12_s11   ;;  %s1327_s10 = sphi %s1351_s10, %s1507_s10   ;;  %s1323_s9 = sphi %s1349_s9, %s1506_s9  }
   0x3   : > { %p22_p1 = scmp.ge.s32.totalorder %s21_s12, 3  ;;  %p143_p2 = scmp.lt.s32.totalorder %s1331_s11, 4 }
   0x5   : > { %s1509_s12 = smov (%p22_p1, %s21_s12), 0  ;;  %p144_p3 = pnand %p1022_p0, %p143_p2 }
   0x6   : > { %s175_s13 = smul.u32 (!%p144_p3), 6, %s1323_s9  ;;  %p1026_p6 = scmp.ne.s32.totalorder (!%p144_p3), %s1323_s9, 0 }
   0x7   : > { %147 = sbr.rel (%p144_p3) target bundleno = 379 (0x17b), region = 28 }
   0x8   : > { %s185_s14 = smul.u32 (!%p144_p3), 96, %s1323_s9  ;;  %p178_p4 = scmp.lt.s32.totalorder (!%p144_p3), %s175_s13, 17 }
   0xa   : > { %p186_p5 = scmp.lt.s32.totalorder (!%p144_p3), %s185_s14, 287 }
   0xe   : > { %s1511_s13 = smov (!%p178_p4, %s175_s13), 17  ;;  %s1513_s14 = smov (!%p186_p5, %s185_s14), 287 }
   0xf   : > { %s1023_s15 = sshll.u32 %s1511_s13, 2  ;;  %s1133_s19 = sshll.u32 %s1513_s14, 3  ;;  %v1333_v0 = vmov (!%p1026_p6), 0.0  }
  0x10   : > { %s1374_s18 = scalar_lea.vmem %s1503_s0, %s1023_s15  ;;  %s1379_s22 = scalar_lea.vmem %s1504_s1, %s1133_s19  ;;  %201 = vst [vmem:[#allocation2] sm:$0xff] (!%p1026_p6), %v1333_v0  ;;  %202 = vst [vmem:[#allocation2 + $0x8] sm:$0xff] (!%p1026_p6), %v1333_v0 }
  0x11   : > { %200 = sbr.rel (%p1026_p6) target bundleno = 24 (0x18), region = 32 }
  0x18 PF: > { %v1159_v1 = vld [vmem:[%s1379_s22 + $0x4] ss:$8 sps:$4 sm:$0xff]   ;;  %v1163_v3 = vld [vmem:[%s1379_s22] ss:$8 sps:$4 sm:$0xff]   ;;  %v1165_v5 = vld [vmem:[%s1379_s22 + $0x14] ss:$8 sps:$4 sm:$0xff]  }
  0x19   : > { %v1161_v2 = vld [vmem:[%s1379_s22 + $0x104] ss:$8 sps:$4 sm:$0xff]   ;;  %805 = vmatprep.subr.bf16.mxu0 %v1159_v1  ;;  %v1164_v4 = vld [vmem:[%s1379_s22 + $0x100] ss:$8 sps:$4 sm:$0xff]   ;;  %v1167_v6 = vld [vmem:[%s1379_s22 + $0x114] ss:$8 sps:$4 sm:$0xff]  }
  0x1a   : > { %846 = vmatprep.subr.bf16.mxu1 %v1161_v2  ;;  %806 = vmatpush1.bf16.msra.mxu0 %v1163_v3  ;;  %v1169_v7 = vld [vmem:[%s1379_s22 + $0x10] ss:$8 sps:$4 sm:$0xff]   ;;  %v1171_v9 = vld [vmem:[%s1379_s22 + $0x24] ss:$8 sps:$4 sm:$0xff]   ;;  %v1175_v11 = vld [vmem:[%s1379_s22 + $0x20] ss:$8 sps:$4 sm:$0xff]  }
  0x1b   : > { %847 = vmatpush1.bf16.msra.mxu1 %v1164_v4  ;;  %807 = vmatprep.subr.bf16.mxu0 %v1165_v5  ;;  %v1170_v8 = vld [vmem:[%s1379_s22 + $0x110] ss:$8 sps:$4 sm:$0xff]   ;;  %v1173_v10 = vld [vmem:[%s1379_s22 + $0x124] ss:$8 sps:$4 sm:$0xff]   ;;  %v1176_v12 = vld [vmem:[%s1379_s22 + $0x120] ss:$8 sps:$4 sm:$0xff]  }
  0x1c   : > { %848 = vmatprep.subr.bf16.mxu1 %v1167_v6  ;;  %v1177_v13 = vld [vmem:[%s1379_s22 + $0x34] ss:$8 sps:$4 sm:$0xff]   ;;  %v1181_v15 = vld [vmem:[%s1379_s22 + $0x30] ss:$8 sps:$4 sm:$0xff]   ;;  %v1183_v17 = vld [vmem:[%s1379_s22 + $0x44] ss:$8 sps:$4 sm:$0xff]  }
  0x1d   : > { %v1179_v14 = vld [vmem:[%s1379_s22 + $0x134] ss:$8 sps:$4 sm:$0xff]   ;;  %v1182_v16 = vld [vmem:[%s1379_s22 + $0x130] ss:$8 sps:$4 sm:$0xff]   ;;  %v1185_v18 = vld [vmem:[%s1379_s22 + $0x144] ss:$8 sps:$4 sm:$0xff]  }
  0x1e   : > { %808 = vmatpush1.bf16.msra.mxu0 %v1169_v7  ;;  %v1187_v19 = vld [vmem:[%s1379_s22 + $0x40] ss:$8 sps:$4 sm:$0xff]   ;;  %v1189_v21 = vld [vmem:[%s1379_s22 + $0x54] ss:$8 sps:$4 sm:$0xff]   ;;  %v1193_v23 = vld [vmem:[%s1379_s22 + $0x50] ss:$8 sps:$4 sm:$0xff]  }
  0x1f   : > { %849 = vmatpush1.bf16.msra.mxu1 %v1170_v8  ;;  %809 = vmatprep.subr.bf16.mxu0 %v1171_v9  ;;  %v1188_v20 = vld [vmem:[%s1379_s22 + $0x140] ss:$8 sps:$4 sm:$0xff]   ;;  %v1191_v22 = vld [vmem:[%s1379_s22 + $0x154] ss:$8 sps:$4 sm:$0xff]   ;;  %v1194_v24 = vld [vmem:[%s1379_s22 + $0x150] ss:$8 sps:$4 sm:$0xff]  }
  0x20   : > { %850 = vmatprep.subr.bf16.mxu1 %v1173_v10  ;;  %v1195_v25 = vld [vmem:[%s1379_s22 + $0x64] ss:$8 sps:$4 sm:$0xff]   ;;  %v1199_v27 = vld [vmem:[%s1379_s22 + $0x60] ss:$8 sps:$4 sm:$0xff]   ;;  %v1201_v29 = vld [vmem:[%s1379_s22 + $0x74] ss:$8 sps:$4 sm:$0xff]  }
  0x21   : > { %v1197_v26 = vld [vmem:[%s1379_s22 + $0x164] ss:$8 sps:$4 sm:$0xff]   ;;  %v1200_v28 = vld [vmem:[%s1379_s22 + $0x160] ss:$8 sps:$4 sm:$0xff]   ;;  %v1203_v30 = vld [vmem:[%s1379_s22 + $0x174] ss:$8 sps:$4 sm:$0xff]  }
  0x22   : > { %810 = vmatpush1.bf16.msra.mxu0 %v1175_v11  ;;  %v1205_v31 = vld [vmem:[%s1379_s22 + $0x70] ss:$8 sps:$4 sm:$0xff]   ;;  %v1207_v33 = vld [vmem:[%s1379_s22 + $0x84] ss:$8 sps:$4 sm:$0xff]   ;;  %v1211_v35 = vld [vmem:[%s1379_s22 + $0x80] ss:$8 sps:$4 sm:$0xff]  }
  0x23   : > { %851 = vmatpush1.bf16.msra.mxu1 %v1176_v12  ;;  %811 = vmatprep.subr.bf16.mxu0 %v1177_v13  ;;  %v1206_v32 = vld [vmem:[%s1379_s22 + $0x170] ss:$8 sps:$4 sm:$0xff]   ;;  %v1209_v34 = vld [vmem:[%s1379_s22 + $0x184] ss:$8 sps:$4 sm:$0xff]   ;;  %v1212_v36 = vld [vmem:[%s1379_s22 + $0x180] ss:$8 sps:$4 sm:$0xff]  }
  0x24   : > { %852 = vmatprep.subr.bf16.mxu1 %v1179_v14  ;;  %v1213_v37 = vld [vmem:[%s1379_s22 + $0x94] ss:$8 sps:$4 sm:$0xff]   ;;  %v1217_v39 = vld [vmem:[%s1379_s22 + $0x90] ss:$8 sps:$4 sm:$0xff]   ;;  %v1219_v41 = vld [vmem:[%s1379_s22 + $0xa4] ss:$8 sps:$4 sm:$0xff]  }
  0x25   : > { %v1215_v38 = vld [vmem:[%s1379_s22 + $0x194] ss:$8 sps:$4 sm:$0xff]   ;;  %v1218_v40 = vld [vmem:[%s1379_s22 + $0x190] ss:$8 sps:$4 sm:$0xff]   ;;  %v1221_v42 = vld [vmem:[%s1379_s22 + $0x1a4] ss:$8 sps:$4 sm:$0xff]  }
  0x26   : > { %812 = vmatpush1.bf16.msra.mxu0 %v1181_v15  ;;  %v1223_v43 = vld [vmem:[%s1379_s22 + $0xa0] ss:$8 sps:$4 sm:$0xff]   ;;  %v1225_v45 = vld [vmem:[%s1379_s22 + $0xb4] ss:$8 sps:$4 sm:$0xff]   ;;  %v1229_v50 = vld [vmem:[%s1379_s22 + $0xb0] ss:$8 sps:$4 sm:$0xff]  }
  0x27   : > { %853 = vmatpush1.bf16.msra.mxu1 %v1182_v16  ;;  %813 = vmatprep.subr.bf16.mxu0 %v1183_v17  ;;  %v1224_v44 = vld [vmem:[%s1379_s22 + $0x1a0] ss:$8 sps:$4 sm:$0xff]   ;;  %v1227_v46 = vld [vmem:[%s1379_s22 + $0x1b4] ss:$8 sps:$4 sm:$0xff]   ;;  %v1230_v51 = vld [vmem:[%s1379_s22 + $0x1b0] ss:$8 sps:$4 sm:$0xff]  }
  0x28   : > { %854 = vmatprep.subr.bf16.mxu1 %v1185_v18  ;;  %v205_v47 = vld [vmem:[%s1374_s18] sm:$0xff]  ;;  %v206_v49 = vld [vmem:[%s1374_s18 + $0x8] sm:$0xff]  ;;  %v1237_v57 = vld [vmem:[%s1379_s22 + $0xd4] ss:$8 sps:$4 sm:$0xff]   ;;  %p1129_p7 = scmp.ne.s32.totalorder %s1323_s9, 2 }
  0x29   : > { %v1028_v48 = vcombine.high %v205_v47, %v205_v47  ;;  %v1030_v52 = vcombine.high %v206_v49, %v206_v49  ;;  %v1231_v53 = vld [vmem:[%s1379_s22 + $0xc4] ss:$8 sps:$4 sm:$0xff]   ;;  %v1235_v55 = vld [vmem:[%s1379_s22 + $0xc0] ss:$8 sps:$4 sm:$0xff]   ;;  %v1239_v58 = vld [vmem:[%s1379_s22 + $0x1d4] ss:$8 sps:$4 sm:$0xff]   ;;  %v1027_v6 = vcombine.low %v205_v47, %v205_v47  ;;  %v1029_v7 = vcombine.low %v206_v49, %v206_v49 }
  0x2a   : > { %814 = vmatpush1.bf16.msra.mxu0 %v1187_v19  ;;  %v1233_v54 = vld [vmem:[%s1379_s22 + $0x1c4] ss:$8 sps:$4 sm:$0xff]   ;;  %v1236_v56 = vld [vmem:[%s1379_s22 + $0x1c0] ss:$8 sps:$4 sm:$0xff]   ;;  %v1241_v59 = vld [vmem:[%s1379_s22 + $0xd0] ss:$8 sps:$4 sm:$0xff]  }
  0x2b   : > { %855 = vmatpush1.bf16.msra.mxu1 %v1188_v20  ;;  %815 = vmatprep.subr.bf16.mxu0 %v1189_v21  ;;  %v1242_v60 = vld [vmem:[%s1379_s22 + $0x1d0] ss:$8 sps:$4 sm:$0xff]   ;;  %v1243_v61 = vld [vmem:[%s1379_s22 + $0xe4] ss:$8 sps:$4 sm:$0xff]   ;;  %v1247_v63 = vld [vmem:[%s1379_s22 + $0xe0] ss:$8 sps:$4 sm:$0xff]  }
  0x2c   : > { %856 = vmatprep.subr.bf16.mxu1 %v1191_v22  ;;  %837 = vmatprep.mubr.bf16.mxu0 %v1028_v48  ;;  %v1245_v62 = vld [vmem:[%s1379_s22 + $0x1e4] ss:$8 sps:$4 sm:$0xff]   ;;  %v1248_v0 = vld [vmem:[%s1379_s22 + $0x1e0] ss:$8 sps:$4 sm:$0xff]   ;;  %v1249_v1 = vld [vmem:[%s1379_s22 + $0xf4] ss:$8 sps:$4 sm:$0xff]  }
  0x2d   : > { %878 = vmatprep.mubr.bf16.mxu1 %v1030_v52  ;;  %v1251_v2 = vld [vmem:[%s1379_s22 + $0x1f4] ss:$8 sps:$4 sm:$0xff]   ;;  %v1253_v3 = vld [vmem:[%s1379_s22 + $0xf0] ss:$8 sps:$4 sm:$0xff]   ;;  %v1261_v5 = vld [vmem:[%s1379_s22 + $0x204] ss:$8 sps:$4 sm:$0xff]  }
  0x2e   : > { %816 = vmatpush1.bf16.msra.mxu0 %v1193_v23  ;;  %v1254_v4 = vld [vmem:[%s1379_s22 + $0x1f0] ss:$8 sps:$4 sm:$0xff]   ;;  %v1259_v8 = vld [vmem:[%s1379_s22 + $0x200] ss:$8 sps:$4 sm:$0xff]   ;;  %v1264_v10 = vld [vmem:[%s1379_s22 + $0x214] ss:$8 sps:$4 sm:$0xff]  }
  0x2f   : > { %857 = vmatpush1.bf16.msra.mxu1 %v1194_v24  ;;  %817 = vmatprep.subr.bf16.mxu0 %v1195_v25  ;;  %v1451_v9 = vld [vmem:[%s1374_s18 + $0x10] sm:$0xff]  ;;  %v1267_v13 = vld [vmem:[%s1379_s22 + $0x224] ss:$8 sps:$4 sm:$0xff]   ;;  %v1265_v14 = vld [vmem:[%s1379_s22 + $0x220] ss:$8 sps:$4 sm:$0xff]  }
  0x30   : > { %858 = vmatprep.subr.bf16.mxu1 %v1197_v26  ;;  %v1032_v11 = vcombine.high %v1451_v9, %v1451_v9  ;;  %v1262_v12 = vld [vmem:[%s1379_s22 + $0x210] ss:$8 sps:$4 sm:$0xff]   ;;  %v1270_v15 = vld [vmem:[%s1379_s22 + $0x234] ss:$8 sps:$4 sm:$0xff]   ;;  %v1273_v17 = vld [vmem:[%s1379_s22 + $0x244] ss:$8 sps:$4 sm:$0xff]  }
  0x31   : > { %v1268_v16 = vld [vmem:[%s1379_s22 + $0x230] ss:$8 sps:$4 sm:$0xff]   ;;  %v1271_v18 = vld [vmem:[%s1379_s22 + $0x240] ss:$8 sps:$4 sm:$0xff]   ;;  %v1276_v19 = vld [vmem:[%s1379_s22 + $0x254] ss:$8 sps:$4 sm:$0xff]  }
  0x32   : > { %818 = vmatpush1.bf16.msra.mxu0 %v1199_v27  ;;  %v1274_v20 = vld [vmem:[%s1379_s22 + $0x250] ss:$8 sps:$4 sm:$0xff]   ;;  %v1279_v21 = vld [vmem:[%s1379_s22 + $0x264] ss:$8 sps:$4 sm:$0xff]   ;;  %v1277_v22 = vld [vmem:[%s1379_s22 + $0x260] ss:$8 sps:$4 sm:$0xff]  }
  0x33   : > { %859 = vmatpush1.bf16.msra.mxu1 %v1200_v28  ;;  %819 = vmatprep.subr.bf16.mxu0 %v1201_v29  ;;  %v1282_v23 = vld [vmem:[%s1379_s22 + $0x274] ss:$8 sps:$4 sm:$0xff]   ;;  %v1280_v24 = vld [vmem:[%s1379_s22 + $0x270] ss:$8 sps:$4 sm:$0xff]   ;;  %v1285_v25 = vld [vmem:[%s1379_s22 + $0x284] ss:$8 sps:$4 sm:$0xff]  }
  0x34   : > { %860 = vmatprep.subr.bf16.mxu1 %v1203_v30  ;;  %v1283_v26 = vld [vmem:[%s1379_s22 + $0x280] ss:$8 sps:$4 sm:$0xff]   ;;  %v1288_v27 = vld [vmem:[%s1379_s22 + $0x294] ss:$8 sps:$4 sm:$0xff]   ;;  %v1286_v28 = vld [vmem:[%s1379_s22 + $0x290] ss:$8 sps:$4 sm:$0xff]  }
  0x35   : > { %v1291_v29 = vld [vmem:[%s1379_s22 + $0x2a4] ss:$8 sps:$4 sm:$0xff]   ;;  %v1289_v30 = vld [vmem:[%s1379_s22 + $0x2a0] ss:$8 sps:$4 sm:$0xff]  }
  0x36   : > { %820 = vmatpush1.bf16.msra.mxu0 %v1205_v31  ;;  %v1294_v31 = vld [vmem:[%s1379_s22 + $0x2b4] ss:$8 sps:$4 sm:$0xff]   ;;  %v203_v52 = vld [vmem:[#allocation2] sm:$0xff] }
  0x37   : > { %861 = vmatpush1.bf16.msra.mxu1 %v1206_v32  ;;  %821 = vmatprep.subr.bf16.mxu0 %v1207_v33  ;;  %v1292_v32 = vld [vmem:[%s1379_s22 + $0x2b0] ss:$8 sps:$4 sm:$0xff]   ;;  %v1297_v33 = vld [vmem:[%s1379_s22 + $0x2c4] ss:$8 sps:$4 sm:$0xff]  }
  0x38   : > { %862 = vmatprep.subr.bf16.mxu1 %v1209_v34  ;;  %v1295_v34 = vld [vmem:[%s1379_s22 + $0x2c0] ss:$8 sps:$4 sm:$0xff]  }
  0x3a   : > { %822 = vmatpush1.bf16.msra.mxu0 %v1211_v35  ;;  %v1300_v35 = vld [vmem:[%s1379_s22 + $0x2d4] ss:$8 sps:$4 sm:$0xff]  }
  0x3b   : > { %863 = vmatpush1.bf16.msra.mxu1 %v1212_v36  ;;  %823 = vmatprep.subr.bf16.mxu0 %v1213_v37  ;;  %v1298_v36 = vld [vmem:[%s1379_s22 + $0x2d0] ss:$8 sps:$4 sm:$0xff]   ;;  %v1303_v37 = vld [vmem:[%s1379_s22 + $0x2e4] ss:$8 sps:$4 sm:$0xff]  }
  0x3c   : > { %864 = vmatprep.subr.bf16.mxu1 %v1215_v38  ;;  %v1301_v38 = vld [vmem:[%s1379_s22 + $0x2e0] ss:$8 sps:$4 sm:$0xff]  }
  0x3e   : > { %824 = vmatpush1.bf16.msra.mxu0 %v1217_v39  ;;  %v1306_v39 = vld [vmem:[%s1379_s22 + $0x2f4] ss:$8 sps:$4 sm:$0xff]  }
  0x3f   : > { %865 = vmatpush1.bf16.msra.mxu1 %v1218_v40  ;;  %825 = vmatprep.subr.bf16.mxu0 %v1219_v41  ;;  %v1304_v40 = vld [vmem:[%s1379_s22 + $0x2f0] ss:$8 sps:$4 sm:$0xff]   ;;  %v1031_v41 = vcombine.low %v1451_v9, %v1451_v9 }
  0x40   : > { %866 = vmatprep.subr.bf16.mxu1 %v1221_v42 }
  0x42   : > { %826 = vmatpush1.bf16.msra.mxu0 %v1223_v43 }
  0x43   : > { %867 = vmatpush1.bf16.msra.mxu1 %v1224_v44  ;;  %827 = vmatprep.subr.bf16.mxu0 %v1225_v45 }
  0x44   : > { %868 = vmatprep.subr.bf16.mxu1 %v1227_v46 }
  0x46   : > { %828 = vmatpush1.bf16.msra.mxu0 %v1229_v50 }
  0x47   : > { %869 = vmatpush1.bf16.msra.mxu1 %v1230_v51  ;;  %829 = vmatprep.subr.bf16.mxu0 %v1231_v53 }
  0x48   : > { %870 = vmatprep.subr.bf16.mxu1 %v1233_v54 }
  0x4a   : > { %830 = vmatpush1.bf16.msra.mxu0 %v1235_v55  ;;  %v204_v55 = vld [vmem:[#allocation2 + $0x8] sm:$0xff] }
  0x4b   : > { %871 = vmatpush1.bf16.msra.mxu1 %v1236_v56  ;;  %831 = vmatprep.subr.bf16.mxu0 %v1237_v57 }
  0x4c   : > { %872 = vmatprep.subr.bf16.mxu1 %v1239_v58 }
  0x4e   : > { %832 = vmatpush1.bf16.msra.mxu0 %v1241_v59 }
  0x4f   : > { %873 = vmatpush1.bf16.msra.mxu1 %v1242_v60  ;;  %833 = vmatprep.subr.bf16.mxu0 %v1243_v61 }
  0x50   : > { %874 = vmatprep.subr.bf16.mxu1 %v1245_v62 }
  0x52   : > { %834 = vmatpush1.bf16.msra.mxu0 %v1247_v63 }
  0x53   : > { %875 = vmatpush1.bf16.msra.mxu1 %v1248_v0  ;;  %835 = vmatprep.subr.bf16.mxu0 %v1249_v1 }
  0x54   : > { %876 = vmatprep.subr.bf16.mxu1 %v1251_v2 }
  0x56   : > { %836 = vmatpush1.bf16.msra.mxu0 %v1253_v3 }
  0x57   : > { %877 = vmatpush1.bf16.msra.mxu1 %v1254_v4  ;;  %887 = vmatprep.subr.bf16.mxu0 %v1261_v5 }
  0x59   : > { %838 = vmatmul.mubr.bf16.vlgmr.msra.gmra.mrb[0].mxu0 %v1027_v6 }
  0x5a   : > { %879 = vmatmul.mubr.bf16.vlgmr.msra.gmra.mrb[0].mxu1 %v1029_v7  ;;  %888 = vmatpush1.bf16.msra.mxu0 %v1259_v8 }
  0x5b   : > { %919 = vmatprep.mubr.bf16.mxu0 %v1032_v11  ;;  %889 = vmatprep.subr.bf16.mxu0 %v1264_v10 }
  0x5e   : > { %890 = vmatpush1.bf16.msra.mxu0 %v1262_v12 }
  0x5f   : > { %891 = vmatprep.subr.bf16.mxu0 %v1267_v13 }
  0x62   : > { %892 = vmatpush1.bf16.msra.mxu0 %v1265_v14 }
  0x63   : > { %893 = vmatprep.subr.bf16.mxu0 %v1270_v15 }
  0x66   : > { %894 = vmatpush1.bf16.msra.mxu0 %v1268_v16 }
  0x67   : > { %895 = vmatprep.subr.bf16.mxu0 %v1273_v17 }
  0x6a   : > { %896 = vmatpush1.bf16.msra.mxu0 %v1271_v18 }
  0x6b   : > { %897 = vmatprep.subr.bf16.mxu0 %v1276_v19 }
  0x6e   : > { %898 = vmatpush1.bf16.msra.mxu0 %v1274_v20 }
  0x6f   : > { %899 = vmatprep.subr.bf16.mxu0 %v1279_v21 }
  0x72   : > { %900 = vmatpush1.bf16.msra.mxu0 %v1277_v22 }
  0x73   : > { %901 = vmatprep.subr.bf16.mxu0 %v1282_v23 }
  0x76   : > { %902 = vmatpush1.bf16.msra.mxu0 %v1280_v24 }
  0x77   : > { %903 = vmatprep.subr.bf16.mxu0 %v1285_v25 }
  0x7a   : > { %904 = vmatpush1.bf16.msra.mxu0 %v1283_v26 }
  0x7b   : > { %905 = vmatprep.subr.bf16.mxu0 %v1288_v27 }
  0x7e   : > { %906 = vmatpush1.bf16.msra.mxu0 %v1286_v28 }
  0x7f   : > { %907 = vmatprep.subr.bf16.mxu0 %v1291_v29 }
  0x82   : > { %908 = vmatpush1.bf16.msra.mxu0 %v1289_v30 }
  0x83   : > { %909 = vmatprep.subr.bf16.mxu0 %v1294_v31 }
  0x86   : > { %910 = vmatpush1.bf16.msra.mxu0 %v1292_v32 }
  0x87   : > { %911 = vmatprep.subr.bf16.mxu0 %v1297_v33 }
  0x8a   : > { %912 = vmatpush1.bf16.msra.mxu0 %v1295_v34 }
  0x8b   : > { %913 = vmatprep.subr.bf16.mxu0 %v1300_v35 }
  0x8e   : > { %914 = vmatpush1.bf16.msra.mxu0 %v1298_v36 }
  0x8f   : > { %915 = vmatprep.subr.bf16.mxu0 %v1303_v37 }
  0x92   : > { %916 = vmatpush1.bf16.msra.mxu0 %v1301_v38 }
  0x93   : > { %917 = vmatprep.subr.bf16.mxu0 %v1306_v39 }
  0x96   : > { %918 = vmatpush1.bf16.msra.mxu0 %v1304_v40 }
  0x99   : > { %920 = vmatmul.mubr.bf16.vlgmr.msra.gmra.mrb[4].mxu0 %v1031_v41 }
 0x12c   : > { %v839_v42 = vpop.f32.mrb[0].mxu0 }
 0x12d   : > { %v880_v43 = vpop.f32.mrb[0].mxu1  ;;  %v841_v45 = vpop.f32.mrb[1].mxu0 }
 0x12e   : > { %v881_v44 = vadd.f32 %v880_v43, %v839_v42  ;;  %v882_v46 = vpop.f32.mrb[1].mxu1  ;;  %v843_v48 = vpop.f32.mrb[2].mxu0 }
 0x12f   : > { %v883_v47 = vadd.f32 %v882_v46, %v841_v45  ;;  %v884_v49 = vpop.f32.mrb[2].mxu1  ;;  %v844_v50 = vpop.f32.mrb[3].mxu0 }
 0x130   : > { %v885_v51 = vpop.f32.mrb[3].mxu1 }
 0x16c   : > { %v921_v53 = vpop.f32.mrb[4].mxu0  ;;  %935 = sbr.rel (%p1129_p7) target bundleno = 379 (0x17b), region = 36 }
 0x16d   : > { %v922_v54 = vadd.f32 %v921_v53, %v881_v44  ;;  %v923_v56 = vpop.f32.mrb[5].mxu0 }
 0x16e   : > { %v924_v57 = vadd.f32 %v923_v56, %v883_v47  ;;  %v925_v58 = vpop.f32.mrb[6].mxu0 }
 0x16f   : > { %v928_v59 = vadd.f32 %v922_v54, %v203_v52  ;;  %v926_v60 = vpop.f32.mrb[7].mxu0 }
 0x170   : > { %v929_v61 = vadd.f32 %v924_v57, %v204_v55 }
 0x171   : > { %930 = vst [vmem:[#allocation2] sm:$0xff] %v928_v59 }
 0x172   : > { %931 = vst [vmem:[#allocation2 + $0x8] sm:$0xff] %v929_v61 }
 0x178   : > { %v936_v62 = vld [vmem:[#allocation2] sm:$0xff] }
 0x179   : > { %v937_v63 = vld [vmem:[#allocation2 + $0x8] sm:$0xff]  ;;  %938 = vst [vmem:[%s1505_s2] sm:$0xff] %v936_v62 }
 0x17a   : > { %939 = vst [vmem:[%s1505_s2 + $0x8] sm:$0xff] %v937_v63 }
 0x17b PF: > { %s12_s11 = sadd.s32 1, %s1331_s11   ;;  %s1506_s9 = smov %s1327_s10 }
 0x17c   : > { %p9_p8 = scmp.ge.s32.totalorder %s12_s11, 5   ;;  %s1507_s10 = smov %s1509_s12 }
 0x17e   :  { %11 = sbr.rel (!%p9_p8) target bundleno = 2 (0x2), region = 69 }

// kernel: resnet_forward.109
= control target key start
LH: loop header
LB: loop body
LE: loop exit
PB: predicated region body
PF: predicated region fallthrough
CT: control target
= control target key end

     0   :  { %v109_v3 = vmov 1983009808   ;;  %v84_v5 = vlaneseq  ;;  %vm70_vm0 = vcmask 1040384   ;;  %s139_s0 = inlined_call_operand.vmem [shape: f32[8,512], index: 0, kind: input, shape index: {}]   ;;  %s140_s1 = inlined_call_operand.vmem [shape: f32[2,512], index: 1, kind: output, shape index: {}]  }
   0x1   :  { %v13_v0 = vld [vmem:[%s139_s0] sm:$0xff]  ;;  %v14_v1 = vld [vmem:[%s139_s0 + $0x8] sm:$0xff]  ;;  %v15_v2 = vld [vmem:[%s139_s0 + $0x10] sm:$0xff]  ;;  %v82_v4 = vunpack.c.l.s4 %v109_v3 }
   0x2   :  { %v16_v6 = vld [vmem:[%s139_s0 + $0x18] sm:$0xff]  ;;  %v17_v7 = vrot.slane %v13_v0, 4  ;;  %v23_v8 = vrot.slane %v14_v1, 4  ;;  %v29_v9 = vrot.slane %v15_v2, 4  ;;  %v41_v10 = vmul.f32 %v13_v0, %v13_v0 }
   0x3   :  { %v35_v11 = vrot.slane %v16_v6, 4  ;;  %v42_v12 = vmul.f32 %v14_v1, %v14_v1  ;;  %v43_v13 = vmul.f32 %v15_v2, %v15_v2  ;;  %v44_v14 = vmul.f32 %v16_v6, %v16_v6 }
   0x4   :  { %v18_v15 = vadd.f32 %v17_v7, %v13_v0  ;;  %v24_v16 = vadd.f32 %v23_v8, %v14_v1  ;;  %v30_v17 = vadd.f32 %v29_v9, %v15_v2  ;;  %v45_v18 = vrot.slane %v41_v10, 4 }
   0x5   :  { %v36_v19 = vadd.f32 %v35_v11, %v16_v6  ;;  %v51_v20 = vrot.slane %v42_v12, 4  ;;  %v57_v21 = vrot.slane %v43_v13, 4  ;;  %v63_v22 = vrot.slane %v44_v14, 4 }
   0x6   :  { %v19_v23 = vrot.slane %v18_v15, 2  ;;  %v25_v24 = vrot.slane %v24_v16, 2  ;;  %v31_v25 = vrot.slane %v30_v17, 2  ;;  %v46_v26 = vadd.f32 %v45_v18, %v41_v10 }
   0x7   :  { %v37_v27 = vrot.slane %v36_v19, 2  ;;  %v52_v28 = vadd.f32 %v51_v20, %v42_v12  ;;  %v58_v29 = vadd.f32 %v57_v21, %v43_v13  ;;  %v64_v30 = vadd.f32 %v63_v22, %v44_v14 }
   0x8   :  { %v20_v31 = vadd.f32 %v19_v23, %v18_v15  ;;  %v26_v32 = vadd.f32 %v25_v24, %v24_v16  ;;  %v32_v33 = vadd.f32 %v31_v25, %v30_v17  ;;  %v47_v34 = vrot.slane %v46_v26, 2 }
   0x9   :  { %v38_v35 = vadd.f32 %v37_v27, %v36_v19  ;;  %v53_v36 = vrot.slane %v52_v28, 2  ;;  %v59_v37 = vrot.slane %v58_v29, 2  ;;  %v65_v38 = vrot.slane %v64_v30, 2 }
   0xa   :  { %v21_v39 = vrot.slane %v20_v31, 1  ;;  %v27_v40 = vrot.slane %v26_v32, 1  ;;  %v33_v41 = vrot.slane %v32_v33, 1  ;;  %v48_v42 = vadd.f32 %v47_v34, %v46_v26 }
   0xb   :  { %v39_v43 = vrot.slane %v38_v35, 1  ;;  %v54_v44 = vadd.f32 %v53_v36, %v52_v28  ;;  %v60_v45 = vadd.f32 %v59_v37, %v58_v29  ;;  %v66_v46 = vadd.f32 %v65_v38, %v64_v30 }
   0xc   :  { %v22_v47 = vadd.f32 %v21_v39, %v20_v31  ;;  %v28_v48 = vadd.f32 %v27_v40, %v26_v32  ;;  %v34_v49 = vadd.f32 %v33_v41, %v32_v33  ;;  %v49_v50 = vrot.slane %v48_v42, 1 }
   0xd   :  { %v40_v51 = vadd.f32 %v39_v43, %v38_v35  ;;  %v55_v52 = vrot.slane %v54_v44, 1  ;;  %v61_v53 = vrot.slane %v60_v45, 1  ;;  %v67_v54 = vrot.slane %v66_v46, 1 }
   0xe   :  { %v50_v55 = vadd.f32 %v49_v50, %v48_v42  ;;  %v83_v56 = vunpack.c.0.s8 %v82_v4  ;;  %v85_v57 = vshrl.u32 %v84_v5, 7 }
   0xf   :  { %v56_v58 = vadd.f32 %v55_v52, %v54_v44  ;;  %v62_v59 = vadd.f32 %v61_v53, %v60_v45  ;;  %v68_v60 = vadd.f32 %v67_v54, %v66_v46 }
  0x10   :  { %v71_v61 = vsel %vm70_vm0, %v22_v47, %v50_v55  ;;  %v86_v62 = vsub.s32 %v83_v56, %v85_v57 }
  0x11   :  { %v72_v63 = vsel %vm70_vm0, %v28_v48, %v56_v58  ;;  %v73_v0 = vsel %vm70_vm0, %v34_v49, %v62_v59  ;;  %v74_v1 = vsel %vm70_vm0, %v40_v51, %v68_v60 }
  0x12   :  { %v79_v2 = vcombine.low %v71_v61, %v72_v63  ;;  %v80_v3 = vcombine.low %v73_v0, %v74_v1 }
  0x14   :  { %v87_v6 = vrot.slane %v79_v2, %v86_v62  ;;  %v94_v7 = vrot.slane %v80_v3, %v86_v62 }
  0x16   :  { %v95_v8 = vcombine.low %v87_v6, %v94_v7 }
  0x18   :  { %103 = vst [vmem:[%s140_s1] sm:$0xff] %v95_v8 }

// kernel: resnet_forward.105
= control target key start
LH: loop header
LB: loop body
LE: loop exit
PB: predicated region body
PF: predicated region fallthrough
CT: control target
= control target key end

     0   :  { %s906_s1 = inlined_call_operand.vmem [shape: bf16[256,512], index: 1, kind: input, shape index: {}]   ;;  %s907_s0 = inlined_call_operand.vmem [shape: bf16[8,256], index: 0, kind: input, shape index: {}]   ;;  %s908_s2 = inlined_call_operand.vmem [shape: f32[8,512], index: 2, kind: output, shape index: {}]  }
   0x1   :  { %v586_v0 = vld [vmem:[%s906_s1 + $0x4] ss:$16 sps:$4 sm:$0xff]   ;;  %v588_v1 = vld [vmem:[%s906_s1 + $0xc] ss:$16 sps:$4 sm:$0xff]   ;;  %v590_v2 = vld [vmem:[%s906_s1] ss:$16 sps:$4 sm:$0xff]  }
   0x2   :  { %415 = vmatprep.subr.bf16.mxu0 %v586_v0  ;;  %v591_v3 = vld [vmem:[%s906_s1 + $0x8] ss:$16 sps:$4 sm:$0xff]   ;;  %456 = vmatprep.subr.bf16.mxu1 %v588_v1  ;;  %v592_v4 = vld [vmem:[%s906_s1 + $0x24] ss:$16 sps:$4 sm:$0xff]   ;;  %v594_v5 = vld [vmem:[%s906_s1 + $0x2c] ss:$16 sps:$4 sm:$0xff]  }
   0x3   :  { %416 = vmatpush1.bf16.msra.mxu0 %v590_v2  ;;  %457 = vmatpush1.bf16.msra.mxu1 %v591_v3  ;;  %v596_v6 = vld [vmem:[%s906_s1 + $0x20] ss:$16 sps:$4 sm:$0xff]   ;;  %v597_v7 = vld [vmem:[%s906_s1 + $0x28] ss:$16 sps:$4 sm:$0xff]   ;;  %v598_v8 = vld [vmem:[%s906_s1 + $0x44] ss:$16 sps:$4 sm:$0xff]  }
   0x4   :  { %417 = vmatprep.subr.bf16.mxu0 %v592_v4  ;;  %458 = vmatprep.subr.bf16.mxu1 %v594_v5  ;;  %v600_v9 = vld [vmem:[%s906_s1 + $0x4c] ss:$16 sps:$4 sm:$0xff]   ;;  %v602_v10 = vld [vmem:[%s906_s1 + $0x40] ss:$16 sps:$4 sm:$0xff]   ;;  %v603_v11 = vld [vmem:[%s906_s1 + $0x48] ss:$16 sps:$4 sm:$0xff]  }
   0x5   :  { %v604_v12 = vld [vmem:[%s906_s1 + $0x64] ss:$16 sps:$4 sm:$0xff]   ;;  %v606_v13 = vld [vmem:[%s906_s1 + $0x6c] ss:$16 sps:$4 sm:$0xff]   ;;  %v608_v14 = vld [vmem:[%s906_s1 + $0x60] ss:$16 sps:$4 sm:$0xff]  }
   0x6   :  { %v609_v15 = vld [vmem:[%s906_s1 + $0x68] ss:$16 sps:$4 sm:$0xff]   ;;  %v610_v16 = vld [vmem:[%s906_s1 + $0x84] ss:$16 sps:$4 sm:$0xff]   ;;  %v612_v17 = vld [vmem:[%s906_s1 + $0x8c] ss:$16 sps:$4 sm:$0xff]  }
   0x7   :  { %418 = vmatpush1.bf16.msra.mxu0 %v596_v6  ;;  %459 = vmatpush1.bf16.msra.mxu1 %v597_v7  ;;  %v614_v18 = vld [vmem:[%s906_s1 + $0x80] ss:$16 sps:$4 sm:$0xff]   ;;  %v615_v19 = vld [vmem:[%s906_s1 + $0x88] ss:$16 sps:$4 sm:$0xff]   ;;  %v616_v20 = vld [vmem:[%s906_s1 + $0xa4] ss:$16 sps:$4 sm:$0xff]  }
   0x8   :  { %419 = vmatprep.subr.bf16.mxu0 %v598_v8  ;;  %460 = vmatprep.subr.bf16.mxu1 %v600_v9  ;;  %v618_v21 = vld [vmem:[%s906_s1 + $0xac] ss:$16 sps:$4 sm:$0xff]   ;;  %v620_v22 = vld [vmem:[%s906_s1 + $0xa0] ss:$16 sps:$4 sm:$0xff]   ;;  %v621_v23 = vld [vmem:[%s906_s1 + $0xa8] ss:$16 sps:$4 sm:$0xff]  }
   0x9   :  { %v622_v24 = vld [vmem:[%s906_s1 + $0xc4] ss:$16 sps:$4 sm:$0xff]   ;;  %v624_v25 = vld [vmem:[%s906_s1 + $0xcc] ss:$16 sps:$4 sm:$0xff]   ;;  %v626_v26 = vld [vmem:[%s906_s1 + $0xc0] ss:$16 sps:$4 sm:$0xff]  }
   0xa   :  { %v627_v27 = vld [vmem:[%s906_s1 + $0xc8] ss:$16 sps:$4 sm:$0xff]   ;;  %v628_v28 = vld [vmem:[%s906_s1 + $0xe4] ss:$16 sps:$4 sm:$0xff]   ;;  %v630_v29 = vld [vmem:[%s906_s1 + $0xec] ss:$16 sps:$4 sm:$0xff]  }
   0xb   :  { %420 = vmatpush1.bf16.msra.mxu0 %v602_v10  ;;  %461 = vmatpush1.bf16.msra.mxu1 %v603_v11  ;;  %v632_v30 = vld [vmem:[%s906_s1 + $0xe0] ss:$16 sps:$4 sm:$0xff]   ;;  %v633_v31 = vld [vmem:[%s906_s1 + $0xe8] ss:$16 sps:$4 sm:$0xff]   ;;  %v634_v32 = vld [vmem:[%s906_s1 + $0x104] ss:$16 sps:$4 sm:$0xff]  }
   0xc   :  { %421 = vmatprep.subr.bf16.mxu0 %v604_v12  ;;  %462 = vmatprep.subr.bf16.mxu1 %v606_v13  ;;  %v636_v33 = vld [vmem:[%s906_s1 + $0x10c] ss:$16 sps:$4 sm:$0xff]   ;;  %v638_v34 = vld [vmem:[%s906_s1 + $0x100] ss:$16 sps:$4 sm:$0xff]   ;;  %v639_v35 = vld [vmem:[%s906_s1 + $0x108] ss:$16 sps:$4 sm:$0xff]  }
   0xd   :  { %v640_v36 = vld [vmem:[%s906_s1 + $0x124] ss:$16 sps:$4 sm:$0xff]   ;;  %v642_v37 = vld [vmem:[%s906_s1 + $0x12c] ss:$16 sps:$4 sm:$0xff]   ;;  %v644_v38 = vld [vmem:[%s906_s1 + $0x120] ss:$16 sps:$4 sm:$0xff]  }
   0xe   :  { %v645_v39 = vld [vmem:[%s906_s1 + $0x128] ss:$16 sps:$4 sm:$0xff]   ;;  %v646_v40 = vld [vmem:[%s906_s1 + $0x144] ss:$16 sps:$4 sm:$0xff]   ;;  %v648_v41 = vld [vmem:[%s906_s1 + $0x14c] ss:$16 sps:$4 sm:$0xff]  }
   0xf   :  { %422 = vmatpush1.bf16.msra.mxu0 %v608_v14  ;;  %463 = vmatpush1.bf16.msra.mxu1 %v609_v15  ;;  %v650_v42 = vld [vmem:[%s906_s1 + $0x140] ss:$16 sps:$4 sm:$0xff]   ;;  %v651_v43 = vld [vmem:[%s906_s1 + $0x148] ss:$16 sps:$4 sm:$0xff]   ;;  %v652_v44 = vld [vmem:[%s906_s1 + $0x164] ss:$16 sps:$4 sm:$0xff]  }
  0x10   :  { %423 = vmatprep.subr.bf16.mxu0 %v610_v16  ;;  %464 = vmatprep.subr.bf16.mxu1 %v612_v17  ;;  %v654_v45 = vld [vmem:[%s906_s1 + $0x16c] ss:$16 sps:$4 sm:$0xff]   ;;  %v23_v46 = vld [vmem:[%s907_s0] sm:$0xff]  ;;  %v657_v49 = vld [vmem:[%s906_s1 + $0x168] ss:$16 sps:$4 sm:$0xff]  }
  0x11   :  { %v521_v47 = vcombine.high %v23_v46, %v23_v46  ;;  %v656_v48 = vld [vmem:[%s906_s1 + $0x160] ss:$16 sps:$4 sm:$0xff]   ;;  %v658_v50 = vld [vmem:[%s906_s1 + $0x184] ss:$16 sps:$4 sm:$0xff]   ;;  %v660_v51 = vld [vmem:[%s906_s1 + $0x18c] ss:$16 sps:$4 sm:$0xff]   ;;  %v520_v2 = vcombine.low %v23_v46, %v23_v46 }
  0x12   :  { %v662_v52 = vld [vmem:[%s906_s1 + $0x180] ss:$16 sps:$4 sm:$0xff]   ;;  %v663_v53 = vld [vmem:[%s906_s1 + $0x188] ss:$16 sps:$4 sm:$0xff]   ;;  %v664_v54 = vld [vmem:[%s906_s1 + $0x1a4] ss:$16 sps:$4 sm:$0xff]  }
  0x13   :  { %424 = vmatpush1.bf16.msra.mxu0 %v614_v18  ;;  %465 = vmatpush1.bf16.msra.mxu1 %v615_v19  ;;  %v666_v55 = vld [vmem:[%s906_s1 + $0x1ac] ss:$16 sps:$4 sm:$0xff]   ;;  %v668_v56 = vld [vmem:[%s906_s1 + $0x1a0] ss:$16 sps:$4 sm:$0xff]   ;;  %v669_v57 = vld [vmem:[%s906_s1 + $0x1a8] ss:$16 sps:$4 sm:$0xff]  }
  0x14   :  { %425 = vmatprep.subr.bf16.mxu0 %v616_v20  ;;  %466 = vmatprep.subr.bf16.mxu1 %v618_v21  ;;  %v670_v58 = vld [vmem:[%s906_s1 + $0x1c4] ss:$16 sps:$4 sm:$0xff]   ;;  %v672_v59 = vld [vmem:[%s906_s1 + $0x1cc] ss:$16 sps:$4 sm:$0xff]   ;;  %v674_v60 = vld [vmem:[%s906_s1 + $0x1c0] ss:$16 sps:$4 sm:$0xff]  }
  0x15   :  { %447 = vmatprep.mubr.bf16.mxu0 %v521_v47  ;;  %488 = vmatprep.mubr.bf16.mxu1 %v521_v47  ;;  %v675_v61 = vld [vmem:[%s906_s1 + $0x1c8] ss:$16 sps:$4 sm:$0xff]   ;;  %v676_v62 = vld [vmem:[%s906_s1 + $0x1e4] ss:$16 sps:$4 sm:$0xff]   ;;  %v678_v63 = vld [vmem:[%s906_s1 + $0x1ec] ss:$16 sps:$4 sm:$0xff]  }
  0x16   :  { %v680_v0 = vld [vmem:[%s906_s1 + $0x1e0] ss:$16 sps:$4 sm:$0xff]   ;;  %v681_v1 = vld [vmem:[%s906_s1 + $0x1e8] ss:$16 sps:$4 sm:$0xff]  }
  0x17   :  { %426 = vmatpush1.bf16.msra.mxu0 %v620_v22  ;;  %467 = vmatpush1.bf16.msra.mxu1 %v621_v23 }
  0x18   :  { %427 = vmatprep.subr.bf16.mxu0 %v622_v24  ;;  %468 = vmatprep.subr.bf16.mxu1 %v624_v25 }
  0x1b   :  { %428 = vmatpush1.bf16.msra.mxu0 %v626_v26  ;;  %469 = vmatpush1.bf16.msra.mxu1 %v627_v27 }
  0x1c   :  { %429 = vmatprep.subr.bf16.mxu0 %v628_v28  ;;  %470 = vmatprep.subr.bf16.mxu1 %v630_v29 }
  0x1f   :  { %430 = vmatpush1.bf16.msra.mxu0 %v632_v30  ;;  %471 = vmatpush1.bf16.msra.mxu1 %v633_v31 }
  0x20   :  { %431 = vmatprep.subr.bf16.mxu0 %v634_v32  ;;  %472 = vmatprep.subr.bf16.mxu1 %v636_v33 }
  0x23   :  { %432 = vmatpush1.bf16.msra.mxu0 %v638_v34  ;;  %473 = vmatpush1.bf16.msra.mxu1 %v639_v35 }
  0x24   :  { %433 = vmatprep.subr.bf16.mxu0 %v640_v36  ;;  %474 = vmatprep.subr.bf16.mxu1 %v642_v37 }
  0x27   :  { %434 = vmatpush1.bf16.msra.mxu0 %v644_v38  ;;  %475 = vmatpush1.bf16.msra.mxu1 %v645_v39 }
  0x28   :  { %435 = vmatprep.subr.bf16.mxu0 %v646_v40  ;;  %476 = vmatprep.subr.bf16.mxu1 %v648_v41 }
  0x2b   :  { %436 = vmatpush1.bf16.msra.mxu0 %v650_v42  ;;  %477 = vmatpush1.bf16.msra.mxu1 %v651_v43 }
  0x2c   :  { %437 = vmatprep.subr.bf16.mxu0 %v652_v44  ;;  %478 = vmatprep.subr.bf16.mxu1 %v654_v45 }
  0x2f   :  { %438 = vmatpush1.bf16.msra.mxu0 %v656_v48  ;;  %479 = vmatpush1.bf16.msra.mxu1 %v657_v49 }
  0x30   :  { %439 = vmatprep.subr.bf16.mxu0 %v658_v50  ;;  %480 = vmatprep.subr.bf16.mxu1 %v660_v51 }
  0x33   :  { %440 = vmatpush1.bf16.msra.mxu0 %v662_v52  ;;  %481 = vmatpush1.bf16.msra.mxu1 %v663_v53 }
  0x34   :  { %441 = vmatprep.subr.bf16.mxu0 %v664_v54  ;;  %482 = vmatprep.subr.bf16.mxu1 %v666_v55 }
  0x37   :  { %442 = vmatpush1.bf16.msra.mxu0 %v668_v56  ;;  %483 = vmatpush1.bf16.msra.mxu1 %v669_v57 }
  0x38   :  { %443 = vmatprep.subr.bf16.mxu0 %v670_v58  ;;  %484 = vmatprep.subr.bf16.mxu1 %v672_v59 }
  0x3b   :  { %444 = vmatpush1.bf16.msra.mxu0 %v674_v60  ;;  %485 = vmatpush1.bf16.msra.mxu1 %v675_v61 }
  0x3c   :  { %445 = vmatprep.subr.bf16.mxu0 %v676_v62  ;;  %486 = vmatprep.subr.bf16.mxu1 %v678_v63 }
  0x3f   :  { %446 = vmatpush1.bf16.msra.mxu0 %v680_v0  ;;  %487 = vmatpush1.bf16.msra.mxu1 %v681_v1 }
  0x42   :  { %448 = vmatmul.mubr.bf16.vlgmr.msra.gmra.mrb[0].mxu0 %v520_v2  ;;  %489 = vmatmul.mubr.bf16.vlgmr.msra.gmra.mrb[0].mxu1 %v520_v2 }
 0x115   :  { %v449_v3 = vpop.f32.mrb[0].mxu0  ;;  %v490_v4 = vpop.f32.mrb[0].mxu1 }
 0x116   :  { %512 = vst [vmem:[%s908_s2] sm:$0xff] %v449_v3  ;;  %514 = vst [vmem:[%s908_s2 + $0x10] sm:$0xff] %v490_v4  ;;  %v451_v5 = vpop.f32.mrb[1].mxu0  ;;  %v492_v6 = vpop.f32.mrb[1].mxu1 }
 0x117   :  { %513 = vst [vmem:[%s908_s2 + $0x8] sm:$0xff] %v451_v5  ;;  %515 = vst [vmem:[%s908_s2 + $0x18] sm:$0xff] %v492_v6  ;;  %v453_v7 = vpop.f32.mrb[2].mxu0  ;;  %v494_v8 = vpop.f32.mrb[2].mxu1 }
 0x118   :  { %v454_v9 = vpop.f32.mrb[3].mxu0  ;;  %v495_v10 = vpop.f32.mrb[3].mxu1 }

// kernel: resnet_forward.110
= control target key start
LH: loop header
LB: loop body
LE: loop exit
PB: predicated region body
PF: predicated region fallthrough
CT: control target
= control target key end

     0   :  { %v17_v0 = vlaneseq  ;;  %s126_s1 = inlined_call_operand.vmem [shape: f32[2,512], index: 1, kind: input, shape index: {}]   ;;  %s127_s0 = inlined_call_operand.vmem [shape: f32[8,512], index: 0, kind: input, shape index: {}]   ;;  %s128_s2 = inlined_call_operand.vmem [shape: f32[8,512], index: 2, kind: output, shape index: {}]  }
   0x1   :  { %v15_v2 = vld [vmem:[%s126_s1] ss:$2 sm:$0xf]  ;;  %v80_v3 = vld [vmem:[%s126_s1 + $0x1] ss:$2 sm:$0xf] }
   0x2   :  { %v18_v1 = vshrl.u32 %v17_v0, 7  ;;  %v11_v8 = vld [vmem:[%s127_s0] sm:$0xff]  ;;  %v12_v9 = vld [vmem:[%s127_s0 + $0x8] sm:$0xff]  ;;  %v13_v14 = vld [vmem:[%s127_s0 + $0x10] sm:$0xff] }
   0x3   :  { %v14_v15 = vld [vmem:[%s127_s0 + $0x18] sm:$0xff] }
   0x4   :  { %v19_v4 = vsub.s32 0, %v18_v1  ;;  %v23_v5 = vsub.s32 1, %v18_v1  ;;  %v27_v6 = vsub.s32 2, %v18_v1  ;;  %v31_v7 = vsub.s32 3, %v18_v1 }
   0x6   :  { %v20_v10 = vrot.slane %v15_v2, %v19_v4  ;;  %v47_v11 = vrot.slane %v80_v3, %v19_v4  ;;  %v24_v12 = vrot.slane %v15_v2, %v23_v5  ;;  %v51_v13 = vrot.slane %v80_v3, %v23_v5 }
   0x7   :  { %v28_v16 = vrot.slane %v15_v2, %v27_v6  ;;  %v55_v17 = vrot.slane %v80_v3, %v27_v6  ;;  %v32_v18 = vrot.slane %v15_v2, %v31_v7  ;;  %v59_v19 = vrot.slane %v80_v3, %v31_v7 }
   0x8   :  { %v37_v20 = vsub.f32 %v11_v8, %v20_v10  ;;  %v38_v21 = vsub.f32 %v12_v9, %v24_v12 }
   0x9   :  { %v39_v22 = vsub.f32 %v13_v14, %v28_v16  ;;  %v40_v23 = vsub.f32 %v14_v15, %v32_v18 }
   0xa   :  { %v64_v24 = vmul.f32 %v47_v11, %v37_v20  ;;  %v65_v25 = vmul.f32 %v51_v13, %v38_v21 }
   0xb   :  { %v66_v26 = vmul.f32 %v55_v17, %v39_v22  ;;  %v67_v27 = vmul.f32 %v59_v19, %v40_v23 }
   0xc   :  { %v68_v28 = vmax.f32 %v64_v24, 0.0  ;;  %v69_v29 = vmax.f32 %v65_v25, 0.0 }
   0xd   :  { %v70_v30 = vmax.f32 %v66_v26, 0.0  ;;  %v71_v31 = vmax.f32 %v67_v27, 0.0 }
   0xe   :  { %72 = vst [vmem:[%s128_s2] sm:$0xff] %v68_v28  ;;  %73 = vst [vmem:[%s128_s2 + $0x8] sm:$0xff] %v69_v29 }
   0xf   :  { %74 = vst [vmem:[%s128_s2 + $0x10] sm:$0xff] %v70_v30  ;;  %75 = vst [vmem:[%s128_s2 + $0x18] sm:$0xff] %v71_v31 }

// kernel: resnet_forward.108
= control target key start
LH: loop header
LB: loop body
LE: loop exit
PB: predicated region body
PF: predicated region fallthrough
CT: control target
= control target key end

     0   :  { %s2300_s9 = smov 0   ;;  %s2302_s10 = smov 0   ;;  %s2580_s0 = inlined_call_operand.vmem [shape: bf16[8,2304], index: 0, kind: input, shape index: {}]   ;;  %s2581_s1 = inlined_call_operand.vmem [shape: bf16[2304,512], index: 1, kind: input, shape index: {}]   ;;  %s2582_s2 = inlined_call_operand.vmem [shape: f32[8,512], index: 2, kind: output, shape index: {}]  }
   0x1   :  { %s2304_s11 = smov 0  }
   0x2 LB: > { %s21_s12 = sadd.s32 1, %s2278_s10  ;;  %p1733_p0 = scmp.ge.s32.totalorder %s2282_s11, 1  ;;  %s2282_s11 = sphi %s2304_s11, %s12_s11   ;;  %s2278_s10 = sphi %s2302_s10, %s2584_s10   ;;  %s2274_s9 = sphi %s2300_s9, %s2583_s9  }
   0x3   : > { %p22_p1 = scmp.ge.s32.totalorder %s21_s12, 3  ;;  %p143_p2 = scmp.lt.s32.totalorder %s2282_s11, 4 }
   0x5   : > { %s2586_s12 = smov (%p22_p1, %s21_s12), 0  ;;  %p144_p3 = pnand %p1733_p0, %p143_p2 }
   0x6   : > { %s175_s13 = smul.u32 (!%p144_p3), 6, %s2274_s9  ;;  %p1737_p6 = scmp.ne.s32.totalorder (!%p144_p3), %s2274_s9, 0 }
   0x7   : > { %147 = sbr.rel (%p144_p3) target bundleno = 445 (0x1bd), region = 28 }
   0x8   : > { %s185_s14 = smul.u32 (!%p144_p3), 96, %s2274_s9  ;;  %p178_p4 = scmp.lt.s32.totalorder (!%p144_p3), %s175_s13, 17 }
   0xa   : > { %p186_p5 = scmp.lt.s32.totalorder (!%p144_p3), %s185_s14, 287 }
   0xe   : > { %s2588_s13 = smov (!%p178_p4, %s175_s13), 17  ;;  %s2590_s14 = smov (!%p186_p5, %s185_s14), 287 }
   0xf   : > { %s1734_s15 = sshll.u32 %s2588_s13, 2  ;;  %s1940_s19 = sshll.u32 %s2590_s14, 4  ;;  %v2284_v0 = vmov (!%p1737_p6), 0.0  }
  0x10   : > { %s2325_s18 = scalar_lea.vmem %s2580_s0, %s1734_s15  ;;  %s2330_s22 = scalar_lea.vmem %s2581_s1, %s1940_s19  ;;  %201 = vst [vmem:[#allocation2] sm:$0xff] (!%p1737_p6), %v2284_v0  ;;  %202 = vst [vmem:[#allocation2 + $0x8] sm:$0xff] (!%p1737_p6), %v2284_v0 }
  0x11   : > { %200 = sbr.rel (%p1737_p6) target bundleno = 24 (0x18), region = 32  ;;  %203 = vst [vmem:[#allocation2 + $0x10] sm:$0xff] (!%p1737_p6), %v2284_v0  ;;  %204 = vst [vmem:[#allocation2 + $0x18] sm:$0xff] (!%p1737_p6), %v2284_v0 }
  0x18 PF: > { %v1966_v1 = vld [vmem:[%s2330_s22 + $0x4] ss:$16 sps:$4 sm:$0xff]   ;;  %v1970_v3 = vld [vmem:[%s2330_s22] ss:$16 sps:$4 sm:$0xff]   ;;  %v210_v49 = vld [vmem:[%s2325_s18 + $0x8] sm:$0xff]  ;;  %p1936_p7 = scmp.ne.s32.totalorder %s2274_s9, 2 }
  0x19   : > { %v1968_v2 = vld [vmem:[%s2330_s22 + $0x204] ss:$16 sps:$4 sm:$0xff]   ;;  %1385 = vmatprep.subr.bf16.mxu0 %v1966_v1  ;;  %v1971_v4 = vld [vmem:[%s2330_s22 + $0x200] ss:$16 sps:$4 sm:$0xff]   ;;  %v2385_v52 = vcombine.high %v210_v49, %v210_v49 }
  0x1a   : > { %1426 = vmatprep.subr.bf16.mxu1 %v1968_v2  ;;  %v1972_v5 = vld [vmem:[%s2330_s22 + $0x24] ss:$16 sps:$4 sm:$0xff]   ;;  %1386 = vmatpush1.bf16.msra.mxu0 %v1970_v3  ;;  %v1976_v7 = vld [vmem:[%s2330_s22 + $0x20] ss:$16 sps:$4 sm:$0xff]  }
  0x1b   : > { %1427 = vmatpush1.bf16.msra.mxu1 %v1971_v4  ;;  %v1974_v6 = vld [vmem:[%s2330_s22 + $0x224] ss:$16 sps:$4 sm:$0xff]   ;;  %1387 = vmatprep.subr.bf16.mxu0 %v1972_v5  ;;  %v1977_v8 = vld [vmem:[%s2330_s22 + $0x220] ss:$16 sps:$4 sm:$0xff]  }
  0x1c   : > { %1428 = vmatprep.subr.bf16.mxu1 %v1974_v6  ;;  %v1978_v9 = vld [vmem:[%s2330_s22 + $0x44] ss:$16 sps:$4 sm:$0xff]   ;;  %v1982_v11 = vld [vmem:[%s2330_s22 + $0x40] ss:$16 sps:$4 sm:$0xff]   ;;  %1458 = vmatprep.mubr.bf16.mxu1 %v2385_v52  ;;  %v2071_v6 = vld [vmem:[%s2330_s22 + $0xc] ss:$16 sps:$4 sm:$0xff]  }
  0x1d   : > { %v1980_v10 = vld [vmem:[%s2330_s22 + $0x244] ss:$16 sps:$4 sm:$0xff]   ;;  %v1983_v12 = vld [vmem:[%s2330_s22 + $0x240] ss:$16 sps:$4 sm:$0xff]  }
  0x1e   : > { %1388 = vmatpush1.bf16.msra.mxu0 %v1976_v7  ;;  %v1984_v13 = vld [vmem:[%s2330_s22 + $0x64] ss:$16 sps:$4 sm:$0xff]   ;;  %v1988_v15 = vld [vmem:[%s2330_s22 + $0x60] ss:$16 sps:$4 sm:$0xff]  }
  0x1f   : > { %1429 = vmatpush1.bf16.msra.mxu1 %v1977_v8  ;;  %1389 = vmatprep.subr.bf16.mxu0 %v1978_v9  ;;  %v1986_v14 = vld [vmem:[%s2330_s22 + $0x264] ss:$16 sps:$4 sm:$0xff]   ;;  %v1989_v16 = vld [vmem:[%s2330_s22 + $0x260] ss:$16 sps:$4 sm:$0xff]   ;;  %v2409_v8 = vcombine.low %v210_v49, %v210_v49 }
  0x20   : > { %1430 = vmatprep.subr.bf16.mxu1 %v1980_v10  ;;  %v1990_v17 = vld [vmem:[%s2330_s22 + $0x84] ss:$16 sps:$4 sm:$0xff]   ;;  %v1994_v19 = vld [vmem:[%s2330_s22 + $0x80] ss:$16 sps:$4 sm:$0xff]   ;;  %v2069_v10 = vld [vmem:[%s2330_s22 + $0x8] ss:$16 sps:$4 sm:$0xff]  }
  0x21   : > { %v1992_v18 = vld [vmem:[%s2330_s22 + $0x284] ss:$16 sps:$4 sm:$0xff]   ;;  %v1995_v20 = vld [vmem:[%s2330_s22 + $0x280] ss:$16 sps:$4 sm:$0xff]  }
  0x22   : > { %1390 = vmatpush1.bf16.msra.mxu0 %v1982_v11  ;;  %v1996_v21 = vld [vmem:[%s2330_s22 + $0xa4] ss:$16 sps:$4 sm:$0xff]   ;;  %v2000_v23 = vld [vmem:[%s2330_s22 + $0xa0] ss:$16 sps:$4 sm:$0xff]  }
  0x23   : > { %1431 = vmatpush1.bf16.msra.mxu1 %v1983_v12  ;;  %1391 = vmatprep.subr.bf16.mxu0 %v1984_v13  ;;  %v1998_v22 = vld [vmem:[%s2330_s22 + $0x2a4] ss:$16 sps:$4 sm:$0xff]   ;;  %v2001_v24 = vld [vmem:[%s2330_s22 + $0x2a0] ss:$16 sps:$4 sm:$0xff]   ;;  %v2077_v12 = vld [vmem:[%s2330_s22 + $0x2c] ss:$16 sps:$4 sm:$0xff]  }
  0x24   : > { %1432 = vmatprep.subr.bf16.mxu1 %v1986_v14  ;;  %v2002_v25 = vld [vmem:[%s2330_s22 + $0xc4] ss:$16 sps:$4 sm:$0xff]   ;;  %v2006_v27 = vld [vmem:[%s2330_s22 + $0xc0] ss:$16 sps:$4 sm:$0xff]   ;;  %v2075_v14 = vld [vmem:[%s2330_s22 + $0x28] ss:$16 sps:$4 sm:$0xff]  }
  0x25   : > { %v2004_v26 = vld [vmem:[%s2330_s22 + $0x2c4] ss:$16 sps:$4 sm:$0xff]   ;;  %v2007_v28 = vld [vmem:[%s2330_s22 + $0x2c0] ss:$16 sps:$4 sm:$0xff]  }
  0x26   : > { %1392 = vmatpush1.bf16.msra.mxu0 %v1988_v15  ;;  %v2008_v29 = vld [vmem:[%s2330_s22 + $0xe4] ss:$16 sps:$4 sm:$0xff]   ;;  %v2012_v31 = vld [vmem:[%s2330_s22 + $0xe0] ss:$16 sps:$4 sm:$0xff]  }
  0x27   : > { %1433 = vmatpush1.bf16.msra.mxu1 %v1989_v16  ;;  %1393 = vmatprep.subr.bf16.mxu0 %v1990_v17  ;;  %v2010_v30 = vld [vmem:[%s2330_s22 + $0x2e4] ss:$16 sps:$4 sm:$0xff]   ;;  %v2013_v32 = vld [vmem:[%s2330_s22 + $0x2e0] ss:$16 sps:$4 sm:$0xff]   ;;  %v2083_v16 = vld [vmem:[%s2330_s22 + $0x4c] ss:$16 sps:$4 sm:$0xff]  }
  0x28   : > { %1434 = vmatprep.subr.bf16.mxu1 %v1992_v18  ;;  %v2014_v33 = vld [vmem:[%s2330_s22 + $0x104] ss:$16 sps:$4 sm:$0xff]   ;;  %v2018_v35 = vld [vmem:[%s2330_s22 + $0x100] ss:$16 sps:$4 sm:$0xff]   ;;  %v2081_v18 = vld [vmem:[%s2330_s22 + $0x48] ss:$16 sps:$4 sm:$0xff]  }
  0x29   : > { %v2016_v34 = vld [vmem:[%s2330_s22 + $0x304] ss:$16 sps:$4 sm:$0xff]   ;;  %v2019_v36 = vld [vmem:[%s2330_s22 + $0x300] ss:$16 sps:$4 sm:$0xff]  }
  0x2a   : > { %1394 = vmatpush1.bf16.msra.mxu0 %v1994_v19  ;;  %v2020_v37 = vld [vmem:[%s2330_s22 + $0x124] ss:$16 sps:$4 sm:$0xff]   ;;  %v2024_v39 = vld [vmem:[%s2330_s22 + $0x120] ss:$16 sps:$4 sm:$0xff]  }
  0x2b   : > { %1435 = vmatpush1.bf16.msra.mxu1 %v1995_v20  ;;  %1395 = vmatprep.subr.bf16.mxu0 %v1996_v21  ;;  %v2022_v38 = vld [vmem:[%s2330_s22 + $0x324] ss:$16 sps:$4 sm:$0xff]   ;;  %v2025_v40 = vld [vmem:[%s2330_s22 + $0x320] ss:$16 sps:$4 sm:$0xff]   ;;  %v2089_v20 = vld [vmem:[%s2330_s22 + $0x6c] ss:$16 sps:$4 sm:$0xff]  }
  0x2c   : > { %1436 = vmatprep.subr.bf16.mxu1 %v1998_v22  ;;  %v2026_v41 = vld [vmem:[%s2330_s22 + $0x144] ss:$16 sps:$4 sm:$0xff]   ;;  %v2030_v43 = vld [vmem:[%s2330_s22 + $0x140] ss:$16 sps:$4 sm:$0xff]   ;;  %v2087_v22 = vld [vmem:[%s2330_s22 + $0x68] ss:$16 sps:$4 sm:$0xff]  }
  0x2d   : > { %v2028_v42 = vld [vmem:[%s2330_s22 + $0x344] ss:$16 sps:$4 sm:$0xff]   ;;  %v2031_v44 = vld [vmem:[%s2330_s22 + $0x340] ss:$16 sps:$4 sm:$0xff]  }
  0x2e   : > { %1396 = vmatpush1.bf16.msra.mxu0 %v2000_v23  ;;  %v2032_v45 = vld [vmem:[%s2330_s22 + $0x164] ss:$16 sps:$4 sm:$0xff]   ;;  %v2036_v50 = vld [vmem:[%s2330_s22 + $0x160] ss:$16 sps:$4 sm:$0xff]  }
  0x2f   : > { %1437 = vmatpush1.bf16.msra.mxu1 %v2001_v24  ;;  %1397 = vmatprep.subr.bf16.mxu0 %v2002_v25  ;;  %v2034_v46 = vld [vmem:[%s2330_s22 + $0x364] ss:$16 sps:$4 sm:$0xff]   ;;  %v2037_v51 = vld [vmem:[%s2330_s22 + $0x360] ss:$16 sps:$4 sm:$0xff]   ;;  %v2095_v24 = vld [vmem:[%s2330_s22 + $0x8c] ss:$16 sps:$4 sm:$0xff]  }
  0x30   : > { %1438 = vmatprep.subr.bf16.mxu1 %v2004_v26  ;;  %v209_v47 = vld [vmem:[%s2325_s18] sm:$0xff]  ;;  %v2093_v26 = vld [vmem:[%s2330_s22 + $0x88] ss:$16 sps:$4 sm:$0xff]  }
  0x31   : > { %v2380_v48 = vcombine.high %v209_v47, %v209_v47  ;;  %v2038_v53 = vld [vmem:[%s2330_s22 + $0x184] ss:$16 sps:$4 sm:$0xff]   ;;  %v2042_v55 = vld [vmem:[%s2330_s22 + $0x180] ss:$16 sps:$4 sm:$0xff]   ;;  %v2407_v7 = vcombine.low %v209_v47, %v209_v47 }
  0x32   : > { %1398 = vmatpush1.bf16.msra.mxu0 %v2006_v27  ;;  %v2040_v54 = vld [vmem:[%s2330_s22 + $0x384] ss:$16 sps:$4 sm:$0xff]   ;;  %v2043_v56 = vld [vmem:[%s2330_s22 + $0x380] ss:$16 sps:$4 sm:$0xff]  }
  0x33   : > { %1439 = vmatpush1.bf16.msra.mxu1 %v2007_v28  ;;  %1399 = vmatprep.subr.bf16.mxu0 %v2008_v29  ;;  %v2044_v57 = vld [vmem:[%s2330_s22 + $0x1a4] ss:$16 sps:$4 sm:$0xff]   ;;  %v2048_v59 = vld [vmem:[%s2330_s22 + $0x1a0] ss:$16 sps:$4 sm:$0xff]   ;;  %v2101_v28 = vld [vmem:[%s2330_s22 + $0xac] ss:$16 sps:$4 sm:$0xff]  }
  0x34   : > { %1440 = vmatprep.subr.bf16.mxu1 %v2010_v30  ;;  %1417 = vmatprep.mubr.bf16.mxu0 %v2380_v48  ;;  %v2046_v58 = vld [vmem:[%s2330_s22 + $0x3a4] ss:$16 sps:$4 sm:$0xff]   ;;  %v2049_v60 = vld [vmem:[%s2330_s22 + $0x3a0] ss:$16 sps:$4 sm:$0xff]   ;;  %v2099_v30 = vld [vmem:[%s2330_s22 + $0xa8] ss:$16 sps:$4 sm:$0xff]  }
  0x35   : > { %v2050_v61 = vld [vmem:[%s2330_s22 + $0x1c4] ss:$16 sps:$4 sm:$0xff]   ;;  %v2054_v63 = vld [vmem:[%s2330_s22 + $0x1c0] ss:$16 sps:$4 sm:$0xff]  }
  0x36   : > { %1400 = vmatpush1.bf16.msra.mxu0 %v2012_v31  ;;  %v2052_v62 = vld [vmem:[%s2330_s22 + $0x3c4] ss:$16 sps:$4 sm:$0xff]   ;;  %v2055_v0 = vld [vmem:[%s2330_s22 + $0x3c0] ss:$16 sps:$4 sm:$0xff]  }
  0x37   : > { %1441 = vmatpush1.bf16.msra.mxu1 %v2013_v32  ;;  %1401 = vmatprep.subr.bf16.mxu0 %v2014_v33  ;;  %v2056_v1 = vld [vmem:[%s2330_s22 + $0x1e4] ss:$16 sps:$4 sm:$0xff]   ;;  %v2060_v3 = vld [vmem:[%s2330_s22 + $0x1e0] ss:$16 sps:$4 sm:$0xff]   ;;  %v2107_v32 = vld [vmem:[%s2330_s22 + $0xcc] ss:$16 sps:$4 sm:$0xff]  }
  0x38   : > { %1442 = vmatprep.subr.bf16.mxu1 %v2016_v34  ;;  %v2058_v2 = vld [vmem:[%s2330_s22 + $0x3e4] ss:$16 sps:$4 sm:$0xff]   ;;  %v2061_v4 = vld [vmem:[%s2330_s22 + $0x3e0] ss:$16 sps:$4 sm:$0xff]  }
  0x39   : > { %v2068_v5 = vld [vmem:[%s2330_s22 + $0x404] ss:$16 sps:$4 sm:$0xff]   ;;  %v2066_v9 = vld [vmem:[%s2330_s22 + $0x400] ss:$16 sps:$4 sm:$0xff]  }
  0x3a   : > { %1402 = vmatpush1.bf16.msra.mxu0 %v2018_v35  ;;  %v2074_v11 = vld [vmem:[%s2330_s22 + $0x424] ss:$16 sps:$4 sm:$0xff]   ;;  %v2072_v13 = vld [vmem:[%s2330_s22 + $0x420] ss:$16 sps:$4 sm:$0xff]  }
  0x3b   : > { %1443 = vmatpush1.bf16.msra.mxu1 %v2019_v36  ;;  %1403 = vmatprep.subr.bf16.mxu0 %v2020_v37  ;;  %v2080_v15 = vld [vmem:[%s2330_s22 + $0x444] ss:$16 sps:$4 sm:$0xff]   ;;  %v2078_v17 = vld [vmem:[%s2330_s22 + $0x440] ss:$16 sps:$4 sm:$0xff]   ;;  %v2105_v36 = vld [vmem:[%s2330_s22 + $0xc8] ss:$16 sps:$4 sm:$0xff]  }
  0x3c   : > { %1444 = vmatprep.subr.bf16.mxu1 %v2022_v38  ;;  %v2086_v19 = vld [vmem:[%s2330_s22 + $0x464] ss:$16 sps:$4 sm:$0xff]   ;;  %v2084_v21 = vld [vmem:[%s2330_s22 + $0x460] ss:$16 sps:$4 sm:$0xff]   ;;  %v2113_v38 = vld [vmem:[%s2330_s22 + $0xec] ss:$16 sps:$4 sm:$0xff]  }
  0x3d   : > { %v2092_v23 = vld [vmem:[%s2330_s22 + $0x484] ss:$16 sps:$4 sm:$0xff]   ;;  %v2090_v25 = vld [vmem:[%s2330_s22 + $0x480] ss:$16 sps:$4 sm:$0xff]  }
  0x3e   : > { %1404 = vmatpush1.bf16.msra.mxu0 %v2024_v39  ;;  %v2098_v27 = vld [vmem:[%s2330_s22 + $0x4a4] ss:$16 sps:$4 sm:$0xff]   ;;  %v2096_v29 = vld [vmem:[%s2330_s22 + $0x4a0] ss:$16 sps:$4 sm:$0xff]  }
  0x3f   : > { %1445 = vmatpush1.bf16.msra.mxu1 %v2025_v40  ;;  %1405 = vmatprep.subr.bf16.mxu0 %v2026_v41  ;;  %v2104_v31 = vld [vmem:[%s2330_s22 + $0x4c4] ss:$16 sps:$4 sm:$0xff]   ;;  %v2102_v34 = vld [vmem:[%s2330_s22 + $0x4c0] ss:$16 sps:$4 sm:$0xff]   ;;  %v2111_v40 = vld [vmem:[%s2330_s22 + $0xe8] ss:$16 sps:$4 sm:$0xff]  }
  0x40   : > { %1446 = vmatprep.subr.bf16.mxu1 %v2028_v42  ;;  %v2439_v33 = vld [vmem:[%s2325_s18 + $0x10] sm:$0xff]  ;;  %v2119_v42 = vld [vmem:[%s2330_s22 + $0x10c] ss:$16 sps:$4 sm:$0xff]  }
  0x41   : > { %v2444_v35 = vcombine.high %v2439_v33, %v2439_v33  ;;  %v2110_v37 = vld [vmem:[%s2330_s22 + $0x4e4] ss:$16 sps:$4 sm:$0xff]   ;;  %v2108_v39 = vld [vmem:[%s2330_s22 + $0x4e0] ss:$16 sps:$4 sm:$0xff]  }
  0x42   : > { %1406 = vmatpush1.bf16.msra.mxu0 %v2030_v43  ;;  %v2116_v41 = vld [vmem:[%s2330_s22 + $0x504] ss:$16 sps:$4 sm:$0xff]   ;;  %v2114_v43 = vld [vmem:[%s2330_s22 + $0x500] ss:$16 sps:$4 sm:$0xff]  }
  0x43   : > { %1447 = vmatpush1.bf16.msra.mxu1 %v2031_v44  ;;  %1407 = vmatprep.subr.bf16.mxu0 %v2032_v45  ;;  %v2117_v44 = vld [vmem:[%s2330_s22 + $0x108] ss:$16 sps:$4 sm:$0xff]   ;;  %v2122_v45 = vld [vmem:[%s2330_s22 + $0x524] ss:$16 sps:$4 sm:$0xff]   ;;  %v2120_v47 = vld [vmem:[%s2330_s22 + $0x520] ss:$16 sps:$4 sm:$0xff]  }
  0x44   : > { %1448 = vmatprep.subr.bf16.mxu1 %v2034_v46  ;;  %v2125_v46 = vld [vmem:[%s2330_s22 + $0x12c] ss:$16 sps:$4 sm:$0xff]   ;;  %v2128_v49 = vld [vmem:[%s2330_s22 + $0x544] ss:$16 sps:$4 sm:$0xff]  }
  0x46   : > { %1408 = vmatpush1.bf16.msra.mxu0 %v2036_v50  ;;  %v2131_v50 = vld [vmem:[%s2330_s22 + $0x14c] ss:$16 sps:$4 sm:$0xff]  }
  0x47   : > { %1449 = vmatpush1.bf16.msra.mxu1 %v2037_v51  ;;  %1409 = vmatprep.subr.bf16.mxu0 %v2038_v53  ;;  %v2126_v51 = vld [vmem:[%s2330_s22 + $0x540] ss:$16 sps:$4 sm:$0xff]   ;;  %v2129_v53 = vld [vmem:[%s2330_s22 + $0x148] ss:$16 sps:$4 sm:$0xff]  }
  0x48   : > { %1450 = vmatprep.subr.bf16.mxu1 %v2040_v54  ;;  %v2134_v54 = vld [vmem:[%s2330_s22 + $0x564] ss:$16 sps:$4 sm:$0xff]  }
  0x4a   : > { %1410 = vmatpush1.bf16.msra.mxu0 %v2042_v55  ;;  %v2137_v55 = vld [vmem:[%s2330_s22 + $0x16c] ss:$16 sps:$4 sm:$0xff]  }
  0x4b   : > { %1451 = vmatpush1.bf16.msra.mxu1 %v2043_v56  ;;  %1411 = vmatprep.subr.bf16.mxu0 %v2044_v57  ;;  %v2132_v56 = vld [vmem:[%s2330_s22 + $0x560] ss:$16 sps:$4 sm:$0xff]   ;;  %v2135_v57 = vld [vmem:[%s2330_s22 + $0x168] ss:$16 sps:$4 sm:$0xff]  }
  0x4c   : > { %1452 = vmatprep.subr.bf16.mxu1 %v2046_v58  ;;  %v2140_v58 = vld [vmem:[%s2330_s22 + $0x584] ss:$16 sps:$4 sm:$0xff]  }
  0x4e   : > { %1412 = vmatpush1.bf16.msra.mxu0 %v2048_v59  ;;  %v2143_v59 = vld [vmem:[%s2330_s22 + $0x18c] ss:$16 sps:$4 sm:$0xff]  }
  0x4f   : > { %1453 = vmatpush1.bf16.msra.mxu1 %v2049_v60  ;;  %1413 = vmatprep.subr.bf16.mxu0 %v2050_v61  ;;  %v2138_v60 = vld [vmem:[%s2330_s22 + $0x580] ss:$16 sps:$4 sm:$0xff]   ;;  %v2141_v61 = vld [vmem:[%s2330_s22 + $0x188] ss:$16 sps:$4 sm:$0xff]  }
  0x50   : > { %1454 = vmatprep.subr.bf16.mxu1 %v2052_v62  ;;  %v2146_v62 = vld [vmem:[%s2330_s22 + $0x5a4] ss:$16 sps:$4 sm:$0xff]  }
  0x52   : > { %1414 = vmatpush1.bf16.msra.mxu0 %v2054_v63  ;;  %v2149_v63 = vld [vmem:[%s2330_s22 + $0x1ac] ss:$16 sps:$4 sm:$0xff]  }
  0x53   : > { %1455 = vmatpush1.bf16.msra.mxu1 %v2055_v0  ;;  %1415 = vmatprep.subr.bf16.mxu0 %v2056_v1  ;;  %v2144_v0 = vld [vmem:[%s2330_s22 + $0x5a0] ss:$16 sps:$4 sm:$0xff]   ;;  %v2147_v1 = vld [vmem:[%s2330_s22 + $0x1a8] ss:$16 sps:$4 sm:$0xff]  }
  0x54   : > { %1456 = vmatprep.subr.bf16.mxu1 %v2058_v2  ;;  %v2152_v2 = vld [vmem:[%s2330_s22 + $0x5c4] ss:$16 sps:$4 sm:$0xff]  }
  0x56   : > { %1416 = vmatpush1.bf16.msra.mxu0 %v2060_v3  ;;  %v2155_v3 = vld [vmem:[%s2330_s22 + $0x1cc] ss:$16 sps:$4 sm:$0xff]  }
  0x57   : > { %1457 = vmatpush1.bf16.msra.mxu1 %v2061_v4  ;;  %1467 = vmatprep.subr.bf16.mxu0 %v2068_v5  ;;  %v2150_v4 = vld [vmem:[%s2330_s22 + $0x5c0] ss:$16 sps:$4 sm:$0xff]   ;;  %v2153_v5 = vld [vmem:[%s2330_s22 + $0x1c8] ss:$16 sps:$4 sm:$0xff]  }
  0x58   : > { %1508 = vmatprep.subr.bf16.mxu1 %v2071_v6  ;;  %v2158_v6 = vld [vmem:[%s2330_s22 + $0x5e4] ss:$16 sps:$4 sm:$0xff]  }
  0x59   : > { %1418 = vmatmul.mubr.bf16.vlgmr.msra.gmra.mrb[0].mxu0 %v2407_v7 }
  0x5a   : > { %1459 = vmatmul.mubr.bf16.vlgmr.msra.gmra.mrb[0].mxu1 %v2409_v8  ;;  %1468 = vmatpush1.bf16.msra.mxu0 %v2066_v9  ;;  %v2161_v9 = vld [vmem:[%s2330_s22 + $0x1ec] ss:$16 sps:$4 sm:$0xff]  }
  0x5b   : > { %1509 = vmatpush1.bf16.msra.mxu1 %v2069_v10  ;;  %1469 = vmatprep.subr.bf16.mxu0 %v2074_v11  ;;  %v2156_v10 = vld [vmem:[%s2330_s22 + $0x5e0] ss:$16 sps:$4 sm:$0xff]   ;;  %v2159_v11 = vld [vmem:[%s2330_s22 + $0x1e8] ss:$16 sps:$4 sm:$0xff]  }
  0x5c   : > { %1510 = vmatprep.subr.bf16.mxu1 %v2077_v12  ;;  %1540 = vmatprep.mubr.bf16.mxu1 %v2380_v48  ;;  %v2123_v48 = vld [vmem:[%s2330_s22 + $0x128] ss:$16 sps:$4 sm:$0xff]   ;;  %v2166_v12 = vld [vmem:[%s2330_s22 + $0x20c] ss:$16 sps:$4 sm:$0xff]  }
  0x5d   : > { %1499 = vmatprep.mubr.bf16.mxu0 %v2444_v35 }
  0x5e   : > { %1470 = vmatpush1.bf16.msra.mxu0 %v2072_v13  ;;  %v2169_v13 = vld [vmem:[%s2330_s22 + $0x40c] ss:$16 sps:$4 sm:$0xff]  }
  0x5f   : > { %1511 = vmatpush1.bf16.msra.mxu1 %v2075_v14  ;;  %1471 = vmatprep.subr.bf16.mxu0 %v2080_v15  ;;  %v2488_v14 = vcombine.low %v2439_v33, %v2439_v33  ;;  %v2164_v15 = vld [vmem:[%s2330_s22 + $0x208] ss:$16 sps:$4 sm:$0xff]  }
  0x60   : > { %1512 = vmatprep.subr.bf16.mxu1 %v2083_v16  ;;  %v2167_v16 = vld [vmem:[%s2330_s22 + $0x408] ss:$16 sps:$4 sm:$0xff]  }
  0x61   : > { %v2194_v33 = vld [vmem:[%s2330_s22 + $0x2a8] ss:$16 sps:$4 sm:$0xff]  }
  0x62   : > { %1472 = vmatpush1.bf16.msra.mxu0 %v2078_v17  ;;  %v2172_v17 = vld [vmem:[%s2330_s22 + $0x22c] ss:$16 sps:$4 sm:$0xff]  }
  0x63   : > { %1513 = vmatpush1.bf16.msra.mxu1 %v2081_v18  ;;  %1473 = vmatprep.subr.bf16.mxu0 %v2086_v19  ;;  %v2175_v18 = vld [vmem:[%s2330_s22 + $0x42c] ss:$16 sps:$4 sm:$0xff]   ;;  %v2170_v19 = vld [vmem:[%s2330_s22 + $0x228] ss:$16 sps:$4 sm:$0xff]  }
  0x64   : > { %1514 = vmatprep.subr.bf16.mxu1 %v2089_v20  ;;  %v2173_v20 = vld [vmem:[%s2330_s22 + $0x428] ss:$16 sps:$4 sm:$0xff]  }
  0x66   : > { %1474 = vmatpush1.bf16.msra.mxu0 %v2084_v21  ;;  %v2178_v21 = vld [vmem:[%s2330_s22 + $0x24c] ss:$16 sps:$4 sm:$0xff]  }
  0x67   : > { %1515 = vmatpush1.bf16.msra.mxu1 %v2087_v22  ;;  %1475 = vmatprep.subr.bf16.mxu0 %v2092_v23  ;;  %v2181_v22 = vld [vmem:[%s2330_s22 + $0x44c] ss:$16 sps:$4 sm:$0xff]   ;;  %v2179_v23 = vld [vmem:[%s2330_s22 + $0x448] ss:$16 sps:$4 sm:$0xff]  }
  0x68   : > { %1516 = vmatprep.subr.bf16.mxu1 %v2095_v24  ;;  %v2184_v24 = vld [vmem:[%s2330_s22 + $0x26c] ss:$16 sps:$4 sm:$0xff]  }
  0x6a   : > { %1476 = vmatpush1.bf16.msra.mxu0 %v2090_v25  ;;  %v2187_v25 = vld [vmem:[%s2330_s22 + $0x46c] ss:$16 sps:$4 sm:$0xff]  }
  0x6b   : > { %1517 = vmatpush1.bf16.msra.mxu1 %v2093_v26  ;;  %1477 = vmatprep.subr.bf16.mxu0 %v2098_v27  ;;  %v2182_v26 = vld [vmem:[%s2330_s22 + $0x268] ss:$16 sps:$4 sm:$0xff]   ;;  %v2190_v27 = vld [vmem:[%s2330_s22 + $0x28c] ss:$16 sps:$4 sm:$0xff]  }
  0x6c   : > { %1518 = vmatprep.subr.bf16.mxu1 %v2101_v28  ;;  %v2193_v28 = vld [vmem:[%s2330_s22 + $0x48c] ss:$16 sps:$4 sm:$0xff]  }
  0x6e   : > { %1478 = vmatpush1.bf16.msra.mxu0 %v2096_v29  ;;  %v2188_v29 = vld [vmem:[%s2330_s22 + $0x288] ss:$16 sps:$4 sm:$0xff]  }
  0x6f   : > { %1519 = vmatpush1.bf16.msra.mxu1 %v2099_v30  ;;  %1479 = vmatprep.subr.bf16.mxu0 %v2104_v31  ;;  %v2191_v30 = vld [vmem:[%s2330_s22 + $0x488] ss:$16 sps:$4 sm:$0xff]   ;;  %v2196_v31 = vld [vmem:[%s2330_s22 + $0x2ac] ss:$16 sps:$4 sm:$0xff]  }
  0x70   : > { %1520 = vmatprep.subr.bf16.mxu1 %v2107_v32  ;;  %v2199_v32 = vld [vmem:[%s2330_s22 + $0x4ac] ss:$16 sps:$4 sm:$0xff]  }
  0x72   : > { %1480 = vmatpush1.bf16.msra.mxu0 %v2102_v34  ;;  %v2197_v34 = vld [vmem:[%s2330_s22 + $0x4a8] ss:$16 sps:$4 sm:$0xff]  }
  0x73   : > { %1521 = vmatpush1.bf16.msra.mxu1 %v2105_v36  ;;  %1481 = vmatprep.subr.bf16.mxu0 %v2110_v37  ;;  %v2205_v36 = vld [vmem:[%s2330_s22 + $0x4cc] ss:$16 sps:$4 sm:$0xff]   ;;  %v2200_v37 = vld [vmem:[%s2330_s22 + $0x2c8] ss:$16 sps:$4 sm:$0xff]  }
  0x74   : > { %1522 = vmatprep.subr.bf16.mxu1 %v2113_v38  ;;  %v2203_v38 = vld [vmem:[%s2330_s22 + $0x4c8] ss:$16 sps:$4 sm:$0xff]  }
  0x76   : > { %1482 = vmatpush1.bf16.msra.mxu0 %v2108_v39  ;;  %v2208_v39 = vld [vmem:[%s2330_s22 + $0x2ec] ss:$16 sps:$4 sm:$0xff]  }
  0x77   : > { %1523 = vmatpush1.bf16.msra.mxu1 %v2111_v40  ;;  %1483 = vmatprep.subr.bf16.mxu0 %v2116_v41  ;;  %v2211_v40 = vld [vmem:[%s2330_s22 + $0x4ec] ss:$16 sps:$4 sm:$0xff]   ;;  %v2206_v41 = vld [vmem:[%s2330_s22 + $0x2e8] ss:$16 sps:$4 sm:$0xff]  }
  0x78   : > { %1524 = vmatprep.subr.bf16.mxu1 %v2119_v42  ;;  %v2209_v42 = vld [vmem:[%s2330_s22 + $0x4e8] ss:$16 sps:$4 sm:$0xff]  }
  0x7a   : > { %1484 = vmatpush1.bf16.msra.mxu0 %v2114_v43  ;;  %v2214_v43 = vld [vmem:[%s2330_s22 + $0x30c] ss:$16 sps:$4 sm:$0xff]  }
  0x7b   : > { %1525 = vmatpush1.bf16.msra.mxu1 %v2117_v44  ;;  %1485 = vmatprep.subr.bf16.mxu0 %v2122_v45  ;;  %v2217_v44 = vld [vmem:[%s2330_s22 + $0x50c] ss:$16 sps:$4 sm:$0xff]   ;;  %v2212_v45 = vld [vmem:[%s2330_s22 + $0x308] ss:$16 sps:$4 sm:$0xff]  }
  0x7c   : > { %1526 = vmatprep.subr.bf16.mxu1 %v2125_v46  ;;  %v2215_v46 = vld [vmem:[%s2330_s22 + $0x508] ss:$16 sps:$4 sm:$0xff]  }
  0x7e   : > { %1486 = vmatpush1.bf16.msra.mxu0 %v2120_v47  ;;  %v2220_v47 = vld [vmem:[%s2330_s22 + $0x32c] ss:$16 sps:$4 sm:$0xff]  }
  0x7f   : > { %1527 = vmatpush1.bf16.msra.mxu1 %v2123_v48  ;;  %1487 = vmatprep.subr.bf16.mxu0 %v2128_v49  ;;  %v2223_v48 = vld [vmem:[%s2330_s22 + $0x52c] ss:$16 sps:$4 sm:$0xff]   ;;  %v2218_v49 = vld [vmem:[%s2330_s22 + $0x328] ss:$16 sps:$4 sm:$0xff]  }
  0x80   : > { %1528 = vmatprep.subr.bf16.mxu1 %v2131_v50  ;;  %v2221_v50 = vld [vmem:[%s2330_s22 + $0x528] ss:$16 sps:$4 sm:$0xff]  }
  0x82   : > { %1488 = vmatpush1.bf16.msra.mxu0 %v2126_v51  ;;  %v2226_v51 = vld [vmem:[%s2330_s22 + $0x34c] ss:$16 sps:$4 sm:$0xff]  }
  0x83   : > { %1529 = vmatpush1.bf16.msra.mxu1 %v2129_v53  ;;  %1489 = vmatprep.subr.bf16.mxu0 %v2134_v54  ;;  %v2229_v53 = vld [vmem:[%s2330_s22 + $0x54c] ss:$16 sps:$4 sm:$0xff]   ;;  %v2224_v54 = vld [vmem:[%s2330_s22 + $0x348] ss:$16 sps:$4 sm:$0xff]  }
  0x84   : > { %1530 = vmatprep.subr.bf16.mxu1 %v2137_v55  ;;  %v2227_v55 = vld [vmem:[%s2330_s22 + $0x548] ss:$16 sps:$4 sm:$0xff]  }
  0x86   : > { %1490 = vmatpush1.bf16.msra.mxu0 %v2132_v56  ;;  %v2232_v56 = vld [vmem:[%s2330_s22 + $0x36c] ss:$16 sps:$4 sm:$0xff]  }
  0x87   : > { %1531 = vmatpush1.bf16.msra.mxu1 %v2135_v57  ;;  %1491 = vmatprep.subr.bf16.mxu0 %v2140_v58  ;;  %v2235_v57 = vld [vmem:[%s2330_s22 + $0x56c] ss:$16 sps:$4 sm:$0xff]   ;;  %v2230_v58 = vld [vmem:[%s2330_s22 + $0x368] ss:$16 sps:$4 sm:$0xff]  }
  0x88   : > { %1532 = vmatprep.subr.bf16.mxu1 %v2143_v59  ;;  %v2233_v59 = vld [vmem:[%s2330_s22 + $0x568] ss:$16 sps:$4 sm:$0xff]  }
  0x8a   : > { %1492 = vmatpush1.bf16.msra.mxu0 %v2138_v60  ;;  %v2238_v60 = vld [vmem:[%s2330_s22 + $0x38c] ss:$16 sps:$4 sm:$0xff]  }
  0x8b   : > { %1533 = vmatpush1.bf16.msra.mxu1 %v2141_v61  ;;  %1493 = vmatprep.subr.bf16.mxu0 %v2146_v62  ;;  %v2241_v61 = vld [vmem:[%s2330_s22 + $0x58c] ss:$16 sps:$4 sm:$0xff]   ;;  %v2236_v62 = vld [vmem:[%s2330_s22 + $0x388] ss:$16 sps:$4 sm:$0xff]  }
  0x8c   : > { %1534 = vmatprep.subr.bf16.mxu1 %v2149_v63  ;;  %v2239_v63 = vld [vmem:[%s2330_s22 + $0x588] ss:$16 sps:$4 sm:$0xff]  }
  0x8e   : > { %1494 = vmatpush1.bf16.msra.mxu0 %v2144_v0  ;;  %v2244_v0 = vld [vmem:[%s2330_s22 + $0x3ac] ss:$16 sps:$4 sm:$0xff]  }
  0x8f   : > { %1535 = vmatpush1.bf16.msra.mxu1 %v2147_v1  ;;  %1495 = vmatprep.subr.bf16.mxu0 %v2152_v2  ;;  %v2247_v1 = vld [vmem:[%s2330_s22 + $0x5ac] ss:$16 sps:$4 sm:$0xff]   ;;  %v2242_v2 = vld [vmem:[%s2330_s22 + $0x3a8] ss:$16 sps:$4 sm:$0xff]  }
  0x90   : > { %1536 = vmatprep.subr.bf16.mxu1 %v2155_v3  ;;  %v2245_v3 = vld [vmem:[%s2330_s22 + $0x5a8] ss:$16 sps:$4 sm:$0xff]  }
  0x92   : > { %1496 = vmatpush1.bf16.msra.mxu0 %v2150_v4  ;;  %v2250_v4 = vld [vmem:[%s2330_s22 + $0x3cc] ss:$16 sps:$4 sm:$0xff]  }
  0x93   : > { %1537 = vmatpush1.bf16.msra.mxu1 %v2153_v5  ;;  %1497 = vmatprep.subr.bf16.mxu0 %v2158_v6  ;;  %v2253_v5 = vld [vmem:[%s2330_s22 + $0x5cc] ss:$16 sps:$4 sm:$0xff]   ;;  %v2248_v6 = vld [vmem:[%s2330_s22 + $0x3c8] ss:$16 sps:$4 sm:$0xff]  }
  0x94   : > { %1538 = vmatprep.subr.bf16.mxu1 %v2161_v9  ;;  %v2251_v9 = vld [vmem:[%s2330_s22 + $0x5c8] ss:$16 sps:$4 sm:$0xff]  }
  0x96   : > { %1498 = vmatpush1.bf16.msra.mxu0 %v2156_v10  ;;  %v2256_v10 = vld [vmem:[%s2330_s22 + $0x3ec] ss:$16 sps:$4 sm:$0xff]  }
  0x97   : > { %1539 = vmatpush1.bf16.msra.mxu1 %v2159_v11  ;;  %1549 = vmatprep.subr.bf16.mxu0 %v2166_v12  ;;  %v2259_v11 = vld [vmem:[%s2330_s22 + $0x5ec] ss:$16 sps:$4 sm:$0xff]   ;;  %v2254_v12 = vld [vmem:[%s2330_s22 + $0x3e8] ss:$16 sps:$4 sm:$0xff]  }
  0x98   : > { %1590 = vmatprep.subr.bf16.mxu1 %v2169_v13  ;;  %v2257_v13 = vld [vmem:[%s2330_s22 + $0x5e8] ss:$16 sps:$4 sm:$0xff]  }
  0x99   : > { %1500 = vmatmul.mubr.bf16.vlgmr.msra.gmra.mrb[4].mxu0 %v2488_v14 }
  0x9a   : > { %1541 = vmatmul.mubr.bf16.vlgmr.msra.gmra.mrb[4].mxu1 %v2407_v7  ;;  %1550 = vmatpush1.bf16.msra.mxu0 %v2164_v15  ;;  %v2176_v7 = vld [vmem:[%s2330_s22 + $0x248] ss:$16 sps:$4 sm:$0xff]  }
  0x9b   : > { %1591 = vmatpush1.bf16.msra.mxu1 %v2167_v16  ;;  %1551 = vmatprep.subr.bf16.mxu0 %v2172_v17 }
  0x9c   : > { %1592 = vmatprep.subr.bf16.mxu1 %v2175_v18  ;;  %1581 = vmatprep.mubr.bf16.mxu0 %v2385_v52  ;;  %v2185_v52 = vld [vmem:[%s2330_s22 + $0x468] ss:$16 sps:$4 sm:$0xff]  }
  0x9d   : > { %1622 = vmatprep.mubr.bf16.mxu1 %v2444_v35  ;;  %v2202_v35 = vld [vmem:[%s2330_s22 + $0x2cc] ss:$16 sps:$4 sm:$0xff]  }
  0x9e   : > { %1552 = vmatpush1.bf16.msra.mxu0 %v2170_v19 }
  0x9f   : > { %1593 = vmatpush1.bf16.msra.mxu1 %v2173_v20  ;;  %1553 = vmatprep.subr.bf16.mxu0 %v2178_v21 }
  0xa0   : > { %1594 = vmatprep.subr.bf16.mxu1 %v2181_v22 }
  0xa2   : > { %1554 = vmatpush1.bf16.msra.mxu0 %v2176_v7 }
  0xa3   : > { %1595 = vmatpush1.bf16.msra.mxu1 %v2179_v23  ;;  %1555 = vmatprep.subr.bf16.mxu0 %v2184_v24  ;;  %v205_v24 = vld [vmem:[#allocation2] sm:$0xff] }
  0xa4   : > { %1596 = vmatprep.subr.bf16.mxu1 %v2187_v25 }
  0xa6   : > { %1556 = vmatpush1.bf16.msra.mxu0 %v2182_v26 }
  0xa7   : > { %1597 = vmatpush1.bf16.msra.mxu1 %v2185_v52  ;;  %1557 = vmatprep.subr.bf16.mxu0 %v2190_v27  ;;  %v206_v27 = vld [vmem:[#allocation2 + $0x8] sm:$0xff] }
  0xa8   : > { %1598 = vmatprep.subr.bf16.mxu1 %v2193_v28 }
  0xaa   : > { %1558 = vmatpush1.bf16.msra.mxu0 %v2188_v29 }
  0xab   : > { %1599 = vmatpush1.bf16.msra.mxu1 %v2191_v30  ;;  %1559 = vmatprep.subr.bf16.mxu0 %v2196_v31 }
  0xac   : > { %1600 = vmatprep.subr.bf16.mxu1 %v2199_v32 }
  0xae   : > { %1560 = vmatpush1.bf16.msra.mxu0 %v2194_v33 }
  0xaf   : > { %1601 = vmatpush1.bf16.msra.mxu1 %v2197_v34  ;;  %1561 = vmatprep.subr.bf16.mxu0 %v2202_v35 }
  0xb0   : > { %1602 = vmatprep.subr.bf16.mxu1 %v2205_v36 }
  0xb2   : > { %1562 = vmatpush1.bf16.msra.mxu0 %v2200_v37 }
  0xb3   : > { %1603 = vmatpush1.bf16.msra.mxu1 %v2203_v38  ;;  %1563 = vmatprep.subr.bf16.mxu0 %v2208_v39 }
  0xb4   : > { %1604 = vmatprep.subr.bf16.mxu1 %v2211_v40  ;;  %v207_v40 = vld [vmem:[#allocation2 + $0x10] sm:$0xff] }
  0xb6   : > { %1564 = vmatpush1.bf16.msra.mxu0 %v2206_v41 }
  0xb7   : > { %1605 = vmatpush1.bf16.msra.mxu1 %v2209_v42  ;;  %1565 = vmatprep.subr.bf16.mxu0 %v2214_v43 }
  0xb8   : > { %1606 = vmatprep.subr.bf16.mxu1 %v2217_v44 }
  0xba   : > { %1566 = vmatpush1.bf16.msra.mxu0 %v2212_v45  ;;  %v208_v45 = vld [vmem:[#allocation2 + $0x18] sm:$0xff] }
  0xbb   : > { %1607 = vmatpush1.bf16.msra.mxu1 %v2215_v46  ;;  %1567 = vmatprep.subr.bf16.mxu0 %v2220_v47 }
  0xbc   : > { %1608 = vmatprep.subr.bf16.mxu1 %v2223_v48 }
  0xbe   : > { %1568 = vmatpush1.bf16.msra.mxu0 %v2218_v49 }
  0xbf   : > { %1609 = vmatpush1.bf16.msra.mxu1 %v2221_v50  ;;  %1569 = vmatprep.subr.bf16.mxu0 %v2226_v51 }
  0xc0   : > { %1610 = vmatprep.subr.bf16.mxu1 %v2229_v53 }
  0xc2   : > { %1570 = vmatpush1.bf16.msra.mxu0 %v2224_v54 }
  0xc3   : > { %1611 = vmatpush1.bf16.msra.mxu1 %v2227_v55  ;;  %1571 = vmatprep.subr.bf16.mxu0 %v2232_v56 }
  0xc4   : > { %1612 = vmatprep.subr.bf16.mxu1 %v2235_v57 }
  0xc6   : > { %1572 = vmatpush1.bf16.msra.mxu0 %v2230_v58 }
  0xc7   : > { %1613 = vmatpush1.bf16.msra.mxu1 %v2233_v59  ;;  %1573 = vmatprep.subr.bf16.mxu0 %v2238_v60 }
  0xc8   : > { %1614 = vmatprep.subr.bf16.mxu1 %v2241_v61 }
  0xca   : > { %1574 = vmatpush1.bf16.msra.mxu0 %v2236_v62 }
  0xcb   : > { %1615 = vmatpush1.bf16.msra.mxu1 %v2239_v63  ;;  %1575 = vmatprep.subr.bf16.mxu0 %v2244_v0 }
  0xcc   : > { %1616 = vmatprep.subr.bf16.mxu1 %v2247_v1 }
  0xce   : > { %1576 = vmatpush1.bf16.msra.mxu0 %v2242_v2 }
  0xcf   : > { %1617 = vmatpush1.bf16.msra.mxu1 %v2245_v3  ;;  %1577 = vmatprep.subr.bf16.mxu0 %v2250_v4 }
  0xd0   : > { %1618 = vmatprep.subr.bf16.mxu1 %v2253_v5 }
  0xd2   : > { %1578 = vmatpush1.bf16.msra.mxu0 %v2248_v6 }
  0xd3   : > { %1619 = vmatpush1.bf16.msra.mxu1 %v2251_v9  ;;  %1579 = vmatprep.subr.bf16.mxu0 %v2256_v10 }
  0xd4   : > { %1620 = vmatprep.subr.bf16.mxu1 %v2259_v11 }
  0xd6   : > { %1580 = vmatpush1.bf16.msra.mxu0 %v2254_v12 }
  0xd7   : > { %1621 = vmatpush1.bf16.msra.mxu1 %v2257_v13 }
  0xd9   : > { %1582 = vmatmul.mubr.bf16.vlgmr.msra.gmra.mrb[8].mxu0 %v2409_v8 }
  0xda   : > { %1623 = vmatmul.mubr.bf16.vlgmr.msra.gmra.mrb[8].mxu1 %v2488_v14 }
 0x12c   : > { %v1419_v15 = vpop.f32.mrb[0].mxu0 }
 0x12d   : > { %v1460_v16 = vpop.f32.mrb[0].mxu1  ;;  %v1421_v18 = vpop.f32.mrb[1].mxu0 }
 0x12e   : > { %v1461_v17 = vadd.f32 %v1460_v16, %v1419_v15  ;;  %v1462_v19 = vpop.f32.mrb[1].mxu1  ;;  %v1423_v21 = vpop.f32.mrb[2].mxu0 }
 0x12f   : > { %v1463_v20 = vadd.f32 %v1462_v19, %v1421_v18  ;;  %v1464_v22 = vpop.f32.mrb[2].mxu1  ;;  %v1424_v7 = vpop.f32.mrb[3].mxu0 }
 0x130   : > { %v1465_v23 = vpop.f32.mrb[3].mxu1 }
 0x16c   : > { %v1501_v25 = vpop.f32.mrb[4].mxu0 }
 0x16d   : > { %v1542_v26 = vpop.f32.mrb[4].mxu1  ;;  %v1502_v52 = vadd.f32 %v1501_v25, %v1461_v17  ;;  %v1503_v28 = vpop.f32.mrb[5].mxu0 }
 0x16e   : > { %v1544_v29 = vpop.f32.mrb[5].mxu1  ;;  %v1504_v8 = vadd.f32 %v1503_v28, %v1463_v20  ;;  %v1505_v30 = vpop.f32.mrb[6].mxu0 }
 0x16f   : > { %v1546_v14 = vpop.f32.mrb[6].mxu1  ;;  %v1631_v31 = vadd.f32 %v1502_v52, %v205_v24  ;;  %v1506_v32 = vpop.f32.mrb[7].mxu0 }
 0x170   : > { %v1547_v33 = vpop.f32.mrb[7].mxu1  ;;  %v1632_v34 = vadd.f32 %v1504_v8, %v206_v27 }
 0x171   : > { %1635 = vst [vmem:[#allocation2] sm:$0xff] %v1631_v31 }
 0x172   : > { %1636 = vst [vmem:[#allocation2 + $0x8] sm:$0xff] %v1632_v34 }
 0x178   : > { %v1643_v51 = vld [vmem:[#allocation2] sm:$0xff] (!%p1936_p7) }
 0x179   : > { %v1644_v53 = vld [vmem:[#allocation2 + $0x8] sm:$0xff] (!%p1936_p7)  ;;  %1647 = vst [vmem:[%s2582_s2] sm:$0xff] (!%p1936_p7), %v1643_v51 }
 0x17a   : > { %1648 = vst [vmem:[%s2582_s2 + $0x8] sm:$0xff] (!%p1936_p7), %v1644_v53 }
 0x1ac   : > { %v1583_v35 = vpop.f32.mrb[8].mxu0 }
 0x1ad   : > { %v1624_v36 = vpop.f32.mrb[8].mxu1  ;;  %v1584_v37 = vadd.f32 %v1583_v35, %v1542_v26  ;;  %v1585_v38 = vpop.f32.mrb[9].mxu0 }
 0x1ae   : > { %v1626_v39 = vpop.f32.mrb[9].mxu1  ;;  %v1586_v41 = vadd.f32 %v1585_v38, %v1544_v29  ;;  %v1587_v42 = vpop.f32.mrb[10].mxu0  ;;  %1642 = sbr.rel (%p1936_p7) target bundleno = 445 (0x1bd), region = 36 }
 0x1af   : > { %v1628_v43 = vpop.f32.mrb[10].mxu1  ;;  %v1625_v44 = vadd.f32 %v1624_v36, %v1584_v37  ;;  %v1588_v46 = vpop.f32.mrb[11].mxu0 }
 0x1b0   : > { %v1629_v47 = vpop.f32.mrb[11].mxu1  ;;  %v1627_v48 = vadd.f32 %v1626_v39, %v1586_v41 }
 0x1b1   : > { %v1633_v49 = vadd.f32 %v1625_v44, %v207_v40 }
 0x1b2   : > { %v1634_v50 = vadd.f32 %v1627_v48, %v208_v45 }
 0x1b3   : > { %1637 = vst [vmem:[#allocation2 + $0x10] sm:$0xff] %v1633_v49 }
 0x1b4   : > { %1638 = vst [vmem:[#allocation2 + $0x18] sm:$0xff] %v1634_v50 }
 0x1ba   : > { %v1645_v54 = vld [vmem:[#allocation2 + $0x10] sm:$0xff] }
 0x1bb   : > { %1649 = vst [vmem:[%s2582_s2 + $0x10] sm:$0xff] %v1645_v54  ;;  %v1646_v55 = vld [vmem:[#allocation2 + $0x18] sm:$0xff] }
 0x1bc   : > { %1650 = vst [vmem:[%s2582_s2 + $0x18] sm:$0xff] %v1646_v55 }
 0x1bd PF: > { %s12_s11 = sadd.s32 1, %s2282_s11   ;;  %s2583_s9 = smov %s2278_s10 }
 0x1be   : > { %p9_p8 = scmp.ge.s32.totalorder %s12_s11, 5   ;;  %s2584_s10 = smov %s2586_s12 }
 0x1c0   :  { %11 = sbr.rel (!%p9_p8) target bundleno = 2 (0x2), region = 69 }

// kernel: resnet_forward.107
= control target key start
LH: loop header
LB: loop body
LE: loop exit
PB: predicated region body
PF: predicated region fallthrough
CT: control target
= control target key end

     0   :  { %v17_v0 = vlaneseq  ;;  %s122_s1 = inlined_call_operand.vmem [shape: f32[2,512], index: 1, kind: input, shape index: {}]   ;;  %s123_s0 = inlined_call_operand.vmem [shape: f32[8,512], index: 0, kind: input, shape index: {}]   ;;  %s124_s2 = inlined_call_operand.vmem [shape: f32[8,512], index: 2, kind: output, shape index: {}]  }
   0x1   :  { %v15_v2 = vld [vmem:[%s122_s1] ss:$2 sm:$0xf]  ;;  %v76_v3 = vld [vmem:[%s122_s1 + $0x1] ss:$2 sm:$0xf] }
   0x2   :  { %v18_v1 = vshrl.u32 %v17_v0, 7  ;;  %v11_v8 = vld [vmem:[%s123_s0] sm:$0xff]  ;;  %v12_v9 = vld [vmem:[%s123_s0 + $0x8] sm:$0xff]  ;;  %v13_v14 = vld [vmem:[%s123_s0 + $0x10] sm:$0xff] }
   0x3   :  { %v14_v15 = vld [vmem:[%s123_s0 + $0x18] sm:$0xff] }
   0x4   :  { %v19_v4 = vsub.s32 0, %v18_v1  ;;  %v23_v5 = vsub.s32 1, %v18_v1  ;;  %v27_v6 = vsub.s32 2, %v18_v1  ;;  %v31_v7 = vsub.s32 3, %v18_v1 }
   0x6   :  { %v20_v10 = vrot.slane %v15_v2, %v19_v4  ;;  %v47_v11 = vrot.slane %v76_v3, %v19_v4  ;;  %v24_v12 = vrot.slane %v15_v2, %v23_v5  ;;  %v51_v13 = vrot.slane %v76_v3, %v23_v5 }
   0x7   :  { %v28_v16 = vrot.slane %v15_v2, %v27_v6  ;;  %v55_v17 = vrot.slane %v76_v3, %v27_v6  ;;  %v32_v18 = vrot.slane %v15_v2, %v31_v7  ;;  %v59_v19 = vrot.slane %v76_v3, %v31_v7 }
   0x8   :  { %v37_v20 = vsub.f32 %v11_v8, %v20_v10  ;;  %v38_v21 = vsub.f32 %v12_v9, %v24_v12 }
   0x9   :  { %v39_v22 = vsub.f32 %v13_v14, %v28_v16  ;;  %v40_v23 = vsub.f32 %v14_v15, %v32_v18 }
   0xa   :  { %v64_v24 = vmul.f32 %v47_v11, %v37_v20  ;;  %v65_v25 = vmul.f32 %v51_v13, %v38_v21 }
   0xb   :  { %v66_v26 = vmul.f32 %v55_v17, %v39_v22  ;;  %v67_v27 = vmul.f32 %v59_v19, %v40_v23 }
   0xc   :  { %68 = vst [vmem:[%s124_s2] sm:$0xff] %v64_v24  ;;  %69 = vst [vmem:[%s124_s2 + $0x8] sm:$0xff] %v65_v25 }
   0xd   :  { %70 = vst [vmem:[%s124_s2 + $0x10] sm:$0xff] %v66_v26  ;;  %71 = vst [vmem:[%s124_s2 + $0x18] sm:$0xff] %v67_v27 }

// kernel: resnet_forward.113
= control target key start
LH: loop header
LB: loop body
LE: loop exit
PB: predicated region body
PF: predicated region fallthrough
CT: control target
= control target key end

     0   :  { %v20_v0 = vlaneseq  ;;  %s154_s1 = inlined_call_operand.vmem [shape: f32[2,512], index: 1, kind: input, shape index: {}]   ;;  %s155_s0 = inlined_call_operand.vmem [shape: f32[8,512], index: 0, kind: input, shape index: {}]   ;;  %s156_s2 = inlined_call_operand.vmem [shape: f32[8,512], index: 2, kind: input, shape index: {}]   ;;  %s157_s3 = inlined_call_operand.vmem [shape: f32[8,512], index: 3, kind: output, shape index: {}]  }
   0x1   :  { %v18_v2 = vld [vmem:[%s154_s1] ss:$2 sm:$0xf]  ;;  %v91_v3 = vld [vmem:[%s154_s1 + $0x1] ss:$2 sm:$0xf] }
   0x2   :  { %v21_v1 = vshrl.u32 %v20_v0, 7  ;;  %v14_v8 = vld [vmem:[%s155_s0] sm:$0xff]  ;;  %v15_v9 = vld [vmem:[%s155_s0 + $0x8] sm:$0xff]  ;;  %v16_v14 = vld [vmem:[%s155_s0 + $0x10] sm:$0xff] }
   0x3   :  { %v17_v15 = vld [vmem:[%s155_s0 + $0x18] sm:$0xff]  ;;  %v71_v22 = vld [vmem:[%s156_s2] sm:$0xff]  ;;  %v72_v23 = vld [vmem:[%s156_s2 + $0x8] sm:$0xff] }
   0x4   :  { %v22_v4 = vsub.s32 0, %v21_v1  ;;  %v26_v5 = vsub.s32 1, %v21_v1  ;;  %v30_v6 = vsub.s32 2, %v21_v1  ;;  %v34_v7 = vsub.s32 3, %v21_v1  ;;  %v73_v28 = vld [vmem:[%s156_s2 + $0x10] sm:$0xff]  ;;  %v74_v29 = vld [vmem:[%s156_s2 + $0x18] sm:$0xff] }
   0x6   :  { %v23_v10 = vrot.slane %v18_v2, %v22_v4  ;;  %v50_v11 = vrot.slane %v91_v3, %v22_v4  ;;  %v27_v12 = vrot.slane %v18_v2, %v26_v5  ;;  %v54_v13 = vrot.slane %v91_v3, %v26_v5 }
   0x7   :  { %v31_v16 = vrot.slane %v18_v2, %v30_v6  ;;  %v58_v17 = vrot.slane %v91_v3, %v30_v6  ;;  %v35_v18 = vrot.slane %v18_v2, %v34_v7  ;;  %v62_v19 = vrot.slane %v91_v3, %v34_v7 }
   0x8   :  { %v40_v20 = vsub.f32 %v14_v8, %v23_v10  ;;  %v41_v21 = vsub.f32 %v15_v9, %v27_v12 }
   0x9   :  { %v42_v24 = vsub.f32 %v16_v14, %v31_v16  ;;  %v43_v25 = vsub.f32 %v17_v15, %v35_v18 }
   0xa   :  { %v67_v26 = vmul.f32 %v50_v11, %v40_v20  ;;  %v68_v27 = vmul.f32 %v54_v13, %v41_v21 }
   0xb   :  { %v69_v30 = vmul.f32 %v58_v17, %v42_v24  ;;  %v70_v31 = vmul.f32 %v62_v19, %v43_v25 }
   0xc   :  { %v75_v32 = vadd.f32 %v71_v22, %v67_v26  ;;  %v76_v33 = vadd.f32 %v72_v23, %v68_v27 }
   0xd   :  { %v77_v34 = vadd.f32 %v73_v28, %v69_v30  ;;  %v78_v35 = vadd.f32 %v74_v29, %v70_v31 }
   0xe   :  { %v79_v36 = vmax.f32 %v75_v32, 0.0  ;;  %v80_v37 = vmax.f32 %v76_v33, 0.0 }
   0xf   :  { %v81_v38 = vmax.f32 %v77_v34, 0.0  ;;  %v82_v39 = vmax.f32 %v78_v35, 0.0 }
  0x10   :  { %83 = vst [vmem:[%s157_s3] sm:$0xff] %v79_v36  ;;  %84 = vst [vmem:[%s157_s3 + $0x8] sm:$0xff] %v80_v37 }
  0x11   :  { %85 = vst [vmem:[%s157_s3 + $0x10] sm:$0xff] %v81_v38  ;;  %86 = vst [vmem:[%s157_s3 + $0x18] sm:$0xff] %v82_v39 }

// kernel: resnet_forward.111
= control target key start
LH: loop header
LB: loop body
LE: loop exit
PB: predicated region body
PF: predicated region fallthrough
CT: control target
= control target key end

     0   :  { %s2300_s9 = smov 0   ;;  %s2302_s10 = smov 0   ;;  %s2580_s0 = inlined_call_operand.vmem [shape: bf16[8,4608], index: 0, kind: input, shape index: {}]   ;;  %s2581_s1 = inlined_call_operand.vmem [shape: bf16[4608,512], index: 1, kind: input, shape index: {}]   ;;  %s2582_s2 = inlined_call_operand.vmem [shape: f32[8,512], index: 2, kind: output, shape index: {}]  }
   0x1   :  { %s2304_s11 = smov 0  }
   0x2 LB: > { %s21_s12 = sadd.s32 1, %s2278_s10  ;;  %p1733_p0 = scmp.ge.s32.totalorder %s2282_s11, 1  ;;  %s2282_s11 = sphi %s2304_s11, %s12_s11   ;;  %s2278_s10 = sphi %s2302_s10, %s2584_s10   ;;  %s2274_s9 = sphi %s2300_s9, %s2583_s9  }
   0x3   : > { %p22_p1 = scmp.ge.s32.totalorder %s21_s12, 6  ;;  %p143_p2 = scmp.lt.s32.totalorder %s2282_s11, 7 }
   0x5   : > { %s2586_s12 = smov (%p22_p1, %s21_s12), 0  ;;  %p144_p3 = pnand %p1733_p0, %p143_p2 }
   0x6   : > { %s175_s13 = smul.u32 (!%p144_p3), 6, %s2274_s9  ;;  %p1737_p6 = scmp.ne.s32.totalorder (!%p144_p3), %s2274_s9, 0 }
   0x7   : > { %147 = sbr.rel (%p144_p3) target bundleno = 445 (0x1bd), region = 28 }
   0x8   : > { %s185_s14 = smul.u32 (!%p144_p3), 96, %s2274_s9  ;;  %p178_p4 = scmp.lt.s32.totalorder (!%p144_p3), %s175_s13, 35 }
   0xa   : > { %p186_p5 = scmp.lt.s32.totalorder (!%p144_p3), %s185_s14, 575 }
   0xe   : > { %s2588_s13 = smov (!%p178_p4, %s175_s13), 35  ;;  %s2590_s14 = smov (!%p186_p5, %s185_s14), 575 }
   0xf   : > { %s1734_s15 = sshll.u32 %s2588_s13, 2  ;;  %s1940_s19 = sshll.u32 %s2590_s14, 4  ;;  %v2284_v0 = vmov (!%p1737_p6), 0.0  }
  0x10   : > { %s2325_s18 = scalar_lea.vmem %s2580_s0, %s1734_s15  ;;  %s2330_s22 = scalar_lea.vmem %s2581_s1, %s1940_s19  ;;  %201 = vst [vmem:[#allocation2] sm:$0xff] (!%p1737_p6), %v2284_v0  ;;  %202 = vst [vmem:[#allocation2 + $0x8] sm:$0xff] (!%p1737_p6), %v2284_v0 }
  0x11   : > { %200 = sbr.rel (%p1737_p6) target bundleno = 24 (0x18), region = 32  ;;  %203 = vst [vmem:[#allocation2 + $0x10] sm:$0xff] (!%p1737_p6), %v2284_v0  ;;  %204 = vst [vmem:[#allocation2 + $0x18] sm:$0xff] (!%p1737_p6), %v2284_v0 }
  0x18 PF: > { %v1966_v1 = vld [vmem:[%s2330_s22 + $0x4] ss:$16 sps:$4 sm:$0xff]   ;;  %v1970_v3 = vld [vmem:[%s2330_s22] ss:$16 sps:$4 sm:$0xff]   ;;  %v210_v49 = vld [vmem:[%s2325_s18 + $0x8] sm:$0xff]  ;;  %p1936_p7 = scmp.ne.s32.totalorder %s2274_s9, 5 }
  0x19   : > { %v1968_v2 = vld [vmem:[%s2330_s22 + $0x204] ss:$16 sps:$4 sm:$0xff]   ;;  %1385 = vmatprep.subr.bf16.mxu0 %v1966_v1  ;;  %v1971_v4 = vld [vmem:[%s2330_s22 + $0x200] ss:$16 sps:$4 sm:$0xff]   ;;  %v2385_v52 = vcombine.high %v210_v49, %v210_v49 }
  0x1a   : > { %1426 = vmatprep.subr.bf16.mxu1 %v1968_v2  ;;  %v1972_v5 = vld [vmem:[%s2330_s22 + $0x24] ss:$16 sps:$4 sm:$0xff]   ;;  %1386 = vmatpush1.bf16.msra.mxu0 %v1970_v3  ;;  %v1976_v7 = vld [vmem:[%s2330_s22 + $0x20] ss:$16 sps:$4 sm:$0xff]  }
  0x1b   : > { %1427 = vmatpush1.bf16.msra.mxu1 %v1971_v4  ;;  %v1974_v6 = vld [vmem:[%s2330_s22 + $0x224] ss:$16 sps:$4 sm:$0xff]   ;;  %1387 = vmatprep.subr.bf16.mxu0 %v1972_v5  ;;  %v1977_v8 = vld [vmem:[%s2330_s22 + $0x220] ss:$16 sps:$4 sm:$0xff]  }
  0x1c   : > { %1428 = vmatprep.subr.bf16.mxu1 %v1974_v6  ;;  %v1978_v9 = vld [vmem:[%s2330_s22 + $0x44] ss:$16 sps:$4 sm:$0xff]   ;;  %v1982_v11 = vld [vmem:[%s2330_s22 + $0x40] ss:$16 sps:$4 sm:$0xff]   ;;  %1458 = vmatprep.mubr.bf16.mxu1 %v2385_v52  ;;  %v2071_v6 = vld [vmem:[%s2330_s22 + $0xc] ss:$16 sps:$4 sm:$0xff]  }
  0x1d   : > { %v1980_v10 = vld [vmem:[%s2330_s22 + $0x244] ss:$16 sps:$4 sm:$0xff]   ;;  %v1983_v12 = vld [vmem:[%s2330_s22 + $0x240] ss:$16 sps:$4 sm:$0xff]  }
  0x1e   : > { %1388 = vmatpush1.bf16.msra.mxu0 %v1976_v7  ;;  %v1984_v13 = vld [vmem:[%s2330_s22 + $0x64] ss:$16 sps:$4 sm:$0xff]   ;;  %v1988_v15 = vld [vmem:[%s2330_s22 + $0x60] ss:$16 sps:$4 sm:$0xff]  }
  0x1f   : > { %1429 = vmatpush1.bf16.msra.mxu1 %v1977_v8  ;;  %1389 = vmatprep.subr.bf16.mxu0 %v1978_v9  ;;  %v1986_v14 = vld [vmem:[%s2330_s22 + $0x264] ss:$16 sps:$4 sm:$0xff]   ;;  %v1989_v16 = vld [vmem:[%s2330_s22 + $0x260] ss:$16 sps:$4 sm:$0xff]   ;;  %v2409_v8 = vcombine.low %v210_v49, %v210_v49 }
  0x20   : > { %1430 = vmatprep.subr.bf16.mxu1 %v1980_v10  ;;  %v1990_v17 = vld [vmem:[%s2330_s22 + $0x84] ss:$16 sps:$4 sm:$0xff]   ;;  %v1994_v19 = vld [vmem:[%s2330_s22 + $0x80] ss:$16 sps:$4 sm:$0xff]   ;;  %v2069_v10 = vld [vmem:[%s2330_s22 + $0x8] ss:$16 sps:$4 sm:$0xff]  }
  0x21   : > { %v1992_v18 = vld [vmem:[%s2330_s22 + $0x284] ss:$16 sps:$4 sm:$0xff]   ;;  %v1995_v20 = vld [vmem:[%s2330_s22 + $0x280] ss:$16 sps:$4 sm:$0xff]  }
  0x22   : > { %1390 = vmatpush1.bf16.msra.mxu0 %v1982_v11  ;;  %v1996_v21 = vld [vmem:[%s2330_s22 + $0xa4] ss:$16 sps:$4 sm:$0xff]   ;;  %v2000_v23 = vld [vmem:[%s2330_s22 + $0xa0] ss:$16 sps:$4 sm:$0xff]  }
  0x23   : > { %1431 = vmatpush1.bf16.msra.mxu1 %v1983_v12  ;;  %1391 = vmatprep.subr.bf16.mxu0 %v1984_v13  ;;  %v1998_v22 = vld [vmem:[%s2330_s22 + $0x2a4] ss:$16 sps:$4 sm:$0xff]   ;;  %v2001_v24 = vld [vmem:[%s2330_s22 + $0x2a0] ss:$16 sps:$4 sm:$0xff]   ;;  %v2077_v12 = vld [vmem:[%s2330_s22 + $0x2c] ss:$16 sps:$4 sm:$0xff]  }
  0x24   : > { %1432 = vmatprep.subr.bf16.mxu1 %v1986_v14  ;;  %v2002_v25 = vld [vmem:[%s2330_s22 + $0xc4] ss:$16 sps:$4 sm:$0xff]   ;;  %v2006_v27 = vld [vmem:[%s2330_s22 + $0xc0] ss:$16 sps:$4 sm:$0xff]   ;;  %v2075_v14 = vld [vmem:[%s2330_s22 + $0x28] ss:$16 sps:$4 sm:$0xff]  }
  0x25   : > { %v2004_v26 = vld [vmem:[%s2330_s22 + $0x2c4] ss:$16 sps:$4 sm:$0xff]   ;;  %v2007_v28 = vld [vmem:[%s2330_s22 + $0x2c0] ss:$16 sps:$4 sm:$0xff]  }
  0x26   : > { %1392 = vmatpush1.bf16.msra.mxu0 %v1988_v15  ;;  %v2008_v29 = vld [vmem:[%s2330_s22 + $0xe4] ss:$16 sps:$4 sm:$0xff]   ;;  %v2012_v31 = vld [vmem:[%s2330_s22 + $0xe0] ss:$16 sps:$4 sm:$0xff]  }
  0x27   : > { %1433 = vmatpush1.bf16.msra.mxu1 %v1989_v16  ;;  %1393 = vmatprep.subr.bf16.mxu0 %v1990_v17  ;;  %v2010_v30 = vld [vmem:[%s2330_s22 + $0x2e4] ss:$16 sps:$4 sm:$0xff]   ;;  %v2013_v32 = vld [vmem:[%s2330_s22 + $0x2e0] ss:$16 sps:$4 sm:$0xff]   ;;  %v2083_v16 = vld [vmem:[%s2330_s22 + $0x4c] ss:$16 sps:$4 sm:$0xff]  }
  0x28   : > { %1434 = vmatprep.subr.bf16.mxu1 %v1992_v18  ;;  %v2014_v33 = vld [vmem:[%s2330_s22 + $0x104] ss:$16 sps:$4 sm:$0xff]   ;;  %v2018_v35 = vld [vmem:[%s2330_s22 + $0x100] ss:$16 sps:$4 sm:$0xff]   ;;  %v2081_v18 = vld [vmem:[%s2330_s22 + $0x48] ss:$16 sps:$4 sm:$0xff]  }
  0x29   : > { %v2016_v34 = vld [vmem:[%s2330_s22 + $0x304] ss:$16 sps:$4 sm:$0xff]   ;;  %v2019_v36 = vld [vmem:[%s2330_s22 + $0x300] ss:$16 sps:$4 sm:$0xff]  }
  0x2a   : > { %1394 = vmatpush1.bf16.msra.mxu0 %v1994_v19  ;;  %v2020_v37 = vld [vmem:[%s2330_s22 + $0x124] ss:$16 sps:$4 sm:$0xff]   ;;  %v2024_v39 = vld [vmem:[%s2330_s22 + $0x120] ss:$16 sps:$4 sm:$0xff]  }
  0x2b   : > { %1435 = vmatpush1.bf16.msra.mxu1 %v1995_v20  ;;  %1395 = vmatprep.subr.bf16.mxu0 %v1996_v21  ;;  %v2022_v38 = vld [vmem:[%s2330_s22 + $0x324] ss:$16 sps:$4 sm:$0xff]   ;;  %v2025_v40 = vld [vmem:[%s2330_s22 + $0x320] ss:$16 sps:$4 sm:$0xff]   ;;  %v2089_v20 = vld [vmem:[%s2330_s22 + $0x6c] ss:$16 sps:$4 sm:$0xff]  }
  0x2c   : > { %1436 = vmatprep.subr.bf16.mxu1 %v1998_v22  ;;  %v2026_v41 = vld [vmem:[%s2330_s22 + $0x144] ss:$16 sps:$4 sm:$0xff]   ;;  %v2030_v43 = vld [vmem:[%s2330_s22 + $0x140] ss:$16 sps:$4 sm:$0xff]   ;;  %v2087_v22 = vld [vmem:[%s2330_s22 + $0x68] ss:$16 sps:$4 sm:$0xff]  }
  0x2d   : > { %v2028_v42 = vld [vmem:[%s2330_s22 + $0x344] ss:$16 sps:$4 sm:$0xff]   ;;  %v2031_v44 = vld [vmem:[%s2330_s22 + $0x340] ss:$16 sps:$4 sm:$0xff]  }
  0x2e   : > { %1396 = vmatpush1.bf16.msra.mxu0 %v2000_v23  ;;  %v2032_v45 = vld [vmem:[%s2330_s22 + $0x164] ss:$16 sps:$4 sm:$0xff]   ;;  %v2036_v50 = vld [vmem:[%s2330_s22 + $0x160] ss:$16 sps:$4 sm:$0xff]  }
  0x2f   : > { %1437 = vmatpush1.bf16.msra.mxu1 %v2001_v24  ;;  %1397 = vmatprep.subr.bf16.mxu0 %v2002_v25  ;;  %v2034_v46 = vld [vmem:[%s2330_s22 + $0x364] ss:$16 sps:$4 sm:$0xff]   ;;  %v2037_v51 = vld [vmem:[%s2330_s22 + $0x360] ss:$16 sps:$4 sm:$0xff]   ;;  %v2095_v24 = vld [vmem:[%s2330_s22 + $0x8c] ss:$16 sps:$4 sm:$0xff]  }
  0x30   : > { %1438 = vmatprep.subr.bf16.mxu1 %v2004_v26  ;;  %v209_v47 = vld [vmem:[%s2325_s18] sm:$0xff]  ;;  %v2093_v26 = vld [vmem:[%s2330_s22 + $0x88] ss:$16 sps:$4 sm:$0xff]  }
  0x31   : > { %v2380_v48 = vcombine.high %v209_v47, %v209_v47  ;;  %v2038_v53 = vld [vmem:[%s2330_s22 + $0x184] ss:$16 sps:$4 sm:$0xff]   ;;  %v2042_v55 = vld [vmem:[%s2330_s22 + $0x180] ss:$16 sps:$4 sm:$0xff]   ;;  %v2407_v7 = vcombine.low %v209_v47, %v209_v47 }
  0x32   : > { %1398 = vmatpush1.bf16.msra.mxu0 %v2006_v27  ;;  %v2040_v54 = vld [vmem:[%s2330_s22 + $0x384] ss:$16 sps:$4 sm:$0xff]   ;;  %v2043_v56 = vld [vmem:[%s2330_s22 + $0x380] ss:$16 sps:$4 sm:$0xff]  }
  0x33   : > { %1439 = vmatpush1.bf16.msra.mxu1 %v2007_v28  ;;  %1399 = vmatprep.subr.bf16.mxu0 %v2008_v29  ;;  %v2044_v57 = vld [vmem:[%s2330_s22 + $0x1a4] ss:$16 sps:$4 sm:$0xff]   ;;  %v2048_v59 = vld [vmem:[%s2330_s22 + $0x1a0] ss:$16 sps:$4 sm:$0xff]   ;;  %v2101_v28 = vld [vmem:[%s2330_s22 + $0xac] ss:$16 sps:$4 sm:$0xff]  }
  0x34   : > { %1440 = vmatprep.subr.bf16.mxu1 %v2010_v30  ;;  %1417 = vmatprep.mubr.bf16.mxu0 %v2380_v48  ;;  %v2046_v58 = vld [vmem:[%s2330_s22 + $0x3a4] ss:$16 sps:$4 sm:$0xff]   ;;  %v2049_v60 = vld [vmem:[%s2330_s22 + $0x3a0] ss:$16 sps:$4 sm:$0xff]   ;;  %v2099_v30 = vld [vmem:[%s2330_s22 + $0xa8] ss:$16 sps:$4 sm:$0xff]  }
  0x35   : > { %v2050_v61 = vld [vmem:[%s2330_s22 + $0x1c4] ss:$16 sps:$4 sm:$0xff]   ;;  %v2054_v63 = vld [vmem:[%s2330_s22 + $0x1c0] ss:$16 sps:$4 sm:$0xff]  }
  0x36   : > { %1400 = vmatpush1.bf16.msra.mxu0 %v2012_v31  ;;  %v2052_v62 = vld [vmem:[%s2330_s22 + $0x3c4] ss:$16 sps:$4 sm:$0xff]   ;;  %v2055_v0 = vld [vmem:[%s2330_s22 + $0x3c0] ss:$16 sps:$4 sm:$0xff]  }
  0x37   : > { %1441 = vmatpush1.bf16.msra.mxu1 %v2013_v32  ;;  %1401 = vmatprep.subr.bf16.mxu0 %v2014_v33  ;;  %v2056_v1 = vld [vmem:[%s2330_s22 + $0x1e4] ss:$16 sps:$4 sm:$0xff]   ;;  %v2060_v3 = vld [vmem:[%s2330_s22 + $0x1e0] ss:$16 sps:$4 sm:$0xff]   ;;  %v2107_v32 = vld [vmem:[%s2330_s22 + $0xcc] ss:$16 sps:$4 sm:$0xff]  }
  0x38   : > { %1442 = vmatprep.subr.bf16.mxu1 %v2016_v34  ;;  %v2058_v2 = vld [vmem:[%s2330_s22 + $0x3e4] ss:$16 sps:$4 sm:$0xff]   ;;  %v2061_v4 = vld [vmem:[%s2330_s22 + $0x3e0] ss:$16 sps:$4 sm:$0xff]  }
  0x39   : > { %v2068_v5 = vld [vmem:[%s2330_s22 + $0x404] ss:$16 sps:$4 sm:$0xff]   ;;  %v2066_v9 = vld [vmem:[%s2330_s22 + $0x400] ss:$16 sps:$4 sm:$0xff]  }
  0x3a   : > { %1402 = vmatpush1.bf16.msra.mxu0 %v2018_v35  ;;  %v2074_v11 = vld [vmem:[%s2330_s22 + $0x424] ss:$16 sps:$4 sm:$0xff]   ;;  %v2072_v13 = vld [vmem:[%s2330_s22 + $0x420] ss:$16 sps:$4 sm:$0xff]  }
  0x3b   : > { %1443 = vmatpush1.bf16.msra.mxu1 %v2019_v36  ;;  %1403 = vmatprep.subr.bf16.mxu0 %v2020_v37  ;;  %v2080_v15 = vld [vmem:[%s2330_s22 + $0x444] ss:$16 sps:$4 sm:$0xff]   ;;  %v2078_v17 = vld [vmem:[%s2330_s22 + $0x440] ss:$16 sps:$4 sm:$0xff]   ;;  %v2105_v36 = vld [vmem:[%s2330_s22 + $0xc8] ss:$16 sps:$4 sm:$0xff]  }
  0x3c   : > { %1444 = vmatprep.subr.bf16.mxu1 %v2022_v38  ;;  %v2086_v19 = vld [vmem:[%s2330_s22 + $0x464] ss:$16 sps:$4 sm:$0xff]   ;;  %v2084_v21 = vld [vmem:[%s2330_s22 + $0x460] ss:$16 sps:$4 sm:$0xff]   ;;  %v2113_v38 = vld [vmem:[%s2330_s22 + $0xec] ss:$16 sps:$4 sm:$0xff]  }
  0x3d   : > { %v2092_v23 = vld [vmem:[%s2330_s22 + $0x484] ss:$16 sps:$4 sm:$0xff]   ;;  %v2090_v25 = vld [vmem:[%s2330_s22 + $0x480] ss:$16 sps:$4 sm:$0xff]  }
  0x3e   : > { %1404 = vmatpush1.bf16.msra.mxu0 %v2024_v39  ;;  %v2098_v27 = vld [vmem:[%s2330_s22 + $0x4a4] ss:$16 sps:$4 sm:$0xff]   ;;  %v2096_v29 = vld [vmem:[%s2330_s22 + $0x4a0] ss:$16 sps:$4 sm:$0xff]  }
  0x3f   : > { %1445 = vmatpush1.bf16.msra.mxu1 %v2025_v40  ;;  %1405 = vmatprep.subr.bf16.mxu0 %v2026_v41  ;;  %v2104_v31 = vld [vmem:[%s2330_s22 + $0x4c4] ss:$16 sps:$4 sm:$0xff]   ;;  %v2102_v34 = vld [vmem:[%s2330_s22 + $0x4c0] ss:$16 sps:$4 sm:$0xff]   ;;  %v2111_v40 = vld [vmem:[%s2330_s22 + $0xe8] ss:$16 sps:$4 sm:$0xff]  }
  0x40   : > { %1446 = vmatprep.subr.bf16.mxu1 %v2028_v42  ;;  %v2439_v33 = vld [vmem:[%s2325_s18 + $0x10] sm:$0xff]  ;;  %v2119_v42 = vld [vmem:[%s2330_s22 + $0x10c] ss:$16 sps:$4 sm:$0xff]  }
  0x41   : > { %v2444_v35 = vcombine.high %v2439_v33, %v2439_v33  ;;  %v2110_v37 = vld [vmem:[%s2330_s22 + $0x4e4] ss:$16 sps:$4 sm:$0xff]   ;;  %v2108_v39 = vld [vmem:[%s2330_s22 + $0x4e0] ss:$16 sps:$4 sm:$0xff]  }
  0x42   : > { %1406 = vmatpush1.bf16.msra.mxu0 %v2030_v43  ;;  %v2116_v41 = vld [vmem:[%s2330_s22 + $0x504] ss:$16 sps:$4 sm:$0xff]   ;;  %v2114_v43 = vld [vmem:[%s2330_s22 + $0x500] ss:$16 sps:$4 sm:$0xff]  }
  0x43   : > { %1447 = vmatpush1.bf16.msra.mxu1 %v2031_v44  ;;  %1407 = vmatprep.subr.bf16.mxu0 %v2032_v45  ;;  %v2117_v44 = vld [vmem:[%s2330_s22 + $0x108] ss:$16 sps:$4 sm:$0xff]   ;;  %v2122_v45 = vld [vmem:[%s2330_s22 + $0x524] ss:$16 sps:$4 sm:$0xff]   ;;  %v2120_v47 = vld [vmem:[%s2330_s22 + $0x520] ss:$16 sps:$4 sm:$0xff]  }
  0x44   : > { %1448 = vmatprep.subr.bf16.mxu1 %v2034_v46  ;;  %v2125_v46 = vld [vmem:[%s2330_s22 + $0x12c] ss:$16 sps:$4 sm:$0xff]   ;;  %v2128_v49 = vld [vmem:[%s2330_s22 + $0x544] ss:$16 sps:$4 sm:$0xff]  }
  0x46   : > { %1408 = vmatpush1.bf16.msra.mxu0 %v2036_v50  ;;  %v2131_v50 = vld [vmem:[%s2330_s22 + $0x14c] ss:$16 sps:$4 sm:$0xff]  }
  0x47   : > { %1449 = vmatpush1.bf16.msra.mxu1 %v2037_v51  ;;  %1409 = vmatprep.subr.bf16.mxu0 %v2038_v53  ;;  %v2126_v51 = vld [vmem:[%s2330_s22 + $0x540] ss:$16 sps:$4 sm:$0xff]   ;;  %v2129_v53 = vld [vmem:[%s2330_s22 + $0x148] ss:$16 sps:$4 sm:$0xff]  }
  0x48   : > { %1450 = vmatprep.subr.bf16.mxu1 %v2040_v54  ;;  %v2134_v54 = vld [vmem:[%s2330_s22 + $0x564] ss:$16 sps:$4 sm:$0xff]  }
  0x4a   : > { %1410 = vmatpush1.bf16.msra.mxu0 %v2042_v55  ;;  %v2137_v55 = vld [vmem:[%s2330_s22 + $0x16c] ss:$16 sps:$4 sm:$0xff]  }
  0x4b   : > { %1451 = vmatpush1.bf16.msra.mxu1 %v2043_v56  ;;  %1411 = vmatprep.subr.bf16.mxu0 %v2044_v57  ;;  %v2132_v56 = vld [vmem:[%s2330_s22 + $0x560] ss:$16 sps:$4 sm:$0xff]   ;;  %v2135_v57 = vld [vmem:[%s2330_s22 + $0x168] ss:$16 sps:$4 sm:$0xff]  }
  0x4c   : > { %1452 = vmatprep.subr.bf16.mxu1 %v2046_v58  ;;  %v2140_v58 = vld [vmem:[%s2330_s22 + $0x584] ss:$16 sps:$4 sm:$0xff]  }
  0x4e   : > { %1412 = vmatpush1.bf16.msra.mxu0 %v2048_v59  ;;  %v2143_v59 = vld [vmem:[%s2330_s22 + $0x18c] ss:$16 sps:$4 sm:$0xff]  }
  0x4f   : > { %1453 = vmatpush1.bf16.msra.mxu1 %v2049_v60  ;;  %1413 = vmatprep.subr.bf16.mxu0 %v2050_v61  ;;  %v2138_v60 = vld [vmem:[%s2330_s22 + $0x580] ss:$16 sps:$4 sm:$0xff]   ;;  %v2141_v61 = vld [vmem:[%s2330_s22 + $0x188] ss:$16 sps:$4 sm:$0xff]  }
  0x50   : > { %1454 = vmatprep.subr.bf16.mxu1 %v2052_v62  ;;  %v2146_v62 = vld [vmem:[%s2330_s22 + $0x5a4] ss:$16 sps:$4 sm:$0xff]  }
  0x52   : > { %1414 = vmatpush1.bf16.msra.mxu0 %v2054_v63  ;;  %v2149_v63 = vld [vmem:[%s2330_s22 + $0x1ac] ss:$16 sps:$4 sm:$0xff]  }
  0x53   : > { %1455 = vmatpush1.bf16.msra.mxu1 %v2055_v0  ;;  %1415 = vmatprep.subr.bf16.mxu0 %v2056_v1  ;;  %v2144_v0 = vld [vmem:[%s2330_s22 + $0x5a0] ss:$16 sps:$4 sm:$0xff]   ;;  %v2147_v1 = vld [vmem:[%s2330_s22 + $0x1a8] ss:$16 sps:$4 sm:$0xff]  }
  0x54   : > { %1456 = vmatprep.subr.bf16.mxu1 %v2058_v2  ;;  %v2152_v2 = vld [vmem:[%s2330_s22 + $0x5c4] ss:$16 sps:$4 sm:$0xff]  }
  0x56   : > { %1416 = vmatpush1.bf16.msra.mxu0 %v2060_v3  ;;  %v2155_v3 = vld [vmem:[%s2330_s22 + $0x1cc] ss:$16 sps:$4 sm:$0xff]  }
  0x57   : > { %1457 = vmatpush1.bf16.msra.mxu1 %v2061_v4  ;;  %1467 = vmatprep.subr.bf16.mxu0 %v2068_v5  ;;  %v2150_v4 = vld [vmem:[%s2330_s22 + $0x5c0] ss:$16 sps:$4 sm:$0xff]   ;;  %v2153_v5 = vld [vmem:[%s2330_s22 + $0x1c8] ss:$16 sps:$4 sm:$0xff]  }
  0x58   : > { %1508 = vmatprep.subr.bf16.mxu1 %v2071_v6  ;;  %v2158_v6 = vld [vmem:[%s2330_s22 + $0x5e4] ss:$16 sps:$4 sm:$0xff]  }
  0x59   : > { %1418 = vmatmul.mubr.bf16.vlgmr.msra.gmra.mrb[0].mxu0 %v2407_v7 }
  0x5a   : > { %1459 = vmatmul.mubr.bf16.vlgmr.msra.gmra.mrb[0].mxu1 %v2409_v8  ;;  %1468 = vmatpush1.bf16.msra.mxu0 %v2066_v9  ;;  %v2161_v9 = vld [vmem:[%s2330_s22 + $0x1ec] ss:$16 sps:$4 sm:$0xff]  }
  0x5b   : > { %1509 = vmatpush1.bf16.msra.mxu1 %v2069_v10  ;;  %1469 = vmatprep.subr.bf16.mxu0 %v2074_v11  ;;  %v2156_v10 = vld [vmem:[%s2330_s22 + $0x5e0] ss:$16 sps:$4 sm:$0xff]   ;;  %v2159_v11 = vld [vmem:[%s2330_s22 + $0x1e8] ss:$16 sps:$4 sm:$0xff]  }
  0x5c   : > { %1510 = vmatprep.subr.bf16.mxu1 %v2077_v12  ;;  %1540 = vmatprep.mubr.bf16.mxu1 %v2380_v48  ;;  %v2123_v48 = vld [vmem:[%s2330_s22 + $0x128] ss:$16 sps:$4 sm:$0xff]   ;;  %v2166_v12 = vld [vmem:[%s2330_s22 + $0x20c] ss:$16 sps:$4 sm:$0xff]  }
  0x5d   : > { %1499 = vmatprep.mubr.bf16.mxu0 %v2444_v35 }
  0x5e   : > { %1470 = vmatpush1.bf16.msra.mxu0 %v2072_v13  ;;  %v2169_v13 = vld [vmem:[%s2330_s22 + $0x40c] ss:$16 sps:$4 sm:$0xff]  }
  0x5f   : > { %1511 = vmatpush1.bf16.msra.mxu1 %v2075_v14  ;;  %1471 = vmatprep.subr.bf16.mxu0 %v2080_v15  ;;  %v2488_v14 = vcombine.low %v2439_v33, %v2439_v33  ;;  %v2164_v15 = vld [vmem:[%s2330_s22 + $0x208] ss:$16 sps:$4 sm:$0xff]  }
  0x60   : > { %1512 = vmatprep.subr.bf16.mxu1 %v2083_v16  ;;  %v2167_v16 = vld [vmem:[%s2330_s22 + $0x408] ss:$16 sps:$4 sm:$0xff]  }
  0x61   : > { %v2194_v33 = vld [vmem:[%s2330_s22 + $0x2a8] ss:$16 sps:$4 sm:$0xff]  }
  0x62   : > { %1472 = vmatpush1.bf16.msra.mxu0 %v2078_v17  ;;  %v2172_v17 = vld [vmem:[%s2330_s22 + $0x22c] ss:$16 sps:$4 sm:$0xff]  }
  0x63   : > { %1513 = vmatpush1.bf16.msra.mxu1 %v2081_v18  ;;  %1473 = vmatprep.subr.bf16.mxu0 %v2086_v19  ;;  %v2175_v18 = vld [vmem:[%s2330_s22 + $0x42c] ss:$16 sps:$4 sm:$0xff]   ;;  %v2170_v19 = vld [vmem:[%s2330_s22 + $0x228] ss:$16 sps:$4 sm:$0xff]  }
  0x64   : > { %1514 = vmatprep.subr.bf16.mxu1 %v2089_v20  ;;  %v2173_v20 = vld [vmem:[%s2330_s22 + $0x428] ss:$16 sps:$4 sm:$0xff]  }
  0x66   : > { %1474 = vmatpush1.bf16.msra.mxu0 %v2084_v21  ;;  %v2178_v21 = vld [vmem:[%s2330_s22 + $0x24c] ss:$16 sps:$4 sm:$0xff]  }
  0x67   : > { %1515 = vmatpush1.bf16.msra.mxu1 %v2087_v22  ;;  %1475 = vmatprep.subr.bf16.mxu0 %v2092_v23  ;;  %v2181_v22 = vld [vmem:[%s2330_s22 + $0x44c] ss:$16 sps:$4 sm:$0xff]   ;;  %v2179_v23 = vld [vmem:[%s2330_s22 + $0x448] ss:$16 sps:$4 sm:$0xff]  }
  0x68   : > { %1516 = vmatprep.subr.bf16.mxu1 %v2095_v24  ;;  %v2184_v24 = vld [vmem:[%s2330_s22 + $0x26c] ss:$16 sps:$4 sm:$0xff]  }
  0x6a   : > { %1476 = vmatpush1.bf16.msra.mxu0 %v2090_v25  ;;  %v2187_v25 = vld [vmem:[%s2330_s22 + $0x46c] ss:$16 sps:$4 sm:$0xff]  }
  0x6b   : > { %1517 = vmatpush1.bf16.msra.mxu1 %v2093_v26  ;;  %1477 = vmatprep.subr.bf16.mxu0 %v2098_v27  ;;  %v2182_v26 = vld [vmem:[%s2330_s22 + $0x268] ss:$16 sps:$4 sm:$0xff]   ;;  %v2190_v27 = vld [vmem:[%s2330_s22 + $0x28c] ss:$16 sps:$4 sm:$0xff]  }
  0x6c   : > { %1518 = vmatprep.subr.bf16.mxu1 %v2101_v28  ;;  %v2193_v28 = vld [vmem:[%s2330_s22 + $0x48c] ss:$16 sps:$4 sm:$0xff]  }
  0x6e   : > { %1478 = vmatpush1.bf16.msra.mxu0 %v2096_v29  ;;  %v2188_v29 = vld [vmem:[%s2330_s22 + $0x288] ss:$16 sps:$4 sm:$0xff]  }
  0x6f   : > { %1519 = vmatpush1.bf16.msra.mxu1 %v2099_v30  ;;  %1479 = vmatprep.subr.bf16.mxu0 %v2104_v31  ;;  %v2191_v30 = vld [vmem:[%s2330_s22 + $0x488] ss:$16 sps:$4 sm:$0xff]   ;;  %v2196_v31 = vld [vmem:[%s2330_s22 + $0x2ac] ss:$16 sps:$4 sm:$0xff]  }
  0x70   : > { %1520 = vmatprep.subr.bf16.mxu1 %v2107_v32  ;;  %v2199_v32 = vld [vmem:[%s2330_s22 + $0x4ac] ss:$16 sps:$4 sm:$0xff]  }
  0x72   : > { %1480 = vmatpush1.bf16.msra.mxu0 %v2102_v34  ;;  %v2197_v34 = vld [vmem:[%s2330_s22 + $0x4a8] ss:$16 sps:$4 sm:$0xff]  }
  0x73   : > { %1521 = vmatpush1.bf16.msra.mxu1 %v2105_v36  ;;  %1481 = vmatprep.subr.bf16.mxu0 %v2110_v37  ;;  %v2205_v36 = vld [vmem:[%s2330_s22 + $0x4cc] ss:$16 sps:$4 sm:$0xff]   ;;  %v2200_v37 = vld [vmem:[%s2330_s22 + $0x2c8] ss:$16 sps:$4 sm:$0xff]  }
  0x74   : > { %1522 = vmatprep.subr.bf16.mxu1 %v2113_v38  ;;  %v2203_v38 = vld [vmem:[%s2330_s22 + $0x4c8] ss:$16 sps:$4 sm:$0xff]  }
  0x76   : > { %1482 = vmatpush1.bf16.msra.mxu0 %v2108_v39  ;;  %v2208_v39 = vld [vmem:[%s2330_s22 + $0x2ec] ss:$16 sps:$4 sm:$0xff]  }
  0x77   : > { %1523 = vmatpush1.bf16.msra.mxu1 %v2111_v40  ;;  %1483 = vmatprep.subr.bf16.mxu0 %v2116_v41  ;;  %v2211_v40 = vld [vmem:[%s2330_s22 + $0x4ec] ss:$16 sps:$4 sm:$0xff]   ;;  %v2206_v41 = vld [vmem:[%s2330_s22 + $0x2e8] ss:$16 sps:$4 sm:$0xff]  }
  0x78   : > { %1524 = vmatprep.subr.bf16.mxu1 %v2119_v42  ;;  %v2209_v42 = vld [vmem:[%s2330_s22 + $0x4e8] ss:$16 sps:$4 sm:$0xff]  }
  0x7a   : > { %1484 = vmatpush1.bf16.msra.mxu0 %v2114_v43  ;;  %v2214_v43 = vld [vmem:[%s2330_s22 + $0x30c] ss:$16 sps:$4 sm:$0xff]  }
  0x7b   : > { %1525 = vmatpush1.bf16.msra.mxu1 %v2117_v44  ;;  %1485 = vmatprep.subr.bf16.mxu0 %v2122_v45  ;;  %v2217_v44 = vld [vmem:[%s2330_s22 + $0x50c] ss:$16 sps:$4 sm:$0xff]   ;;  %v2212_v45 = vld [vmem:[%s2330_s22 + $0x308] ss:$16 sps:$4 sm:$0xff]  }
  0x7c   : > { %1526 = vmatprep.subr.bf16.mxu1 %v2125_v46  ;;  %v2215_v46 = vld [vmem:[%s2330_s22 + $0x508] ss:$16 sps:$4 sm:$0xff]  }
  0x7e   : > { %1486 = vmatpush1.bf16.msra.mxu0 %v2120_v47  ;;  %v2220_v47 = vld [vmem:[%s2330_s22 + $0x32c] ss:$16 sps:$4 sm:$0xff]  }
  0x7f   : > { %1527 = vmatpush1.bf16.msra.mxu1 %v2123_v48  ;;  %1487 = vmatprep.subr.bf16.mxu0 %v2128_v49  ;;  %v2223_v48 = vld [vmem:[%s2330_s22 + $0x52c] ss:$16 sps:$4 sm:$0xff]   ;;  %v2218_v49 = vld [vmem:[%s2330_s22 + $0x328] ss:$16 sps:$4 sm:$0xff]  }
  0x80   : > { %1528 = vmatprep.subr.bf16.mxu1 %v2131_v50  ;;  %v2221_v50 = vld [vmem:[%s2330_s22 + $0x528] ss:$16 sps:$4 sm:$0xff]  }
  0x82   : > { %1488 = vmatpush1.bf16.msra.mxu0 %v2126_v51  ;;  %v2226_v51 = vld [vmem:[%s2330_s22 + $0x34c] ss:$16 sps:$4 sm:$0xff]  }
  0x83   : > { %1529 = vmatpush1.bf16.msra.mxu1 %v2129_v53  ;;  %1489 = vmatprep.subr.bf16.mxu0 %v2134_v54  ;;  %v2229_v53 = vld [vmem:[%s2330_s22 + $0x54c] ss:$16 sps:$4 sm:$0xff]   ;;  %v2224_v54 = vld [vmem:[%s2330_s22 + $0x348] ss:$16 sps:$4 sm:$0xff]  }
  0x84   : > { %1530 = vmatprep.subr.bf16.mxu1 %v2137_v55  ;;  %v2227_v55 = vld [vmem:[%s2330_s22 + $0x548] ss:$16 sps:$4 sm:$0xff]  }
  0x86   : > { %1490 = vmatpush1.bf16.msra.mxu0 %v2132_v56  ;;  %v2232_v56 = vld [vmem:[%s2330_s22 + $0x36c] ss:$16 sps:$4 sm:$0xff]  }
  0x87   : > { %1531 = vmatpush1.bf16.msra.mxu1 %v2135_v57  ;;  %1491 = vmatprep.subr.bf16.mxu0 %v2140_v58  ;;  %v2235_v57 = vld [vmem:[%s2330_s22 + $0x56c] ss:$16 sps:$4 sm:$0xff]   ;;  %v2230_v58 = vld [vmem:[%s2330_s22 + $0x368] ss:$16 sps:$4 sm:$0xff]  }
  0x88   : > { %1532 = vmatprep.subr.bf16.mxu1 %v2143_v59  ;;  %v2233_v59 = vld [vmem:[%s2330_s22 + $0x568] ss:$16 sps:$4 sm:$0xff]  }
  0x8a   : > { %1492 = vmatpush1.bf16.msra.mxu0 %v2138_v60  ;;  %v2238_v60 = vld [vmem:[%s2330_s22 + $0x38c] ss:$16 sps:$4 sm:$0xff]  }
  0x8b   : > { %1533 = vmatpush1.bf16.msra.mxu1 %v2141_v61  ;;  %1493 = vmatprep.subr.bf16.mxu0 %v2146_v62  ;;  %v2241_v61 = vld [vmem:[%s2330_s22 + $0x58c] ss:$16 sps:$4 sm:$0xff]   ;;  %v2236_v62 = vld [vmem:[%s2330_s22 + $0x388] ss:$16 sps:$4 sm:$0xff]  }
  0x8c   : > { %1534 = vmatprep.subr.bf16.mxu1 %v2149_v63  ;;  %v2239_v63 = vld [vmem:[%s2330_s22 + $0x588] ss:$16 sps:$4 sm:$0xff]  }
  0x8e   : > { %1494 = vmatpush1.bf16.msra.mxu0 %v2144_v0  ;;  %v2244_v0 = vld [vmem:[%s2330_s22 + $0x3ac] ss:$16 sps:$4 sm:$0xff]  }
  0x8f   : > { %1535 = vmatpush1.bf16.msra.mxu1 %v2147_v1  ;;  %1495 = vmatprep.subr.bf16.mxu0 %v2152_v2  ;;  %v2247_v1 = vld [vmem:[%s2330_s22 + $0x5ac] ss:$16 sps:$4 sm:$0xff]   ;;  %v2242_v2 = vld [vmem:[%s2330_s22 + $0x3a8] ss:$16 sps:$4 sm:$0xff]  }
  0x90   : > { %1536 = vmatprep.subr.bf16.mxu1 %v2155_v3  ;;  %v2245_v3 = vld [vmem:[%s2330_s22 + $0x5a8] ss:$16 sps:$4 sm:$0xff]  }
  0x92   : > { %1496 = vmatpush1.bf16.msra.mxu0 %v2150_v4  ;;  %v2250_v4 = vld [vmem:[%s2330_s22 + $0x3cc] ss:$16 sps:$4 sm:$0xff]  }
  0x93   : > { %1537 = vmatpush1.bf16.msra.mxu1 %v2153_v5  ;;  %1497 = vmatprep.subr.bf16.mxu0 %v2158_v6  ;;  %v2253_v5 = vld [vmem:[%s2330_s22 + $0x5cc] ss:$16 sps:$4 sm:$0xff]   ;;  %v2248_v6 = vld [vmem:[%s2330_s22 + $0x3c8] ss:$16 sps:$4 sm:$0xff]  }
  0x94   : > { %1538 = vmatprep.subr.bf16.mxu1 %v2161_v9  ;;  %v2251_v9 = vld [vmem:[%s2330_s22 + $0x5c8] ss:$16 sps:$4 sm:$0xff]  }
  0x96   : > { %1498 = vmatpush1.bf16.msra.mxu0 %v2156_v10  ;;  %v2256_v10 = vld [vmem:[%s2330_s22 + $0x3ec] ss:$16 sps:$4 sm:$0xff]  }
  0x97   : > { %1539 = vmatpush1.bf16.msra.mxu1 %v2159_v11  ;;  %1549 = vmatprep.subr.bf16.mxu0 %v2166_v12  ;;  %v2259_v11 = vld [vmem:[%s2330_s22 + $0x5ec] ss:$16 sps:$4 sm:$0xff]   ;;  %v2254_v12 = vld [vmem:[%s2330_s22 + $0x3e8] ss:$16 sps:$4 sm:$0xff]  }
  0x98   : > { %1590 = vmatprep.subr.bf16.mxu1 %v2169_v13  ;;  %v2257_v13 = vld [vmem:[%s2330_s22 + $0x5e8] ss:$16 sps:$4 sm:$0xff]  }
  0x99   : > { %1500 = vmatmul.mubr.bf16.vlgmr.msra.gmra.mrb[4].mxu0 %v2488_v14 }
  0x9a   : > { %1541 = vmatmul.mubr.bf16.vlgmr.msra.gmra.mrb[4].mxu1 %v2407_v7  ;;  %1550 = vmatpush1.bf16.msra.mxu0 %v2164_v15  ;;  %v2176_v7 = vld [vmem:[%s2330_s22 + $0x248] ss:$16 sps:$4 sm:$0xff]  }
  0x9b   : > { %1591 = vmatpush1.bf16.msra.mxu1 %v2167_v16  ;;  %1551 = vmatprep.subr.bf16.mxu0 %v2172_v17 }
  0x9c   : > { %1592 = vmatprep.subr.bf16.mxu1 %v2175_v18  ;;  %1581 = vmatprep.mubr.bf16.mxu0 %v2385_v52  ;;  %v2185_v52 = vld [vmem:[%s2330_s22 + $0x468] ss:$16 sps:$4 sm:$0xff]  }
  0x9d   : > { %1622 = vmatprep.mubr.bf16.mxu1 %v2444_v35  ;;  %v2202_v35 = vld [vmem:[%s2330_s22 + $0x2cc] ss:$16 sps:$4 sm:$0xff]  }
  0x9e   : > { %1552 = vmatpush1.bf16.msra.mxu0 %v2170_v19 }
  0x9f   : > { %1593 = vmatpush1.bf16.msra.mxu1 %v2173_v20  ;;  %1553 = vmatprep.subr.bf16.mxu0 %v2178_v21 }
  0xa0   : > { %1594 = vmatprep.subr.bf16.mxu1 %v2181_v22 }
  0xa2   : > { %1554 = vmatpush1.bf16.msra.mxu0 %v2176_v7 }
  0xa3   : > { %1595 = vmatpush1.bf16.msra.mxu1 %v2179_v23  ;;  %1555 = vmatprep.subr.bf16.mxu0 %v2184_v24  ;;  %v205_v24 = vld [vmem:[#allocation2] sm:$0xff] }
  0xa4   : > { %1596 = vmatprep.subr.bf16.mxu1 %v2187_v25 }
  0xa6   : > { %1556 = vmatpush1.bf16.msra.mxu0 %v2182_v26 }
  0xa7   : > { %1597 = vmatpush1.bf16.msra.mxu1 %v2185_v52  ;;  %1557 = vmatprep.subr.bf16.mxu0 %v2190_v27  ;;  %v206_v27 = vld [vmem:[#allocation2 + $0x8] sm:$0xff] }
  0xa8   : > { %1598 = vmatprep.subr.bf16.mxu1 %v2193_v28 }
  0xaa   : > { %1558 = vmatpush1.bf16.msra.mxu0 %v2188_v29 }
  0xab   : > { %1599 = vmatpush1.bf16.msra.mxu1 %v2191_v30  ;;  %1559 = vmatprep.subr.bf16.mxu0 %v2196_v31 }
  0xac   : > { %1600 = vmatprep.subr.bf16.mxu1 %v2199_v32 }
  0xae   : > { %1560 = vmatpush1.bf16.msra.mxu0 %v2194_v33 }
  0xaf   : > { %1601 = vmatpush1.bf16.msra.mxu1 %v2197_v34  ;;  %1561 = vmatprep.subr.bf16.mxu0 %v2202_v35 }
  0xb0   : > { %1602 = vmatprep.subr.bf16.mxu1 %v2205_v36 }
  0xb2   : > { %1562 = vmatpush1.bf16.msra.mxu0 %v2200_v37 }
  0xb3   : > { %1603 = vmatpush1.bf16.msra.mxu1 %v2203_v38  ;;  %1563 = vmatprep.subr.bf16.mxu0 %v2208_v39 }
  0xb4   : > { %1604 = vmatprep.subr.bf16.mxu1 %v2211_v40  ;;  %v207_v40 = vld [vmem:[#allocation2 + $0x10] sm:$0xff] }
  0xb6   : > { %1564 = vmatpush1.bf16.msra.mxu0 %v2206_v41 }
  0xb7   : > { %1605 = vmatpush1.bf16.msra.mxu1 %v2209_v42  ;;  %1565 = vmatprep.subr.bf16.mxu0 %v2214_v43 }
  0xb8   : > { %1606 = vmatprep.subr.bf16.mxu1 %v2217_v44 }
  0xba   : > { %1566 = vmatpush1.bf16.msra.mxu0 %v2212_v45  ;;  %v208_v45 = vld [vmem:[#allocation2 + $0x18] sm:$0xff] }
  0xbb   : > { %1607 = vmatpush1.bf16.msra.mxu1 %v2215_v46  ;;  %1567 = vmatprep.subr.bf16.mxu0 %v2220_v47 }
  0xbc   : > { %1608 = vmatprep.subr.bf16.mxu1 %v2223_v48 }
  0xbe   : > { %1568 = vmatpush1.bf16.msra.mxu0 %v2218_v49 }
  0xbf   : > { %1609 = vmatpush1.bf16.msra.mxu1 %v2221_v50  ;;  %1569 = vmatprep.subr.bf16.mxu0 %v2226_v51 }
  0xc0   : > { %1610 = vmatprep.subr.bf16.mxu1 %v2229_v53 }
  0xc2   : > { %1570 = vmatpush1.bf16.msra.mxu0 %v2224_v54 }
  0xc3   : > { %1611 = vmatpush1.bf16.msra.mxu1 %v2227_v55  ;;  %1571 = vmatprep.subr.bf16.mxu0 %v2232_v56 }
  0xc4   : > { %1612 = vmatprep.subr.bf16.mxu1 %v2235_v57 }
  0xc6   : > { %1572 = vmatpush1.bf16.msra.mxu0 %v2230_v58 }
  0xc7   : > { %1613 = vmatpush1.bf16.msra.mxu1 %v2233_v59  ;;  %1573 = vmatprep.subr.bf16.mxu0 %v2238_v60 }
  0xc8   : > { %1614 = vmatprep.subr.bf16.mxu1 %v2241_v61 }
  0xca   : > { %1574 = vmatpush1.bf16.msra.mxu0 %v2236_v62 }
  0xcb   : > { %1615 = vmatpush1.bf16.msra.mxu1 %v2239_v63  ;;  %1575 = vmatprep.subr.bf16.mxu0 %v2244_v0 }
  0xcc   : > { %1616 = vmatprep.subr.bf16.mxu1 %v2247_v1 }
  0xce   : > { %1576 = vmatpush1.bf16.msra.mxu0 %v2242_v2 }
  0xcf   : > { %1617 = vmatpush1.bf16.msra.mxu1 %v2245_v3  ;;  %1577 = vmatprep.subr.bf16.mxu0 %v2250_v4 }
  0xd0   : > { %1618 = vmatprep.subr.bf16.mxu1 %v2253_v5 }
  0xd2   : > { %1578 = vmatpush1.bf16.msra.mxu0 %v2248_v6 }
  0xd3   : > { %1619 = vmatpush1.bf16.msra.mxu1 %v2251_v9  ;;  %1579 = vmatprep.subr.bf16.mxu0 %v2256_v10 }
  0xd4   : > { %1620 = vmatprep.subr.bf16.mxu1 %v2259_v11 }
  0xd6   : > { %1580 = vmatpush1.bf16.msra.mxu0 %v2254_v12 }
  0xd7   : > { %1621 = vmatpush1.bf16.msra.mxu1 %v2257_v13 }
  0xd9   : > { %1582 = vmatmul.mubr.bf16.vlgmr.msra.gmra.mrb[8].mxu0 %v2409_v8 }
  0xda   : > { %1623 = vmatmul.mubr.bf16.vlgmr.msra.gmra.mrb[8].mxu1 %v2488_v14 }
 0x12c   : > { %v1419_v15 = vpop.f32.mrb[0].mxu0 }
 0x12d   : > { %v1460_v16 = vpop.f32.mrb[0].mxu1  ;;  %v1421_v18 = vpop.f32.mrb[1].mxu0 }
 0x12e   : > { %v1461_v17 = vadd.f32 %v1460_v16, %v1419_v15  ;;  %v1462_v19 = vpop.f32.mrb[1].mxu1  ;;  %v1423_v21 = vpop.f32.mrb[2].mxu0 }
 0x12f   : > { %v1463_v20 = vadd.f32 %v1462_v19, %v1421_v18  ;;  %v1464_v22 = vpop.f32.mrb[2].mxu1  ;;  %v1424_v7 = vpop.f32.mrb[3].mxu0 }
 0x130   : > { %v1465_v23 = vpop.f32.mrb[3].mxu1 }
 0x16c   : > { %v1501_v25 = vpop.f32.mrb[4].mxu0 }
 0x16d   : > { %v1542_v26 = vpop.f32.mrb[4].mxu1  ;;  %v1502_v52 = vadd.f32 %v1501_v25, %v1461_v17  ;;  %v1503_v28 = vpop.f32.mrb[5].mxu0 }
 0x16e   : > { %v1544_v29 = vpop.f32.mrb[5].mxu1  ;;  %v1504_v8 = vadd.f32 %v1503_v28, %v1463_v20  ;;  %v1505_v30 = vpop.f32.mrb[6].mxu0 }
 0x16f   : > { %v1546_v14 = vpop.f32.mrb[6].mxu1  ;;  %v1631_v31 = vadd.f32 %v1502_v52, %v205_v24  ;;  %v1506_v32 = vpop.f32.mrb[7].mxu0 }
 0x170   : > { %v1547_v33 = vpop.f32.mrb[7].mxu1  ;;  %v1632_v34 = vadd.f32 %v1504_v8, %v206_v27 }
 0x171   : > { %1635 = vst [vmem:[#allocation2] sm:$0xff] %v1631_v31 }
 0x172   : > { %1636 = vst [vmem:[#allocation2 + $0x8] sm:$0xff] %v1632_v34 }
 0x178   : > { %v1643_v51 = vld [vmem:[#allocation2] sm:$0xff] (!%p1936_p7) }
 0x179   : > { %v1644_v53 = vld [vmem:[#allocation2 + $0x8] sm:$0xff] (!%p1936_p7)  ;;  %1647 = vst [vmem:[%s2582_s2] sm:$0xff] (!%p1936_p7), %v1643_v51 }
 0x17a   : > { %1648 = vst [vmem:[%s2582_s2 + $0x8] sm:$0xff] (!%p1936_p7), %v1644_v53 }
 0x1ac   : > { %v1583_v35 = vpop.f32.mrb[8].mxu0 }
 0x1ad   : > { %v1624_v36 = vpop.f32.mrb[8].mxu1  ;;  %v1584_v37 = vadd.f32 %v1583_v35, %v1542_v26  ;;  %v1585_v38 = vpop.f32.mrb[9].mxu0 }
 0x1ae   : > { %v1626_v39 = vpop.f32.mrb[9].mxu1  ;;  %v1586_v41 = vadd.f32 %v1585_v38, %v1544_v29  ;;  %v1587_v42 = vpop.f32.mrb[10].mxu0  ;;  %1642 = sbr.rel (%p1936_p7) target bundleno = 445 (0x1bd), region = 36 }
 0x1af   : > { %v1628_v43 = vpop.f32.mrb[10].mxu1  ;;  %v1625_v44 = vadd.f32 %v1624_v36, %v1584_v37  ;;  %v1588_v46 = vpop.f32.mrb[11].mxu0 }
 0x1b0   : > { %v1629_v47 = vpop.f32.mrb[11].mxu1  ;;  %v1627_v48 = vadd.f32 %v1626_v39, %v1586_v41 }
 0x1b1   : > { %v1633_v49 = vadd.f32 %v1625_v44, %v207_v40 }
 0x1b2   : > { %v1634_v50 = vadd.f32 %v1627_v48, %v208_v45 }
 0x1b3   : > { %1637 = vst [vmem:[#allocation2 + $0x10] sm:$0xff] %v1633_v49 }
 0x1b4   : > { %1638 = vst [vmem:[#allocation2 + $0x18] sm:$0xff] %v1634_v50 }
 0x1ba   : > { %v1645_v54 = vld [vmem:[#allocation2 + $0x10] sm:$0xff] }
 0x1bb   : > { %1649 = vst [vmem:[%s2582_s2 + $0x10] sm:$0xff] %v1645_v54  ;;  %v1646_v55 = vld [vmem:[#allocation2 + $0x18] sm:$0xff] }
 0x1bc   : > { %1650 = vst [vmem:[%s2582_s2 + $0x18] sm:$0xff] %v1646_v55 }
 0x1bd PF: > { %s12_s11 = sadd.s32 1, %s2282_s11   ;;  %s2583_s9 = smov %s2278_s10 }
 0x1be   : > { %p9_p8 = scmp.ge.s32.totalorder %s12_s11, 8   ;;  %s2584_s10 = smov %s2586_s12 }
 0x1c0   :  { %11 = sbr.rel (!%p9_p8) target bundleno = 2 (0x2), region = 69 }

</bundles_post_ra>
